<compile_context>
chip_gen: v6e
topology: v6e:2x2x1
jax: 0.10.0
libtpu: 0.0.40
codegen_flags: <defaults>
</compile_context>

<pallas_src>
import jax
import jax.numpy as jnp
import numpy as np
from jax.experimental import pallas as pl
from jax.experimental.pallas import tpu as pltpu

# ----------------------------- hparams (small, synthetic) -----------------------------
N_MELS = 16
RES_ENC_FILTERS = [8, 8, 16]          # K = 3 conv layers
GRU_DIM = 32                           # res_enc_gru_dim (even)
N_TOKENS = 8                           # res_enc_n_tokens
EMBED_DIM = 16                         # res_enc_embed_dim
BN_EPS = 1e-5
LRELU_SLOPE = 0.05

_PRECISION = jax.lax.Precision.HIGHEST


def _calculate_channels(L, kernel_size, stride, pad, n_convs):
    for _ in range(n_convs):
        L = (L - kernel_size + 2 * pad) // stride + 1
    return L


def _conv_out(L):  # 3x3, stride 2, pad 1
    return (L - 3 + 2) // 2 + 1


def _dot(a, b):
    return jnp.dot(a, b, precision=_PRECISION, preferred_element_type=jnp.float32)


# ----------------------------- fused forward kernel -----------------------------
def _ref_encoder_kernel(x_ref, m1_ref, b1_ref, m2_ref, b2_ref, m3_ref, b3_ref,
                        wih_ref, bih_ref, whh_ref, bhh_ref,
                        wpost_ref, bpost_ref, wemb_ref, bemb_ref, eps_ref,
                        embed_ref, zr_ref, mu_ref, logvar_ref, post_ref):
    def lrelu(v):
        return jnp.where(v >= 0.0, v, LRELU_SLOPE * v)

    def conv_rows(rows_in, m_ref, b_ref, hout, pad_out):
        """One conv layer.  rows_in: list of padded-row values [1, (Win+2)*Cin]
        (zero rows at the top/bottom).  m_ref: [3, (Win+2)*Cin, Nout] per-kh GEMMs
        (stride-2 column selection + BN + bias/zero-padding already folded in)."""
        bias = b_ref[...]                        # [1, Nout]
        ms = [m_ref[kh] for kh in range(3)]      # hoisted weight loads
        rows_out = []
        for ho in range(hout):                   # small static loop (<= 8 iterations)
            acc = bias
            for kh in range(3):
                acc = acc + _dot(rows_in[2 * ho + kh], ms[kh])
            rows_out.append(lrelu(acc))          # lrelu(0)=0 keeps folded padding zero
        if pad_out:
            z = jnp.zeros_like(rows_out[0])
            rows_out = [z] + rows_out + [z]
        return rows_out

    # ---- input image rows (already zero-padded host-side): [T0+2] rows of [1, F0+2] ----
    t_pad = x_ref.shape[0]
    rows0 = [x_ref[r] for r in range(t_pad)]

    h1 = _conv_out(t_pad - 2)
    h2 = _conv_out(h1)
    h3 = _conv_out(h2)

    # ---- conv1 / conv2 (outputs in padded (width, channel) flat layout) ----
    rows1 = conv_rows(rows0, m1_ref, b1_ref, h1, True)
    rows2 = conv_rows(rows1, m2_ref, b2_ref, h2, True)
    # ---- conv3 (output directly in GRU feature order c*W3 + w, unpadded) ----
    feats = conv_rows(rows2, m3_ref, b3_ref, h3, False)     # h3 rows of [1, C3*W3]

    # ---- GRU recurrence (gate order r,z,n; h0 = 0) ----
    wih = wih_ref[...]
    bih = bih_ref[...]
    whh = whh_ref[...]
    bhh = bhh_ref[...]
    hdim = whh.shape[0]
    h = jnp.zeros((1, hdim), jnp.float32)
    for t in range(h3):                          # static, tiny trip count
        xg = _dot(feats[t], wih) + bih                               # [1, 3H]
        hg = _dot(h, whh) + bhh                                      # [1, 3H]
        r = jax.nn.sigmoid(xg[:, :hdim] + hg[:, :hdim])
        z = jax.nn.sigmoid(xg[:, hdim:2 * hdim] + hg[:, hdim:2 * hdim])
        ng = jnp.tanh(xg[:, 2 * hdim:] + r * hg[:, 2 * hdim:])       # b_hn stays inside r*(.)
        h = (1.0 - z) * ng + z * h

    # ---- post_fc -> (mu, logvar) -> reparameterize(eps) -> embed_fc ----
    post = _dot(h, wpost_ref[...]) + bpost_ref[...]                  # [1, 2*n_tokens]
    n_tok = mu_ref.shape[-1]
    mu = post[:, :n_tok]
    logvar = post[:, n_tok:]
    zr = eps_ref[...] * jnp.exp(0.5 * logvar) + mu
    embed = _dot(zr, wemb_ref[...]) + bemb_ref[...]

    post_ref[...] = post
    mu_ref[...] = mu
    logvar_ref[...] = logvar
    zr_ref[...] = zr
    embed_ref[...] = embed


# ----------------------------- host-side prep / wrapper -----------------------------
def _full_spec(a):
    nd = a.ndim
    return pl.BlockSpec(tuple(a.shape), lambda i, _nd=nd: (0,) * _nd)


def _batch_spec(tail):
    nt = len(tail)
    return pl.BlockSpec((None,) + tuple(tail), lambda i, _nt=nt: (i,) + (0,) * _nt)


def _lowered_conv_weights(p, win, wout, pad_out):
    """Fold eval-mode BatchNorm + conv bias into the conv, and lower the 3x3/stride-2/pad-1 conv
    over the width axis into three per-kh GEMM matrices acting on flattened (width, channel) rows.

    pad_out=True : output columns use the padded layout [(wout+2)*cout] with zero pad columns,
                   ready to be consumed by the next conv layer.
    pad_out=False: output columns use (channel, width) order [cout*wout] (the GRU feature order).
    """
    s = p['gamma'] * jax.lax.rsqrt(p['var'] + BN_EPS)                 # [Cout]
    w = (p['w'] * s[:, None, None, None]).astype(jnp.float32)         # [Cout, Cin, 3, 3]
    bias = ((p['b'] - p['mean']) * s + p['beta']).astype(jnp.float32)  # [Cout]
    cout, cin = w.shape[0], w.shape[1]
    w_k = jnp.transpose(w, (2, 3, 1, 0))                              # [kh, kw, Cin, Cout]

    winp = win + 2
    sel = np.zeros((3, winp, wout), np.float32)                       # sel[kw, w_in, w_out]
    for kw in range(3):
        for wo in range(wout):
            sel[kw, 2 * wo + kw, wo] = 1.0                            # stride-2 column selection

    if pad_out:
        m = jnp.einsum('kiw,hkcd->hicwd', sel, w_k)                   # [kh, Winp, Cin, Wout, Cout]
        m = jnp.pad(m, ((0, 0), (0, 0), (0, 0), (1, 1), (0, 0)))      # zero pad columns
        m = m.reshape(3, winp * cin, (wout + 2) * cout)
        b = jnp.pad(jnp.broadcast_to(bias[None, :], (wout, cout)), ((1, 1), (0, 0)))
        b = b.reshape(1, (wout + 2) * cout)
    else:
        m = jnp.einsum('kiw,hkcd->hicdw', sel, w_k)                   # [kh, Winp, Cin, Cout, Wout]
        m = m.reshape(3, winp * cin, cout * wout)
        b = jnp.broadcast_to(bias[:, None], (cout, wout)).reshape(1, cout * wout)
    return m.astype(jnp.float32), b.astype(jnp.float32)


def reference_encoder_forward(inputs, params, eps):
    """inputs: [B, T_frames, n_mels] -> (embed, zr, mu, logvar, post_out)."""
    B = inputs.shape[0]
    x = inputs.reshape(B, -1, N_MELS).astype(jnp.float32)    # matches .view(B, 1, -1, n_mels)
    T0, F0 = x.shape[1], x.shape[2]
    xp = jnp.pad(x, ((0, 0), (1, 1), (1, 1)))[:, :, None, :]  # [B, T0+2, 1, F0+2] zero-padded

    W1 = _conv_out(F0)
    W2 = _conv_out(W1)
    W3 = _conv_out(W2)
    Hh = GRU_DIM
    n = N_TOKENS

    m1, b1 = _lowered_conv_weights(params['convs'][0], F0, W1, True)
    m2, b2 = _lowered_conv_weights(params['convs'][1], W1, W2, True)
    m3, b3 = _lowered_conv_weights(params['convs'][2], W2, W3, False)   # GRU feature order

    gp = params['gru']
    wih = gp['weight_ih'].T.astype(jnp.float32)                        # [C3*W3, 3H]
    bih = gp['bias_ih'].reshape(1, 3 * Hh).astype(jnp.float32)
    whh = gp['weight_hh'].T.astype(jnp.float32)                        # [H, 3H]
    bhh = gp['bias_hh'].reshape(1, 3 * Hh).astype(jnp.float32)

    pp = params['post']
    wpost = pp['w_post'].T.astype(jnp.float32)                         # [H, 2n]
    bpost = pp['b_post'].reshape(1, 2 * n).astype(jnp.float32)
    wemb = pp['w_embed'].T.astype(jnp.float32)                         # [n, E]
    bemb = pp['b_embed'].reshape(1, EMBED_DIM).astype(jnp.float32)

    eps3 = eps[:, None, :].astype(jnp.float32)                         # [B, 1, n]

    args = (xp, m1, b1, m2, b2, m3, b3, wih, bih, whh, bhh,
            wpost, bpost, wemb, bemb, eps3)
    in_specs = ([_batch_spec((T0 + 2, 1, F0 + 2))]
                + [_full_spec(a) for a in args[1:15]]
                + [_batch_spec((1, n))])

    out_shapes = (
        jax.ShapeDtypeStruct((B, 1, EMBED_DIM), jnp.float32),   # embed
        jax.ShapeDtypeStruct((B, 1, n), jnp.float32),           # zr
        jax.ShapeDtypeStruct((B, 1, n), jnp.float32),           # mu
        jax.ShapeDtypeStruct((B, 1, n), jnp.float32),           # logvar
        jax.ShapeDtypeStruct((B, 1, 2 * n), jnp.float32),       # post_fc output
    )
    out_specs = (
        _batch_spec((1, EMBED_DIM)),
        _batch_spec((1, n)),
        _batch_spec((1, n)),
        _batch_spec((1, n)),
        _batch_spec((1, 2 * n)),
    )

    embed, zr, mu, logvar, post_out = pl.pallas_call(
        _ref_encoder_kernel,
        out_shape=out_shapes,
        grid=(B,),
        in_specs=in_specs,
        out_specs=out_specs,
        compiler_params=pltpu.CompilerParams(dimension_semantics=("parallel",)),
    )(*args)

    return (embed.reshape(B, EMBED_DIM), zr.reshape(B, n), mu.reshape(B, n),
            logvar.reshape(B, n), post_out.reshape(B, 2 * n))


# ----------------------------- deterministic parameter init -----------------------------
def init_params(key):
    # TODO(synk): BatchNorm uses eval-mode running statistics (folded into the conv GEMM);
    #             training-mode batch statistics are not reproduced.
    keys = jax.random.split(key, 32)
    ki = iter(keys)
    params = {'convs': []}
    filters = [1] + RES_ENC_FILTERS
    for i in range(len(RES_ENC_FILTERS)):
        cin, cout = filters[i], filters[i + 1]
        params['convs'].append(dict(
            w=0.1 * jax.random.normal(next(ki), (cout, cin, 3, 3), jnp.float32),
            b=0.1 * jax.random.normal(next(ki), (cout,), jnp.float32),
            gamma=1.0 + 0.1 * jax.random.normal(next(ki), (cout,), jnp.float32),
            beta=0.1 * jax.random.normal(next(ki), (cout,), jnp.float32),
            mean=0.1 * jax.random.normal(next(ki), (cout,), jnp.float32),
            var=1.0 + 0.1 * jax.random.uniform(next(ki), (cout,), jnp.float32),
        ))
    D_in = RES_ENC_FILTERS[-1] * _calculate_channels(N_MELS, 3, 2, 1, len(RES_ENC_FILTERS))
    H = GRU_DIM
    params['gru'] = dict(
        weight_ih=0.1 * jax.random.normal(next(ki), (3 * H, D_in), jnp.float32),
        weight_hh=0.1 * jax.random.normal(next(ki), (3 * H, H), jnp.float32),
        bias_ih=0.1 * jax.random.normal(next(ki), (3 * H,), jnp.float32),
        bias_hh=0.1 * jax.random.normal(next(ki), (3 * H,), jnp.float32),
    )
    params['post'] = dict(
        w_post=0.1 * jax.random.normal(next(ki), (2 * N_TOKENS, H), jnp.float32),
        b_post=0.1 * jax.random.normal(next(ki), (2 * N_TOKENS,), jnp.float32),
        w_embed=0.1 * jax.random.normal(next(ki), (EMBED_DIM, N_TOKENS), jnp.float32),
        b_embed=0.1 * jax.random.normal(next(ki), (EMBED_DIM,), jnp.float32),
    )
    return params


if __name__ == "__main__":
    key = jax.random.PRNGKey(0)
    k_param, k_input, k_eps = jax.random.split(key, 3)

    B, T_FRAMES = 2, 16
    params = init_params(k_param)
    mels = jax.random.normal(k_input, (B, T_FRAMES, N_MELS), jnp.float32)
    # eps for reparameterize (rand_sampling=True); torch.randn_like replaced by explicit input.
    eps = jax.random.normal(k_eps, (B, N_TOKENS), jnp.float32)

    fwd = jax.jit(reference_encoder_forward)
    outputs = fwd(mels, params, eps)
    jax.block_until_ready(outputs)

    embed, zr, mu, logvar, post_out = outputs
    assert embed.shape == (B, EMBED_DIM)
    assert zr.shape == (B, N_TOKENS)
    assert mu.shape == (B, N_TOKENS)
    assert logvar.shape == (B, N_TOKENS)
    assert post_out.shape == (B, 2 * N_TOKENS)
    for o in outputs:
        assert bool(jnp.all(jnp.isfinite(o)))
    print("KERNEL_OK")
</pallas_src>

<mosaic_0001>
module attributes {stable_mosaic.version = 11 : i64} {
  func.func @_ref_encoder_kernel(%arg0: i32, %arg1: memref<1x18x1x18xf32, #tpu.memory_space<vmem>>, %arg2: memref<3x18x80xf32, #tpu.memory_space<vmem>>, %arg3: memref<1x80xf32, #tpu.memory_space<vmem>>, %arg4: memref<3x80x48xf32, #tpu.memory_space<vmem>>, %arg5: memref<1x48xf32, #tpu.memory_space<vmem>>, %arg6: memref<3x48x32xf32, #tpu.memory_space<vmem>>, %arg7: memref<1x32xf32, #tpu.memory_space<vmem>>, %arg8: memref<32x96xf32, #tpu.memory_space<vmem>>, %arg9: memref<1x96xf32, #tpu.memory_space<vmem>>, %arg10: memref<32x96xf32, #tpu.memory_space<vmem>>, %arg11: memref<1x96xf32, #tpu.memory_space<vmem>>, %arg12: memref<32x16xf32, #tpu.memory_space<vmem>>, %arg13: memref<1x16xf32, #tpu.memory_space<vmem>>, %arg14: memref<8x16xf32, #tpu.memory_space<vmem>>, %arg15: memref<1x16xf32, #tpu.memory_space<vmem>>, %arg16: memref<1x1x8xf32, #tpu.memory_space<vmem>>, %arg17: memref<1x1x16xf32, #tpu.memory_space<vmem>>, %arg18: memref<1x1x8xf32, #tpu.memory_space<vmem>>, %arg19: memref<1x1x8xf32, #tpu.memory_space<vmem>>, %arg20: memref<1x1x8xf32, #tpu.memory_space<vmem>>, %arg21: memref<1x1x16xf32, #tpu.memory_space<vmem>>) attributes {dimension_semantics = [#tpu.dimension_semantics<parallel>], iteration_bounds = array<i64: 2>, scalar_prefetch = 0 : i64, scratch_operands = 0 : i64, tpu.core_type = #tpu.core_type<tc>, window_params = [{transform_indices = @transform_0, window_bounds = array<i64: 1, 18, 1, 18>}, {pipeline_mode = #tpu.pipeline_mode<synchronous>, transform_indices = @transform_1, window_bounds = array<i64: 3, 18, 80>}, {pipeline_mode = #tpu.pipeline_mode<synchronous>, transform_indices = @transform_2, window_bounds = array<i64: 1, 80>}, {pipeline_mode = #tpu.pipeline_mode<synchronous>, transform_indices = @transform_3, window_bounds = array<i64: 3, 80, 48>}, {pipeline_mode = #tpu.pipeline_mode<synchronous>, transform_indices = @transform_4, window_bounds = array<i64: 1, 48>}, {pipeline_mode = #tpu.pipeline_mode<synchronous>, transform_indices = @transform_5, window_bounds = array<i64: 3, 48, 32>}, {pipeline_mode = #tpu.pipeline_mode<synchronous>, transform_indices = @transform_6, window_bounds = array<i64: 1, 32>}, {pipeline_mode = #tpu.pipeline_mode<synchronous>, transform_indices = @transform_7, window_bounds = array<i64: 32, 96>}, {pipeline_mode = #tpu.pipeline_mode<synchronous>, transform_indices = @transform_8, window_bounds = array<i64: 1, 96>}, {pipeline_mode = #tpu.pipeline_mode<synchronous>, transform_indices = @transform_9, window_bounds = array<i64: 32, 96>}, {pipeline_mode = #tpu.pipeline_mode<synchronous>, transform_indices = @transform_10, window_bounds = array<i64: 1, 96>}, {pipeline_mode = #tpu.pipeline_mode<synchronous>, transform_indices = @transform_11, window_bounds = array<i64: 32, 16>}, {pipeline_mode = #tpu.pipeline_mode<synchronous>, transform_indices = @transform_12, window_bounds = array<i64: 1, 16>}, {pipeline_mode = #tpu.pipeline_mode<synchronous>, transform_indices = @transform_13, window_bounds = array<i64: 8, 16>}, {pipeline_mode = #tpu.pipeline_mode<synchronous>, transform_indices = @transform_14, window_bounds = array<i64: 1, 16>}, {transform_indices = @transform_15, window_bounds = array<i64: 1, 1, 8>}, {transform_indices = @transform_16, window_bounds = array<i64: 1, 1, 16>}, {transform_indices = @transform_17, window_bounds = array<i64: 1, 1, 8>}, {transform_indices = @transform_18, window_bounds = array<i64: 1, 1, 8>}, {transform_indices = @transform_19, window_bounds = array<i64: 1, 1, 8>}, {transform_indices = @transform_20, window_bounds = array<i64: 1, 1, 16>}]} {
    %c0 = arith.constant 0 : index
    %c0_0 = arith.constant 0 : index
    %c0_1 = arith.constant 0 : index
    %c0_2 = arith.constant 0 : index
    %0 = vector.load %arg1[%c0, %c0_0, %c0_1, %c0_2] : memref<1x18x1x18xf32, #tpu.memory_space<vmem>>, vector<1x1x1x18xf32>
    %1 = vector.shape_cast %0 : vector<1x1x1x18xf32> to vector<1x18xf32>
    %c0_3 = arith.constant 0 : index
    %c1 = arith.constant 1 : index
    %c0_4 = arith.constant 0 : index
    %c0_5 = arith.constant 0 : index
    %2 = vector.load %arg1[%c0_3, %c1, %c0_4, %c0_5] : memref<1x18x1x18xf32, #tpu.memory_space<vmem>>, vector<1x1x1x18xf32>
    %3 = vector.shape_cast %2 : vector<1x1x1x18xf32> to vector<1x18xf32>
    %c0_6 = arith.constant 0 : index
    %c2 = arith.constant 2 : index
    %c0_7 = arith.constant 0 : index
    %c0_8 = arith.constant 0 : index
    %4 = vector.load %arg1[%c0_6, %c2, %c0_7, %c0_8] : memref<1x18x1x18xf32, #tpu.memory_space<vmem>>, vector<1x1x1x18xf32>
    %5 = vector.shape_cast %4 : vector<1x1x1x18xf32> to vector<1x18xf32>
    %c0_9 = arith.constant 0 : index
    %c3 = arith.constant 3 : index
    %c0_10 = arith.constant 0 : index
    %c0_11 = arith.constant 0 : index
    %6 = vector.load %arg1[%c0_9, %c3, %c0_10, %c0_11] : memref<1x18x1x18xf32, #tpu.memory_space<vmem>>, vector<1x1x1x18xf32>
    %7 = vector.shape_cast %6 : vector<1x1x1x18xf32> to vector<1x18xf32>
    %c0_12 = arith.constant 0 : index
    %c4 = arith.constant 4 : index
    %c0_13 = arith.constant 0 : index
    %c0_14 = arith.constant 0 : index
    %8 = vector.load %arg1[%c0_12, %c4, %c0_13, %c0_14] : memref<1x18x1x18xf32, #tpu.memory_space<vmem>>, vector<1x1x1x18xf32>
    %9 = vector.shape_cast %8 : vector<1x1x1x18xf32> to vector<1x18xf32>
    %c0_15 = arith.constant 0 : index
    %c5 = arith.constant 5 : index
    %c0_16 = arith.constant 0 : index
    %c0_17 = arith.constant 0 : index
    %10 = vector.load %arg1[%c0_15, %c5, %c0_16, %c0_17] : memref<1x18x1x18xf32, #tpu.memory_space<vmem>>, vector<1x1x1x18xf32>
    %11 = vector.shape_cast %10 : vector<1x1x1x18xf32> to vector<1x18xf32>
    %c0_18 = arith.constant 0 : index
    %c6 = arith.constant 6 : index
    %c0_19 = arith.constant 0 : index
    %c0_20 = arith.constant 0 : index
    %12 = vector.load %arg1[%c0_18, %c6, %c0_19, %c0_20] : memref<1x18x1x18xf32, #tpu.memory_space<vmem>>, vector<1x1x1x18xf32>
    %13 = vector.shape_cast %12 : vector<1x1x1x18xf32> to vector<1x18xf32>
    %c0_21 = arith.constant 0 : index
    %c7 = arith.constant 7 : index
    %c0_22 = arith.constant 0 : index
    %c0_23 = arith.constant 0 : index
    %14 = vector.load %arg1[%c0_21, %c7, %c0_22, %c0_23] : memref<1x18x1x18xf32, #tpu.memory_space<vmem>>, vector<1x1x1x18xf32>
    %15 = vector.shape_cast %14 : vector<1x1x1x18xf32> to vector<1x18xf32>
    %c0_24 = arith.constant 0 : index
    %c8 = arith.constant 8 : index
    %c0_25 = arith.constant 0 : index
    %c0_26 = arith.constant 0 : index
    %16 = vector.load %arg1[%c0_24, %c8, %c0_25, %c0_26] : memref<1x18x1x18xf32, #tpu.memory_space<vmem>>, vector<1x1x1x18xf32>
    %17 = vector.shape_cast %16 : vector<1x1x1x18xf32> to vector<1x18xf32>
    %c0_27 = arith.constant 0 : index
    %c9 = arith.constant 9 : index
    %c0_28 = arith.constant 0 : index
    %c0_29 = arith.constant 0 : index
    %18 = vector.load %arg1[%c0_27, %c9, %c0_28, %c0_29] : memref<1x18x1x18xf32, #tpu.memory_space<vmem>>, vector<1x1x1x18xf32>
    %19 = vector.shape_cast %18 : vector<1x1x1x18xf32> to vector<1x18xf32>
    %c0_30 = arith.constant 0 : index
    %c10 = arith.constant 10 : index
    %c0_31 = arith.constant 0 : index
    %c0_32 = arith.constant 0 : index
    %20 = vector.load %arg1[%c0_30, %c10, %c0_31, %c0_32] : memref<1x18x1x18xf32, #tpu.memory_space<vmem>>, vector<1x1x1x18xf32>
    %21 = vector.shape_cast %20 : vector<1x1x1x18xf32> to vector<1x18xf32>
    %c0_33 = arith.constant 0 : index
    %c11 = arith.constant 11 : index
    %c0_34 = arith.constant 0 : index
    %c0_35 = arith.constant 0 : index
    %22 = vector.load %arg1[%c0_33, %c11, %c0_34, %c0_35] : memref<1x18x1x18xf32, #tpu.memory_space<vmem>>, vector<1x1x1x18xf32>
    %23 = vector.shape_cast %22 : vector<1x1x1x18xf32> to vector<1x18xf32>
    %c0_36 = arith.constant 0 : index
    %c12 = arith.constant 12 : index
    %c0_37 = arith.constant 0 : index
    %c0_38 = arith.constant 0 : index
    %24 = vector.load %arg1[%c0_36, %c12, %c0_37, %c0_38] : memref<1x18x1x18xf32, #tpu.memory_space<vmem>>, vector<1x1x1x18xf32>
    %25 = vector.shape_cast %24 : vector<1x1x1x18xf32> to vector<1x18xf32>
    %c0_39 = arith.constant 0 : index
    %c13 = arith.constant 13 : index
    %c0_40 = arith.constant 0 : index
    %c0_41 = arith.constant 0 : index
    %26 = vector.load %arg1[%c0_39, %c13, %c0_40, %c0_41] : memref<1x18x1x18xf32, #tpu.memory_space<vmem>>, vector<1x1x1x18xf32>
    %27 = vector.shape_cast %26 : vector<1x1x1x18xf32> to vector<1x18xf32>
    %c0_42 = arith.constant 0 : index
    %c14 = arith.constant 14 : index
    %c0_43 = arith.constant 0 : index
    %c0_44 = arith.constant 0 : index
    %28 = vector.load %arg1[%c0_42, %c14, %c0_43, %c0_44] : memref<1x18x1x18xf32, #tpu.memory_space<vmem>>, vector<1x1x1x18xf32>
    %29 = vector.shape_cast %28 : vector<1x1x1x18xf32> to vector<1x18xf32>
    %c0_45 = arith.constant 0 : index
    %c15 = arith.constant 15 : index
    %c0_46 = arith.constant 0 : index
    %c0_47 = arith.constant 0 : index
    %30 = vector.load %arg1[%c0_45, %c15, %c0_46, %c0_47] : memref<1x18x1x18xf32, #tpu.memory_space<vmem>>, vector<1x1x1x18xf32>
    %31 = vector.shape_cast %30 : vector<1x1x1x18xf32> to vector<1x18xf32>
    %c0_48 = arith.constant 0 : index
    %c16 = arith.constant 16 : index
    %c0_49 = arith.constant 0 : index
    %c0_50 = arith.constant 0 : index
    %32 = vector.load %arg1[%c0_48, %c16, %c0_49, %c0_50] : memref<1x18x1x18xf32, #tpu.memory_space<vmem>>, vector<1x1x1x18xf32>
    %33 = vector.shape_cast %32 : vector<1x1x1x18xf32> to vector<1x18xf32>
    %c0_51 = arith.constant 0 : index
    %c0_52 = arith.constant 0 : index
    %34 = vector.load %arg3[%c0_51, %c0_52] : memref<1x80xf32, #tpu.memory_space<vmem>>, vector<1x80xf32>
    %c0_53 = arith.constant 0 : index
    %c0_54 = arith.constant 0 : index
    %c0_55 = arith.constant 0 : index
    %35 = vector.load %arg2[%c0_53, %c0_54, %c0_55] : memref<3x18x80xf32, #tpu.memory_space<vmem>>, vector<1x18x80xf32>
    %36 = vector.shape_cast %35 : vector<1x18x80xf32> to vector<18x80xf32>
    %c1_56 = arith.constant 1 : index
    %c0_57 = arith.constant 0 : index
    %c0_58 = arith.constant 0 : index
    %37 = vector.load %arg2[%c1_56, %c0_57, %c0_58] : memref<3x18x80xf32, #tpu.memory_space<vmem>>, vector<1x18x80xf32>
    %38 = vector.shape_cast %37 : vector<1x18x80xf32> to vector<18x80xf32>
    %c2_59 = arith.constant 2 : index
    %c0_60 = arith.constant 0 : index
    %c0_61 = arith.constant 0 : index
    %39 = vector.load %arg2[%c2_59, %c0_60, %c0_61] : memref<3x18x80xf32, #tpu.memory_space<vmem>>, vector<1x18x80xf32>
    %40 = vector.shape_cast %39 : vector<1x18x80xf32> to vector<18x80xf32>
    %cst = arith.constant dense<0.000000e+00> : vector<1x80xf32>
    %41 = tpu.matmul %1, %36, %cst {dimension_numbers = #tpu.dot_dimension_numbers<[1], [0], [0], [1], [0, 0, 1, 1], [], []>, precision = #tpu.contract_precision<fp32>} : vector<1x18xf32>, vector<18x80xf32>, vector<1x80xf32> -> vector<1x80xf32>
    %42 = arith.addf %34, %41 : vector<1x80xf32>
    %cst_62 = arith.constant dense<0.000000e+00> : vector<1x80xf32>
    %43 = tpu.matmul %3, %38, %cst_62 {dimension_numbers = #tpu.dot_dimension_numbers<[1], [0], [0], [1], [0, 0, 1, 1], [], []>, precision = #tpu.contract_precision<fp32>} : vector<1x18xf32>, vector<18x80xf32>, vector<1x80xf32> -> vector<1x80xf32>
    %44 = arith.addf %42, %43 : vector<1x80xf32>
    %cst_63 = arith.constant dense<0.000000e+00> : vector<1x80xf32>
    %45 = tpu.matmul %5, %40, %cst_63 {dimension_numbers = #tpu.dot_dimension_numbers<[1], [0], [0], [1], [0, 0, 1, 1], [], []>, precision = #tpu.contract_precision<fp32>} : vector<1x18xf32>, vector<18x80xf32>, vector<1x80xf32> -> vector<1x80xf32>
    %46 = arith.addf %44, %45 : vector<1x80xf32>
    %cst_64 = arith.constant 0.000000e+00 : f32
    %47 = vector.broadcast %cst_64 : f32 to vector<1x80xf32>
    %48 = arith.cmpf oge, %46, %47 : vector<1x80xf32>
    %cst_65 = arith.constant 5.000000e-02 : f32
    %49 = vector.broadcast %cst_65 : f32 to vector<1x80xf32>
    %50 = arith.mulf %49, %46 : vector<1x80xf32>
    %51 = arith.select %48, %46, %50 : vector<1x80xi1>, vector<1x80xf32>
    %cst_66 = arith.constant dense<0.000000e+00> : vector<1x80xf32>
    %52 = tpu.matmul %5, %36, %cst_66 {dimension_numbers = #tpu.dot_dimension_numbers<[1], [0], [0], [1], [0, 0, 1, 1], [], []>, precision = #tpu.contract_precision<fp32>} : vector<1x18xf32>, vector<18x80xf32>, vector<1x80xf32> -> vector<1x80xf32>
    %53 = arith.addf %34, %52 : vector<1x80xf32>
    %cst_67 = arith.constant dense<0.000000e+00> : vector<1x80xf32>
    %54 = tpu.matmul %7, %38, %cst_67 {dimension_numbers = #tpu.dot_dimension_numbers<[1], [0], [0], [1], [0, 0, 1, 1], [], []>, precision = #tpu.contract_precision<fp32>} : vector<1x18xf32>, vector<18x80xf32>, vector<1x80xf32> -> vector<1x80xf32>
    %55 = arith.addf %53, %54 : vector<1x80xf32>
    %cst_68 = arith.constant dense<0.000000e+00> : vector<1x80xf32>
    %56 = tpu.matmul %9, %40, %cst_68 {dimension_numbers = #tpu.dot_dimension_numbers<[1], [0], [0], [1], [0, 0, 1, 1], [], []>, precision = #tpu.contract_precision<fp32>} : vector<1x18xf32>, vector<18x80xf32>, vector<1x80xf32> -> vector<1x80xf32>
    %57 = arith.addf %55, %56 : vector<1x80xf32>
    %cst_69 = arith.constant 0.000000e+00 : f32
    %58 = vector.broadcast %cst_69 : f32 to vector<1x80xf32>
    %59 = arith.cmpf oge, %57, %58 : vector<1x80xf32>
    %cst_70 = arith.constant 5.000000e-02 : f32
    %60 = vector.broadcast %cst_70 : f32 to vector<1x80xf32>
    %61 = arith.mulf %60, %57 : vector<1x80xf32>
    %62 = arith.select %59, %57, %61 : vector<1x80xi1>, vector<1x80xf32>
    %cst_71 = arith.constant dense<0.000000e+00> : vector<1x80xf32>
    %63 = tpu.matmul %9, %36, %cst_71 {dimension_numbers = #tpu.dot_dimension_numbers<[1], [0], [0], [1], [0, 0, 1, 1], [], []>, precision = #tpu.contract_precision<fp32>} : vector<1x18xf32>, vector<18x80xf32>, vector<1x80xf32> -> vector<1x80xf32>
    %64 = arith.addf %34, %63 : vector<1x80xf32>
    %cst_72 = arith.constant dense<0.000000e+00> : vector<1x80xf32>
    %65 = tpu.matmul %11, %38, %cst_72 {dimension_numbers = #tpu.dot_dimension_numbers<[1], [0], [0], [1], [0, 0, 1, 1], [], []>, precision = #tpu.contract_precision<fp32>} : vector<1x18xf32>, vector<18x80xf32>, vector<1x80xf32> -> vector<1x80xf32>
    %66 = arith.addf %64, %65 : vector<1x80xf32>
    %cst_73 = arith.constant dense<0.000000e+00> : vector<1x80xf32>
    %67 = tpu.matmul %13, %40, %cst_73 {dimension_numbers = #tpu.dot_dimension_numbers<[1], [0], [0], [1], [0, 0, 1, 1], [], []>, precision = #tpu.contract_precision<fp32>} : vector<1x18xf32>, vector<18x80xf32>, vector<1x80xf32> -> vector<1x80xf32>
    %68 = arith.addf %66, %67 : vector<1x80xf32>
    %cst_74 = arith.constant 0.000000e+00 : f32
    %69 = vector.broadcast %cst_74 : f32 to vector<1x80xf32>
    %70 = arith.cmpf oge, %68, %69 : vector<1x80xf32>
    %cst_75 = arith.constant 5.000000e-02 : f32
    %71 = vector.broadcast %cst_75 : f32 to vector<1x80xf32>
    %72 = arith.mulf %71, %68 : vector<1x80xf32>
    %73 = arith.select %70, %68, %72 : vector<1x80xi1>, vector<1x80xf32>
    %cst_76 = arith.constant dense<0.000000e+00> : vector<1x80xf32>
    %74 = tpu.matmul %13, %36, %cst_76 {dimension_numbers = #tpu.dot_dimension_numbers<[1], [0], [0], [1], [0, 0, 1, 1], [], []>, precision = #tpu.contract_precision<fp32>} : vector<1x18xf32>, vector<18x80xf32>, vector<1x80xf32> -> vector<1x80xf32>
    %75 = arith.addf %34, %74 : vector<1x80xf32>
    %cst_77 = arith.constant dense<0.000000e+00> : vector<1x80xf32>
    %76 = tpu.matmul %15, %38, %cst_77 {dimension_numbers = #tpu.dot_dimension_numbers<[1], [0], [0], [1], [0, 0, 1, 1], [], []>, precision = #tpu.contract_precision<fp32>} : vector<1x18xf32>, vector<18x80xf32>, vector<1x80xf32> -> vector<1x80xf32>
    %77 = arith.addf %75, %76 : vector<1x80xf32>
    %cst_78 = arith.constant dense<0.000000e+00> : vector<1x80xf32>
    %78 = tpu.matmul %17, %40, %cst_78 {dimension_numbers = #tpu.dot_dimension_numbers<[1], [0], [0], [1], [0, 0, 1, 1], [], []>, precision = #tpu.contract_precision<fp32>} : vector<1x18xf32>, vector<18x80xf32>, vector<1x80xf32> -> vector<1x80xf32>
    %79 = arith.addf %77, %78 : vector<1x80xf32>
    %cst_79 = arith.constant 0.000000e+00 : f32
    %80 = vector.broadcast %cst_79 : f32 to vector<1x80xf32>
    %81 = arith.cmpf oge, %79, %80 : vector<1x80xf32>
    %cst_80 = arith.constant 5.000000e-02 : f32
    %82 = vector.broadcast %cst_80 : f32 to vector<1x80xf32>
    %83 = arith.mulf %82, %79 : vector<1x80xf32>
    %84 = arith.select %81, %79, %83 : vector<1x80xi1>, vector<1x80xf32>
    %cst_81 = arith.constant dense<0.000000e+00> : vector<1x80xf32>
    %85 = tpu.matmul %17, %36, %cst_81 {dimension_numbers = #tpu.dot_dimension_numbers<[1], [0], [0], [1], [0, 0, 1, 1], [], []>, precision = #tpu.contract_precision<fp32>} : vector<1x18xf32>, vector<18x80xf32>, vector<1x80xf32> -> vector<1x80xf32>
    %86 = arith.addf %34, %85 : vector<1x80xf32>
    %cst_82 = arith.constant dense<0.000000e+00> : vector<1x80xf32>
    %87 = tpu.matmul %19, %38, %cst_82 {dimension_numbers = #tpu.dot_dimension_numbers<[1], [0], [0], [1], [0, 0, 1, 1], [], []>, precision = #tpu.contract_precision<fp32>} : vector<1x18xf32>, vector<18x80xf32>, vector<1x80xf32> -> vector<1x80xf32>
    %88 = arith.addf %86, %87 : vector<1x80xf32>
    %cst_83 = arith.constant dense<0.000000e+00> : vector<1x80xf32>
    %89 = tpu.matmul %21, %40, %cst_83 {dimension_numbers = #tpu.dot_dimension_numbers<[1], [0], [0], [1], [0, 0, 1, 1], [], []>, precision = #tpu.contract_precision<fp32>} : vector<1x18xf32>, vector<18x80xf32>, vector<1x80xf32> -> vector<1x80xf32>
    %90 = arith.addf %88, %89 : vector<1x80xf32>
    %cst_84 = arith.constant 0.000000e+00 : f32
    %91 = vector.broadcast %cst_84 : f32 to vector<1x80xf32>
    %92 = arith.cmpf oge, %90, %91 : vector<1x80xf32>
    %cst_85 = arith.constant 5.000000e-02 : f32
    %93 = vector.broadcast %cst_85 : f32 to vector<1x80xf32>
    %94 = arith.mulf %93, %90 : vector<1x80xf32>
    %95 = arith.select %92, %90, %94 : vector<1x80xi1>, vector<1x80xf32>
    %cst_86 = arith.constant dense<0.000000e+00> : vector<1x80xf32>
    %96 = tpu.matmul %21, %36, %cst_86 {dimension_numbers = #tpu.dot_dimension_numbers<[1], [0], [0], [1], [0, 0, 1, 1], [], []>, precision = #tpu.contract_precision<fp32>} : vector<1x18xf32>, vector<18x80xf32>, vector<1x80xf32> -> vector<1x80xf32>
    %97 = arith.addf %34, %96 : vector<1x80xf32>
    %cst_87 = arith.constant dense<0.000000e+00> : vector<1x80xf32>
    %98 = tpu.matmul %23, %38, %cst_87 {dimension_numbers = #tpu.dot_dimension_numbers<[1], [0], [0], [1], [0, 0, 1, 1], [], []>, precision = #tpu.contract_precision<fp32>} : vector<1x18xf32>, vector<18x80xf32>, vector<1x80xf32> -> vector<1x80xf32>
    %99 = arith.addf %97, %98 : vector<1x80xf32>
    %cst_88 = arith.constant dense<0.000000e+00> : vector<1x80xf32>
    %100 = tpu.matmul %25, %40, %cst_88 {dimension_numbers = #tpu.dot_dimension_numbers<[1], [0], [0], [1], [0, 0, 1, 1], [], []>, precision = #tpu.contract_precision<fp32>} : vector<1x18xf32>, vector<18x80xf32>, vector<1x80xf32> -> vector<1x80xf32>
    %101 = arith.addf %99, %100 : vector<1x80xf32>
    %cst_89 = arith.constant 0.000000e+00 : f32
    %102 = vector.broadcast %cst_89 : f32 to vector<1x80xf32>
    %103 = arith.cmpf oge, %101, %102 : vector<1x80xf32>
    %cst_90 = arith.constant 5.000000e-02 : f32
    %104 = vector.broadcast %cst_90 : f32 to vector<1x80xf32>
    %105 = arith.mulf %104, %101 : vector<1x80xf32>
    %106 = arith.select %103, %101, %105 : vector<1x80xi1>, vector<1x80xf32>
    %cst_91 = arith.constant dense<0.000000e+00> : vector<1x80xf32>
    %107 = tpu.matmul %25, %36, %cst_91 {dimension_numbers = #tpu.dot_dimension_numbers<[1], [0], [0], [1], [0, 0, 1, 1], [], []>, precision = #tpu.contract_precision<fp32>} : vector<1x18xf32>, vector<18x80xf32>, vector<1x80xf32> -> vector<1x80xf32>
    %108 = arith.addf %34, %107 : vector<1x80xf32>
    %cst_92 = arith.constant dense<0.000000e+00> : vector<1x80xf32>
    %109 = tpu.matmul %27, %38, %cst_92 {dimension_numbers = #tpu.dot_dimension_numbers<[1], [0], [0], [1], [0, 0, 1, 1], [], []>, precision = #tpu.contract_precision<fp32>} : vector<1x18xf32>, vector<18x80xf32>, vector<1x80xf32> -> vector<1x80xf32>
    %110 = arith.addf %108, %109 : vector<1x80xf32>
    %cst_93 = arith.constant dense<0.000000e+00> : vector<1x80xf32>
    %111 = tpu.matmul %29, %40, %cst_93 {dimension_numbers = #tpu.dot_dimension_numbers<[1], [0], [0], [1], [0, 0, 1, 1], [], []>, precision = #tpu.contract_precision<fp32>} : vector<1x18xf32>, vector<18x80xf32>, vector<1x80xf32> -> vector<1x80xf32>
    %112 = arith.addf %110, %111 : vector<1x80xf32>
    %cst_94 = arith.constant 0.000000e+00 : f32
    %113 = vector.broadcast %cst_94 : f32 to vector<1x80xf32>
    %114 = arith.cmpf oge, %112, %113 : vector<1x80xf32>
    %cst_95 = arith.constant 5.000000e-02 : f32
    %115 = vector.broadcast %cst_95 : f32 to vector<1x80xf32>
    %116 = arith.mulf %115, %112 : vector<1x80xf32>
    %117 = arith.select %114, %112, %116 : vector<1x80xi1>, vector<1x80xf32>
    %cst_96 = arith.constant dense<0.000000e+00> : vector<1x80xf32>
    %118 = tpu.matmul %29, %36, %cst_96 {dimension_numbers = #tpu.dot_dimension_numbers<[1], [0], [0], [1], [0, 0, 1, 1], [], []>, precision = #tpu.contract_precision<fp32>} : vector<1x18xf32>, vector<18x80xf32>, vector<1x80xf32> -> vector<1x80xf32>
    %119 = arith.addf %34, %118 : vector<1x80xf32>
    %cst_97 = arith.constant dense<0.000000e+00> : vector<1x80xf32>
    %120 = tpu.matmul %31, %38, %cst_97 {dimension_numbers = #tpu.dot_dimension_numbers<[1], [0], [0], [1], [0, 0, 1, 1], [], []>, precision = #tpu.contract_precision<fp32>} : vector<1x18xf32>, vector<18x80xf32>, vector<1x80xf32> -> vector<1x80xf32>
    %121 = arith.addf %119, %120 : vector<1x80xf32>
    %cst_98 = arith.constant dense<0.000000e+00> : vector<1x80xf32>
    %122 = tpu.matmul %33, %40, %cst_98 {dimension_numbers = #tpu.dot_dimension_numbers<[1], [0], [0], [1], [0, 0, 1, 1], [], []>, precision = #tpu.contract_precision<fp32>} : vector<1x18xf32>, vector<18x80xf32>, vector<1x80xf32> -> vector<1x80xf32>
    %123 = arith.addf %121, %122 : vector<1x80xf32>
    %cst_99 = arith.constant 0.000000e+00 : f32
    %124 = vector.broadcast %cst_99 : f32 to vector<1x80xf32>
    %125 = arith.cmpf oge, %123, %124 : vector<1x80xf32>
    %cst_100 = arith.constant 5.000000e-02 : f32
    %126 = vector.broadcast %cst_100 : f32 to vector<1x80xf32>
    %127 = arith.mulf %126, %123 : vector<1x80xf32>
    %128 = arith.select %125, %123, %127 : vector<1x80xi1>, vector<1x80xf32>
    %cst_101 = arith.constant 0.000000e+00 : f32
    %129 = vector.broadcast %cst_101 : f32 to vector<1x80xf32>
    %c0_102 = arith.constant 0 : index
    %c0_103 = arith.constant 0 : index
    %130 = vector.load %arg5[%c0_102, %c0_103] : memref<1x48xf32, #tpu.memory_space<vmem>>, vector<1x48xf32>
    %c0_104 = arith.constant 0 : index
    %c0_105 = arith.constant 0 : index
    %c0_106 = arith.constant 0 : index
    %131 = vector.load %arg4[%c0_104, %c0_105, %c0_106] : memref<3x80x48xf32, #tpu.memory_space<vmem>>, vector<1x80x48xf32>
    %132 = vector.shape_cast %131 : vector<1x80x48xf32> to vector<80x48xf32>
    %c1_107 = arith.constant 1 : index
    %c0_108 = arith.constant 0 : index
    %c0_109 = arith.constant 0 : index
    %133 = vector.load %arg4[%c1_107, %c0_108, %c0_109] : memref<3x80x48xf32, #tpu.memory_space<vmem>>, vector<1x80x48xf32>
    %134 = vector.shape_cast %133 : vector<1x80x48xf32> to vector<80x48xf32>
    %c2_110 = arith.constant 2 : index
    %c0_111 = arith.constant 0 : index
    %c0_112 = arith.constant 0 : index
    %135 = vector.load %arg4[%c2_110, %c0_111, %c0_112] : memref<3x80x48xf32, #tpu.memory_space<vmem>>, vector<1x80x48xf32>
    %136 = vector.shape_cast %135 : vector<1x80x48xf32> to vector<80x48xf32>
    %cst_113 = arith.constant dense<0.000000e+00> : vector<1x48xf32>
    %137 = tpu.matmul %129, %132, %cst_113 {dimension_numbers = #tpu.dot_dimension_numbers<[1], [0], [0], [1], [0, 0, 1, 1], [], []>, precision = #tpu.contract_precision<fp32>} : vector<1x80xf32>, vector<80x48xf32>, vector<1x48xf32> -> vector<1x48xf32>
    %138 = arith.addf %130, %137 : vector<1x48xf32>
    %cst_114 = arith.constant dense<0.000000e+00> : vector<1x48xf32>
    %139 = tpu.matmul %51, %134, %cst_114 {dimension_numbers = #tpu.dot_dimension_numbers<[1], [0], [0], [1], [0, 0, 1, 1], [], []>, precision = #tpu.contract_precision<fp32>} : vector<1x80xf32>, vector<80x48xf32>, vector<1x48xf32> -> vector<1x48xf32>
    %140 = arith.addf %138, %139 : vector<1x48xf32>
    %cst_115 = arith.constant dense<0.000000e+00> : vector<1x48xf32>
    %141 = tpu.matmul %62, %136, %cst_115 {dimension_numbers = #tpu.dot_dimension_numbers<[1], [0], [0], [1], [0, 0, 1, 1], [], []>, precision = #tpu.contract_precision<fp32>} : vector<1x80xf32>, vector<80x48xf32>, vector<1x48xf32> -> vector<1x48xf32>
    %142 = arith.addf %140, %141 : vector<1x48xf32>
    %cst_116 = arith.constant 0.000000e+00 : f32
    %143 = vector.broadcast %cst_116 : f32 to vector<1x48xf32>
    %144 = arith.cmpf oge, %142, %143 : vector<1x48xf32>
    %cst_117 = arith.constant 5.000000e-02 : f32
    %145 = vector.broadcast %cst_117 : f32 to vector<1x48xf32>
    %146 = arith.mulf %145, %142 : vector<1x48xf32>
    %147 = arith.select %144, %142, %146 : vector<1x48xi1>, vector<1x48xf32>
    %cst_118 = arith.constant dense<0.000000e+00> : vector<1x48xf32>
    %148 = tpu.matmul %62, %132, %cst_118 {dimension_numbers = #tpu.dot_dimension_numbers<[1], [0], [0], [1], [0, 0, 1, 1], [], []>, precision = #tpu.contract_precision<fp32>} : vector<1x80xf32>, vector<80x48xf32>, vector<1x48xf32> -> vector<1x48xf32>
    %149 = arith.addf %130, %148 : vector<1x48xf32>
    %cst_119 = arith.constant dense<0.000000e+00> : vector<1x48xf32>
    %150 = tpu.matmul %73, %134, %cst_119 {dimension_numbers = #tpu.dot_dimension_numbers<[1], [0], [0], [1], [0, 0, 1, 1], [], []>, precision = #tpu.contract_precision<fp32>} : vector<1x80xf32>, vector<80x48xf32>, vector<1x48xf32> -> vector<1x48xf32>
    %151 = arith.addf %149, %150 : vector<1x48xf32>
    %cst_120 = arith.constant dense<0.000000e+00> : vector<1x48xf32>
    %152 = tpu.matmul %84, %136, %cst_120 {dimension_numbers = #tpu.dot_dimension_numbers<[1], [0], [0], [1], [0, 0, 1, 1], [], []>, precision = #tpu.contract_precision<fp32>} : vector<1x80xf32>, vector<80x48xf32>, vector<1x48xf32> -> vector<1x48xf32>
    %153 = arith.addf %151, %152 : vector<1x48xf32>
    %cst_121 = arith.constant 0.000000e+00 : f32
    %154 = vector.broadcast %cst_121 : f32 to vector<1x48xf32>
    %155 = arith.cmpf oge, %153, %154 : vector<1x48xf32>
    %cst_122 = arith.constant 5.000000e-02 : f32
    %156 = vector.broadcast %cst_122 : f32 to vector<1x48xf32>
    %157 = arith.mulf %156, %153 : vector<1x48xf32>
    %158 = arith.select %155, %153, %157 : vector<1x48xi1>, vector<1x48xf32>
    %cst_123 = arith.constant dense<0.000000e+00> : vector<1x48xf32>
    %159 = tpu.matmul %84, %132, %cst_123 {dimension_numbers = #tpu.dot_dimension_numbers<[1], [0], [0], [1], [0, 0, 1, 1], [], []>, precision = #tpu.contract_precision<fp32>} : vector<1x80xf32>, vector<80x48xf32>, vector<1x48xf32> -> vector<1x48xf32>
    %160 = arith.addf %130, %159 : vector<1x48xf32>
    %cst_124 = arith.constant dense<0.000000e+00> : vector<1x48xf32>
    %161 = tpu.matmul %95, %134, %cst_124 {dimension_numbers = #tpu.dot_dimension_numbers<[1], [0], [0], [1], [0, 0, 1, 1], [], []>, precision = #tpu.contract_precision<fp32>} : vector<1x80xf32>, vector<80x48xf32>, vector<1x48xf32> -> vector<1x48xf32>
    %162 = arith.addf %160, %161 : vector<1x48xf32>
    %cst_125 = arith.constant dense<0.000000e+00> : vector<1x48xf32>
    %163 = tpu.matmul %106, %136, %cst_125 {dimension_numbers = #tpu.dot_dimension_numbers<[1], [0], [0], [1], [0, 0, 1, 1], [], []>, precision = #tpu.contract_precision<fp32>} : vector<1x80xf32>, vector<80x48xf32>, vector<1x48xf32> -> vector<1x48xf32>
    %164 = arith.addf %162, %163 : vector<1x48xf32>
    %cst_126 = arith.constant 0.000000e+00 : f32
    %165 = vector.broadcast %cst_126 : f32 to vector<1x48xf32>
    %166 = arith.cmpf oge, %164, %165 : vector<1x48xf32>
    %cst_127 = arith.constant 5.000000e-02 : f32
    %167 = vector.broadcast %cst_127 : f32 to vector<1x48xf32>
    %168 = arith.mulf %167, %164 : vector<1x48xf32>
    %169 = arith.select %166, %164, %168 : vector<1x48xi1>, vector<1x48xf32>
    %cst_128 = arith.constant dense<0.000000e+00> : vector<1x48xf32>
    %170 = tpu.matmul %106, %132, %cst_128 {dimension_numbers = #tpu.dot_dimension_numbers<[1], [0], [0], [1], [0, 0, 1, 1], [], []>, precision = #tpu.contract_precision<fp32>} : vector<1x80xf32>, vector<80x48xf32>, vector<1x48xf32> -> vector<1x48xf32>
    %171 = arith.addf %130, %170 : vector<1x48xf32>
    %cst_129 = arith.constant dense<0.000000e+00> : vector<1x48xf32>
    %172 = tpu.matmul %117, %134, %cst_129 {dimension_numbers = #tpu.dot_dimension_numbers<[1], [0], [0], [1], [0, 0, 1, 1], [], []>, precision = #tpu.contract_precision<fp32>} : vector<1x80xf32>, vector<80x48xf32>, vector<1x48xf32> -> vector<1x48xf32>
    %173 = arith.addf %171, %172 : vector<1x48xf32>
    %cst_130 = arith.constant dense<0.000000e+00> : vector<1x48xf32>
    %174 = tpu.matmul %128, %136, %cst_130 {dimension_numbers = #tpu.dot_dimension_numbers<[1], [0], [0], [1], [0, 0, 1, 1], [], []>, precision = #tpu.contract_precision<fp32>} : vector<1x80xf32>, vector<80x48xf32>, vector<1x48xf32> -> vector<1x48xf32>
    %175 = arith.addf %173, %174 : vector<1x48xf32>
    %cst_131 = arith.constant 0.000000e+00 : f32
    %176 = vector.broadcast %cst_131 : f32 to vector<1x48xf32>
    %177 = arith.cmpf oge, %175, %176 : vector<1x48xf32>
    %cst_132 = arith.constant 5.000000e-02 : f32
    %178 = vector.broadcast %cst_132 : f32 to vector<1x48xf32>
    %179 = arith.mulf %178, %175 : vector<1x48xf32>
    %180 = arith.select %177, %175, %179 : vector<1x48xi1>, vector<1x48xf32>
    %cst_133 = arith.constant 0.000000e+00 : f32
    %181 = vector.broadcast %cst_133 : f32 to vector<1x48xf32>
    %c0_134 = arith.constant 0 : index
    %c0_135 = arith.constant 0 : index
    %182 = vector.load %arg7[%c0_134, %c0_135] : memref<1x32xf32, #tpu.memory_space<vmem>>, vector<1x32xf32>
    %c0_136 = arith.constant 0 : index
    %c0_137 = arith.constant 0 : index
    %c0_138 = arith.constant 0 : index
    %183 = vector.load %arg6[%c0_136, %c0_137, %c0_138] : memref<3x48x32xf32, #tpu.memory_space<vmem>>, vector<1x48x32xf32>
    %184 = vector.shape_cast %183 : vector<1x48x32xf32> to vector<48x32xf32>
    %c1_139 = arith.constant 1 : index
    %c0_140 = arith.constant 0 : index
    %c0_141 = arith.constant 0 : index
    %185 = vector.load %arg6[%c1_139, %c0_140, %c0_141] : memref<3x48x32xf32, #tpu.memory_space<vmem>>, vector<1x48x32xf32>
    %186 = vector.shape_cast %185 : vector<1x48x32xf32> to vector<48x32xf32>
    %c2_142 = arith.constant 2 : index
    %c0_143 = arith.constant 0 : index
    %c0_144 = arith.constant 0 : index
    %187 = vector.load %arg6[%c2_142, %c0_143, %c0_144] : memref<3x48x32xf32, #tpu.memory_space<vmem>>, vector<1x48x32xf32>
    %188 = vector.shape_cast %187 : vector<1x48x32xf32> to vector<48x32xf32>
    %cst_145 = arith.constant dense<0.000000e+00> : vector<1x32xf32>
    %189 = tpu.matmul %181, %184, %cst_145 {dimension_numbers = #tpu.dot_dimension_numbers<[1], [0], [0], [1], [0, 0, 1, 1], [], []>, precision = #tpu.contract_precision<fp32>} : vector<1x48xf32>, vector<48x32xf32>, vector<1x32xf32> -> vector<1x32xf32>
    %190 = arith.addf %182, %189 : vector<1x32xf32>
    %cst_146 = arith.constant dense<0.000000e+00> : vector<1x32xf32>
    %191 = tpu.matmul %147, %186, %cst_146 {dimension_numbers = #tpu.dot_dimension_numbers<[1], [0], [0], [1], [0, 0, 1, 1], [], []>, precision = #tpu.contract_precision<fp32>} : vector<1x48xf32>, vector<48x32xf32>, vector<1x32xf32> -> vector<1x32xf32>
    %192 = arith.addf %190, %191 : vector<1x32xf32>
    %cst_147 = arith.constant dense<0.000000e+00> : vector<1x32xf32>
    %193 = tpu.matmul %158, %188, %cst_147 {dimension_numbers = #tpu.dot_dimension_numbers<[1], [0], [0], [1], [0, 0, 1, 1], [], []>, precision = #tpu.contract_precision<fp32>} : vector<1x48xf32>, vector<48x32xf32>, vector<1x32xf32> -> vector<1x32xf32>
    %194 = arith.addf %192, %193 : vector<1x32xf32>
    %cst_148 = arith.constant 0.000000e+00 : f32
    %195 = vector.broadcast %cst_148 : f32 to vector<1x32xf32>
    %196 = arith.cmpf oge, %194, %195 : vector<1x32xf32>
    %cst_149 = arith.constant 5.000000e-02 : f32
    %197 = vector.broadcast %cst_149 : f32 to vector<1x32xf32>
    %198 = arith.mulf %197, %194 : vector<1x32xf32>
    %199 = arith.select %196, %194, %198 : vector<1x32xi1>, vector<1x32xf32>
    %cst_150 = arith.constant dense<0.000000e+00> : vector<1x32xf32>
    %200 = tpu.matmul %158, %184, %cst_150 {dimension_numbers = #tpu.dot_dimension_numbers<[1], [0], [0], [1], [0, 0, 1, 1], [], []>, precision = #tpu.contract_precision<fp32>} : vector<1x48xf32>, vector<48x32xf32>, vector<1x32xf32> -> vector<1x32xf32>
    %201 = arith.addf %182, %200 : vector<1x32xf32>
    %cst_151 = arith.constant dense<0.000000e+00> : vector<1x32xf32>
    %202 = tpu.matmul %169, %186, %cst_151 {dimension_numbers = #tpu.dot_dimension_numbers<[1], [0], [0], [1], [0, 0, 1, 1], [], []>, precision = #tpu.contract_precision<fp32>} : vector<1x48xf32>, vector<48x32xf32>, vector<1x32xf32> -> vector<1x32xf32>
    %203 = arith.addf %201, %202 : vector<1x32xf32>
    %cst_152 = arith.constant dense<0.000000e+00> : vector<1x32xf32>
    %204 = tpu.matmul %180, %188, %cst_152 {dimension_numbers = #tpu.dot_dimension_numbers<[1], [0], [0], [1], [0, 0, 1, 1], [], []>, precision = #tpu.contract_precision<fp32>} : vector<1x48xf32>, vector<48x32xf32>, vector<1x32xf32> -> vector<1x32xf32>
    %205 = arith.addf %203, %204 : vector<1x32xf32>
    %cst_153 = arith.constant 0.000000e+00 : f32
    %206 = vector.broadcast %cst_153 : f32 to vector<1x32xf32>
    %207 = arith.cmpf oge, %205, %206 : vector<1x32xf32>
    %cst_154 = arith.constant 5.000000e-02 : f32
    %208 = vector.broadcast %cst_154 : f32 to vector<1x32xf32>
    %209 = arith.mulf %208, %205 : vector<1x32xf32>
    %210 = arith.select %207, %205, %209 : vector<1x32xi1>, vector<1x32xf32>
    %c0_155 = arith.constant 0 : index
    %c0_156 = arith.constant 0 : index
    %211 = vector.load %arg8[%c0_155, %c0_156] : memref<32x96xf32, #tpu.memory_space<vmem>>, vector<32x96xf32>
    %c0_157 = arith.constant 0 : index
    %c0_158 = arith.constant 0 : index
    %212 = vector.load %arg9[%c0_157, %c0_158] : memref<1x96xf32, #tpu.memory_space<vmem>>, vector<1x96xf32>
    %c0_159 = arith.constant 0 : index
    %c0_160 = arith.constant 0 : index
    %213 = vector.load %arg10[%c0_159, %c0_160] : memref<32x96xf32, #tpu.memory_space<vmem>>, vector<32x96xf32>
    %c0_161 = arith.constant 0 : index
    %c0_162 = arith.constant 0 : index
    %214 = vector.load %arg11[%c0_161, %c0_162] : memref<1x96xf32, #tpu.memory_space<vmem>>, vector<1x96xf32>
    %cst_163 = arith.constant 0.000000e+00 : f32
    %215 = vector.broadcast %cst_163 : f32 to vector<1x32xf32>
    %cst_164 = arith.constant dense<0.000000e+00> : vector<1x96xf32>
    %216 = tpu.matmul %199, %211, %cst_164 {dimension_numbers = #tpu.dot_dimension_numbers<[1], [0], [0], [1], [0, 0, 1, 1], [], []>, precision = #tpu.contract_precision<fp32>} : vector<1x32xf32>, vector<32x96xf32>, vector<1x96xf32> -> vector<1x96xf32>
    %217 = arith.addf %216, %212 : vector<1x96xf32>
    %cst_165 = arith.constant dense<0.000000e+00> : vector<1x96xf32>
    %218 = tpu.matmul %215, %213, %cst_165 {dimension_numbers = #tpu.dot_dimension_numbers<[1], [0], [0], [1], [0, 0, 1, 1], [], []>, precision = #tpu.contract_precision<fp32>} : vector<1x32xf32>, vector<32x96xf32>, vector<1x96xf32> -> vector<1x96xf32>
    %219 = arith.addf %218, %214 : vector<1x96xf32>
    %220 = vector.extract_strided_slice %217 {offsets = [0, 0], sizes = [1, 32], strides = [1, 1]} : vector<1x96xf32> to vector<1x32xf32>
    %221 = vector.extract_strided_slice %219 {offsets = [0, 0], sizes = [1, 32], strides = [1, 1]} : vector<1x96xf32> to vector<1x32xf32>
    %222 = arith.addf %220, %221 : vector<1x32xf32>
    %223 = arith.negf %222 : vector<1x32xf32>
    %224 = math.exp %223 : vector<1x32xf32>
    %cst_166 = arith.constant 1.000000e+00 : f32
    %225 = vector.broadcast %cst_166 : f32 to vector<1x32xf32>
    %226 = arith.addf %225, %224 : vector<1x32xf32>
    %227 = arith.divf %225, %226 : vector<1x32xf32>
    %228 = vector.extract_strided_slice %217 {offsets = [0, 32], sizes = [1, 32], strides = [1, 1]} : vector<1x96xf32> to vector<1x32xf32>
    %229 = vector.extract_strided_slice %219 {offsets = [0, 32], sizes = [1, 32], strides = [1, 1]} : vector<1x96xf32> to vector<1x32xf32>
    %230 = arith.addf %228, %229 : vector<1x32xf32>
    %231 = arith.negf %230 : vector<1x32xf32>
    %232 = math.exp %231 : vector<1x32xf32>
    %cst_167 = arith.constant 1.000000e+00 : f32
    %233 = vector.broadcast %cst_167 : f32 to vector<1x32xf32>
    %234 = arith.addf %233, %232 : vector<1x32xf32>
    %235 = arith.divf %233, %234 : vector<1x32xf32>
    %236 = vector.extract_strided_slice %217 {offsets = [0, 64], sizes = [1, 32], strides = [1, 1]} : vector<1x96xf32> to vector<1x32xf32>
    %237 = vector.extract_strided_slice %219 {offsets = [0, 64], sizes = [1, 32], strides = [1, 1]} : vector<1x96xf32> to vector<1x32xf32>
    %238 = arith.mulf %227, %237 : vector<1x32xf32>
    %239 = arith.addf %236, %238 : vector<1x32xf32>
    %240 = math.tanh %239 : vector<1x32xf32>
    %cst_168 = arith.constant 1.000000e+00 : f32
    %241 = vector.broadcast %cst_168 : f32 to vector<1x32xf32>
    %242 = arith.subf %241, %235 : vector<1x32xf32>
    %243 = arith.mulf %242, %240 : vector<1x32xf32>
    %244 = arith.mulf %235, %215 : vector<1x32xf32>
    %245 = arith.addf %243, %244 : vector<1x32xf32>
    %cst_169 = arith.constant dense<0.000000e+00> : vector<1x96xf32>
    %246 = tpu.matmul %210, %211, %cst_169 {dimension_numbers = #tpu.dot_dimension_numbers<[1], [0], [0], [1], [0, 0, 1, 1], [], []>, precision = #tpu.contract_precision<fp32>} : vector<1x32xf32>, vector<32x96xf32>, vector<1x96xf32> -> vector<1x96xf32>
    %247 = arith.addf %246, %212 : vector<1x96xf32>
    %cst_170 = arith.constant dense<0.000000e+00> : vector<1x96xf32>
    %248 = tpu.matmul %245, %213, %cst_170 {dimension_numbers = #tpu.dot_dimension_numbers<[1], [0], [0], [1], [0, 0, 1, 1], [], []>, precision = #tpu.contract_precision<fp32>} : vector<1x32xf32>, vector<32x96xf32>, vector<1x96xf32> -> vector<1x96xf32>
    %249 = arith.addf %248, %214 : vector<1x96xf32>
    %250 = vector.extract_strided_slice %247 {offsets = [0, 0], sizes = [1, 32], strides = [1, 1]} : vector<1x96xf32> to vector<1x32xf32>
    %251 = vector.extract_strided_slice %249 {offsets = [0, 0], sizes = [1, 32], strides = [1, 1]} : vector<1x96xf32> to vector<1x32xf32>
    %252 = arith.addf %250, %251 : vector<1x32xf32>
    %253 = arith.negf %252 : vector<1x32xf32>
    %254 = math.exp %253 : vector<1x32xf32>
    %cst_171 = arith.constant 1.000000e+00 : f32
    %255 = vector.broadcast %cst_171 : f32 to vector<1x32xf32>
    %256 = arith.addf %255, %254 : vector<1x32xf32>
    %257 = arith.divf %255, %256 : vector<1x32xf32>
    %258 = vector.extract_strided_slice %247 {offsets = [0, 32], sizes = [1, 32], strides = [1, 1]} : vector<1x96xf32> to vector<1x32xf32>
    %259 = vector.extract_strided_slice %249 {offsets = [0, 32], sizes = [1, 32], strides = [1, 1]} : vector<1x96xf32> to vector<1x32xf32>
    %260 = arith.addf %258, %259 : vector<1x32xf32>
    %261 = arith.negf %260 : vector<1x32xf32>
    %262 = math.exp %261 : vector<1x32xf32>
    %cst_172 = arith.constant 1.000000e+00 : f32
    %263 = vector.broadcast %cst_172 : f32 to vector<1x32xf32>
    %264 = arith.addf %263, %262 : vector<1x32xf32>
    %265 = arith.divf %263, %264 : vector<1x32xf32>
    %266 = vector.extract_strided_slice %247 {offsets = [0, 64], sizes = [1, 32], strides = [1, 1]} : vector<1x96xf32> to vector<1x32xf32>
    %267 = vector.extract_strided_slice %249 {offsets = [0, 64], sizes = [1, 32], strides = [1, 1]} : vector<1x96xf32> to vector<1x32xf32>
    %268 = arith.mulf %257, %267 : vector<1x32xf32>
    %269 = arith.addf %266, %268 : vector<1x32xf32>
    %270 = math.tanh %269 : vector<1x32xf32>
    %cst_173 = arith.constant 1.000000e+00 : f32
    %271 = vector.broadcast %cst_173 : f32 to vector<1x32xf32>
    %272 = arith.subf %271, %265 : vector<1x32xf32>
    %273 = arith.mulf %272, %270 : vector<1x32xf32>
    %274 = arith.mulf %265, %245 : vector<1x32xf32>
    %275 = arith.addf %273, %274 : vector<1x32xf32>
    %c0_174 = arith.constant 0 : index
    %c0_175 = arith.constant 0 : index
    %276 = vector.load %arg12[%c0_174, %c0_175] : memref<32x16xf32, #tpu.memory_space<vmem>>, vector<32x16xf32>
    %cst_176 = arith.constant dense<0.000000e+00> : vector<1x16xf32>
    %277 = tpu.matmul %275, %276, %cst_176 {dimension_numbers = #tpu.dot_dimension_numbers<[1], [0], [0], [1], [0, 0, 1, 1], [], []>, precision = #tpu.contract_precision<fp32>} : vector<1x32xf32>, vector<32x16xf32>, vector<1x16xf32> -> vector<1x16xf32>
    %c0_177 = arith.constant 0 : index
    %c0_178 = arith.constant 0 : index
    %278 = vector.load %arg13[%c0_177, %c0_178] : memref<1x16xf32, #tpu.memory_space<vmem>>, vector<1x16xf32>
    %279 = arith.addf %277, %278 : vector<1x16xf32>
    %280 = vector.extract_strided_slice %279 {offsets = [0, 0], sizes = [1, 8], strides = [1, 1]} : vector<1x16xf32> to vector<1x8xf32>
    %281 = vector.extract_strided_slice %279 {offsets = [0, 8], sizes = [1, 8], strides = [1, 1]} : vector<1x16xf32> to vector<1x8xf32>
    %c0_179 = arith.constant 0 : index
    %c0_180 = arith.constant 0 : index
    %c0_181 = arith.constant 0 : index
    %282 = vector.load %arg16[%c0_179, %c0_180, %c0_181] : memref<1x1x8xf32, #tpu.memory_space<vmem>>, vector<1x1x8xf32>
    %283 = vector.shape_cast %282 : vector<1x1x8xf32> to vector<1x8xf32>
    %cst_182 = arith.constant 5.000000e-01 : f32
    %284 = vector.broadcast %cst_182 : f32 to vector<1x8xf32>
    %285 = arith.mulf %284, %281 : vector<1x8xf32>
    %286 = math.exp %285 : vector<1x8xf32>
    %287 = arith.mulf %283, %286 : vector<1x8xf32>
    %288 = arith.addf %287, %280 : vector<1x8xf32>
    %c0_183 = arith.constant 0 : index
    %c0_184 = arith.constant 0 : index
    %289 = vector.load %arg14[%c0_183, %c0_184] : memref<8x16xf32, #tpu.memory_space<vmem>>, vector<8x16xf32>
    %cst_185 = arith.constant dense<0.000000e+00> : vector<1x16xf32>
    %290 = tpu.matmul %288, %289, %cst_185 {dimension_numbers = #tpu.dot_dimension_numbers<[1], [0], [0], [1], [0, 0, 1, 1], [], []>, precision = #tpu.contract_precision<fp32>} : vector<1x8xf32>, vector<8x16xf32>, vector<1x16xf32> -> vector<1x16xf32>
    %c0_186 = arith.constant 0 : index
    %c0_187 = arith.constant 0 : index
    %291 = vector.load %arg15[%c0_186, %c0_187] : memref<1x16xf32, #tpu.memory_space<vmem>>, vector<1x16xf32>
    %292 = arith.addf %290, %291 : vector<1x16xf32>
    %c0_188 = arith.constant 0 : index
    %c0_189 = arith.constant 0 : index
    %c0_190 = arith.constant 0 : index
    %293 = vector.load %arg21[%c0_188, %c0_189, %c0_190] : memref<1x1x16xf32, #tpu.memory_space<vmem>>, vector<1x1x16xf32>
    %294 = vector.shape_cast %293 : vector<1x1x16xf32> to vector<1x16xf32>
    %295 = vector.shape_cast %279 : vector<1x16xf32> to vector<1x1x16xf32>
    tpu.vector_store %arg21[%c0_188, %c0_189, %c0_190], %295 {strides = array<i32>} : memref<1x1x16xf32, #tpu.memory_space<vmem>>, vector<1x1x16xf32>,
    %c0_191 = arith.constant 0 : index
    %c0_192 = arith.constant 0 : index
    %c0_193 = arith.constant 0 : index
    %296 = vector.load %arg19[%c0_191, %c0_192, %c0_193] : memref<1x1x8xf32, #tpu.memory_space<vmem>>, vector<1x1x8xf32>
    %297 = vector.shape_cast %296 : vector<1x1x8xf32> to vector<1x8xf32>
    %298 = vector.shape_cast %280 : vector<1x8xf32> to vector<1x1x8xf32>
    tpu.vector_store %arg19[%c0_191, %c0_192, %c0_193], %298 {strides = array<i32>} : memref<1x1x8xf32, #tpu.memory_space<vmem>>, vector<1x1x8xf32>,
    %c0_194 = arith.constant 0 : index
    %c0_195 = arith.constant 0 : index
    %c0_196 = arith.constant 0 : index
    %299 = vector.load %arg20[%c0_194, %c0_195, %c0_196] : memref<1x1x8xf32, #tpu.memory_space<vmem>>, vector<1x1x8xf32>
    %300 = vector.shape_cast %299 : vector<1x1x8xf32> to vector<1x8xf32>
    %301 = vector.shape_cast %281 : vector<1x8xf32> to vector<1x1x8xf32>
    tpu.vector_store %arg20[%c0_194, %c0_195, %c0_196], %301 {strides = array<i32>} : memref<1x1x8xf32, #tpu.memory_space<vmem>>, vector<1x1x8xf32>,
    %c0_197 = arith.constant 0 : index
    %c0_198 = arith.constant 0 : index
    %c0_199 = arith.constant 0 : index
    %302 = vector.load %arg18[%c0_197, %c0_198, %c0_199] : memref<1x1x8xf32, #tpu.memory_space<vmem>>, vector<1x1x8xf32>
    %303 = vector.shape_cast %302 : vector<1x1x8xf32> to vector<1x8xf32>
    %304 = vector.shape_cast %288 : vector<1x8xf32> to vector<1x1x8xf32>
    tpu.vector_store %arg18[%c0_197, %c0_198, %c0_199], %304 {strides = array<i32>} : memref<1x1x8xf32, #tpu.memory_space<vmem>>, vector<1x1x8xf32>,
    %c0_200 = arith.constant 0 : index
    %c0_201 = arith.constant 0 : index
    %c0_202 = arith.constant 0 : index
    %305 = vector.load %arg17[%c0_200, %c0_201, %c0_202] : memref<1x1x16xf32, #tpu.memory_space<vmem>>, vector<1x1x16xf32>
    %306 = vector.shape_cast %305 : vector<1x1x16xf32> to vector<1x16xf32>
    %307 = vector.shape_cast %292 : vector<1x16xf32> to vector<1x1x16xf32>
    tpu.vector_store %arg17[%c0_200, %c0_201, %c0_202], %307 {strides = array<i32>} : memref<1x1x16xf32, #tpu.memory_space<vmem>>, vector<1x1x16xf32>,
    return
  }
  func.func @transform_0(%arg0: i32) -> (i32, i32, i32, i32) {
    %c0_i32 = arith.constant 0 : i32
    %c0_i32_0 = arith.constant 0 : i32
    %c0_i32_1 = arith.constant 0 : i32
    %c0_i32_2 = arith.constant 0 : i32
    return %arg0, %c0_i32, %c0_i32_0, %c0_i32_1 : i32, i32, i32, i32
  }
  func.func @transform_1(%arg0: i32) -> (i32, i32, i32) {
    %c0_i32 = arith.constant 0 : i32
    %c0_i32_0 = arith.constant 0 : i32
    %c0_i32_1 = arith.constant 0 : i32
    %c0_i32_2 = arith.constant 0 : i32
    return %c0_i32, %c0_i32_0, %c0_i32_1 : i32, i32, i32
  }
  func.func @transform_2(%arg0: i32) -> (i32, i32) {
    %c0_i32 = arith.constant 0 : i32
    %c0_i32_0 = arith.constant 0 : i32
    %c0_i32_1 = arith.constant 0 : i32
    return %c0_i32, %c0_i32_0 : i32, i32
  }
  func.func @transform_3(%arg0: i32) -> (i32, i32, i32) {
    %c0_i32 = arith.constant 0 : i32
    %c0_i32_0 = arith.constant 0 : i32
    %c0_i32_1 = arith.constant 0 : i32
    %c0_i32_2 = arith.constant 0 : i32
    return %c0_i32, %c0_i32_0, %c0_i32_1 : i32, i32, i32
  }
  func.func @transform_4(%arg0: i32) -> (i32, i32) {
    %c0_i32 = arith.constant 0 : i32
    %c0_i32_0 = arith.constant 0 : i32
    %c0_i32_1 = arith.constant 0 : i32
    return %c0_i32, %c0_i32_0 : i32, i32
  }
  func.func @transform_5(%arg0: i32) -> (i32, i32, i32) {
    %c0_i32 = arith.constant 0 : i32
    %c0_i32_0 = arith.constant 0 : i32
    %c0_i32_1 = arith.constant 0 : i32
    %c0_i32_2 = arith.constant 0 : i32
    return %c0_i32, %c0_i32_0, %c0_i32_1 : i32, i32, i32
  }
  func.func @transform_6(%arg0: i32) -> (i32, i32) {
    %c0_i32 = arith.constant 0 : i32
    %c0_i32_0 = arith.constant 0 : i32
    %c0_i32_1 = arith.constant 0 : i32
    return %c0_i32, %c0_i32_0 : i32, i32
  }
  func.func @transform_7(%arg0: i32) -> (i32, i32) {
    %c0_i32 = arith.constant 0 : i32
    %c0_i32_0 = arith.constant 0 : i32
    %c0_i32_1 = arith.constant 0 : i32
    return %c0_i32, %c0_i32_0 : i32, i32
  }
  func.func @transform_8(%arg0: i32) -> (i32, i32) {
    %c0_i32 = arith.constant 0 : i32
    %c0_i32_0 = arith.constant 0 : i32
    %c0_i32_1 = arith.constant 0 : i32
    return %c0_i32, %c0_i32_0 : i32, i32
  }
  func.func @transform_9(%arg0: i32) -> (i32, i32) {
    %c0_i32 = arith.constant 0 : i32
    %c0_i32_0 = arith.constant 0 : i32
    %c0_i32_1 = arith.constant 0 : i32
    return %c0_i32, %c0_i32_0 : i32, i32
  }
  func.func @transform_10(%arg0: i32) -> (i32, i32) {
    %c0_i32 = arith.constant 0 : i32
    %c0_i32_0 = arith.constant 0 : i32
    %c0_i32_1 = arith.constant 0 : i32
    return %c0_i32, %c0_i32_0 : i32, i32
  }
  func.func @transform_11(%arg0: i32) -> (i32, i32) {
    %c0_i32 = arith.constant 0 : i32
    %c0_i32_0 = arith.constant 0 : i32
    %c0_i32_1 = arith.constant 0 : i32
    return %c0_i32, %c0_i32_0 : i32, i32
  }
  func.func @transform_12(%arg0: i32) -> (i32, i32) {
    %c0_i32 = arith.constant 0 : i32
    %c0_i32_0 = arith.constant 0 : i32
    %c0_i32_1 = arith.constant 0 : i32
    return %c0_i32, %c0_i32_0 : i32, i32
  }
  func.func @transform_13(%arg0: i32) -> (i32, i32) {
    %c0_i32 = arith.constant 0 : i32
    %c0_i32_0 = arith.constant 0 : i32
    %c0_i32_1 = arith.constant 0 : i32
    return %c0_i32, %c0_i32_0 : i32, i32
  }
  func.func @transform_14(%arg0: i32) -> (i32, i32) {
    %c0_i32 = arith.constant 0 : i32
    %c0_i32_0 = arith.constant 0 : i32
    %c0_i32_1 = arith.constant 0 : i32
    return %c0_i32, %c0_i32_0 : i32, i32
  }
  func.func @transform_15(%arg0: i32) -> (i32, i32, i32) {
    %c0_i32 = arith.constant 0 : i32
    %c0_i32_0 = arith.constant 0 : i32
    %c0_i32_1 = arith.constant 0 : i32
    return %arg0, %c0_i32, %c0_i32_0 : i32, i32, i32
  }
  func.func @transform_16(%arg0: i32) -> (i32, i32, i32) {
    %c0_i32 = arith.constant 0 : i32
    %c0_i32_0 = arith.constant 0 : i32
    %c0_i32_1 = arith.constant 0 : i32
    return %arg0, %c0_i32, %c0_i32_0 : i32, i32, i32
  }
  func.func @transform_17(%arg0: i32) -> (i32, i32, i32) {
    %c0_i32 = arith.constant 0 : i32
    %c0_i32_0 = arith.constant 0 : i32
    %c0_i32_1 = arith.constant 0 : i32
    return %arg0, %c0_i32, %c0_i32_0 : i32, i32, i32
  }
  func.func @transform_18(%arg0: i32) -> (i32, i32, i32) {
    %c0_i32 = arith.constant 0 : i32
    %c0_i32_0 = arith.constant 0 : i32
    %c0_i32_1 = arith.constant 0 : i32
    return %arg0, %c0_i32, %c0_i32_0 : i32, i32, i32
  }
  func.func @transform_19(%arg0: i32) -> (i32, i32, i32) {
    %c0_i32 = arith.constant 0 : i32
    %c0_i32_0 = arith.constant 0 : i32
    %c0_i32_1 = arith.constant 0 : i32
    return %arg0, %c0_i32, %c0_i32_0 : i32, i32, i32
  }
  func.func @transform_20(%arg0: i32) -> (i32, i32, i32) {
    %c0_i32 = arith.constant 0 : i32
    %c0_i32_0 = arith.constant 0 : i32
    %c0_i32_1 = arith.constant 0 : i32
    return %arg0, %c0_i32, %c0_i32_0 : i32, i32, i32
  }
}

</mosaic_0001>

<bundles_post_ra>
// kernel: reference_encoder_forward.1
= control target key start
LH: loop header
LB: loop body
LE: loop exit
PB: predicated region body
PF: predicated region fallthrough
CT: control target
= control target key end

     0   :  { %s36993_s0 = inlined_call_operand.vmem [shape: f32[2,18,1,18], index: 0, kind: input, shape index: {}]   ;;  %s36994_s1 = inlined_call_operand.vmem [shape: f32[3,18,80], index: 1, kind: input, shape index: {}]   ;;  %s36995_s2 = inlined_call_operand.vmem [shape: f32[1,80], index: 2, kind: input, shape index: {}]   ;;  %s36996_s3 = inlined_call_operand.vmem [shape: f32[3,80,48], index: 3, kind: input, shape index: {}]   ;;  %s36997_s4 = inlined_call_operand.vmem [shape: f32[1,48], index: 4, kind: input, shape index: {}]   ;;  %s36998_s5 = inlined_call_operand.vmem [shape: f32[3,48,32], index: 5, kind: input, shape index: {}]   ;;  %s36999_s6 = inlined_call_operand.vmem [shape: f32[1,32], index: 6, kind: input, shape index: {}]   ;;  %s37000_s7 = inlined_call_operand.vmem [shape: f32[32,96], index: 7, kind: input, shape index: {}]   ;;  %s37001_s8 = inlined_call_operand.vmem [shape: f32[1,96], index: 8, kind: input, shape index: {}]   ;;  %s37002_s9 = inlined_call_operand.vmem [shape: f32[32,96], index: 9, kind: input, shape index: {}]   ;;  %s37003_s10 = inlined_call_operand.vmem [shape: f32[1,96], index: 10, kind: input, shape index: {}]   ;;  %s37004_s11 = inlined_call_operand.vmem [shape: f32[32,16], index: 11, kind: input, shape index: {}]   ;;  %s37005_s12 = inlined_call_operand.vmem [shape: f32[1,16], index: 12, kind: input, shape index: {}]   ;;  %s37006_s13 = inlined_call_operand.vmem [shape: f32[8,16], index: 13, kind: input, shape index: {}]   ;;  %s37007_s14 = inlined_call_operand.vmem [shape: f32[1,16], index: 14, kind: input, shape index: {}]   ;;  %s37008_s15 = inlined_call_operand.vmem [shape: f32[2,1,8], index: 15, kind: input, shape index: {}]   ;;  %s37009_s16 = inlined_call_operand.hbm [shape: f32[2,1,16], index: 16, kind: output, shape index: {0}]   ;;  %s37010_s17 = inlined_call_operand.hbm [shape: f32[2,1,8], index: 17, kind: output, shape index: {1}]   ;;  %s37011_s18 = inlined_call_operand.hbm [shape: f32[2,1,8], index: 18, kind: output, shape index: {2}]   ;;  %s37012_s19 = inlined_call_operand.hbm [shape: f32[2,1,8], index: 19, kind: output, shape index: {3}]   ;;  %s37013_s20 = inlined_call_operand.hbm [shape: f32[2,1,16], index: 20, kind: output, shape index: {4}]  }
   0x1   :  { %37259 = sst [smem:[#allocation117_spill]] %s36993_s0 }
   0x2   :  { %37260 = sst [smem:[#allocation118_spill]] %s36994_s1 }
   0x3   :  { %37261 = sst [smem:[#allocation119_spill]] %s36995_s2 }
   0x4   :  { %37262 = sst [smem:[#allocation120_spill]] %s36996_s3 }
   0x5   :  { %37263 = sst [smem:[#allocation121_spill]] %s36997_s4 }
   0x6   :  { %37264 = sst [smem:[#allocation122_spill]] %s36998_s5 }
   0x7   :  { %37265 = sst [smem:[#allocation123_spill]] %s36999_s6 }
   0x8   :  { %37266 = sst [smem:[#allocation124_spill]] %s37000_s7 }
   0x9   :  { %37267 = sst [smem:[#allocation125_spill]] %s37001_s8 }
   0xa   :  { %37268 = sst [smem:[#allocation126_spill]] %s37002_s9 }
   0xb   :  { %37269 = sst [smem:[#allocation127_spill]] %s37003_s10 }
   0xc   :  { %37270 = sst [smem:[#allocation128_spill]] %s37004_s11 }
   0xd   :  { %37271 = sst [smem:[#allocation129_spill]] %s37005_s12 }
   0xe   :  { %37272 = sst [smem:[#allocation130_spill]] %s37006_s13 }
   0xf   :  { %37273 = sst [smem:[#allocation131_spill]] %s37008_s15 }
  0x10   :  { %26 = vsyncpa [#allocation3], 0 }
  0x11   :  { %28 = vsyncpa [#allocation3 + $0x1], 0 }
  0x12   :  { %29 = vsyncpa [#allocation5], 0 }
  0x13   :  { %31 = vsyncpa [#allocation5 + $0x1], 0 }
  0x14   :  { %32 = vsyncpa [#allocation8], 0 }
  0x15   :  { %34 = vsyncpa [#allocation8 + $0x1], 0  ;;  %s31431_s1 = smov 0   ;;  %s31433_s22 = smov 0  }
  0x16   :  { %s31435_s23 = smov 0   ;;  %s31437_s24 = smov 0  }
  0x17 LB: > { %37274 = sst [smem:[#allocation13_spill]] %s31309_s23  ;;  %s31452_s2 = sadd.s32 4294967295, %s31313_s24   ;;  %s31313_s24 = sphi %s31437_s24, %s37678_s24   ;;  %s31309_s23 = sphi %s31435_s23, %s37680_s23   ;;  %s31305_s22 = sphi %s31433_s22, %s37682_s22   ;;  %s31301_s1 = sphi %s31431_s1, %s37681_s1  }
  0x18   : > { %s37018_s25 = sadd.s32 4294967294, %s31313_s24   ;;  %s31456_s3 = sadd.s32 1, %s31313_s24  }
  0x19   : > { %37275 = sst [smem:[#allocation14_spill]] %s31456_s3  ;;  %s393_s26 = sadd.s32 1, %s31309_s23 }
  0x1a   : > { %s390_s27 = ssub.s32 %s31313_s24, %s31456_s3  ;;  %p403_p0 = scmp.ne.s32.totalorder %s31309_s23, %s31305_s22 }
  0x1b   : > { %p391_p1 = scmp.eq.s32.totalorder %s390_s27, 0  ;;  %p404_p2 = scmp.eq.s32.totalorder %s31452_s2, 1 }
  0x1c   : > { %p409_p3 = scmp.ne.s32.totalorder %s31305_s22, %s31301_s1  ;;  %p410_p4 = scmp.eq.s32.totalorder %s37018_s25, 1 }
  0x1d   : > { %s31469_s28 = scalar_select %p391_p1, %s31309_s23, %s393_s26  }
  0x1e   : > { %p31471_p5 = por %p404_p2, %p403_p0  ;;  %p31475_p6 = por %p410_p4, %p409_p3 }
  0x1f   : > { %37276 = sst [smem:[#allocation15_spill]] %s31469_s28  ;;  %p25359_p7 = scmp.ge.s32.totalorder %s31313_s24, 1 }
  0x20   : > { %p587_p8 = scmp.lt.s32.totalorder %s31313_s24, 3 }
  0x22   : > { %p588_p9 = pnand %p25359_p7, %p587_p8 }
  0x24   : > { %591 = sbr.rel (%p588_p9) target bundleno = 3789 (0xecd), region = 84 }
  0x29   : > { %s37279_s21 = sld [smem:[#allocation118_spill]]  ;;  %vm718_vm0 = vcmask 1041408   ;;  %v37025_v3 = vmov 0.0   ;;  %p662_p10 = scmp.lt.s32.totalorder %s31452_s2, 1  ;;  %vm31316_vm1 = vmmov 0   ;;  %vm714_vm2 = vcmask 146432  }
  0x2a   : > { %27214 = vmatprep.subr.mxu1 %v37025_v3  ;;  %27205 = vmatprep.subr.mxu0 %v37025_v3  ;;  %s37280_s26 = sld [smem:[#allocation117_spill]]  ;;  %vm12185_vm4 = vcmask 654336   ;;  %vm19014_vm13 = vcmask 392192   ;;  %s31319_s0 = smov 120  }
  0x2b   : > { %27220 = vmatprep.mubr.msk.f32.mxu1 %vm31316_vm1, %v37025_v3  ;;  %27211 = vmatprep.mubr.msk.f32.mxu0 %vm31316_vm1, %v37025_v3  ;;  %s31511_s25 = scalar_select %p662_p10, %s31452_s2, 1 }
  0x2c   : > { %s37281_s23 = sld [smem:[#allocation119_spill]] }
  0x2d   : > { %s31057_s28 = smul.u32 18, %s31511_s25  ;;  %s37452_s30 = sld [smem:[#allocation121_spill]] }
  0x2e   : > { %s37609_s5 = sld [smem:[#allocation122_spill]] }
  0x2f   : > { %v705_v0 = vld [vmem:[%s37279_s21 + $0x10] sm:$0x3]  ;;  %v704_v1 = vld [vmem:[%s37279_s21 + $0x8] sm:$0xff]  ;;  %v703_v2 = vld [vmem:[%s37279_s21] sm:$0xff]  ;;  %s37660_s7 = sld [smem:[#allocation124_spill]] }
  0x30   : > { %v720_v4 = vsel %vm718_vm0, %v705_v0, 0  ;;  %v31493_v5 = vand.u32 4294901760, %v704_v1  ;;  %v31495_v6 = vand.u32 4294901760, %v703_v2  ;;  %s31535_s27 = scalar_lea.vmem %s37280_s26, %s31057_s28  ;;  %v25378_v19 = vld [vmem:[%s37279_s21 + $0x28] sm:$0x3]  ;;  %v25377_v27 = vld [vmem:[%s37279_s21 + $0x20] sm:$0xff] }
  0x31   : > { %v31498_v7 = vand.u32 4294901760, %v720_v4  ;;  %v669_v17 = vld [vmem:[%s31535_s27] sm:$0x1]  ;;  %v1199_v25 = vsel %vm718_vm0, %v25378_v19, 0  ;;  %v25360_v29 = vld [vmem:[%s31535_s27 + $0x1] sm:$0x1] }
  0x32   : > { %v31505_v8 = vsub.f32 %v704_v1, %v31493_v5  ;;  %v31508_v9 = vsub.f32 %v703_v2, %v31495_v6  ;;  %v716_v18 = vsel %vm714_vm2, %v669_v17, 0  ;;  %v31565_v28 = vand.u32 4294901760, %v1199_v25  ;;  %v25376_v31 = vld [vmem:[%s37279_s21 + $0x18] sm:$0xff]  ;;  %v25381_v51 = vld [vmem:[%s37279_s21 + $0x40] sm:$0x3]  ;;  %v25379_v58 = vld [vmem:[%s37279_s21 + $0x30] sm:$0xff]  ;;  %s37282_s3 = smov %s37281_s23 }
  0x33   : > { %v31514_v10 = vsub.f32 %v720_v4, %v31498_v7  ;;  %27206 = vmatpush3.msra.mxu0 %v31498_v7  ;;  %v31552_v22 = vand.u32 4294901760, %v716_v18  ;;  %v31574_v32 = vand.u32 4294901760, %v25377_v27  ;;  %v1196_v34 = vsel %vm714_vm2, %v25360_v29, 0  ;;  %v25380_v55 = vld [vmem:[%s37279_s21 + $0x38] sm:$0xff]  ;;  %v25361_v57 = vld [vmem:[%s31535_s27 + $0x2] sm:$0x1] }
  0x34   : > { %27207 = vmatprep.subr.mxu0 %v37025_v3  ;;  %v31519_v11 = vand.u32 4294901760, %v31505_v8  ;;  %v31522_v12 = vand.u32 4294901760, %v31508_v9  ;;  %v31582_v35 = vsub.f32 %v1199_v25, %v31565_v28  ;;  %v31584_v36 = vand.u32 4294901760, %v25376_v31  ;;  %v25362_v29 = vld [vmem:[%s31535_s27 + $0x3] sm:$0x1]  ;;  %s37285_s26 = sld [smem:[#allocation120_spill]] }
  0x35   : > { %v31526_v13 = vand.u32 4294901760, %v31514_v10  ;;  %27208 = vmatpush3.msra.mxu0 %v31493_v5  ;;  %v791_v24 = vsub.f32 %v716_v18, %v31552_v22  ;;  %v31590_v37 = vsub.f32 %v25377_v27, %v31574_v32  ;;  %v31592_v38 = vand.u32 4294901760, %v1196_v34  ;;  %s37664_s6 = sld [smem:[#allocation123_spill]]  ;;  %s37252_s28 = smov 96  }
  0x36   : > { %v837_v14 = vsub.f32 %v31505_v8, %v31519_v11  ;;  %27209 = vmatprep.subr.mxu0 %v37025_v3  ;;  %v844_v16 = vsub.f32 %v31508_v9, %v31522_v12  ;;  %v31600_v39 = vand.u32 4294901760, %v31582_v35  ;;  %v31603_v40 = vsub.f32 %v25376_v31, %v31584_v36  ;;  %s37665_s9 = sld [smem:[#allocation126_spill]] }
  0x37   : > { %v830_v15 = vsub.f32 %v31514_v10, %v31526_v13  ;;  %27210 = vmatpush3.msra.mxu0 %v31495_v6  ;;  %v792_v26 = vand.u32 4294901760, %v791_v24  ;;  %v31609_v41 = vand.u32 4294901760, %v31590_v37  ;;  %v31612_v42 = vsub.f32 %v1196_v34, %v31592_v38  ;;  %s37666_s8 = sld [smem:[#allocation125_spill]] }
  0x38   : > { %27223 = vmatprep.subr.mxu0 %v37025_v3  ;;  %v31550_v21 = vand.u32 4294901760, %v837_v14  ;;  %v31555_v23 = vand.u32 4294901760, %v844_v16  ;;  %v1309_v43 = vsub.f32 %v31582_v35, %v31600_v39  ;;  %v31620_v44 = vand.u32 4294901760, %v31603_v40  ;;  %s37667_s10 = sld [smem:[#allocation127_spill]] }
  0x39   : > { %v31548_v20 = vand.u32 4294901760, %v830_v15  ;;  %v793_v30 = vsub.f32 %v791_v24, %v792_v26  ;;  %v1316_v45 = vsub.f32 %v31590_v37, %v31609_v41  ;;  %v1271_v46 = vand.u32 4294901760, %v31612_v42  ;;  %s37668_s11 = sld [smem:[#allocation128_spill]] }
  0x3a   : > { %v31633_v47 = vand.u32 4294901760, %v1309_v43  ;;  %v1323_v48 = vsub.f32 %v31603_v40, %v31620_v44  ;;  %v1678_v53 = vsel %vm718_vm0, %v25381_v51, 0  ;;  %v31680_v59 = vand.u32 4294901760, %v25380_v55  ;;  %v25363_v43 = vld [vmem:[%s31535_s27 + $0x4] sm:$0x1]  ;;  %s37670_s12 = sld [smem:[#allocation129_spill]] }
  0x3b   : > { %27215 = vmatpush3.msra.mxu1 %v31548_v20  ;;  %v794_v33 = vand.u32 4294901760, %v793_v30  ;;  %v31643_v49 = vand.u32 4294901760, %v1316_v45  ;;  %v1272_v50 = vsub.f32 %v31612_v42, %v1271_v46  ;;  %v31669_v56 = vand.u32 4294901760, %v1678_v53  ;;  %s37671_s13 = sld [smem:[#allocation130_spill]] }
  0x3c   : > { %27216 = vmatprep.subr.mxu1 %v37025_v3  ;;  %v31655_v52 = vand.u32 4294901760, %v1323_v48  ;;  %v1675_v60 = vsel %vm714_vm2, %v25361_v57, 0  ;;  %v31690_v62 = vand.u32 4294901760, %v25379_v58  ;;  %v31697_v63 = vsub.f32 %v25380_v55, %v31680_v59  ;;  %s37672_s15 = sld [smem:[#allocation131_spill]] }
  0x3d   : > { %27217 = vmatpush3.msra.mxu1 %v31550_v21  ;;  %27212 = vmatmul.mubr.f32.vlgmr.msra.gmra.mxu0 %v794_v33  ;;  %v1273_v54 = vand.u32 4294901760, %v1272_v50  ;;  %v31688_v61 = vsub.f32 %v1678_v53, %v31669_v56  ;;  %v31699_v0 = vand.u32 4294901760, %v1675_v60  ;;  %v2630_v30 = vsel %vm714_vm2, %v25362_v29, 0 }
  0x3e   : > { %27218 = vmatprep.subr.mxu1 %v37025_v3  ;;  %27224 = vmatpush3.msra.mxu0 %v31514_v10  ;;  %v31709_v2 = vsub.f32 %v25379_v58, %v31690_v62  ;;  %v31718_v4 = vand.u32 4294901760, %v31697_v63  ;;  %v31842_v31 = vand.u32 4294901760, %v2630_v30  ;;  %v3106_v45 = vsel %vm714_vm2, %v25363_v43, 0 }
  0x3f   : > { %27219 = vmatpush3.msra.mxu1 %v31555_v23  ;;  %27225 = vmatprep.subr.mxu0 %v37025_v3  ;;  %v31706_v1 = vand.u32 4294901760, %v31688_v61  ;;  %v31721_v14 = vsub.f32 %v1675_v60, %v31699_v0 }
  0x40   : > { %27232 = vmatprep.subr.mxu1 %v37025_v3  ;;  %27221 = vmatmul.mubr.f32.vlgmr.msra.gmra.mxu1 %v31552_v22  ;;  %v31731_v16 = vand.u32 4294901760, %v31709_v2  ;;  %v1795_v17 = vsub.f32 %v31697_v63, %v31718_v4  ;;  %v2701_v33 = vsub.f32 %v2630_v30, %v31842_v31 }
  0x41   : > { %27233 = vmatpush3.msra.mxu1 %v31498_v7  ;;  %27238 = vmatprep.mubr.msk.f32.mxu1 %vm31316_vm1, %v37025_v3  ;;  %v1788_v15 = vsub.f32 %v31688_v61, %v31706_v1  ;;  %v31740_v18 = vand.u32 4294901760, %v31721_v14 }
  0x42   : > { %27234 = vmatprep.subr.mxu1 %v37025_v3  ;;  %27226 = vmatpush3.msra.mxu0 %v31505_v8  ;;  %v2702_v34 = vand.u32 4294901760, %v2701_v33 }
  0x43   : > { %27235 = vmatpush3.msra.mxu1 %v31493_v5  ;;  %27229 = vmatprep.mubr.msk.f32.mxu0 %vm31316_vm1, %v37025_v3  ;;  %v31746_v19 = vand.u32 4294901760, %v1788_v15  ;;  %v1751_v25 = vsub.f32 %v31721_v14, %v31740_v18  ;;  %v25365_v15 = vld [vmem:[%s31535_s27 + $0x6] sm:$0x1] }
  0x44   : > { %27236 = vmatprep.subr.mxu1 %v37025_v3  ;;  %27227 = vmatprep.subr.mxu0 %v37025_v3 }
  0x45   : > { %27237 = vmatpush3.msra.mxu1 %v31495_v6  ;;  %27228 = vmatpush3.msra.mxu0 %v31508_v9  ;;  %v1752_v27 = vand.u32 4294901760, %v1751_v25 }
  0x46   : > { %27250 = vmatprep.subr.mxu1 %v37025_v3  ;;  %27239 = vmatmul.mubr.f32.vlgmr.msra.gmra.mxu1 %v792_v26 }
  0x47   : > { %27230 = vmatmul.mubr.f32.vlgmr.msra.gmra.mxu0 %v791_v24  ;;  %27241 = vmatprep.subr.mxu0 %v37025_v3  ;;  %v31756_v24 = vand.u32 4294901760, %v1795_v17  ;;  %v4534_v17 = vsel %vm714_vm2, %v25365_v15, 0 }
  0x48   : > { %27251 = vmatpush3.msra.mxu1 %v31498_v7  ;;  %27242 = vmatpush3.msra.mxu0 %v31526_v13 }
  0x49   : > { %27252 = vmatprep.subr.mxu1 %v37025_v3  ;;  %27243 = vmatprep.subr.mxu0 %v37025_v3 }
  0x4a   : > { %27253 = vmatpush3.msra.mxu1 %v31493_v5  ;;  %27244 = vmatpush3.msra.mxu0 %v31519_v11 }
  0x4b   : > { %27254 = vmatprep.subr.mxu1 %v37025_v3  ;;  %27245 = vmatprep.subr.mxu0 %v37025_v3 }
  0x4c   : > { %27255 = vmatpush3.msra.mxu1 %v31495_v6  ;;  %27246 = vmatpush3.msra.mxu0 %v31522_v12 }
  0x4d   : > { %27247 = vmatprep.mubr.msk.f32.mxu0 %vm31316_vm1, %v37025_v3  ;;  %27256 = vmatprep.mubr.msk.f32.mxu1 %vm31316_vm1, %v37025_v3 }
  0x4e   : > { %27268 = vmatprep.subr.mxu1 %v37025_v3  ;;  %27248 = vmatmul.mubr.f32.vlgmr.msra.gmra.mxu0 %v31552_v22 }
  0x4f   : > { %27257 = vmatmul.mubr.f32.vlgmr.msra.gmra.mxu1 %v31552_v22  ;;  %27259 = vmatprep.subr.mxu0 %v37025_v3  ;;  %v1802_v22 = vsub.f32 %v31709_v2, %v31731_v16 }
  0x50   : > { %27269 = vmatpush3.msra.mxu1 %v31633_v47  ;;  %27260 = vmatpush3.msra.mxu0 %v31565_v28 }
  0x51   : > { %27270 = vmatprep.subr.mxu1 %v37025_v3  ;;  %27261 = vmatprep.subr.mxu0 %v37025_v3  ;;  %v31764_v26 = vand.u32 4294901760, %v1802_v22 }
  0x52   : > { %27271 = vmatpush3.msra.mxu1 %v31643_v49  ;;  %27262 = vmatpush3.msra.mxu0 %v31574_v32 }
  0x53   : > { %27272 = vmatprep.subr.mxu1 %v37025_v3  ;;  %27263 = vmatprep.subr.mxu0 %v37025_v3 }
  0x54   : > { %27273 = vmatpush3.msra.mxu1 %v31655_v52  ;;  %27264 = vmatpush3.msra.mxu0 %v31584_v36 }
  0x55   : > { %27265 = vmatprep.mubr.msk.f32.mxu0 %vm31316_vm1, %v37025_v3  ;;  %27274 = vmatprep.mubr.msk.f32.mxu1 %vm31316_vm1, %v37025_v3 }
  0x56   : > { %27286 = vmatprep.subr.mxu1 %v37025_v3  ;;  %27266 = vmatmul.mubr.f32.vlgmr.msra.gmra.mxu0 %v1273_v54  ;;  %v25364_v54 = vld [vmem:[%s31535_s27 + $0x5] sm:$0x1] }
  0x57   : > { %27275 = vmatmul.mubr.f32.vlgmr.msra.gmra.mxu1 %v31592_v38  ;;  %27277 = vmatprep.subr.mxu0 %v37025_v3  ;;  %v4058_v55 = vsel %vm714_vm2, %v25364_v54, 0 }
  0x58   : > { %27287 = vmatpush3.msra.mxu1 %v31565_v28  ;;  %27278 = vmatpush3.msra.mxu0 %v31582_v35  ;;  %v32016_v57 = vand.u32 4294901760, %v4058_v55 }
  0x59   : > { %27288 = vmatprep.subr.mxu1 %v37025_v3  ;;  %27279 = vmatprep.subr.mxu0 %v37025_v3 }
  0x5a   : > { %27289 = vmatpush3.msra.mxu1 %v31574_v32  ;;  %27280 = vmatpush3.msra.mxu0 %v31590_v37  ;;  %v4129_v58 = vsub.f32 %v4058_v55, %v32016_v57 }
  0x5b   : > { %27290 = vmatprep.subr.mxu1 %v37025_v3  ;;  %27281 = vmatprep.subr.mxu0 %v37025_v3 }
  0x5c   : > { %27291 = vmatpush3.msra.mxu1 %v31584_v36  ;;  %27282 = vmatpush3.msra.mxu0 %v31603_v40  ;;  %v4130_v60 = vand.u32 4294901760, %v4129_v58 }
  0x5d   : > { %27283 = vmatprep.mubr.msk.f32.mxu0 %vm31316_vm1, %v37025_v3  ;;  %27292 = vmatprep.mubr.msk.f32.mxu1 %vm31316_vm1, %v37025_v3 }
  0x5e   : > { %27304 = vmatprep.subr.mxu1 %v37025_v3  ;;  %27284 = vmatmul.mubr.f32.vlgmr.msra.gmra.mxu0 %v31612_v42 }
  0x5f   : > { %27293 = vmatmul.mubr.f32.vlgmr.msra.gmra.mxu1 %v1271_v46  ;;  %27295 = vmatprep.subr.mxu0 %v37025_v3  ;;  %v31900_v46 = vand.u32 4294901760, %v3106_v45 }
  0x60   : > { %27305 = vmatpush3.msra.mxu1 %v31565_v28  ;;  %27296 = vmatpush3.msra.mxu0 %v31600_v39 }
  0x61   : > { %27306 = vmatprep.subr.mxu1 %v37025_v3  ;;  %27297 = vmatprep.subr.mxu0 %v37025_v3  ;;  %v31912_v48 = vsub.f32 %v3106_v45, %v31900_v46 }
  0x62   : > { %27307 = vmatpush3.msra.mxu1 %v31574_v32  ;;  %27298 = vmatpush3.msra.mxu0 %v31609_v41 }
  0x63   : > { %27308 = vmatprep.subr.mxu1 %v37025_v3  ;;  %27299 = vmatprep.subr.mxu0 %v37025_v3  ;;  %v31922_v50 = vand.u32 4294901760, %v31912_v48 }
  0x64   : > { %27309 = vmatpush3.msra.mxu1 %v31584_v36  ;;  %27300 = vmatpush3.msra.mxu0 %v31620_v44 }
  0x65   : > { %27301 = vmatprep.mubr.msk.f32.mxu0 %vm31316_vm1, %v37025_v3  ;;  %27310 = vmatprep.mubr.msk.f32.mxu1 %vm31316_vm1, %v37025_v3  ;;  %v3179_v51 = vsub.f32 %v31912_v48, %v31922_v50 }
  0x66   : > { %27322 = vmatprep.subr.mxu1 %v37025_v3  ;;  %27302 = vmatmul.mubr.f32.vlgmr.msra.gmra.mxu0 %v31592_v38 }
  0x67   : > { %27311 = vmatmul.mubr.f32.vlgmr.msra.gmra.mxu1 %v31592_v38  ;;  %27313 = vmatprep.subr.mxu0 %v37025_v3  ;;  %v2703_v38 = vsub.f32 %v2701_v33, %v2702_v34  ;;  %v3180_v53 = vand.u32 4294901760, %v3179_v51 }
  0x68   : > { %27323 = vmatpush3.msra.mxu1 %v31746_v19  ;;  %27314 = vmatpush3.msra.mxu0 %v31669_v56 }
  0x69   : > { %27324 = vmatprep.subr.mxu1 %v37025_v3  ;;  %27315 = vmatprep.subr.mxu0 %v37025_v3  ;;  %v2704_v42 = vand.u32 4294901760, %v2703_v38 }
  0x6a   : > { %27325 = vmatpush3.msra.mxu1 %v31756_v24  ;;  %27316 = vmatpush3.msra.mxu0 %v31680_v59 }
  0x6b   : > { %27326 = vmatprep.subr.mxu1 %v37025_v3  ;;  %27317 = vmatprep.subr.mxu0 %v37025_v3 }
  0x6c   : > { %27327 = vmatpush3.msra.mxu1 %v31764_v26  ;;  %27318 = vmatpush3.msra.mxu0 %v31690_v62 }
  0x6d   : > { %27319 = vmatprep.mubr.msk.f32.mxu0 %vm31316_vm1, %v37025_v3  ;;  %27328 = vmatprep.mubr.msk.f32.mxu1 %vm31316_vm1, %v37025_v3 }
  0x6e   : > { %27340 = vmatprep.subr.mxu1 %v37025_v3  ;;  %27320 = vmatmul.mubr.f32.vlgmr.msra.gmra.mxu0 %v1752_v27 }
  0x6f   : > { %27329 = vmatmul.mubr.f32.vlgmr.msra.gmra.mxu1 %v31699_v0  ;;  %27331 = vmatprep.subr.mxu0 %v37025_v3 }
  0x70   : > { %27341 = vmatpush3.msra.mxu1 %v31669_v56  ;;  %27332 = vmatpush3.msra.mxu0 %v31688_v61 }
  0x71   : > { %27342 = vmatprep.subr.mxu1 %v37025_v3  ;;  %27333 = vmatprep.subr.mxu0 %v37025_v3 }
  0x72   : > { %27343 = vmatpush3.msra.mxu1 %v31680_v59  ;;  %27334 = vmatpush3.msra.mxu0 %v31697_v63 }
  0x73   : > { %27344 = vmatprep.subr.mxu1 %v37025_v3  ;;  %27335 = vmatprep.subr.mxu0 %v37025_v3 }
  0x74   : > { %27345 = vmatpush3.msra.mxu1 %v31690_v62  ;;  %27336 = vmatpush3.msra.mxu0 %v31709_v2 }
  0x75   : > { %27337 = vmatprep.mubr.msk.f32.mxu0 %vm31316_vm1, %v37025_v3  ;;  %27346 = vmatprep.mubr.msk.f32.mxu1 %vm31316_vm1, %v37025_v3 }
  0x76   : > { %27358 = vmatprep.subr.mxu1 %v37025_v3  ;;  %27338 = vmatmul.mubr.f32.vlgmr.msra.gmra.mxu0 %v31721_v14 }
  0x77   : > { %27347 = vmatmul.mubr.f32.vlgmr.msra.gmra.mxu1 %v31740_v18  ;;  %27349 = vmatprep.subr.mxu0 %v37025_v3 }
  0x78   : > { %27359 = vmatpush3.msra.mxu1 %v31669_v56  ;;  %27350 = vmatpush3.msra.mxu0 %v31706_v1 }
  0x79   : > { %27360 = vmatprep.subr.mxu1 %v37025_v3  ;;  %27351 = vmatprep.subr.mxu0 %v37025_v3 }
  0x7a   : > { %27361 = vmatpush3.msra.mxu1 %v31680_v59  ;;  %27352 = vmatpush3.msra.mxu0 %v31718_v4 }
  0x7b   : > { %27362 = vmatprep.subr.mxu1 %v37025_v3  ;;  %27353 = vmatprep.subr.mxu0 %v37025_v3 }
  0x7c   : > { %27363 = vmatpush3.msra.mxu1 %v31690_v62  ;;  %27354 = vmatpush3.msra.mxu0 %v31731_v16 }
  0x7d   : > { %27355 = vmatprep.mubr.msk.f32.mxu0 %vm31316_vm1, %v37025_v3  ;;  %27364 = vmatprep.mubr.msk.f32.mxu1 %vm31316_vm1, %v37025_v3 }
  0x7e   : > { %27376 = vmatprep.subr.mxu1 %v37025_v3  ;;  %27356 = vmatmul.mubr.f32.vlgmr.msra.gmra.mxu0 %v31699_v0 }
  0x7f   : > { %27365 = vmatmul.mubr.f32.vlgmr.msra.gmra.mxu1 %v31699_v0  ;;  %27367 = vmatprep.subr.mxu0 %v37025_v3 }
  0x80   : > { %27377 = vmatpush3.msra.mxu1 %v31548_v20  ;;  %27368 = vmatpush3.msra.mxu0 %v31498_v7 }
  0x81   : > { %27378 = vmatprep.subr.mxu1 %v37025_v3  ;;  %27369 = vmatprep.subr.mxu0 %v37025_v3 }
  0x82   : > { %27379 = vmatpush3.msra.mxu1 %v31550_v21  ;;  %27370 = vmatpush3.msra.mxu0 %v31493_v5 }
  0x83   : > { %27380 = vmatprep.subr.mxu1 %v37025_v3  ;;  %27371 = vmatprep.subr.mxu0 %v37025_v3 }
  0x84   : > { %27381 = vmatpush3.msra.mxu1 %v31555_v23  ;;  %27372 = vmatpush3.msra.mxu0 %v31495_v6 }
  0x85   : > { %27373 = vmatprep.mubr.msk.f32.mxu0 %vm31316_vm1, %v37025_v3  ;;  %27382 = vmatprep.mubr.msk.f32.mxu1 %vm31316_vm1, %v37025_v3 }
  0x86   : > { %27394 = vmatprep.subr.mxu1 %v37025_v3  ;;  %27374 = vmatmul.mubr.f32.vlgmr.msra.gmra.mxu0 %v1752_v27 }
  0x87   : > { %27383 = vmatmul.mubr.f32.vlgmr.msra.gmra.mxu1 %v31699_v0  ;;  %27385 = vmatprep.subr.mxu0 %v37025_v3 }
  0x88   : > { %27395 = vmatpush3.msra.mxu1 %v31498_v7  ;;  %27386 = vmatpush3.msra.mxu0 %v31514_v10 }
  0x89   : > { %27396 = vmatprep.subr.mxu1 %v37025_v3  ;;  %27387 = vmatprep.subr.mxu0 %v37025_v3 }
  0x8a   : > { %27397 = vmatpush3.msra.mxu1 %v31493_v5  ;;  %27388 = vmatpush3.msra.mxu0 %v31505_v8 }
  0x8b   : > { %27398 = vmatprep.subr.mxu1 %v37025_v3  ;;  %27389 = vmatprep.subr.mxu0 %v37025_v3 }
  0x8c   : > { %27399 = vmatpush3.msra.mxu1 %v31495_v6  ;;  %27390 = vmatpush3.msra.mxu0 %v31508_v9 }
  0x8d   : > { %27391 = vmatprep.mubr.msk.f32.mxu0 %vm31316_vm1, %v37025_v3  ;;  %27400 = vmatprep.mubr.msk.f32.mxu1 %vm31316_vm1, %v37025_v3 }
  0x8e   : > { %27412 = vmatprep.subr.mxu1 %v37025_v3  ;;  %27392 = vmatmul.mubr.f32.vlgmr.msra.gmra.mxu0 %v31721_v14 }
  0x8f   : > { %27401 = vmatmul.mubr.f32.vlgmr.msra.gmra.mxu1 %v31740_v18  ;;  %27403 = vmatprep.subr.mxu0 %v37025_v3  ;;  %v32074_v18 = vand.u32 4294901760, %v4534_v17 }
  0x90   : > { %27413 = vmatpush3.msra.mxu1 %v31498_v7  ;;  %27404 = vmatpush3.msra.mxu0 %v31526_v13 }
  0x91   : > { %27414 = vmatprep.subr.mxu1 %v37025_v3  ;;  %27405 = vmatprep.subr.mxu0 %v37025_v3  ;;  %v32086_v22 = vsub.f32 %v4534_v17, %v32074_v18 }
  0x92   : > { %27415 = vmatpush3.msra.mxu1 %v31493_v5  ;;  %27406 = vmatpush3.msra.mxu0 %v31519_v11 }
  0x93   : > { %27416 = vmatprep.subr.mxu1 %v37025_v3  ;;  %27407 = vmatprep.subr.mxu0 %v37025_v3  ;;  %v32096_v25 = vand.u32 4294901760, %v32086_v22 }
  0x94   : > { %27417 = vmatpush3.msra.mxu1 %v31495_v6  ;;  %27408 = vmatpush3.msra.mxu0 %v31522_v12 }
  0x95   : > { %27409 = vmatprep.mubr.msk.f32.mxu0 %vm31316_vm1, %v37025_v3  ;;  %27418 = vmatprep.mubr.msk.f32.mxu1 %vm31316_vm1, %v37025_v3  ;;  %v4607_v27 = vsub.f32 %v32086_v22, %v32096_v25 }
  0x96   : > { %27430 = vmatprep.subr.mxu1 %v37025_v3  ;;  %27410 = vmatmul.mubr.f32.vlgmr.msra.gmra.mxu0 %v31699_v0 }
  0x97   : > { %27419 = vmatmul.mubr.f32.vlgmr.msra.gmra.mxu1 %v31699_v0  ;;  %27421 = vmatprep.subr.mxu0 %v37025_v3  ;;  %v4131_v0 = vsub.f32 %v4129_v58, %v4130_v60  ;;  %v32118_v29 = vand.u32 4294901760, %v4607_v27 }
  0x98   : > { %27431 = vmatpush3.msra.mxu1 %v31633_v47  ;;  %27422 = vmatpush3.msra.mxu0 %v31565_v28 }
  0x99   : > { %27432 = vmatprep.subr.mxu1 %v37025_v3  ;;  %27423 = vmatprep.subr.mxu0 %v37025_v3  ;;  %v4132_v14 = vand.u32 4294901760, %v4131_v0 }
  0x9a   : > { %27433 = vmatpush3.msra.mxu1 %v31643_v49  ;;  %27424 = vmatpush3.msra.mxu0 %v31574_v32 }
  0x9b   : > { %27434 = vmatprep.subr.mxu1 %v37025_v3  ;;  %27425 = vmatprep.subr.mxu0 %v37025_v3 }
  0x9c   : > { %27435 = vmatpush3.msra.mxu1 %v31655_v52  ;;  %27426 = vmatpush3.msra.mxu0 %v31584_v36 }
  0x9d   : > { %27427 = vmatprep.mubr.msk.f32.mxu0 %vm31316_vm1, %v37025_v3  ;;  %27436 = vmatprep.mubr.msk.f32.mxu1 %vm31316_vm1, %v37025_v3 }
  0x9e   : > { %27448 = vmatprep.subr.mxu1 %v37025_v3  ;;  %27428 = vmatmul.mubr.f32.vlgmr.msra.gmra.mxu0 %v2704_v42 }
  0x9f   : > { %27437 = vmatmul.mubr.f32.vlgmr.msra.gmra.mxu1 %v31842_v31  ;;  %27439 = vmatprep.subr.mxu0 %v37025_v3 }
  0xa0   : > { %27449 = vmatpush3.msra.mxu1 %v31565_v28  ;;  %27440 = vmatpush3.msra.mxu0 %v31582_v35 }
  0xa1   : > { %27450 = vmatprep.subr.mxu1 %v37025_v3  ;;  %27441 = vmatprep.subr.mxu0 %v37025_v3 }
  0xa2   : > { %27451 = vmatpush3.msra.mxu1 %v31574_v32  ;;  %27442 = vmatpush3.msra.mxu0 %v31590_v37 }
  0xa3   : > { %27452 = vmatprep.subr.mxu1 %v37025_v3  ;;  %27443 = vmatprep.subr.mxu0 %v37025_v3 }
  0xa4   : > { %27453 = vmatpush3.msra.mxu1 %v31584_v36  ;;  %27444 = vmatpush3.msra.mxu0 %v31603_v40 }
  0xa5   : > { %27445 = vmatprep.mubr.msk.f32.mxu0 %vm31316_vm1, %v37025_v3  ;;  %27454 = vmatprep.mubr.msk.f32.mxu1 %vm31316_vm1, %v37025_v3 }
  0xa6   : > { %27466 = vmatprep.subr.mxu1 %v37025_v3  ;;  %27446 = vmatmul.mubr.f32.vlgmr.msra.gmra.mxu0 %v2701_v33 }
  0xa7   : > { %27455 = vmatmul.mubr.f32.vlgmr.msra.gmra.mxu1 %v2702_v34  ;;  %27457 = vmatprep.subr.mxu0 %v37025_v3 }
  0xa8   : > { %27467 = vmatpush3.msra.mxu1 %v31565_v28  ;;  %27458 = vmatpush3.msra.mxu0 %v31600_v39 }
  0xa9   : > { %27468 = vmatprep.subr.mxu1 %v37025_v3  ;;  %27459 = vmatprep.subr.mxu0 %v37025_v3 }
  0xaa   : > { %27469 = vmatpush3.msra.mxu1 %v31574_v32  ;;  %27460 = vmatpush3.msra.mxu0 %v31609_v41 }
  0xab   : > { %27470 = vmatprep.subr.mxu1 %v37025_v3  ;;  %27461 = vmatprep.subr.mxu0 %v37025_v3 }
  0xac   : > { %27471 = vmatpush3.msra.mxu1 %v31584_v36  ;;  %27462 = vmatpush3.msra.mxu0 %v31620_v44 }
  0xad   : > { %27463 = vmatprep.mubr.msk.f32.mxu0 %vm31316_vm1, %v37025_v3  ;;  %27472 = vmatprep.mubr.msk.f32.mxu1 %vm31316_vm1, %v37025_v3 }
  0xae   : > { %27484 = vmatprep.subr.mxu1 %v37025_v3  ;;  %27464 = vmatmul.mubr.f32.vlgmr.msra.gmra.mxu0 %v31842_v31 }
  0xaf   : > { %27473 = vmatmul.mubr.f32.vlgmr.msra.gmra.mxu1 %v31842_v31  ;;  %27475 = vmatprep.subr.mxu0 %v37025_v3 }
  0xb0   : > { %27485 = vmatpush3.msra.mxu1 %v31746_v19  ;;  %27476 = vmatpush3.msra.mxu0 %v31669_v56 }
  0xb1   : > { %27486 = vmatprep.subr.mxu1 %v37025_v3  ;;  %27477 = vmatprep.subr.mxu0 %v37025_v3 }
  0xb2   : > { %27487 = vmatpush3.msra.mxu1 %v31756_v24  ;;  %27478 = vmatpush3.msra.mxu0 %v31680_v59 }
  0xb3   : > { %27488 = vmatprep.subr.mxu1 %v37025_v3  ;;  %27479 = vmatprep.subr.mxu0 %v37025_v3 }
  0xb4   : > { %27489 = vmatpush3.msra.mxu1 %v31764_v26  ;;  %27480 = vmatpush3.msra.mxu0 %v31690_v62 }
  0xb5   : > { %27481 = vmatprep.mubr.msk.f32.mxu0 %vm31316_vm1, %v37025_v3  ;;  %27490 = vmatprep.mubr.msk.f32.mxu1 %vm31316_vm1, %v37025_v3 }
  0xb6   : > { %27502 = vmatprep.subr.mxu1 %v37025_v3  ;;  %27482 = vmatmul.mubr.f32.vlgmr.msra.gmra.mxu0 %v3180_v53 }
  0xb7   : > { %27491 = vmatmul.mubr.f32.vlgmr.msra.gmra.mxu1 %v31900_v46  ;;  %27493 = vmatprep.subr.mxu0 %v37025_v3 }
  0xb8   : > { %27503 = vmatpush3.msra.mxu1 %v31669_v56  ;;  %27494 = vmatpush3.msra.mxu0 %v31688_v61 }
  0xb9   : > { %27504 = vmatprep.subr.mxu1 %v37025_v3  ;;  %27495 = vmatprep.subr.mxu0 %v37025_v3 }
  0xba   : > { %27505 = vmatpush3.msra.mxu1 %v31680_v59  ;;  %27496 = vmatpush3.msra.mxu0 %v31697_v63 }
  0xbb   : > { %27506 = vmatprep.subr.mxu1 %v37025_v3  ;;  %27497 = vmatprep.subr.mxu0 %v37025_v3 }
  0xbc   : > { %27507 = vmatpush3.msra.mxu1 %v31690_v62  ;;  %27498 = vmatpush3.msra.mxu0 %v31709_v2 }
  0xbd   : > { %27499 = vmatprep.mubr.msk.f32.mxu0 %vm31316_vm1, %v37025_v3  ;;  %27508 = vmatprep.mubr.msk.f32.mxu1 %vm31316_vm1, %v37025_v3 }
  0xbe   : > { %27520 = vmatprep.subr.mxu1 %v37025_v3  ;;  %27500 = vmatmul.mubr.f32.vlgmr.msra.gmra.mxu0 %v31912_v48 }
  0xbf   : > { %27509 = vmatmul.mubr.f32.vlgmr.msra.gmra.mxu1 %v31922_v50  ;;  %27511 = vmatprep.subr.mxu0 %v37025_v3 }
  0xc0   : > { %27521 = vmatpush3.msra.mxu1 %v31669_v56  ;;  %27512 = vmatpush3.msra.mxu0 %v31706_v1 }
  0xc1   : > { %27522 = vmatprep.subr.mxu1 %v37025_v3  ;;  %27513 = vmatprep.subr.mxu0 %v37025_v3 }
  0xc2   : > { %27523 = vmatpush3.msra.mxu1 %v31680_v59  ;;  %27514 = vmatpush3.msra.mxu0 %v31718_v4 }
  0xc3   : > { %27524 = vmatprep.subr.mxu1 %v37025_v3  ;;  %27515 = vmatprep.subr.mxu0 %v37025_v3 }
  0xc4   : > { %27525 = vmatpush3.msra.mxu1 %v31690_v62  ;;  %27516 = vmatpush3.msra.mxu0 %v31731_v16 }
  0xc5   : > { %27517 = vmatprep.mubr.msk.f32.mxu0 %vm31316_vm1, %v37025_v3  ;;  %27526 = vmatprep.mubr.msk.f32.mxu1 %vm31316_vm1, %v37025_v3 }
  0xc6   : > { %27538 = vmatprep.subr.mxu1 %v37025_v3  ;;  %27518 = vmatmul.mubr.f32.vlgmr.msra.gmra.mxu0 %v31900_v46 }
  0xc7   : > { %27527 = vmatmul.mubr.f32.vlgmr.msra.gmra.mxu1 %v31900_v46  ;;  %27529 = vmatprep.subr.mxu0 %v37025_v3 }
  0xc8   : > { %27539 = vmatpush3.msra.mxu1 %v31548_v20  ;;  %27530 = vmatpush3.msra.mxu0 %v31498_v7 }
  0xc9   : > { %27540 = vmatprep.subr.mxu1 %v37025_v3  ;;  %27531 = vmatprep.subr.mxu0 %v37025_v3 }
  0xca   : > { %27541 = vmatpush3.msra.mxu1 %v31550_v21  ;;  %27532 = vmatpush3.msra.mxu0 %v31493_v5 }
  0xcb   : > { %27542 = vmatprep.subr.mxu1 %v37025_v3  ;;  %27533 = vmatprep.subr.mxu0 %v37025_v3 }
  0xcc   : > { %27543 = vmatpush3.msra.mxu1 %v31555_v23  ;;  %27534 = vmatpush3.msra.mxu0 %v31495_v6 }
  0xcd   : > { %27535 = vmatprep.mubr.msk.f32.mxu0 %vm31316_vm1, %v37025_v3  ;;  %27544 = vmatprep.mubr.msk.f32.mxu1 %vm31316_vm1, %v37025_v3 }
  0xce   : > { %27556 = vmatprep.subr.mxu1 %v37025_v3  ;;  %27536 = vmatmul.mubr.f32.vlgmr.msra.gmra.mxu0 %v3180_v53 }
  0xcf   : > { %27545 = vmatmul.mubr.f32.vlgmr.msra.gmra.mxu1 %v31900_v46  ;;  %27547 = vmatprep.subr.mxu0 %v37025_v3 }
  0xd0   : > { %27557 = vmatpush3.msra.mxu1 %v31498_v7  ;;  %27548 = vmatpush3.msra.mxu0 %v31514_v10 }
  0xd1   : > { %27558 = vmatprep.subr.mxu1 %v37025_v3  ;;  %27549 = vmatprep.subr.mxu0 %v37025_v3 }
  0xd2   : > { %27559 = vmatpush3.msra.mxu1 %v31493_v5  ;;  %27550 = vmatpush3.msra.mxu0 %v31505_v8 }
  0xd3   : > { %27560 = vmatprep.subr.mxu1 %v37025_v3  ;;  %27551 = vmatprep.subr.mxu0 %v37025_v3 }
  0xd4   : > { %27561 = vmatpush3.msra.mxu1 %v31495_v6  ;;  %27552 = vmatpush3.msra.mxu0 %v31508_v9 }
  0xd5   : > { %27553 = vmatprep.mubr.msk.f32.mxu0 %vm31316_vm1, %v37025_v3  ;;  %27562 = vmatprep.mubr.msk.f32.mxu1 %vm31316_vm1, %v37025_v3 }
  0xd6   : > { %27574 = vmatprep.subr.mxu1 %v37025_v3  ;;  %27554 = vmatmul.mubr.f32.vlgmr.msra.gmra.mxu0 %v31912_v48 }
  0xd7   : > { %27563 = vmatmul.mubr.f32.vlgmr.msra.gmra.mxu1 %v31922_v50  ;;  %27565 = vmatprep.subr.mxu0 %v37025_v3 }
  0xd8   : > { %27575 = vmatpush3.msra.mxu1 %v31498_v7  ;;  %27566 = vmatpush3.msra.mxu0 %v31526_v13 }
  0xd9   : > { %27576 = vmatprep.subr.mxu1 %v37025_v3  ;;  %27567 = vmatprep.subr.mxu0 %v37025_v3 }
  0xda   : > { %27577 = vmatpush3.msra.mxu1 %v31493_v5  ;;  %27568 = vmatpush3.msra.mxu0 %v31519_v11 }
  0xdb   : > { %27578 = vmatprep.subr.mxu1 %v37025_v3  ;;  %27569 = vmatprep.subr.mxu0 %v37025_v3 }
  0xdc   : > { %27579 = vmatpush3.msra.mxu1 %v31495_v6  ;;  %27570 = vmatpush3.msra.mxu0 %v31522_v12 }
  0xdd   : > { %27571 = vmatprep.mubr.msk.f32.mxu0 %vm31316_vm1, %v37025_v3  ;;  %27580 = vmatprep.mubr.msk.f32.mxu1 %vm31316_vm1, %v37025_v3 }
  0xde   : > { %27592 = vmatprep.subr.mxu1 %v37025_v3  ;;  %27572 = vmatmul.mubr.f32.vlgmr.msra.gmra.mxu0 %v31900_v46 }
  0xdf   : > { %27581 = vmatmul.mubr.f32.vlgmr.msra.gmra.mxu1 %v31900_v46  ;;  %27583 = vmatprep.subr.mxu0 %v37025_v3 }
  0xe0   : > { %27593 = vmatpush3.msra.mxu1 %v31633_v47  ;;  %27584 = vmatpush3.msra.mxu0 %v31565_v28 }
  0xe1   : > { %27594 = vmatprep.subr.mxu1 %v37025_v3  ;;  %27585 = vmatprep.subr.mxu0 %v37025_v3 }
  0xe2   : > { %27595 = vmatpush3.msra.mxu1 %v31643_v49  ;;  %27586 = vmatpush3.msra.mxu0 %v31574_v32 }
  0xe3   : > { %27596 = vmatprep.subr.mxu1 %v37025_v3  ;;  %27587 = vmatprep.subr.mxu0 %v37025_v3 }
  0xe4   : > { %27597 = vmatpush3.msra.mxu1 %v31655_v52  ;;  %27588 = vmatpush3.msra.mxu0 %v31584_v36 }
  0xe5   : > { %27589 = vmatprep.mubr.msk.f32.mxu0 %vm31316_vm1, %v37025_v3  ;;  %27598 = vmatprep.mubr.msk.f32.mxu1 %vm31316_vm1, %v37025_v3 }
  0xe6   : > { %27610 = vmatprep.subr.mxu1 %v37025_v3  ;;  %27590 = vmatmul.mubr.f32.vlgmr.msra.gmra.mxu0 %v4132_v14 }
  0xe7   : > { %27599 = vmatmul.mubr.f32.vlgmr.msra.gmra.mxu1 %v32016_v57  ;;  %27601 = vmatprep.subr.mxu0 %v37025_v3 }
  0xe8   : > { %27611 = vmatpush3.msra.mxu1 %v31565_v28  ;;  %27602 = vmatpush3.msra.mxu0 %v31582_v35 }
  0xe9   : > { %27612 = vmatprep.subr.mxu1 %v37025_v3  ;;  %27603 = vmatprep.subr.mxu0 %v37025_v3 }
  0xea   : > { %27613 = vmatpush3.msra.mxu1 %v31574_v32  ;;  %27604 = vmatpush3.msra.mxu0 %v31590_v37 }
  0xeb   : > { %27614 = vmatprep.subr.mxu1 %v37025_v3  ;;  %27605 = vmatprep.subr.mxu0 %v37025_v3 }
  0xec   : > { %27615 = vmatpush3.msra.mxu1 %v31584_v36  ;;  %27606 = vmatpush3.msra.mxu0 %v31603_v40 }
  0xed   : > { %27607 = vmatprep.mubr.msk.f32.mxu0 %vm31316_vm1, %v37025_v3  ;;  %27616 = vmatprep.mubr.msk.f32.mxu1 %vm31316_vm1, %v37025_v3 }
  0xee   : > { %27628 = vmatprep.subr.mxu1 %v37025_v3  ;;  %27608 = vmatmul.mubr.f32.vlgmr.msra.gmra.mxu0 %v4129_v58 }
  0xef   : > { %27617 = vmatmul.mubr.f32.vlgmr.msra.gmra.mxu1 %v4130_v60  ;;  %27619 = vmatprep.subr.mxu0 %v37025_v3  ;;  %v25366_v60 = vld [vmem:[%s31535_s27 + $0x7] sm:$0x1] }
  0xf0   : > { %27629 = vmatpush3.msra.mxu1 %v31565_v28  ;;  %27620 = vmatpush3.msra.mxu0 %v31600_v39  ;;  %v5486_v14 = vsel %vm714_vm2, %v25366_v60, 0 }
  0xf1   : > { %27630 = vmatprep.subr.mxu1 %v37025_v3  ;;  %27621 = vmatprep.subr.mxu0 %v37025_v3 }
  0xf2   : > { %27631 = vmatpush3.msra.mxu1 %v31574_v32  ;;  %27622 = vmatpush3.msra.mxu0 %v31609_v41 }
  0xf3   : > { %27632 = vmatprep.subr.mxu1 %v37025_v3  ;;  %27623 = vmatprep.subr.mxu0 %v37025_v3 }
  0xf4   : > { %27633 = vmatpush3.msra.mxu1 %v31584_v36  ;;  %27624 = vmatpush3.msra.mxu0 %v31620_v44 }
  0xf5   : > { %27625 = vmatprep.mubr.msk.f32.mxu0 %vm31316_vm1, %v37025_v3  ;;  %27634 = vmatprep.mubr.msk.f32.mxu1 %vm31316_vm1, %v37025_v3 }
  0xf6   : > { %27646 = vmatprep.subr.mxu1 %v37025_v3  ;;  %27626 = vmatmul.mubr.f32.vlgmr.msra.gmra.mxu0 %v32016_v57 }
  0xf7   : > { %27635 = vmatmul.mubr.f32.vlgmr.msra.gmra.mxu1 %v32016_v57  ;;  %27637 = vmatprep.subr.mxu0 %v37025_v3 }
  0xf8   : > { %27647 = vmatpush3.msra.mxu1 %v31746_v19  ;;  %27638 = vmatpush3.msra.mxu0 %v31669_v56 }
  0xf9   : > { %27648 = vmatprep.subr.mxu1 %v37025_v3  ;;  %27639 = vmatprep.subr.mxu0 %v37025_v3 }
  0xfa   : > { %27649 = vmatpush3.msra.mxu1 %v31756_v24  ;;  %27640 = vmatpush3.msra.mxu0 %v31680_v59 }
  0xfb   : > { %27650 = vmatprep.subr.mxu1 %v37025_v3  ;;  %27641 = vmatprep.subr.mxu0 %v37025_v3 }
  0xfc   : > { %27651 = vmatpush3.msra.mxu1 %v31764_v26  ;;  %27642 = vmatpush3.msra.mxu0 %v31690_v62 }
  0xfd   : > { %27643 = vmatprep.mubr.msk.f32.mxu0 %vm31316_vm1, %v37025_v3  ;;  %27652 = vmatprep.mubr.msk.f32.mxu1 %vm31316_vm1, %v37025_v3  ;;  %v796_v33 = vpop.f32.mrf.mxu0 }
  0xfe   : > { %27664 = vmatprep.subr.mxu1 %v37025_v3  ;;  %27644 = vmatmul.mubr.f32.vlgmr.msra.gmra.mxu0 %v32118_v29 }
  0xff   : > { %27653 = vmatmul.mubr.f32.vlgmr.msra.gmra.mxu1 %v32074_v18  ;;  %27655 = vmatprep.subr.mxu0 %v37025_v3  ;;  %v27213_v38 = vpop.f32.mrf.mxu0 }
 0x100   : > { %v882_v30 = vpop.f32.mrf.mxu1  ;;  %27665 = vmatpush3.msra.mxu1 %v31669_v56  ;;  %27656 = vmatpush3.msra.mxu0 %v31688_v61 }
 0x101   : > { %27666 = vmatprep.subr.mxu1 %v37025_v3  ;;  %27657 = vmatprep.subr.mxu0 %v37025_v3  ;;  %v883_v34 = vadd.f32 %v882_v30, %v796_v33 }
 0x102   : > { %v27222_v31 = vpop.f32.mrf.mxu1  ;;  %27667 = vmatpush3.msra.mxu1 %v31680_v59  ;;  %27658 = vmatpush3.msra.mxu0 %v31697_v63 }
 0x103   : > { %27668 = vmatprep.subr.mxu1 %v37025_v3  ;;  %27659 = vmatprep.subr.mxu0 %v37025_v3 }
 0x104   : > { %27669 = vmatpush3.msra.mxu1 %v31690_v62  ;;  %27660 = vmatpush3.msra.mxu0 %v31709_v2 }
 0x105   : > { %27661 = vmatprep.mubr.msk.f32.mxu0 %vm31316_vm1, %v37025_v3  ;;  %27670 = vmatprep.mubr.msk.f32.mxu1 %vm31316_vm1, %v37025_v3 }
 0x106   : > { %27682 = vmatprep.subr.mxu1 %v37025_v3  ;;  %27662 = vmatmul.mubr.f32.vlgmr.msra.gmra.mxu0 %v32086_v22  ;;  %v1036_v42 = vpop.f32.mrf.mxu1 }
 0x107   : > { %27671 = vmatmul.mubr.f32.vlgmr.msra.gmra.mxu1 %v32096_v25  ;;  %27673 = vmatprep.subr.mxu0 %v37025_v3  ;;  %v960_v43 = vpop.f32.mrf.mxu0 }
 0x108   : > { %27683 = vmatpush3.msra.mxu1 %v31669_v56  ;;  %27674 = vmatpush3.msra.mxu0 %v31706_v1  ;;  %v961_v45 = vadd.f32 %v960_v43, %v883_v34  ;;  %v27240_v46 = vpop.f32.mrf.mxu1 }
 0x109   : > { %27684 = vmatprep.subr.mxu1 %v37025_v3  ;;  %27675 = vmatprep.subr.mxu0 %v37025_v3  ;;  %v27231_v48 = vpop.f32.mrf.mxu0  ;;  %v32234_v46 = vld [vmem:[%s37281_s23] sm:$0x1]  ;;  %s31317_s23 = smov 64  }
 0x10a   : > { %27685 = vmatpush3.msra.mxu1 %v31680_v59  ;;  %27676 = vmatpush3.msra.mxu0 %v31718_v4  ;;  %v1037_v50 = vadd.f32 %v1036_v42, %v961_v45 }
 0x10b   : > { %27686 = vmatprep.subr.mxu1 %v37025_v3  ;;  %27677 = vmatprep.subr.mxu0 %v37025_v3 }
 0x10c   : > { %27687 = vmatpush3.msra.mxu1 %v31690_v62  ;;  %27678 = vmatpush3.msra.mxu0 %v31731_v16 }
 0x10d   : > { %27679 = vmatprep.mubr.msk.f32.mxu0 %vm31316_vm1, %v37025_v3  ;;  %27688 = vmatprep.mubr.msk.f32.mxu1 %vm31316_vm1, %v37025_v3 }
 0x10e   : > { %27700 = vmatprep.subr.mxu1 %v37025_v3  ;;  %27680 = vmatmul.mubr.f32.vlgmr.msra.gmra.mxu0 %v32074_v18  ;;  %v1116_v51 = vpop.f32.mrf.mxu0 }
 0x10f   : > { %27689 = vmatmul.mubr.f32.vlgmr.msra.gmra.mxu1 %v32074_v18  ;;  %27691 = vmatprep.subr.mxu0 %v37025_v3  ;;  %v1117_v53 = vadd.f32 %v1116_v51, %v1037_v50  ;;  %v1190_v54 = vpop.f32.mrf.mxu1 }
 0x110   : > { %27701 = vmatpush3.msra.mxu1 %v31548_v20  ;;  %27692 = vmatpush3.msra.mxu0 %v31498_v7  ;;  %v27249_v55 = vpop.f32.mrf.mxu0 }
 0x111   : > { %27702 = vmatprep.subr.mxu1 %v37025_v3  ;;  %27693 = vmatprep.subr.mxu0 %v37025_v3  ;;  %v32172_v57 = vadd.f32 %v1190_v54, %v1117_v53  ;;  %v27258_v58 = vpop.f32.mrf.mxu1 }
 0x112   : > { %27703 = vmatpush3.msra.mxu1 %v31550_v21  ;;  %27694 = vmatpush3.msra.mxu0 %v31493_v5 }
 0x113   : > { %27704 = vmatprep.subr.mxu1 %v37025_v3  ;;  %27695 = vmatprep.subr.mxu0 %v37025_v3  ;;  %v1194_v54 = vadd.f32 %v32172_v57, %v32234_v46 }
 0x114   : > { %27705 = vmatpush3.msra.mxu1 %v31555_v23  ;;  %27696 = vmatpush3.msra.mxu0 %v31495_v6 }
 0x115   : > { %27697 = vmatprep.mubr.msk.f32.mxu0 %vm31316_vm1, %v37025_v3  ;;  %27706 = vmatprep.mubr.msk.f32.mxu1 %vm31316_vm1, %v37025_v3 }
 0x116   : > { %27718 = vmatprep.subr.mxu1 %v37025_v3  ;;  %27698 = vmatmul.mubr.f32.vlgmr.msra.gmra.mxu0 %v32118_v29  ;;  %v1275_v0 = vpop.f32.mrf.mxu0  ;;  %v32196_v29 = vand.u32 4294901760, %v5486_v14 }
 0x117   : > { %27707 = vmatmul.mubr.f32.vlgmr.msra.gmra.mxu1 %v32074_v18  ;;  %27709 = vmatprep.subr.mxu0 %v37025_v3  ;;  %v1361_v15 = vpop.f32.mrf.mxu1 }
 0x118   : > { %27719 = vmatpush3.msra.mxu1 %v31498_v7  ;;  %27710 = vmatpush3.msra.mxu0 %v31514_v10  ;;  %v1362_v17 = vadd.f32 %v1361_v15, %v1275_v0  ;;  %v27267_v27 = vpop.f32.mrf.mxu0  ;;  %v32209_v31 = vsub.f32 %v5486_v14, %v32196_v29  ;;  %v25367_v0 = vld [vmem:[%s31535_s27 + $0x8] sm:$0x1] }
 0x119   : > { %27720 = vmatprep.subr.mxu1 %v37025_v3  ;;  %27711 = vmatprep.subr.mxu0 %v37025_v3  ;;  %v27276_v30 = vpop.f32.mrf.mxu1  ;;  %v5962_v14 = vsel %vm714_vm2, %v25367_v0, 0 }
 0x11a   : > { %27721 = vmatpush3.msra.mxu1 %v31493_v5  ;;  %27712 = vmatpush3.msra.mxu0 %v31505_v8 }
 0x11b   : > { %27722 = vmatprep.subr.mxu1 %v37025_v3  ;;  %27713 = vmatprep.subr.mxu0 %v37025_v3 }
 0x11c   : > { %27723 = vmatpush3.msra.mxu1 %v31495_v6  ;;  %27714 = vmatpush3.msra.mxu0 %v31508_v9 }
 0x11d   : > { %27715 = vmatprep.mubr.msk.f32.mxu0 %vm31316_vm1, %v37025_v3  ;;  %27724 = vmatprep.mubr.msk.f32.mxu1 %vm31316_vm1, %v37025_v3 }
 0x11e   : > { %27736 = vmatprep.subr.mxu1 %v37025_v3  ;;  %27716 = vmatmul.mubr.f32.vlgmr.msra.gmra.mxu0 %v32086_v22  ;;  %v1439_v33 = vpop.f32.mrf.mxu0 }
 0x11f   : > { %27725 = vmatmul.mubr.f32.vlgmr.msra.gmra.mxu1 %v32096_v25  ;;  %27727 = vmatprep.subr.mxu0 %v37025_v3  ;;  %v1440_v34 = vadd.f32 %v1439_v33, %v1362_v17  ;;  %v1515_v38 = vpop.f32.mrf.mxu1  ;;  %v5558_v25 = vand.u32 4294901760, %v32209_v31  ;;  %v32267_v33 = vand.u32 4294901760, %v5962_v14 }
 0x120   : > { %27737 = vmatpush3.msra.mxu1 %v31498_v7  ;;  %27728 = vmatpush3.msra.mxu0 %v31526_v13  ;;  %v27285_v42 = vpop.f32.mrf.mxu0 }
 0x121   : > { %27738 = vmatprep.subr.mxu1 %v37025_v3  ;;  %27729 = vmatprep.subr.mxu0 %v37025_v3  ;;  %v1516_v22 = vadd.f32 %v1515_v38, %v1440_v34  ;;  %v27294_v43 = vpop.f32.mrf.mxu1  ;;  %v5559_v45 = vsub.f32 %v32209_v31, %v5558_v25  ;;  %v32280_v34 = vsub.f32 %v5962_v14, %v32267_v33 }
 0x122   : > { %27739 = vmatpush3.msra.mxu1 %v31493_v5  ;;  %27730 = vmatpush3.msra.mxu0 %v31519_v11 }
 0x123   : > { %27740 = vmatprep.subr.mxu1 %v37025_v3  ;;  %27731 = vmatprep.subr.mxu0 %v37025_v3 }
 0x124   : > { %27741 = vmatpush3.msra.mxu1 %v31495_v6  ;;  %27732 = vmatpush3.msra.mxu0 %v31522_v12 }
 0x125   : > { %27733 = vmatprep.mubr.msk.f32.mxu0 %vm31316_vm1, %v37025_v3  ;;  %27742 = vmatprep.mubr.msk.f32.mxu1 %vm31316_vm1, %v37025_v3 }
 0x126   : > { %27754 = vmatprep.subr.mxu1 %v37025_v3  ;;  %27734 = vmatmul.mubr.f32.vlgmr.msra.gmra.mxu0 %v32074_v18  ;;  %v1595_v48 = vpop.f32.mrf.mxu0 }
 0x127   : > { %27743 = vmatmul.mubr.f32.vlgmr.msra.gmra.mxu1 %v32074_v18  ;;  %27745 = vmatprep.subr.mxu0 %v37025_v3  ;;  %v1596_v50 = vadd.f32 %v1595_v48, %v1516_v22  ;;  %v1669_v51 = vpop.f32.mrf.mxu1  ;;  %v5560_v18 = vand.u32 4294901760, %v5559_v45 }
 0x128   : > { %27755 = vmatpush3.msra.mxu1 %v31633_v47  ;;  %27746 = vmatpush3.msra.mxu0 %v31565_v28  ;;  %v27303_v53 = vpop.f32.mrf.mxu0 }
 0x129   : > { %27756 = vmatprep.subr.mxu1 %v37025_v3  ;;  %27747 = vmatprep.subr.mxu0 %v37025_v3  ;;  %v1670_v55 = vadd.f32 %v1669_v51, %v1596_v50  ;;  %v27312_v58 = vpop.f32.mrf.mxu1 }
 0x12a   : > { %27757 = vmatpush3.msra.mxu1 %v31643_v49  ;;  %27748 = vmatpush3.msra.mxu0 %v31574_v32 }
 0x12b   : > { %27758 = vmatprep.subr.mxu1 %v37025_v3  ;;  %27749 = vmatprep.subr.mxu0 %v37025_v3  ;;  %v32248_v60 = vadd.f32 %v1670_v55, %v1194_v54 }
 0x12c   : > { %27759 = vmatpush3.msra.mxu1 %v31655_v52  ;;  %27750 = vmatpush3.msra.mxu0 %v31584_v36 }
 0x12d   : > { %27751 = vmatprep.mubr.msk.f32.mxu0 %vm31316_vm1, %v37025_v3  ;;  %27760 = vmatprep.mubr.msk.f32.mxu1 %vm31316_vm1, %v37025_v3 }
 0x12e   : > { %27772 = vmatprep.subr.mxu1 %v37025_v3  ;;  %27752 = vmatmul.mubr.f32.vlgmr.msra.gmra.mxu0 %v5560_v18  ;;  %v1754_v57 = vpop.f32.mrf.mxu0 }
 0x12f   : > { %27761 = vmatmul.mubr.f32.vlgmr.msra.gmra.mxu1 %v32196_v29  ;;  %27763 = vmatprep.subr.mxu0 %v37025_v3  ;;  %v1840_v15 = vpop.f32.mrf.mxu1 }
 0x130   : > { %27773 = vmatpush3.msra.mxu1 %v31565_v28  ;;  %27764 = vmatpush3.msra.mxu0 %v31582_v35  ;;  %v1841_v17 = vadd.f32 %v1840_v15, %v1754_v57  ;;  %v27321_v27 = vpop.f32.mrf.mxu0 }
 0x131   : > { %27774 = vmatprep.subr.mxu1 %v37025_v3  ;;  %27765 = vmatprep.subr.mxu0 %v37025_v3  ;;  %v27330_v30 = vpop.f32.mrf.mxu1 }
 0x132   : > { %27775 = vmatpush3.msra.mxu1 %v31574_v32  ;;  %27766 = vmatpush3.msra.mxu0 %v31590_v37 }
 0x133   : > { %27776 = vmatprep.subr.mxu1 %v37025_v3  ;;  %27767 = vmatprep.subr.mxu0 %v37025_v3 }
 0x134   : > { %27777 = vmatpush3.msra.mxu1 %v31584_v36  ;;  %27768 = vmatpush3.msra.mxu0 %v31603_v40 }
 0x135   : > { %27769 = vmatprep.mubr.msk.f32.mxu0 %vm31316_vm1, %v37025_v3  ;;  %27778 = vmatprep.mubr.msk.f32.mxu1 %vm31316_vm1, %v37025_v3 }
 0x136   : > { %27790 = vmatprep.subr.mxu1 %v37025_v3  ;;  %27770 = vmatmul.mubr.f32.vlgmr.msra.gmra.mxu0 %v32209_v31  ;;  %v1918_v38 = vpop.f32.mrf.mxu0 }
 0x137   : > { %27779 = vmatmul.mubr.f32.vlgmr.msra.gmra.mxu1 %v5558_v25  ;;  %27781 = vmatprep.subr.mxu0 %v37025_v3  ;;  %v1919_v42 = vadd.f32 %v1918_v38, %v1841_v17  ;;  %v1994_v22 = vpop.f32.mrf.mxu1  ;;  %v32290_v25 = vand.u32 4294901760, %v32280_v34 }
 0x138   : > { %27791 = vmatpush3.msra.mxu1 %v31565_v28  ;;  %27782 = vmatpush3.msra.mxu0 %v31600_v39  ;;  %v27339_v43 = vpop.f32.mrf.mxu0 }
 0x139   : > { %27792 = vmatprep.subr.mxu1 %v37025_v3  ;;  %27783 = vmatprep.subr.mxu0 %v37025_v3  ;;  %v1995_v45 = vadd.f32 %v1994_v22, %v1919_v42  ;;  %v27348_v31 = vpop.f32.mrf.mxu1  ;;  %v6035_v48 = vsub.f32 %v32280_v34, %v32290_v25 }
 0x13a   : > { %27793 = vmatpush3.msra.mxu1 %v31574_v32  ;;  %27784 = vmatpush3.msra.mxu0 %v31609_v41 }
 0x13b   : > { %27794 = vmatprep.subr.mxu1 %v37025_v3  ;;  %27785 = vmatprep.subr.mxu0 %v37025_v3 }
 0x13c   : > { %27795 = vmatpush3.msra.mxu1 %v31584_v36  ;;  %27786 = vmatpush3.msra.mxu0 %v31620_v44 }
 0x13d   : > { %27787 = vmatprep.mubr.msk.f32.mxu0 %vm31316_vm1, %v37025_v3  ;;  %27796 = vmatprep.mubr.msk.f32.mxu1 %vm31316_vm1, %v37025_v3 }
 0x13e   : > { %27808 = vmatprep.subr.mxu1 %v37025_v3  ;;  %27788 = vmatmul.mubr.f32.vlgmr.msra.gmra.mxu0 %v32196_v29  ;;  %v2074_v50 = vpop.f32.mrf.mxu0 }
 0x13f   : > { %27797 = vmatmul.mubr.f32.vlgmr.msra.gmra.mxu1 %v32196_v29  ;;  %27799 = vmatprep.subr.mxu0 %v37025_v3  ;;  %v2075_v51 = vadd.f32 %v2074_v50, %v1995_v45  ;;  %v2148_v53 = vpop.f32.mrf.mxu1  ;;  %v32312_v29 = vand.u32 4294901760, %v6035_v48 }
 0x140   : > { %27809 = vmatpush3.msra.mxu1 %v31746_v19  ;;  %27800 = vmatpush3.msra.mxu0 %v31669_v56  ;;  %v27357_v54 = vpop.f32.mrf.mxu0 }
 0x141   : > { %27810 = vmatprep.subr.mxu1 %v37025_v3  ;;  %27801 = vmatprep.subr.mxu0 %v37025_v3  ;;  %v2149_v55 = vadd.f32 %v2148_v53, %v2075_v51  ;;  %v27366_v58 = vpop.f32.mrf.mxu1  ;;  %v25368_v53 = vld [vmem:[%s31535_s27 + $0x9] sm:$0x1] }
 0x142   : > { %27811 = vmatpush3.msra.mxu1 %v31756_v24  ;;  %27802 = vmatpush3.msra.mxu0 %v31680_v59 }
 0x143   : > { %27812 = vmatprep.subr.mxu1 %v37025_v3  ;;  %27803 = vmatprep.subr.mxu0 %v37025_v3  ;;  %v32317_v18 = vadd.f32 %v2149_v55, %v32248_v60  ;;  %v6914_v55 = vsel %vm714_vm2, %v25368_v53, 0 }
 0x144   : > { %27813 = vmatpush3.msra.mxu1 %v31764_v26  ;;  %27804 = vmatpush3.msra.mxu0 %v31690_v62 }
 0x145   : > { %27805 = vmatprep.mubr.msk.f32.mxu0 %vm31316_vm1, %v37025_v3  ;;  %27814 = vmatprep.mubr.msk.f32.mxu1 %vm31316_vm1, %v37025_v3  ;;  %vm2153_vm3 = vcmp.ge.f32.partialorder %v32317_v18, 0.0 }
 0x146   : > { %27826 = vmatprep.subr.mxu1 %v37025_v3  ;;  %27806 = vmatmul.mubr.f32.vlgmr.msra.gmra.mxu0 %v32312_v29  ;;  %v2230_v0 = vpop.f32.mrf.mxu0 }
 0x147   : > { %27815 = vmatmul.mubr.f32.vlgmr.msra.gmra.mxu1 %v32267_v33  ;;  %27817 = vmatprep.subr.mxu0 %v37025_v3  ;;  %v2316_v60 = vpop.f32.mrf.mxu1 }
 0x148   : > { %27827 = vmatpush3.msra.mxu1 %v31669_v56  ;;  %27818 = vmatpush3.msra.mxu0 %v31688_v61  ;;  %v2317_v57 = vadd.f32 %v2316_v60, %v2230_v0  ;;  %v27375_v14 = vpop.f32.mrf.mxu0 }
 0x149   : > { %27828 = vmatprep.subr.mxu1 %v37025_v3  ;;  %27819 = vmatprep.subr.mxu0 %v37025_v3  ;;  %v27384_v15 = vpop.f32.mrf.mxu1 }
 0x14a   : > { %27829 = vmatpush3.msra.mxu1 %v31680_v59  ;;  %27820 = vmatpush3.msra.mxu0 %v31697_v63 }
 0x14b   : > { %27830 = vmatprep.subr.mxu1 %v37025_v3  ;;  %27821 = vmatprep.subr.mxu0 %v37025_v3 }
 0x14c   : > { %27831 = vmatpush3.msra.mxu1 %v31690_v62  ;;  %27822 = vmatpush3.msra.mxu0 %v31709_v2 }
 0x14d   : > { %27823 = vmatprep.mubr.msk.f32.mxu0 %vm31316_vm1, %v37025_v3  ;;  %27832 = vmatprep.mubr.msk.f32.mxu1 %vm31316_vm1, %v37025_v3 }
 0x14e   : > { %27844 = vmatprep.subr.mxu1 %v37025_v3  ;;  %27824 = vmatmul.mubr.f32.vlgmr.msra.gmra.mxu0 %v32280_v34  ;;  %v2394_v17 = vpop.f32.mrf.mxu0 }
 0x14f   : > { %27833 = vmatmul.mubr.f32.vlgmr.msra.gmra.mxu1 %v32290_v25  ;;  %27835 = vmatprep.subr.mxu0 %v37025_v3  ;;  %v2395_v27 = vadd.f32 %v2394_v17, %v2317_v57  ;;  %v2470_v30 = vpop.f32.mrf.mxu1 }
 0x150   : > { %27845 = vmatpush3.msra.mxu1 %v31669_v56  ;;  %27836 = vmatpush3.msra.mxu0 %v31706_v1  ;;  %v27393_v38 = vpop.f32.mrf.mxu0 }
 0x151   : > { %27846 = vmatprep.subr.mxu1 %v37025_v3  ;;  %27837 = vmatprep.subr.mxu0 %v37025_v3  ;;  %v2471_v42 = vadd.f32 %v2470_v30, %v2395_v27  ;;  %v27402_v22 = vpop.f32.mrf.mxu1 }
 0x152   : > { %27847 = vmatpush3.msra.mxu1 %v31680_v59  ;;  %27838 = vmatpush3.msra.mxu0 %v31718_v4 }
 0x153   : > { %27848 = vmatprep.subr.mxu1 %v37025_v3  ;;  %27839 = vmatprep.subr.mxu0 %v37025_v3 }
 0x154   : > { %27849 = vmatpush3.msra.mxu1 %v31690_v62  ;;  %27840 = vmatpush3.msra.mxu0 %v31731_v16 }
 0x155   : > { %27841 = vmatprep.mubr.msk.f32.mxu0 %vm31316_vm1, %v37025_v3  ;;  %27850 = vmatprep.mubr.msk.f32.mxu1 %vm31316_vm1, %v37025_v3 }
 0x156   : > { %27862 = vmatprep.subr.mxu1 %v37025_v3  ;;  %27842 = vmatmul.mubr.f32.vlgmr.msra.gmra.mxu0 %v32267_v33  ;;  %v2550_v43 = vpop.f32.mrf.mxu0 }
 0x157   : > { %27851 = vmatmul.mubr.f32.vlgmr.msra.gmra.mxu1 %v32267_v33  ;;  %27853 = vmatprep.subr.mxu0 %v37025_v3  ;;  %v2551_v45 = vadd.f32 %v2550_v43, %v2471_v42  ;;  %v2624_v31 = vpop.f32.mrf.mxu1 }
 0x158   : > { %27863 = vmatpush3.msra.mxu1 %v31548_v20  ;;  %27854 = vmatpush3.msra.mxu0 %v31498_v7  ;;  %v27411_v48 = vpop.f32.mrf.mxu0 }
 0x159   : > { %27864 = vmatprep.subr.mxu1 %v37025_v3  ;;  %27855 = vmatprep.subr.mxu0 %v37025_v3  ;;  %v32369_v50 = vadd.f32 %v2624_v31, %v2551_v45  ;;  %v27420_v51 = vpop.f32.mrf.mxu1 }
 0x15a   : > { %27865 = vmatpush3.msra.mxu1 %v31550_v21  ;;  %27856 = vmatpush3.msra.mxu0 %v31493_v5 }
 0x15b   : > { %27866 = vmatprep.subr.mxu1 %v37025_v3  ;;  %27857 = vmatprep.subr.mxu0 %v37025_v3  ;;  %v2628_v48 = vadd.f32 %v32369_v50, %v32234_v46 }
 0x15c   : > { %27867 = vmatpush3.msra.mxu1 %v31555_v23  ;;  %27858 = vmatpush3.msra.mxu0 %v31495_v6 }
 0x15d   : > { %27859 = vmatprep.mubr.msk.f32.mxu0 %vm31316_vm1, %v37025_v3  ;;  %27868 = vmatprep.mubr.msk.f32.mxu1 %vm31316_vm1, %v37025_v3 }
 0x15e   : > { %27880 = vmatprep.subr.mxu1 %v37025_v3  ;;  %27860 = vmatmul.mubr.f32.vlgmr.msra.gmra.mxu0 %v32312_v29  ;;  %v2706_v54 = vpop.f32.mrf.mxu0  ;;  %v32393_v29 = vand.u32 4294901760, %v6914_v55 }
 0x15f   : > { %27869 = vmatmul.mubr.f32.vlgmr.msra.gmra.mxu1 %v32267_v33  ;;  %27871 = vmatprep.subr.mxu0 %v37025_v3  ;;  %v2792_v58 = vpop.f32.mrf.mxu1 }
 0x160   : > { %27881 = vmatpush3.msra.mxu1 %v31498_v7  ;;  %27872 = vmatpush3.msra.mxu0 %v31514_v10  ;;  %v2793_v0 = vadd.f32 %v2792_v58, %v2706_v54  ;;  %v27429_v60 = vpop.f32.mrf.mxu0  ;;  %v32406_v14 = vsub.f32 %v6914_v55, %v32393_v29  ;;  %v25369_v55 = vld [vmem:[%s31535_s27 + $0xa] sm:$0x1] }
 0x161   : > { %27882 = vmatprep.subr.mxu1 %v37025_v3  ;;  %27873 = vmatprep.subr.mxu0 %v37025_v3  ;;  %v27438_v57 = vpop.f32.mrf.mxu1  ;;  %v7390_v58 = vsel %vm714_vm2, %v25369_v55, 0 }
 0x162   : > { %27883 = vmatpush3.msra.mxu1 %v31493_v5  ;;  %27874 = vmatpush3.msra.mxu0 %v31505_v8 }
 0x163   : > { %27884 = vmatprep.subr.mxu1 %v37025_v3  ;;  %27875 = vmatprep.subr.mxu0 %v37025_v3 }
 0x164   : > { %27885 = vmatpush3.msra.mxu1 %v31495_v6  ;;  %27876 = vmatpush3.msra.mxu0 %v31508_v9 }
 0x165   : > { %27877 = vmatprep.mubr.msk.f32.mxu0 %vm31316_vm1, %v37025_v3  ;;  %27886 = vmatprep.mubr.msk.f32.mxu1 %vm31316_vm1, %v37025_v3 }
 0x166   : > { %27898 = vmatprep.subr.mxu1 %v37025_v3  ;;  %27878 = vmatmul.mubr.f32.vlgmr.msra.gmra.mxu0 %v32280_v34  ;;  %v2870_v15 = vpop.f32.mrf.mxu0 }
 0x167   : > { %27887 = vmatmul.mubr.f32.vlgmr.msra.gmra.mxu1 %v32290_v25  ;;  %27889 = vmatprep.subr.mxu0 %v37025_v3  ;;  %v2871_v17 = vadd.f32 %v2870_v15, %v2793_v0  ;;  %v2946_v27 = vpop.f32.mrf.mxu1  ;;  %v6986_v25 = vand.u32 4294901760, %v32406_v14 }
 0x168   : > { %27899 = vmatpush3.msra.mxu1 %v31498_v7  ;;  %27890 = vmatpush3.msra.mxu0 %v31526_v13  ;;  %v27447_v30 = vpop.f32.mrf.mxu0 }
 0x169   : > { %27900 = vmatprep.subr.mxu1 %v37025_v3  ;;  %27891 = vmatprep.subr.mxu0 %v37025_v3  ;;  %v2947_v34 = vadd.f32 %v2946_v27, %v2871_v17  ;;  %v27456_v38 = vpop.f32.mrf.mxu1  ;;  %v6987_v42 = vsub.f32 %v32406_v14, %v6986_v25  ;;  %v32459_v17 = vand.u32 4294901760, %v7390_v58 }
 0x16a   : > { %27901 = vmatpush3.msra.mxu1 %v31493_v5  ;;  %27892 = vmatpush3.msra.mxu0 %v31519_v11 }
 0x16b   : > { %27902 = vmatprep.subr.mxu1 %v37025_v3  ;;  %27893 = vmatprep.subr.mxu0 %v37025_v3  ;;  %v32472_v27 = vsub.f32 %v7390_v58, %v32459_v17 }
 0x16c   : > { %27903 = vmatpush3.msra.mxu1 %v31495_v6  ;;  %27894 = vmatpush3.msra.mxu0 %v31522_v12 }
 0x16d   : > { %27895 = vmatprep.mubr.msk.f32.mxu0 %vm31316_vm1, %v37025_v3  ;;  %27904 = vmatprep.mubr.msk.f32.mxu1 %vm31316_vm1, %v37025_v3 }
 0x16e   : > { %27916 = vmatprep.subr.mxu1 %v37025_v3  ;;  %27896 = vmatmul.mubr.f32.vlgmr.msra.gmra.mxu0 %v32267_v33  ;;  %v3026_v22 = vpop.f32.mrf.mxu0 }
 0x16f   : > { %27905 = vmatmul.mubr.f32.vlgmr.msra.gmra.mxu1 %v32267_v33  ;;  %27907 = vmatprep.subr.mxu0 %v37025_v3  ;;  %v3027_v43 = vadd.f32 %v3026_v22, %v2947_v34  ;;  %v3100_v45 = vpop.f32.mrf.mxu1  ;;  %v6988_v33 = vand.u32 4294901760, %v6987_v42 }
 0x170   : > { %27917 = vmatpush3.msra.mxu1 %v31633_v47  ;;  %27908 = vmatpush3.msra.mxu0 %v31565_v28  ;;  %v27465_v31 = vpop.f32.mrf.mxu0 }
 0x171   : > { %27918 = vmatprep.subr.mxu1 %v37025_v3  ;;  %27909 = vmatprep.subr.mxu0 %v37025_v3  ;;  %v3101_v51 = vadd.f32 %v3100_v45, %v3027_v43  ;;  %v27474_v53 = vpop.f32.mrf.mxu1 }
 0x172   : > { %27919 = vmatpush3.msra.mxu1 %v31643_v49  ;;  %27910 = vmatpush3.msra.mxu0 %v31574_v32 }
 0x173   : > { %27920 = vmatprep.subr.mxu1 %v37025_v3  ;;  %27911 = vmatprep.subr.mxu0 %v37025_v3  ;;  %v32440_v54 = vadd.f32 %v3101_v51, %v2628_v48 }
 0x174   : > { %27921 = vmatpush3.msra.mxu1 %v31655_v52  ;;  %27912 = vmatpush3.msra.mxu0 %v31584_v36 }
 0x175   : > { %27913 = vmatprep.mubr.msk.f32.mxu0 %vm31316_vm1, %v37025_v3  ;;  %27922 = vmatprep.mubr.msk.f32.mxu1 %vm31316_vm1, %v37025_v3 }
 0x176   : > { %27934 = vmatprep.subr.mxu1 %v37025_v3  ;;  %27914 = vmatmul.mubr.f32.vlgmr.msra.gmra.mxu0 %v6988_v33  ;;  %v3182_v50 = vpop.f32.mrf.mxu0 }
 0x177   : > { %27923 = vmatmul.mubr.f32.vlgmr.msra.gmra.mxu1 %v32393_v29  ;;  %27925 = vmatprep.subr.mxu0 %v37025_v3  ;;  %v3268_v0 = vpop.f32.mrf.mxu1 }
 0x178   : > { %27935 = vmatpush3.msra.mxu1 %v31565_v28  ;;  %27926 = vmatpush3.msra.mxu0 %v31582_v35  ;;  %v3269_v60 = vadd.f32 %v3268_v0, %v3182_v50  ;;  %v27483_v57 = vpop.f32.mrf.mxu0 }
 0x179   : > { %27936 = vmatprep.subr.mxu1 %v37025_v3  ;;  %27927 = vmatprep.subr.mxu0 %v37025_v3  ;;  %v27492_v15 = vpop.f32.mrf.mxu1 }
 0x17a   : > { %27937 = vmatpush3.msra.mxu1 %v31574_v32  ;;  %27928 = vmatpush3.msra.mxu0 %v31590_v37 }
 0x17b   : > { %27938 = vmatprep.subr.mxu1 %v37025_v3  ;;  %27929 = vmatprep.subr.mxu0 %v37025_v3 }
 0x17c   : > { %27939 = vmatpush3.msra.mxu1 %v31584_v36  ;;  %27930 = vmatpush3.msra.mxu0 %v31603_v40 }
 0x17d   : > { %27931 = vmatprep.mubr.msk.f32.mxu0 %vm31316_vm1, %v37025_v3  ;;  %27940 = vmatprep.mubr.msk.f32.mxu1 %vm31316_vm1, %v37025_v3 }
 0x17e   : > { %27952 = vmatprep.subr.mxu1 %v37025_v3  ;;  %27932 = vmatmul.mubr.f32.vlgmr.msra.gmra.mxu0 %v32406_v14  ;;  %v3346_v30 = vpop.f32.mrf.mxu0 }
 0x17f   : > { %27941 = vmatmul.mubr.f32.vlgmr.msra.gmra.mxu1 %v6986_v25  ;;  %27943 = vmatprep.subr.mxu0 %v37025_v3  ;;  %v3347_v34 = vadd.f32 %v3346_v30, %v3269_v60  ;;  %v3422_v38 = vpop.f32.mrf.mxu1  ;;  %v32482_v25 = vand.u32 4294901760, %v32472_v27 }
 0x180   : > { %27953 = vmatpush3.msra.mxu1 %v31565_v28  ;;  %27944 = vmatpush3.msra.mxu0 %v31600_v39  ;;  %v27501_v42 = vpop.f32.mrf.mxu0 }
 0x181   : > { %27954 = vmatprep.subr.mxu1 %v37025_v3  ;;  %27945 = vmatprep.subr.mxu0 %v37025_v3  ;;  %v3423_v22 = vadd.f32 %v3422_v38, %v3347_v34  ;;  %v27510_v14 = vpop.f32.mrf.mxu1  ;;  %v7463_v43 = vsub.f32 %v32472_v27, %v32482_v25 }
 0x182   : > { %27955 = vmatpush3.msra.mxu1 %v31574_v32  ;;  %27946 = vmatpush3.msra.mxu0 %v31609_v41 }
 0x183   : > { %27956 = vmatprep.subr.mxu1 %v37025_v3  ;;  %27947 = vmatprep.subr.mxu0 %v37025_v3 }
 0x184   : > { %27957 = vmatpush3.msra.mxu1 %v31584_v36  ;;  %27948 = vmatpush3.msra.mxu0 %v31620_v44 }
 0x185   : > { %27949 = vmatprep.mubr.msk.f32.mxu0 %vm31316_vm1, %v37025_v3  ;;  %27958 = vmatprep.mubr.msk.f32.mxu1 %vm31316_vm1, %v37025_v3 }
 0x186   : > { %27970 = vmatprep.subr.mxu1 %v37025_v3  ;;  %27950 = vmatmul.mubr.f32.vlgmr.msra.gmra.mxu0 %v32393_v29  ;;  %v3502_v45 = vpop.f32.mrf.mxu0 }
 0x187   : > { %27959 = vmatmul.mubr.f32.vlgmr.msra.gmra.mxu1 %v32393_v29  ;;  %27961 = vmatprep.subr.mxu0 %v37025_v3  ;;  %v3503_v31 = vadd.f32 %v3502_v45, %v3423_v22  ;;  %v3576_v48 = vpop.f32.mrf.mxu1  ;;  %v32504_v29 = vand.u32 4294901760, %v7463_v43 }
 0x188   : > { %27971 = vmatpush3.msra.mxu1 %v31746_v19  ;;  %27962 = vmatpush3.msra.mxu0 %v31669_v56  ;;  %v27519_v51 = vpop.f32.mrf.mxu0 }
 0x189   : > { %27972 = vmatprep.subr.mxu1 %v37025_v3  ;;  %27963 = vmatprep.subr.mxu0 %v37025_v3  ;;  %v3577_v53 = vadd.f32 %v3576_v48, %v3503_v31  ;;  %v27528_v33 = vpop.f32.mrf.mxu1  ;;  %v25370_v51 = vld [vmem:[%s31535_s27 + $0xb] sm:$0x1] }
 0x18a   : > { %27973 = vmatpush3.msra.mxu1 %v31756_v24  ;;  %27964 = vmatpush3.msra.mxu0 %v31680_v59  ;;  %v8342_v33 = vsel %vm714_vm2, %v25370_v51, 0 }
 0x18b   : > { %27974 = vmatprep.subr.mxu1 %v37025_v3  ;;  %27965 = vmatprep.subr.mxu0 %v37025_v3  ;;  %v32509_v55 = vadd.f32 %v3577_v53, %v32440_v54 }
 0x18c   : > { %27975 = vmatpush3.msra.mxu1 %v31764_v26  ;;  %27966 = vmatpush3.msra.mxu0 %v31690_v62 }
 0x18d   : > { %27967 = vmatprep.mubr.msk.f32.mxu0 %vm31316_vm1, %v37025_v3  ;;  %27976 = vmatprep.mubr.msk.f32.mxu1 %vm31316_vm1, %v37025_v3  ;;  %vm3581_vm5 = vcmp.ge.f32.partialorder %v32509_v55, 0.0 }
 0x18e   : > { %27988 = vmatprep.subr.mxu1 %v37025_v3  ;;  %27968 = vmatmul.mubr.f32.vlgmr.msra.gmra.mxu0 %v32504_v29  ;;  %v3658_v50 = vpop.f32.mrf.mxu0 }
 0x18f   : > { %27977 = vmatmul.mubr.f32.vlgmr.msra.gmra.mxu1 %v32459_v17  ;;  %27979 = vmatprep.subr.mxu0 %v37025_v3  ;;  %v3744_v54 = vpop.f32.mrf.mxu1 }
 0x190   : > { %27989 = vmatpush3.msra.mxu1 %v31669_v56  ;;  %27980 = vmatpush3.msra.mxu0 %v31688_v61  ;;  %v3745_v58 = vadd.f32 %v3744_v54, %v3658_v50  ;;  %v27537_v0 = vpop.f32.mrf.mxu0 }
 0x191   : > { %27990 = vmatprep.subr.mxu1 %v37025_v3  ;;  %27981 = vmatprep.subr.mxu0 %v37025_v3  ;;  %v27546_v60 = vpop.f32.mrf.mxu1 }
 0x192   : > { %27991 = vmatpush3.msra.mxu1 %v31680_v59  ;;  %27982 = vmatpush3.msra.mxu0 %v31697_v63 }
 0x193   : > { %27992 = vmatprep.subr.mxu1 %v37025_v3  ;;  %27983 = vmatprep.subr.mxu0 %v37025_v3 }
 0x194   : > { %27993 = vmatpush3.msra.mxu1 %v31690_v62  ;;  %27984 = vmatpush3.msra.mxu0 %v31709_v2 }
 0x195   : > { %27985 = vmatprep.mubr.msk.f32.mxu0 %vm31316_vm1, %v37025_v3  ;;  %27994 = vmatprep.mubr.msk.f32.mxu1 %vm31316_vm1, %v37025_v3 }
 0x196   : > { %28006 = vmatprep.subr.mxu1 %v37025_v3  ;;  %27986 = vmatmul.mubr.f32.vlgmr.msra.gmra.mxu0 %v32472_v27  ;;  %v3822_v57 = vpop.f32.mrf.mxu0 }
 0x197   : > { %27995 = vmatmul.mubr.f32.vlgmr.msra.gmra.mxu1 %v32482_v25  ;;  %27997 = vmatprep.subr.mxu0 %v37025_v3  ;;  %v3823_v15 = vadd.f32 %v3822_v57, %v3745_v58  ;;  %v3898_v30 = vpop.f32.mrf.mxu1 }
 0x198   : > { %28007 = vmatpush3.msra.mxu1 %v31669_v56  ;;  %27998 = vmatpush3.msra.mxu0 %v31706_v1  ;;  %v27555_v34 = vpop.f32.mrf.mxu0 }
 0x199   : > { %28008 = vmatprep.subr.mxu1 %v37025_v3  ;;  %27999 = vmatprep.subr.mxu0 %v37025_v3  ;;  %v3899_v38 = vadd.f32 %v3898_v30, %v3823_v15  ;;  %v27564_v42 = vpop.f32.mrf.mxu1 }
 0x19a   : > { %28009 = vmatpush3.msra.mxu1 %v31680_v59  ;;  %28000 = vmatpush3.msra.mxu0 %v31718_v4 }
 0x19b   : > { %28010 = vmatprep.subr.mxu1 %v37025_v3  ;;  %28001 = vmatprep.subr.mxu0 %v37025_v3 }
 0x19c   : > { %28011 = vmatpush3.msra.mxu1 %v31690_v62  ;;  %28002 = vmatpush3.msra.mxu0 %v31731_v16 }
 0x19d   : > { %28003 = vmatprep.mubr.msk.f32.mxu0 %vm31316_vm1, %v37025_v3  ;;  %28012 = vmatprep.mubr.msk.f32.mxu1 %vm31316_vm1, %v37025_v3 }
 0x19e   : > { %28024 = vmatprep.subr.mxu1 %v37025_v3  ;;  %28004 = vmatmul.mubr.f32.vlgmr.msra.gmra.mxu0 %v32459_v17  ;;  %v3978_v22 = vpop.f32.mrf.mxu0 }
 0x19f   : > { %28013 = vmatmul.mubr.f32.vlgmr.msra.gmra.mxu1 %v32459_v17  ;;  %28015 = vmatprep.subr.mxu0 %v37025_v3  ;;  %v3979_v14 = vadd.f32 %v3978_v22, %v3899_v38  ;;  %v4052_v43 = vpop.f32.mrf.mxu1 }
 0x1a0   : > { %28025 = vmatpush3.msra.mxu1 %v31548_v20  ;;  %28016 = vmatpush3.msra.mxu0 %v31498_v7  ;;  %v27573_v45 = vpop.f32.mrf.mxu0 }
 0x1a1   : > { %28026 = vmatprep.subr.mxu1 %v37025_v3  ;;  %28017 = vmatprep.subr.mxu0 %v37025_v3  ;;  %v32561_v31 = vadd.f32 %v4052_v43, %v3979_v14  ;;  %v27582_v48 = vpop.f32.mrf.mxu1 }
 0x1a2   : > { %28027 = vmatpush3.msra.mxu1 %v31550_v21  ;;  %28018 = vmatpush3.msra.mxu0 %v31493_v5 }
 0x1a3   : > { %28028 = vmatprep.subr.mxu1 %v37025_v3  ;;  %28019 = vmatprep.subr.mxu0 %v37025_v3  ;;  %v4056_v48 = vadd.f32 %v32561_v31, %v32234_v46 }
 0x1a4   : > { %28029 = vmatpush3.msra.mxu1 %v31555_v23  ;;  %28020 = vmatpush3.msra.mxu0 %v31495_v6 }
 0x1a5   : > { %28021 = vmatprep.mubr.msk.f32.mxu0 %vm31316_vm1, %v37025_v3  ;;  %28030 = vmatprep.mubr.msk.f32.mxu1 %vm31316_vm1, %v37025_v3 }
 0x1a6   : > { %28042 = vmatprep.subr.mxu1 %v37025_v3  ;;  %28022 = vmatmul.mubr.f32.vlgmr.msra.gmra.mxu0 %v32504_v29  ;;  %v4134_v53 = vpop.f32.mrf.mxu0  ;;  %v32585_v29 = vand.u32 4294901760, %v8342_v33 }
 0x1a7   : > { %28031 = vmatmul.mubr.f32.vlgmr.msra.gmra.mxu1 %v32459_v17  ;;  %28033 = vmatprep.subr.mxu0 %v37025_v3  ;;  %v4220_v50 = vpop.f32.mrf.mxu1 }
 0x1a8   : > { %28043 = vmatpush3.msra.mxu1 %v31498_v7  ;;  %28034 = vmatpush3.msra.mxu0 %v31514_v10  ;;  %v4221_v54 = vadd.f32 %v4220_v50, %v4134_v53  ;;  %v27591_v58 = vpop.f32.mrf.mxu0  ;;  %v32598_v60 = vsub.f32 %v8342_v33, %v32585_v29  ;;  %v25371_v50 = vld [vmem:[%s31535_s27 + $0xc] sm:$0x1] }
 0x1a9   : > { %28044 = vmatprep.subr.mxu1 %v37025_v3  ;;  %28035 = vmatprep.subr.mxu0 %v37025_v3  ;;  %v27600_v0 = vpop.f32.mrf.mxu1  ;;  %v8818_v31 = vsel %vm714_vm2, %v25371_v50, 0 }
 0x1aa   : > { %28045 = vmatpush3.msra.mxu1 %v31493_v5  ;;  %28036 = vmatpush3.msra.mxu0 %v31505_v8 }
 0x1ab   : > { %28046 = vmatprep.subr.mxu1 %v37025_v3  ;;  %28037 = vmatprep.subr.mxu0 %v37025_v3 }
 0x1ac   : > { %28047 = vmatpush3.msra.mxu1 %v31495_v6  ;;  %28038 = vmatpush3.msra.mxu0 %v31508_v9 }
 0x1ad   : > { %28039 = vmatprep.mubr.msk.f32.mxu0 %vm31316_vm1, %v37025_v3  ;;  %28048 = vmatprep.mubr.msk.f32.mxu1 %vm31316_vm1, %v37025_v3 }
 0x1ae   : > { %28060 = vmatprep.subr.mxu1 %v37025_v3  ;;  %28040 = vmatmul.mubr.f32.vlgmr.msra.gmra.mxu0 %v32472_v27  ;;  %v4298_v57 = vpop.f32.mrf.mxu0 }
 0x1af   : > { %28049 = vmatmul.mubr.f32.vlgmr.msra.gmra.mxu1 %v32482_v25  ;;  %28051 = vmatprep.subr.mxu0 %v37025_v3  ;;  %v4299_v15 = vadd.f32 %v4298_v57, %v4221_v54  ;;  %v4374_v30 = vpop.f32.mrf.mxu1  ;;  %v8414_v25 = vand.u32 4294901760, %v32598_v60 }
 0x1b0   : > { %28061 = vmatpush3.msra.mxu1 %v31498_v7  ;;  %28052 = vmatpush3.msra.mxu0 %v31526_v13  ;;  %v27609_v34 = vpop.f32.mrf.mxu0 }
 0x1b1   : > { %28062 = vmatprep.subr.mxu1 %v37025_v3  ;;  %28053 = vmatprep.subr.mxu0 %v37025_v3  ;;  %v4375_v27 = vadd.f32 %v4374_v30, %v4299_v15  ;;  %v27618_v38 = vpop.f32.mrf.mxu1  ;;  %v8415_v42 = vsub.f32 %v32598_v60, %v8414_v25  ;;  %v32651_v15 = vand.u32 4294901760, %v8818_v31 }
 0x1b2   : > { %28063 = vmatpush3.msra.mxu1 %v31493_v5  ;;  %28054 = vmatpush3.msra.mxu0 %v31519_v11 }
 0x1b3   : > { %28064 = vmatprep.subr.mxu1 %v37025_v3  ;;  %28055 = vmatprep.subr.mxu0 %v37025_v3  ;;  %v32664_v30 = vsub.f32 %v8818_v31, %v32651_v15 }
 0x1b4   : > { %28065 = vmatpush3.msra.mxu1 %v31495_v6  ;;  %28056 = vmatpush3.msra.mxu0 %v31522_v12 }
 0x1b5   : > { %28057 = vmatprep.mubr.msk.f32.mxu0 %vm31316_vm1, %v37025_v3  ;;  %28066 = vmatprep.mubr.msk.f32.mxu1 %vm31316_vm1, %v37025_v3 }
 0x1b6   : > { %28078 = vmatprep.subr.mxu1 %v37025_v3  ;;  %28058 = vmatmul.mubr.f32.vlgmr.msra.gmra.mxu0 %v32459_v17  ;;  %v4454_v22 = vpop.f32.mrf.mxu0 }
 0x1b7   : > { %28067 = vmatmul.mubr.f32.vlgmr.msra.gmra.mxu1 %v32459_v17  ;;  %28069 = vmatprep.subr.mxu0 %v37025_v3  ;;  %v4455_v14 = vadd.f32 %v4454_v22, %v4375_v27  ;;  %v4528_v43 = vpop.f32.mrf.mxu1  ;;  %v8416_v17 = vand.u32 4294901760, %v8415_v42 }
 0x1b8   : > { %28079 = vmatpush3.msra.mxu1 %v31633_v47  ;;  %28070 = vmatpush3.msra.mxu0 %v31565_v28  ;;  %v27627_v45 = vpop.f32.mrf.mxu0 }
 0x1b9   : > { %28080 = vmatprep.subr.mxu1 %v37025_v3  ;;  %28071 = vmatprep.subr.mxu0 %v37025_v3  ;;  %v4529_v51 = vadd.f32 %v4528_v43, %v4455_v14  ;;  %v27636_v53 = vpop.f32.mrf.mxu1 }
 0x1ba   : > { %28081 = vmatpush3.msra.mxu1 %v31643_v49  ;;  %28072 = vmatpush3.msra.mxu0 %v31574_v32 }
 0x1bb   : > { %28082 = vmatprep.subr.mxu1 %v37025_v3  ;;  %28073 = vmatprep.subr.mxu0 %v37025_v3  ;;  %v32632_v33 = vadd.f32 %v4529_v51, %v4056_v48 }
 0x1bc   : > { %28083 = vmatpush3.msra.mxu1 %v31655_v52  ;;  %28074 = vmatpush3.msra.mxu0 %v31584_v36 }
 0x1bd   : > { %28075 = vmatprep.mubr.msk.f32.mxu0 %vm31316_vm1, %v37025_v3  ;;  %28084 = vmatprep.mubr.msk.f32.mxu1 %vm31316_vm1, %v37025_v3 }
 0x1be   : > { %28096 = vmatprep.subr.mxu1 %v37025_v3  ;;  %28076 = vmatmul.mubr.f32.vlgmr.msra.gmra.mxu0 %v8416_v17  ;;  %v4610_v46 = vpop.f32.mrf.mxu0 }
 0x1bf   : > { %28085 = vmatmul.mubr.f32.vlgmr.msra.gmra.mxu1 %v32585_v29  ;;  %28087 = vmatprep.subr.mxu0 %v37025_v3  ;;  %v4696_v54 = vpop.f32.mrf.mxu1 }
 0x1c0   : > { %28097 = vmatpush3.msra.mxu1 %v31565_v28  ;;  %28088 = vmatpush3.msra.mxu0 %v31582_v35  ;;  %v4697_v58 = vadd.f32 %v4696_v54, %v4610_v46  ;;  %v27645_v0 = vpop.f32.mrf.mxu0 }
 0x1c1   : > { %28098 = vmatprep.subr.mxu1 %v37025_v3  ;;  %28089 = vmatprep.subr.mxu0 %v37025_v3  ;;  %v27654_v57 = vpop.f32.mrf.mxu1 }
 0x1c2   : > { %28099 = vmatpush3.msra.mxu1 %v31574_v32  ;;  %28090 = vmatpush3.msra.mxu0 %v31590_v37 }
 0x1c3   : > { %28100 = vmatprep.subr.mxu1 %v37025_v3  ;;  %28091 = vmatprep.subr.mxu0 %v37025_v3 }
 0x1c4   : > { %28101 = vmatpush3.msra.mxu1 %v31584_v36  ;;  %28092 = vmatpush3.msra.mxu0 %v31603_v40 }
 0x1c5   : > { %28093 = vmatprep.mubr.msk.f32.mxu0 %vm31316_vm1, %v37025_v3  ;;  %28102 = vmatprep.mubr.msk.f32.mxu1 %vm31316_vm1, %v37025_v3 }
 0x1c6   : > { %28114 = vmatprep.subr.mxu1 %v37025_v3  ;;  %28094 = vmatmul.mubr.f32.vlgmr.msra.gmra.mxu0 %v32598_v60  ;;  %v4774_v34 = vpop.f32.mrf.mxu0 }
 0x1c7   : > { %28103 = vmatmul.mubr.f32.vlgmr.msra.gmra.mxu1 %v8414_v25  ;;  %28105 = vmatprep.subr.mxu0 %v37025_v3  ;;  %v4775_v27 = vadd.f32 %v4774_v34, %v4697_v58  ;;  %v4850_v38 = vpop.f32.mrf.mxu1  ;;  %v32674_v25 = vand.u32 4294901760, %v32664_v30 }
 0x1c8   : > { %28115 = vmatpush3.msra.mxu1 %v31565_v28  ;;  %28106 = vmatpush3.msra.mxu0 %v31600_v39  ;;  %v27663_v42 = vpop.f32.mrf.mxu0 }
 0x1c9   : > { %28116 = vmatprep.subr.mxu1 %v37025_v3  ;;  %28107 = vmatprep.subr.mxu0 %v37025_v3  ;;  %v4851_v22 = vadd.f32 %v4850_v38, %v4775_v27  ;;  %v27672_v60 = vpop.f32.mrf.mxu1  ;;  %v8891_v14 = vsub.f32 %v32664_v30, %v32674_v25 }
 0x1ca   : > { %28117 = vmatpush3.msra.mxu1 %v31574_v32  ;;  %28108 = vmatpush3.msra.mxu0 %v31609_v41 }
 0x1cb   : > { %28118 = vmatprep.subr.mxu1 %v37025_v3  ;;  %28109 = vmatprep.subr.mxu0 %v37025_v3 }
 0x1cc   : > { %28119 = vmatpush3.msra.mxu1 %v31584_v36  ;;  %28110 = vmatpush3.msra.mxu0 %v31620_v44 }
 0x1cd   : > { %28111 = vmatprep.mubr.msk.f32.mxu0 %vm31316_vm1, %v37025_v3  ;;  %28120 = vmatprep.mubr.msk.f32.mxu1 %vm31316_vm1, %v37025_v3 }
 0x1ce   : > { %28132 = vmatprep.subr.mxu1 %v37025_v3  ;;  %28112 = vmatmul.mubr.f32.vlgmr.msra.gmra.mxu0 %v32585_v29  ;;  %v4930_v43 = vpop.f32.mrf.mxu0 }
 0x1cf   : > { %28121 = vmatmul.mubr.f32.vlgmr.msra.gmra.mxu1 %v32585_v29  ;;  %28123 = vmatprep.subr.mxu0 %v37025_v3  ;;  %v4931_v45 = vadd.f32 %v4930_v43, %v4851_v22  ;;  %v5004_v48 = vpop.f32.mrf.mxu1  ;;  %v32696_v29 = vand.u32 4294901760, %v8891_v14 }
 0x1d0   : > { %28133 = vmatpush3.msra.mxu1 %v31746_v19  ;;  %28124 = vmatpush3.msra.mxu0 %v31669_v56  ;;  %v27681_v51 = vpop.f32.mrf.mxu0 }
 0x1d1   : > { %28134 = vmatprep.subr.mxu1 %v37025_v3  ;;  %28125 = vmatprep.subr.mxu0 %v37025_v3  ;;  %v5005_v53 = vadd.f32 %v5004_v48, %v4931_v45  ;;  %v27690_v17 = vpop.f32.mrf.mxu1  ;;  %v25372_v51 = vld [vmem:[%s31535_s27 + $0xd] sm:$0x1] }
 0x1d2   : > { %28135 = vmatpush3.msra.mxu1 %v31756_v24  ;;  %28126 = vmatpush3.msra.mxu0 %v31680_v59  ;;  %v9770_v17 = vsel %vm714_vm2, %v25372_v51, 0 }
 0x1d3   : > { %28136 = vmatprep.subr.mxu1 %v37025_v3  ;;  %28127 = vmatprep.subr.mxu0 %v37025_v3  ;;  %v32701_v50 = vadd.f32 %v5005_v53, %v32632_v33 }
 0x1d4   : > { %28137 = vmatpush3.msra.mxu1 %v31764_v26  ;;  %28128 = vmatpush3.msra.mxu0 %v31690_v62 }
 0x1d5   : > { %37283 = vst [vmem:[#allocation16_spill] sm:$0xff] %v32701_v50  ;;  %28129 = vmatprep.mubr.msk.f32.mxu0 %vm31316_vm1, %v37025_v3  ;;  %28138 = vmatprep.mubr.msk.f32.mxu1 %vm31316_vm1, %v37025_v3  ;;  %v37336_v50 = vmov 0.0  }
 0x1d6   : > { %28150 = vmatprep.subr.mxu1 %v37025_v3  ;;  %28130 = vmatmul.mubr.f32.vlgmr.msra.gmra.mxu0 %v32696_v29  ;;  %v5086_v46 = vpop.f32.mrf.mxu0 }
 0x1d7   : > { %28139 = vmatmul.mubr.f32.vlgmr.msra.gmra.mxu1 %v32651_v15  ;;  %28141 = vmatprep.subr.mxu0 %v37025_v3  ;;  %v5172_v33 = vpop.f32.mrf.mxu1 }
 0x1d8   : > { %28151 = vmatpush3.msra.mxu1 %v31669_v56  ;;  %28142 = vmatpush3.msra.mxu0 %v31688_v61  ;;  %v5173_v31 = vadd.f32 %v5172_v33, %v5086_v46  ;;  %v27699_v54 = vpop.f32.mrf.mxu0 }
 0x1d9   : > { %28152 = vmatprep.subr.mxu1 %v37025_v3  ;;  %28143 = vmatprep.subr.mxu0 %v37025_v3  ;;  %v27708_v58 = vpop.f32.mrf.mxu1 }
 0x1da   : > { %28153 = vmatpush3.msra.mxu1 %v31680_v59  ;;  %28144 = vmatpush3.msra.mxu0 %v31697_v63 }
 0x1db   : > { %28154 = vmatprep.subr.mxu1 %v37025_v3  ;;  %28145 = vmatprep.subr.mxu0 %v37025_v3 }
 0x1dc   : > { %28155 = vmatpush3.msra.mxu1 %v31690_v62  ;;  %28146 = vmatpush3.msra.mxu0 %v31709_v2 }
 0x1dd   : > { %28147 = vmatprep.mubr.msk.f32.mxu0 %vm31316_vm1, %v37025_v3  ;;  %28156 = vmatprep.mubr.msk.f32.mxu1 %vm31316_vm1, %v37025_v3 }
 0x1de   : > { %28168 = vmatprep.subr.mxu1 %v37025_v3  ;;  %28148 = vmatmul.mubr.f32.vlgmr.msra.gmra.mxu0 %v32664_v30  ;;  %v5250_v0 = vpop.f32.mrf.mxu0 }
 0x1df   : > { %28157 = vmatmul.mubr.f32.vlgmr.msra.gmra.mxu1 %v32674_v25  ;;  %28159 = vmatprep.subr.mxu0 %v37025_v3  ;;  %v5251_v57 = vadd.f32 %v5250_v0, %v5173_v31  ;;  %v5326_v34 = vpop.f32.mrf.mxu1 }
 0x1e0   : > { %28169 = vmatpush3.msra.mxu1 %v31669_v56  ;;  %28160 = vmatpush3.msra.mxu0 %v31706_v1  ;;  %v27717_v27 = vpop.f32.mrf.mxu0 }
 0x1e1   : > { %28170 = vmatprep.subr.mxu1 %v37025_v3  ;;  %28161 = vmatprep.subr.mxu0 %v37025_v3  ;;  %v5327_v38 = vadd.f32 %v5326_v34, %v5251_v57  ;;  %v27726_v42 = vpop.f32.mrf.mxu1 }
 0x1e2   : > { %28171 = vmatpush3.msra.mxu1 %v31680_v59  ;;  %28162 = vmatpush3.msra.mxu0 %v31718_v4 }
 0x1e3   : > { %28172 = vmatprep.subr.mxu1 %v37025_v3  ;;  %28163 = vmatprep.subr.mxu0 %v37025_v3 }
 0x1e4   : > { %28173 = vmatpush3.msra.mxu1 %v31690_v62  ;;  %28164 = vmatpush3.msra.mxu0 %v31731_v16 }
 0x1e5   : > { %28165 = vmatprep.mubr.msk.f32.mxu0 %vm31316_vm1, %v37025_v3  ;;  %28174 = vmatprep.mubr.msk.f32.mxu1 %vm31316_vm1, %v37025_v3 }
 0x1e6   : > { %28186 = vmatprep.subr.mxu1 %v37025_v3  ;;  %28166 = vmatmul.mubr.f32.vlgmr.msra.gmra.mxu0 %v32651_v15  ;;  %v5406_v22 = vpop.f32.mrf.mxu0 }
 0x1e7   : > { %28175 = vmatmul.mubr.f32.vlgmr.msra.gmra.mxu1 %v32651_v15  ;;  %28177 = vmatprep.subr.mxu0 %v37025_v3  ;;  %v5407_v60 = vadd.f32 %v5406_v22, %v5327_v38  ;;  %v5480_v14 = vpop.f32.mrf.mxu1 }
 0x1e8   : > { %28187 = vmatpush3.msra.mxu1 %v31548_v20  ;;  %28178 = vmatpush3.msra.mxu0 %v31498_v7  ;;  %v27735_v43 = vpop.f32.mrf.mxu0 }
 0x1e9   : > { %28188 = vmatprep.subr.mxu1 %v37025_v3  ;;  %28179 = vmatprep.subr.mxu0 %v37025_v3  ;;  %v32753_v45 = vadd.f32 %v5480_v14, %v5407_v60  ;;  %v27744_v48 = vpop.f32.mrf.mxu1 }
 0x1ea   : > { %28189 = vmatpush3.msra.mxu1 %v31550_v21  ;;  %28180 = vmatpush3.msra.mxu0 %v31493_v5  ;;  %v32821_v48 = vld [vmem:[%s37282_s3] sm:$0x1] }
 0x1eb   : > { %28190 = vmatprep.subr.mxu1 %v37025_v3  ;;  %28181 = vmatprep.subr.mxu0 %v37025_v3 }
 0x1ec   : > { %28191 = vmatpush3.msra.mxu1 %v31555_v23  ;;  %28182 = vmatpush3.msra.mxu0 %v31495_v6 }
 0x1ed   : > { %28183 = vmatprep.mubr.msk.f32.mxu0 %vm31316_vm1, %v37025_v3  ;;  %28192 = vmatprep.mubr.msk.f32.mxu1 %vm31316_vm1, %v37025_v3 }
 0x1ee   : > { %28204 = vmatprep.subr.mxu1 %v37025_v3  ;;  %28184 = vmatmul.mubr.f32.vlgmr.msra.gmra.mxu0 %v32696_v29  ;;  %v5562_v53 = vpop.f32.mrf.mxu0  ;;  %v32777_v29 = vand.u32 4294901760, %v9770_v17 }
 0x1ef   : > { %28193 = vmatmul.mubr.f32.vlgmr.msra.gmra.mxu1 %v32651_v15  ;;  %28195 = vmatprep.subr.mxu0 %v37025_v3  ;;  %v5648_v46 = vpop.f32.mrf.mxu1 }
 0x1f0   : > { %28205 = vmatpush3.msra.mxu1 %v31498_v7  ;;  %28196 = vmatpush3.msra.mxu0 %v31514_v10  ;;  %v5649_v33 = vadd.f32 %v5648_v46, %v5562_v53  ;;  %v27753_v31 = vpop.f32.mrf.mxu0  ;;  %v32790_v58 = vsub.f32 %v9770_v17, %v32777_v29 }
 0x1f1   : > { %28206 = vmatprep.subr.mxu1 %v37025_v3  ;;  %28197 = vmatprep.subr.mxu0 %v37025_v3  ;;  %v27762_v54 = vpop.f32.mrf.mxu1 }
 0x1f2   : > { %28207 = vmatpush3.msra.mxu1 %v31493_v5  ;;  %28198 = vmatpush3.msra.mxu0 %v31505_v8 }
 0x1f3   : > { %28208 = vmatprep.subr.mxu1 %v37025_v3  ;;  %28199 = vmatprep.subr.mxu0 %v37025_v3 }
 0x1f4   : > { %28209 = vmatpush3.msra.mxu1 %v31495_v6  ;;  %28200 = vmatpush3.msra.mxu0 %v31508_v9 }
 0x1f5   : > { %28201 = vmatprep.mubr.msk.f32.mxu0 %vm31316_vm1, %v37025_v3  ;;  %28210 = vmatprep.mubr.msk.f32.mxu1 %vm31316_vm1, %v37025_v3 }
 0x1f6   : > { %28222 = vmatprep.subr.mxu1 %v37025_v3  ;;  %28202 = vmatmul.mubr.f32.vlgmr.msra.gmra.mxu0 %v32664_v30  ;;  %v5726_v0 = vpop.f32.mrf.mxu0 }
 0x1f7   : > { %28211 = vmatmul.mubr.f32.vlgmr.msra.gmra.mxu1 %v32674_v25  ;;  %28213 = vmatprep.subr.mxu0 %v37025_v3  ;;  %v5727_v57 = vadd.f32 %v5726_v0, %v5649_v33  ;;  %v5802_v34 = vpop.f32.mrf.mxu1  ;;  %v9842_v25 = vand.u32 4294901760, %v32790_v58  ;;  %v25373_v33 = vld [vmem:[%s31535_s27 + $0xe] sm:$0x1] }
 0x1f8   : > { %28223 = vmatpush3.msra.mxu1 %v31498_v7  ;;  %28214 = vmatpush3.msra.mxu0 %v31526_v13  ;;  %v27771_v27 = vpop.f32.mrf.mxu0  ;;  %v10246_v31 = vsel %vm714_vm2, %v25373_v33, 0 }
 0x1f9   : > { %28224 = vmatprep.subr.mxu1 %v37025_v3  ;;  %28215 = vmatprep.subr.mxu0 %v37025_v3  ;;  %v5803_v30 = vadd.f32 %v5802_v34, %v5727_v57  ;;  %v27780_v38 = vpop.f32.mrf.mxu1  ;;  %v9843_v42 = vsub.f32 %v32790_v58, %v9842_v25  ;;  %v32848_v27 = vand.u32 4294901760, %v10246_v31 }
 0x1fa   : > { %28225 = vmatpush3.msra.mxu1 %v31493_v5  ;;  %28216 = vmatpush3.msra.mxu0 %v31519_v11 }
 0x1fb   : > { %28226 = vmatprep.subr.mxu1 %v37025_v3  ;;  %28217 = vmatprep.subr.mxu0 %v37025_v3  ;;  %v9844_v17 = vand.u32 4294901760, %v9843_v42 }
 0x1fc   : > { %28227 = vmatpush3.msra.mxu1 %v31495_v6  ;;  %28218 = vmatpush3.msra.mxu0 %v31522_v12 }
 0x1fd   : > { %28219 = vmatprep.mubr.msk.f32.mxu0 %vm31316_vm1, %v37025_v3  ;;  %28228 = vmatprep.mubr.msk.f32.mxu1 %vm31316_vm1, %v37025_v3 }
 0x1fe   : > { %28240 = vmatprep.subr.mxu1 %v37025_v3  ;;  %28220 = vmatmul.mubr.f32.vlgmr.msra.gmra.mxu0 %v32651_v15  ;;  %v5882_v22 = vpop.f32.mrf.mxu0 }
 0x1ff   : > { %28229 = vmatmul.mubr.f32.vlgmr.msra.gmra.mxu1 %v32651_v15  ;;  %28231 = vmatprep.subr.mxu0 %v37025_v3  ;;  %v5883_v60 = vadd.f32 %v5882_v22, %v5803_v30  ;;  %v5956_v14 = vpop.f32.mrf.mxu1  ;;  %v5484_v15 = vadd.f32 %v32821_v48, %v32753_v45  ;;  %v32861_v30 = vsub.f32 %v10246_v31, %v32848_v27 }
 0x200   : > { %28241 = vmatpush3.msra.mxu1 %v31633_v47  ;;  %28232 = vmatpush3.msra.mxu0 %v31565_v28  ;;  %v27789_v43 = vpop.f32.mrf.mxu0 }
 0x201   : > { %28242 = vmatprep.subr.mxu1 %v37025_v3  ;;  %28233 = vmatprep.subr.mxu0 %v37025_v3  ;;  %v5957_v51 = vadd.f32 %v5956_v14, %v5883_v60  ;;  %v27798_v53 = vpop.f32.mrf.mxu1 }
 0x202   : > { %28243 = vmatpush3.msra.mxu1 %v31643_v49  ;;  %28234 = vmatpush3.msra.mxu0 %v31574_v32 }
 0x203   : > { %28244 = vmatprep.subr.mxu1 %v37025_v3  ;;  %28235 = vmatprep.subr.mxu0 %v37025_v3  ;;  %v32829_v46 = vadd.f32 %v5957_v51, %v5484_v15 }
 0x204   : > { %28245 = vmatpush3.msra.mxu1 %v31655_v52  ;;  %28236 = vmatpush3.msra.mxu0 %v31584_v36 }
 0x205   : > { %28237 = vmatprep.mubr.msk.f32.mxu0 %vm31316_vm1, %v37025_v3  ;;  %28246 = vmatprep.mubr.msk.f32.mxu1 %vm31316_vm1, %v37025_v3 }
 0x206   : > { %28258 = vmatprep.subr.mxu1 %v37025_v3  ;;  %28238 = vmatmul.mubr.f32.vlgmr.msra.gmra.mxu0 %v9844_v17  ;;  %v6038_v45 = vpop.f32.mrf.mxu0 }
 0x207   : > { %28247 = vmatmul.mubr.f32.vlgmr.msra.gmra.mxu1 %v32777_v29  ;;  %28249 = vmatprep.subr.mxu0 %v37025_v3  ;;  %v6124_v54 = vpop.f32.mrf.mxu1 }
 0x208   : > { %28259 = vmatpush3.msra.mxu1 %v31565_v28  ;;  %28250 = vmatpush3.msra.mxu0 %v31582_v35  ;;  %v6125_v0 = vadd.f32 %v6124_v54, %v6038_v45  ;;  %v27807_v57 = vpop.f32.mrf.mxu0 }
 0x209   : > { %28260 = vmatprep.subr.mxu1 %v37025_v3  ;;  %28251 = vmatprep.subr.mxu0 %v37025_v3  ;;  %v27816_v34 = vpop.f32.mrf.mxu1 }
 0x20a   : > { %28261 = vmatpush3.msra.mxu1 %v31574_v32  ;;  %28252 = vmatpush3.msra.mxu0 %v31590_v37 }
 0x20b   : > { %28262 = vmatprep.subr.mxu1 %v37025_v3  ;;  %28253 = vmatprep.subr.mxu0 %v37025_v3 }
 0x20c   : > { %28263 = vmatpush3.msra.mxu1 %v31584_v36  ;;  %28254 = vmatpush3.msra.mxu0 %v31603_v40 }
 0x20d   : > { %28255 = vmatprep.mubr.msk.f32.mxu0 %vm31316_vm1, %v37025_v3  ;;  %28264 = vmatprep.mubr.msk.f32.mxu1 %vm31316_vm1, %v37025_v3 }
 0x20e   : > { %28276 = vmatprep.subr.mxu1 %v37025_v3  ;;  %28256 = vmatmul.mubr.f32.vlgmr.msra.gmra.mxu0 %v32790_v58  ;;  %v6202_v38 = vpop.f32.mrf.mxu0 }
 0x20f   : > { %28265 = vmatmul.mubr.f32.vlgmr.msra.gmra.mxu1 %v9842_v25  ;;  %28267 = vmatprep.subr.mxu0 %v37025_v3  ;;  %v6203_v42 = vadd.f32 %v6202_v38, %v6125_v0  ;;  %v6278_v22 = vpop.f32.mrf.mxu1  ;;  %v32871_v25 = vand.u32 4294901760, %v32861_v30 }
 0x210   : > { %28277 = vmatpush3.msra.mxu1 %v31565_v28  ;;  %28268 = vmatpush3.msra.mxu0 %v31600_v39  ;;  %v27825_v60 = vpop.f32.mrf.mxu0 }
 0x211   : > { %28278 = vmatprep.subr.mxu1 %v37025_v3  ;;  %28269 = vmatprep.subr.mxu0 %v37025_v3  ;;  %v6279_v14 = vadd.f32 %v6278_v22, %v6203_v42  ;;  %v27834_v58 = vpop.f32.mrf.mxu1  ;;  %v10319_v43 = vsub.f32 %v32861_v30, %v32871_v25 }
 0x212   : > { %28279 = vmatpush3.msra.mxu1 %v31574_v32  ;;  %28270 = vmatpush3.msra.mxu0 %v31609_v41 }
 0x213   : > { %28280 = vmatprep.subr.mxu1 %v37025_v3  ;;  %28271 = vmatprep.subr.mxu0 %v37025_v3 }
 0x214   : > { %28281 = vmatpush3.msra.mxu1 %v31584_v36  ;;  %28272 = vmatpush3.msra.mxu0 %v31620_v44 }
 0x215   : > { %28273 = vmatprep.mubr.msk.f32.mxu0 %vm31316_vm1, %v37025_v3  ;;  %28282 = vmatprep.mubr.msk.f32.mxu1 %vm31316_vm1, %v37025_v3 }
 0x216   : > { %28294 = vmatprep.subr.mxu1 %v37025_v3  ;;  %28274 = vmatmul.mubr.f32.vlgmr.msra.gmra.mxu0 %v32777_v29  ;;  %v6358_v15 = vpop.f32.mrf.mxu0 }
 0x217   : > { %28283 = vmatmul.mubr.f32.vlgmr.msra.gmra.mxu1 %v32777_v29  ;;  %28285 = vmatprep.subr.mxu0 %v37025_v3  ;;  %v6359_v51 = vadd.f32 %v6358_v15, %v6279_v14  ;;  %v6432_v53 = vpop.f32.mrf.mxu1  ;;  %v32893_v29 = vand.u32 4294901760, %v10319_v43 }
 0x218   : > { %28295 = vmatpush3.msra.mxu1 %v31746_v19  ;;  %28286 = vmatpush3.msra.mxu0 %v31669_v56  ;;  %v27843_v17 = vpop.f32.mrf.mxu0 }
 0x219   : > { %28296 = vmatprep.subr.mxu1 %v37025_v3  ;;  %28287 = vmatprep.subr.mxu0 %v37025_v3  ;;  %v6433_v33 = vadd.f32 %v6432_v53, %v6359_v51  ;;  %v27852_v45 = vpop.f32.mrf.mxu1 }
 0x21a   : > { %28297 = vmatpush3.msra.mxu1 %v31756_v24  ;;  %28288 = vmatpush3.msra.mxu0 %v31680_v59 }
 0x21b   : > { %28298 = vmatprep.subr.mxu1 %v37025_v3  ;;  %28289 = vmatprep.subr.mxu0 %v37025_v3  ;;  %v32898_v31 = vadd.f32 %v6433_v33, %v32829_v46 }
 0x21c   : > { %28299 = vmatpush3.msra.mxu1 %v31764_v26  ;;  %28290 = vmatpush3.msra.mxu0 %v31690_v62 }
 0x21d   : > { %37284 = vst [vmem:[#allocation17_spill] sm:$0xff] %v32898_v31  ;;  %28291 = vmatprep.mubr.msk.f32.mxu0 %vm31316_vm1, %v37025_v3  ;;  %28300 = vmatprep.mubr.msk.f32.mxu1 %vm31316_vm1, %v37025_v3 }
 0x21e   : > { %28312 = vmatprep.subr.mxu1 %v37025_v3  ;;  %28292 = vmatmul.mubr.f32.vlgmr.msra.gmra.mxu0 %v32893_v29  ;;  %v6514_v54 = vpop.f32.mrf.mxu0 }
 0x21f   : > { %28301 = vmatmul.mubr.f32.vlgmr.msra.gmra.mxu1 %v32848_v27  ;;  %28303 = vmatprep.subr.mxu0 %v37025_v3  ;;  %v6600_v46 = vpop.f32.mrf.mxu1 }
 0x220   : > { %28313 = vmatpush3.msra.mxu1 %v31669_v56  ;;  %28304 = vmatpush3.msra.mxu0 %v31688_v61  ;;  %v6601_v0 = vadd.f32 %v6600_v46, %v6514_v54  ;;  %v27861_v57 = vpop.f32.mrf.mxu0 }
 0x221   : > { %28314 = vmatprep.subr.mxu1 %v37025_v3  ;;  %28305 = vmatprep.subr.mxu0 %v37025_v3  ;;  %v27870_v34 = vpop.f32.mrf.mxu1 }
 0x222   : > { %28315 = vmatpush3.msra.mxu1 %v31680_v59  ;;  %28306 = vmatpush3.msra.mxu0 %v31697_v63 }
 0x223   : > { %28316 = vmatprep.subr.mxu1 %v37025_v3  ;;  %28307 = vmatprep.subr.mxu0 %v37025_v3 }
 0x224   : > { %28317 = vmatpush3.msra.mxu1 %v31690_v62  ;;  %28308 = vmatpush3.msra.mxu0 %v31709_v2 }
 0x225   : > { %28309 = vmatprep.mubr.msk.f32.mxu0 %vm31316_vm1, %v37025_v3  ;;  %28318 = vmatprep.mubr.msk.f32.mxu1 %vm31316_vm1, %v37025_v3 }
 0x226   : > { %28330 = vmatprep.subr.mxu1 %v37025_v3  ;;  %28310 = vmatmul.mubr.f32.vlgmr.msra.gmra.mxu0 %v32861_v30  ;;  %v6678_v38 = vpop.f32.mrf.mxu0 }
 0x227   : > { %28319 = vmatmul.mubr.f32.vlgmr.msra.gmra.mxu1 %v32871_v25  ;;  %28321 = vmatprep.subr.mxu0 %v37025_v3  ;;  %v6679_v42 = vadd.f32 %v6678_v38, %v6601_v0  ;;  %v6754_v22 = vpop.f32.mrf.mxu1 }
 0x228   : > { %28331 = vmatpush3.msra.mxu1 %v31669_v56  ;;  %28322 = vmatpush3.msra.mxu0 %v31706_v1  ;;  %v27879_v60 = vpop.f32.mrf.mxu0 }
 0x229   : > { %28332 = vmatprep.subr.mxu1 %v37025_v3  ;;  %28323 = vmatprep.subr.mxu0 %v37025_v3  ;;  %v6755_v14 = vadd.f32 %v6754_v22, %v6679_v42  ;;  %v27888_v58 = vpop.f32.mrf.mxu1  ;;  %v25375_v60 = vld [vmem:[%s31535_s27 + $0x10] sm:$0x1] }
 0x22a   : > { %28333 = vmatpush3.msra.mxu1 %v31680_v59  ;;  %28324 = vmatpush3.msra.mxu0 %v31718_v4 }
 0x22b   : > { %28334 = vmatprep.subr.mxu1 %v37025_v3  ;;  %28325 = vmatprep.subr.mxu0 %v37025_v3 }
 0x22c   : > { %28335 = vmatpush3.msra.mxu1 %v31690_v62  ;;  %28326 = vmatpush3.msra.mxu0 %v31731_v16 }
 0x22d   : > { %28327 = vmatprep.mubr.msk.f32.mxu0 %vm31316_vm1, %v37025_v3  ;;  %28336 = vmatprep.mubr.msk.f32.mxu1 %vm31316_vm1, %v37025_v3 }
 0x22e   : > { %28348 = vmatprep.subr.mxu1 %v37025_v3  ;;  %28328 = vmatmul.mubr.f32.vlgmr.msra.gmra.mxu0 %v32848_v27  ;;  %v6834_v43 = vpop.f32.mrf.mxu0 }
 0x22f   : > { %28337 = vmatmul.mubr.f32.vlgmr.msra.gmra.mxu1 %v32848_v27  ;;  %28339 = vmatprep.subr.mxu0 %v37025_v3  ;;  %v6835_v15 = vadd.f32 %v6834_v43, %v6755_v14  ;;  %v6908_v51 = vpop.f32.mrf.mxu1  ;;  %v11674_v14 = vsel %vm714_vm2, %v25375_v60, 0 }
 0x230   : > { %28349 = vmatpush3.msra.mxu1 %v31548_v20  ;;  %28340 = vmatpush3.msra.mxu0 %v31498_v7  ;;  %v27897_v53 = vpop.f32.mrf.mxu0  ;;  %v25374_v20 = vld [vmem:[%s31535_s27 + $0xf] sm:$0x1]  ;;  %s36807_s27 = sand.u32 1, %s31305_s22  }
 0x231   : > { %28350 = vmatprep.subr.mxu1 %v37025_v3  ;;  %28341 = vmatprep.subr.mxu0 %v37025_v3  ;;  %v32950_v17 = vadd.f32 %v6908_v51, %v6835_v15  ;;  %v27906_v33 = vpop.f32.mrf.mxu1  ;;  %v33040_v51 = vand.u32 4294901760, %v11674_v14 }
 0x232   : > { %28351 = vmatpush3.msra.mxu1 %v31550_v21  ;;  %28342 = vmatpush3.msra.mxu0 %v31493_v5 }
 0x233   : > { %28352 = vmatprep.subr.mxu1 %v37025_v3  ;;  %28343 = vmatprep.subr.mxu0 %v37025_v3 }
 0x234   : > { %28353 = vmatpush3.msra.mxu1 %v31555_v23  ;;  %28344 = vmatpush3.msra.mxu0 %v31495_v6  ;;  %v11198_v23 = vsel %vm714_vm2, %v25374_v20, 0 }
 0x235   : > { %28345 = vmatprep.mubr.msk.f32.mxu0 %vm31316_vm1, %v37025_v3  ;;  %28354 = vmatprep.mubr.msk.f32.mxu1 %vm31316_vm1, %v37025_v3 }
 0x236   : > { %28366 = vmatprep.subr.mxu1 %v37025_v3  ;;  %28346 = vmatmul.mubr.f32.vlgmr.msra.gmra.mxu0 %v32893_v29  ;;  %v6990_v21 = vpop.f32.mrf.mxu0  ;;  %v32974_v29 = vand.u32 4294901760, %v11198_v23 }
 0x237   : > { %28355 = vmatmul.mubr.f32.vlgmr.msra.gmra.mxu1 %v32848_v27  ;;  %28357 = vmatprep.subr.mxu0 %v37025_v3  ;;  %v7076_v45 = vpop.f32.mrf.mxu1 }
 0x238   : > { %28367 = vmatpush3.msra.mxu1 %v31498_v7  ;;  %28358 = vmatpush3.msra.mxu0 %v31514_v10  ;;  %v7077_v54 = vadd.f32 %v7076_v45, %v6990_v21  ;;  %v27915_v46 = vpop.f32.mrf.mxu0 }
 0x239   : > { %28368 = vmatprep.subr.mxu1 %v37025_v3  ;;  %28359 = vmatprep.subr.mxu0 %v37025_v3  ;;  %v27924_v0 = vpop.f32.mrf.mxu1 }
 0x23a   : > { %28369 = vmatpush3.msra.mxu1 %v31493_v5  ;;  %28360 = vmatpush3.msra.mxu0 %v31505_v8  ;;  %v32987_v8 = vsub.f32 %v11198_v23, %v32974_v29 }
 0x23b   : > { %28370 = vmatprep.subr.mxu1 %v37025_v3  ;;  %28361 = vmatprep.subr.mxu0 %v37025_v3 }
 0x23c   : > { %28371 = vmatpush3.msra.mxu1 %v31495_v6  ;;  %28362 = vmatpush3.msra.mxu0 %v31508_v9 }
 0x23d   : > { %28363 = vmatprep.mubr.msk.f32.mxu0 %vm31316_vm1, %v37025_v3  ;;  %28372 = vmatprep.mubr.msk.f32.mxu1 %vm31316_vm1, %v37025_v3 }
 0x23e   : > { %28384 = vmatprep.subr.mxu1 %v37025_v3  ;;  %28364 = vmatmul.mubr.f32.vlgmr.msra.gmra.mxu0 %v32861_v30  ;;  %v7154_v10 = vpop.f32.mrf.mxu0 }
 0x23f   : > { %28373 = vmatmul.mubr.f32.vlgmr.msra.gmra.mxu1 %v32871_v25  ;;  %28375 = vmatprep.subr.mxu0 %v37025_v3  ;;  %v7155_v57 = vadd.f32 %v7154_v10, %v7077_v54  ;;  %v7230_v9 = vpop.f32.mrf.mxu1  ;;  %v11270_v25 = vand.u32 4294901760, %v32987_v8  ;;  %v12159_v10 = vld [vmem:[%s37285_s26 + $0x30] sm:$0xff] }
 0x240   : > { %28385 = vmatpush3.msra.mxu1 %v31498_v7  ;;  %28376 = vmatpush3.msra.mxu0 %v31526_v13  ;;  %v27933_v34 = vpop.f32.mrf.mxu0  ;;  %v6912_v13 = vadd.f32 %v32821_v48, %v32950_v17 }
 0x241   : > { %28386 = vmatprep.subr.mxu1 %v37025_v3  ;;  %28377 = vmatprep.subr.mxu0 %v37025_v3  ;;  %v7231_v30 = vadd.f32 %v7230_v9, %v7155_v57  ;;  %v27942_v38 = vpop.f32.mrf.mxu1 }
 0x242   : > { %28387 = vmatpush3.msra.mxu1 %v31493_v5  ;;  %28378 = vmatpush3.msra.mxu0 %v31519_v11  ;;  %v11271_v5 = vsub.f32 %v32987_v8, %v11270_v25 }
 0x243   : > { %28388 = vmatprep.subr.mxu1 %v37025_v3  ;;  %28379 = vmatprep.subr.mxu0 %v37025_v3 }
 0x244   : > { %28389 = vmatpush3.msra.mxu1 %v31495_v6  ;;  %28380 = vmatpush3.msra.mxu0 %v31522_v12 }
 0x245   : > { %28381 = vmatprep.mubr.msk.f32.mxu0 %vm31316_vm1, %v37025_v3  ;;  %28390 = vmatprep.mubr.msk.f32.mxu1 %vm31316_vm1, %v37025_v3 }
 0x246   : > { %28402 = vmatprep.subr.mxu1 %v37025_v3  ;;  %28382 = vmatmul.mubr.f32.vlgmr.msra.gmra.mxu0 %v32848_v27  ;;  %v7310_v7 = vpop.f32.mrf.mxu0 }
 0x247   : > { %28391 = vmatmul.mubr.f32.vlgmr.msra.gmra.mxu1 %v32848_v27  ;;  %28393 = vmatprep.subr.mxu0 %v37025_v3  ;;  %v7311_v6 = vadd.f32 %v7310_v7, %v7231_v30  ;;  %v7384_v11 = vpop.f32.mrf.mxu1  ;;  %v11272_v27 = vand.u32 4294901760, %v11271_v5 }
 0x248   : > { %28403 = vmatpush3.msra.mxu1 %v31633_v47  ;;  %28394 = vmatpush3.msra.mxu0 %v31565_v28  ;;  %v27951_v12 = vpop.f32.mrf.mxu0 }
 0x249   : > { %28404 = vmatprep.subr.mxu1 %v37025_v3  ;;  %28395 = vmatprep.subr.mxu0 %v37025_v3  ;;  %v7385_v42 = vadd.f32 %v7384_v11, %v7311_v6  ;;  %v27960_v22 = vpop.f32.mrf.mxu1  ;;  %v12157_v6 = vld [vmem:[%s37285_s26 + $0x20] sm:$0xff] }
 0x24a   : > { %28405 = vmatpush3.msra.mxu1 %v31643_v49  ;;  %28396 = vmatpush3.msra.mxu0 %v31574_v32 }
 0x24b   : > { %28406 = vmatprep.subr.mxu1 %v37025_v3  ;;  %28397 = vmatprep.subr.mxu0 %v37025_v3  ;;  %v33021_v47 = vadd.f32 %v7385_v42, %v6912_v13  ;;  %v12156_v13 = vld [vmem:[%s37285_s26 + $0x18] sm:$0xff]  ;;  %v33163_v42 = vand.u32 4294901760, %v12157_v6 }
 0x24c   : > { %28407 = vmatpush3.msra.mxu1 %v31655_v52  ;;  %28398 = vmatpush3.msra.mxu0 %v31584_v36 }
 0x24d   : > { %28399 = vmatprep.mubr.msk.f32.mxu0 %vm31316_vm1, %v37025_v3  ;;  %28408 = vmatprep.mubr.msk.f32.mxu1 %vm31316_vm1, %v37025_v3  ;;  %37294 = vst [vmem:[#allocation26_spill] sm:$0xff] %v33163_v42 }
 0x24e   : > { %28420 = vmatprep.subr.mxu1 %v37025_v3  ;;  %28400 = vmatmul.mubr.f32.vlgmr.msra.gmra.mxu0 %v11272_v27  ;;  %v7466_v49 = vpop.f32.mrf.mxu0 }
 0x24f   : > { %28409 = vmatmul.mubr.f32.vlgmr.msra.gmra.mxu1 %v32974_v29  ;;  %28411 = vmatprep.subr.mxu0 %v37025_v3  ;;  %v7552_v52 = vpop.f32.mrf.mxu1 }
 0x250   : > { %28421 = vmatpush3.msra.mxu1 %v31565_v28  ;;  %28412 = vmatpush3.msra.mxu0 %v31582_v35  ;;  %v7553_v58 = vadd.f32 %v7552_v52, %v7466_v49  ;;  %v27969_v43 = vpop.f32.mrf.mxu0  ;;  %v33053_v35 = vsub.f32 %v11674_v14, %v33040_v51 }
 0x251   : > { %28422 = vmatprep.subr.mxu1 %v37025_v3  ;;  %28413 = vmatprep.subr.mxu0 %v37025_v3  ;;  %v27978_v15 = vpop.f32.mrf.mxu1 }
 0x252   : > { %28423 = vmatpush3.msra.mxu1 %v31574_v32  ;;  %28414 = vmatpush3.msra.mxu0 %v31590_v37  ;;  %v11746_v21 = vand.u32 4294901760, %v33053_v35 }
 0x253   : > { %28424 = vmatprep.subr.mxu1 %v37025_v3  ;;  %28415 = vmatprep.subr.mxu0 %v37025_v3 }
 0x254   : > { %28425 = vmatpush3.msra.mxu1 %v31584_v36  ;;  %28416 = vmatpush3.msra.mxu0 %v31603_v40 }
 0x255   : > { %28417 = vmatprep.mubr.msk.f32.mxu0 %vm31316_vm1, %v37025_v3  ;;  %28426 = vmatprep.mubr.msk.f32.mxu1 %vm31316_vm1, %v37025_v3 }
 0x256   : > { %28438 = vmatprep.subr.mxu1 %v37025_v3  ;;  %28418 = vmatmul.mubr.f32.vlgmr.msra.gmra.mxu0 %v32987_v8  ;;  %v7630_v37 = vpop.f32.mrf.mxu0 }
 0x257   : > { %28427 = vmatmul.mubr.f32.vlgmr.msra.gmra.mxu1 %v11270_v25  ;;  %28429 = vmatprep.subr.mxu0 %v37025_v3  ;;  %v7631_v53 = vadd.f32 %v7630_v37, %v7553_v58  ;;  %v7706_v17 = vpop.f32.mrf.mxu1  ;;  %v12158_v25 = vld [vmem:[%s37285_s26 + $0x28] sm:$0xff]  ;;  %v33181_v58 = vand.u32 4294901760, %v12156_v13 }
 0x258   : > { %28439 = vmatpush3.msra.mxu1 %v31565_v28  ;;  %28430 = vmatpush3.msra.mxu0 %v31600_v39  ;;  %v27987_v40 = vpop.f32.mrf.mxu0  ;;  %v11747_v28 = vsub.f32 %v33053_v35, %v11746_v21 }
 0x259   : > { %28440 = vmatprep.subr.mxu1 %v37025_v3  ;;  %28431 = vmatprep.subr.mxu0 %v37025_v3  ;;  %v7707_v33 = vadd.f32 %v7706_v17, %v7631_v53  ;;  %v27996_v20 = vpop.f32.mrf.mxu1  ;;  %37297 = vst [vmem:[#allocation29_spill] sm:$0xff] %v33181_v58  ;;  %v33196_v53 = vsub.f32 %v12157_v6, %v33163_v42 }
 0x25a   : > { %28441 = vmatpush3.msra.mxu1 %v31574_v32  ;;  %28432 = vmatpush3.msra.mxu0 %v31609_v41  ;;  %v12162_v41 = vld [vmem:[%s37285_s26 + $0x48] sm:$0xff]  ;;  %v11748_v54 = vand.u32 4294901760, %v11747_v28  ;;  %v33215_v20 = vsub.f32 %v12156_v13, %v33181_v58 }
 0x25b   : > { %28442 = vmatprep.subr.mxu1 %v37025_v3  ;;  %28433 = vmatprep.subr.mxu0 %v37025_v3  ;;  %v33092_v46 = vand.u32 4294901760, %v12162_v41  ;;  %37299 = vst [vmem:[#allocation31_spill] sm:$0xff] %v33196_v53  ;;  %v33230_v28 = vand.u32 4294901760, %v33196_v53 }
 0x25c   : > { %28443 = vmatpush3.msra.mxu1 %v31584_v36  ;;  %28434 = vmatpush3.msra.mxu0 %v31620_v44  ;;  %37303 = vst [vmem:[#allocation35_spill] sm:$0xff] %v33215_v20 }
 0x25d   : > { %28435 = vmatprep.mubr.msk.f32.mxu0 %vm31316_vm1, %v37025_v3  ;;  %28444 = vmatprep.mubr.msk.f32.mxu1 %vm31316_vm1, %v37025_v3  ;;  %37306 = vst [vmem:[#allocation38_spill] sm:$0xff] %v33230_v28 }
 0x25e   : > { %28456 = vmatprep.subr.mxu1 %v37025_v3  ;;  %28436 = vmatmul.mubr.f32.vlgmr.msra.gmra.mxu0 %v32974_v29  ;;  %v7786_v32 = vpop.f32.mrf.mxu0 }
 0x25f   : > { %28445 = vmatmul.mubr.f32.vlgmr.msra.gmra.mxu1 %v32974_v29  ;;  %28447 = vmatprep.subr.mxu0 %v37025_v3  ;;  %v7787_v36 = vadd.f32 %v7786_v32, %v7707_v33  ;;  %v7860_v39 = vpop.f32.mrf.mxu1  ;;  %v12160_v29 = vld [vmem:[%s37285_s26 + $0x38] sm:$0xff] }
 0x260   : > { %28457 = vmatpush3.msra.mxu1 %v31746_v19  ;;  %28448 = vmatpush3.msra.mxu0 %v31669_v56  ;;  %v28005_v44 = vpop.f32.mrf.mxu0  ;;  %v12161_v19 = vld [vmem:[%s37285_s26 + $0x40] sm:$0xff]  ;;  %v33119_v9 = vand.u32 4294901760, %v12160_v29 }
 0x261   : > { %28458 = vmatprep.subr.mxu1 %v37025_v3  ;;  %28449 = vmatprep.subr.mxu0 %v37025_v3  ;;  %v7861_v23 = vadd.f32 %v7860_v39, %v7787_v36  ;;  %v28014_v45 = vpop.f32.mrf.mxu1 }
 0x262   : > { %28459 = vmatpush3.msra.mxu1 %v31756_v24  ;;  %28450 = vmatpush3.msra.mxu0 %v31680_v59  ;;  %v33103_v24 = vand.u32 4294901760, %v12161_v19  ;;  %v33144_v11 = vsub.f32 %v12160_v29, %v33119_v9 }
 0x263   : > { %28460 = vmatprep.subr.mxu1 %v37025_v3  ;;  %28451 = vmatprep.subr.mxu0 %v37025_v3  ;;  %v33095_v0 = vadd.f32 %v7861_v23, %v33021_v47  ;;  %v12155_v47 = vld [vmem:[%s37285_s26 + $0x10] sm:$0xff] }
 0x264   : > { %28461 = vmatpush3.msra.mxu1 %v31764_v26  ;;  %28452 = vmatpush3.msra.mxu0 %v31690_v62  ;;  %v33112_v26 = vsub.f32 %v12162_v41, %v33092_v46  ;;  %v33124_v38 = vsub.f32 %v12161_v19, %v33103_v24  ;;  %37290 = vst [vmem:[#allocation22_spill] sm:$0xff] %v33144_v11  ;;  %v33176_v14 = vand.u32 4294901760, %v33144_v11  ;;  %v33198_v17 = vand.u32 4294901760, %v12155_v47 }
 0x265   : > { %37286 = vst [vmem:[#allocation18_spill] sm:$0xff] %v33095_v0  ;;  %28453 = vmatprep.mubr.msk.f32.mxu0 %vm31316_vm1, %v37025_v3  ;;  %28462 = vmatprep.mubr.msk.f32.mxu1 %vm31316_vm1, %v37025_v3 }
 0x266   : > { %28474 = vmatprep.subr.mxu1 %v37025_v3  ;;  %28454 = vmatmul.mubr.f32.vlgmr.msra.gmra.mxu0 %v11748_v54  ;;  %v7942_v8 = vpop.f32.mrf.mxu0  ;;  %37287 = vst [vmem:[#allocation19_spill] sm:$0xff] %v33112_v26  ;;  %37288 = vst [vmem:[#allocation20_spill] sm:$0xff] %v33124_v38  ;;  %v33136_v7 = vand.u32 4294901760, %v33112_v26  ;;  %v33153_v12 = vand.u32 4294901760, %v33124_v38  ;;  %v33233_v32 = vsub.f32 %v12155_v47, %v33198_v17  ;;  %v33246_v54 = vand.u32 4294901760, %v33215_v20 }
 0x267   : > { %28463 = vmatmul.mubr.f32.vlgmr.msra.gmra.mxu1 %v33040_v51  ;;  %28465 = vmatprep.subr.mxu0 %v37025_v3  ;;  %v8028_v57 = vpop.f32.mrf.mxu1  ;;  %37295 = vst [vmem:[#allocation27_spill] sm:$0xff] %v33176_v14  ;;  %37300 = vst [vmem:[#allocation32_spill] sm:$0xff] %v33198_v17 }
 0x268   : > { %28475 = vmatpush3.msra.mxu1 %v31669_v56  ;;  %28466 = vmatpush3.msra.mxu0 %v31688_v61  ;;  %v8029_v34 = vadd.f32 %v8028_v57, %v7942_v8  ;;  %v28023_v30 = vpop.f32.mrf.mxu0  ;;  %v33131_v61 = vand.u32 4294901760, %v12159_v10  ;;  %37289 = vst [vmem:[#allocation21_spill] sm:$0xff] %v33136_v7  ;;  %37292 = vst [vmem:[#allocation24_spill] sm:$0xff] %v33153_v12  ;;  %v12290_v27 = vsub.f32 %v33112_v26, %v33136_v7 }
 0x269   : > { %28476 = vmatprep.subr.mxu1 %v37025_v3  ;;  %28467 = vmatprep.subr.mxu0 %v37025_v3  ;;  %v28032_v5 = vpop.f32.mrf.mxu1  ;;  %v12297_v15 = vsub.f32 %v33124_v38, %v33153_v12  ;;  %37307 = vst [vmem:[#allocation39_spill] sm:$0xff] %v33233_v32  ;;  %37310 = vst [vmem:[#allocation42_spill] sm:$0xff] %v33246_v54  ;;  %v12325_v57 = vsub.f32 %v33196_v53, %v33230_v28 }
 0x26a   : > { %28477 = vmatpush3.msra.mxu1 %v31680_v59  ;;  %28468 = vmatpush3.msra.mxu0 %v31697_v63  ;;  %v33146_v63 = vand.u32 4294901760, %v12158_v25  ;;  %v33202_v40 = vand.u32 4294901760, %v12290_v27  ;;  %v12332_v5 = vsub.f32 %v33215_v20, %v33246_v54 }
 0x26b   : > { %28478 = vmatprep.subr.mxu1 %v37025_v3  ;;  %28469 = vmatprep.subr.mxu0 %v37025_v3  ;;  %v33282_v13 = vand.u32 4294901760, %v12325_v57 }
 0x26c   : > { %28479 = vmatpush3.msra.mxu1 %v31690_v62  ;;  %28470 = vmatpush3.msra.mxu0 %v31709_v2  ;;  %37291 = vst [vmem:[#allocation23_spill] sm:$0xff] %v33146_v63  ;;  %v33161_v2 = vsub.f32 %v12159_v10, %v33131_v61  ;;  %v33179_v52 = vsub.f32 %v12158_v25, %v33146_v63  ;;  %37301 = vst [vmem:[#allocation33_spill] sm:$0xff] %v33202_v40 }
 0x26d   : > { %28471 = vmatprep.mubr.msk.f32.mxu0 %vm31316_vm1, %v37025_v3  ;;  %28480 = vmatprep.mubr.msk.f32.mxu1 %vm31316_vm1, %v37025_v3  ;;  %37317 = vst [vmem:[#allocation49_spill] sm:$0xff] %v33282_v13 }
 0x26e   : > { %28492 = vmatprep.subr.mxu1 %v37025_v3  ;;  %28472 = vmatmul.mubr.f32.vlgmr.msra.gmra.mxu0 %v33053_v35  ;;  %37293 = vst [vmem:[#allocation25_spill] sm:$0xff] %v33161_v2  ;;  %v8106_v22 = vpop.f32.mrf.mxu0  ;;  %37296 = vst [vmem:[#allocation28_spill] sm:$0xff] %v33179_v52  ;;  %v33193_v37 = vand.u32 4294901760, %v33161_v2  ;;  %v33212_v33 = vand.u32 4294901760, %v33179_v52 }
 0x26f   : > { %28481 = vmatmul.mubr.f32.vlgmr.msra.gmra.mxu1 %v11746_v21  ;;  %28483 = vmatprep.subr.mxu0 %v37025_v3  ;;  %v8107_v60 = vadd.f32 %v8106_v22, %v8029_v34  ;;  %v8182_v49 = vpop.f32.mrf.mxu1  ;;  %v33262_v34 = vand.u32 4294901760, %v33233_v32 }
 0x270   : > { %28493 = vmatpush3.msra.mxu1 %v31669_v56  ;;  %28484 = vmatpush3.msra.mxu0 %v31706_v1  ;;  %v28041_v43 = vpop.f32.mrf.mxu0  ;;  %v12154_v56 = vld [vmem:[%s37285_s26 + $0x8] sm:$0xff]  ;;  %37298 = vst [vmem:[#allocation30_spill] sm:$0xff] %v33193_v37  ;;  %37302 = vst [vmem:[#allocation34_spill] sm:$0xff] %v33212_v33  ;;  %v12318_v45 = vsub.f32 %v33179_v52, %v33212_v33 }
 0x271   : > { %28494 = vmatprep.subr.mxu1 %v37025_v3  ;;  %28485 = vmatprep.subr.mxu0 %v37025_v3  ;;  %v8183_v1 = vadd.f32 %v8182_v49, %v8107_v60  ;;  %v28050_v35 = vpop.f32.mrf.mxu1  ;;  %v33217_v21 = vand.u32 4294901760, %v12154_v56  ;;  %37313 = vst [vmem:[#allocation45_spill] sm:$0xff] %v33262_v34  ;;  %v12339_v22 = vsub.f32 %v33233_v32, %v33262_v34  ;;  %v33293_v49 = vand.u32 4294901760, %v12332_v5 }
 0x272   : > { %28495 = vmatpush3.msra.mxu1 %v31680_v59  ;;  %28486 = vmatpush3.msra.mxu0 %v31718_v4  ;;  %v12153_v59 = vld [vmem:[%s37285_s26] sm:$0xff]  ;;  %v12304_v4 = vsub.f32 %v33144_v11, %v33176_v14  ;;  %v33271_v25 = vand.u32 4294901760, %v12318_v45 }
 0x273   : > { %28496 = vmatprep.subr.mxu1 %v37025_v3  ;;  %28487 = vmatprep.subr.mxu0 %v37025_v3  ;;  %37304 = vst [vmem:[#allocation36_spill] sm:$0xff] %v33217_v21  ;;  %v33235_v36 = vand.u32 4294901760, %v12153_v59  ;;  %v33249_v19 = vsub.f32 %v12154_v56, %v33217_v21  ;;  %37319 = vst [vmem:[#allocation51_spill] sm:$0xff] %v33293_v49  ;;  %v33301_v35 = vand.u32 4294901760, %v12339_v22 }
 0x274   : > { %28497 = vmatpush3.msra.mxu1 %v31690_v62  ;;  %28488 = vmatpush3.msra.mxu0 %v31731_v16  ;;  %v33223_v62 = vand.u32 4294901760, %v12297_v15  ;;  %v12311_v16 = vsub.f32 %v33161_v2, %v33193_v37  ;;  %v33241_v23 = vand.u32 4294901760, %v12304_v4  ;;  %37315 = vst [vmem:[#allocation47_spill] sm:$0xff] %v33271_v25 }
 0x275   : > { %28489 = vmatprep.mubr.msk.f32.mxu0 %vm31316_vm1, %v37025_v3  ;;  %28498 = vmatprep.mubr.msk.f32.mxu1 %vm31316_vm1, %v37025_v3  ;;  %37308 = vst [vmem:[#allocation40_spill] sm:$0xff] %v33235_v36  ;;  %37311 = vst [vmem:[#allocation43_spill] sm:$0xff] %v33249_v19  ;;  %v33265_v30 = vsub.f32 %v12153_v59, %v33235_v36  ;;  %v33276_v6 = vand.u32 4294901760, %v33249_v19 }
 0x276   : > { %37305 = vst [vmem:[#allocation37_spill] sm:$0xff] %v33223_v62  ;;  %28524 = vmatprep.subr.mxu1 %v37025_v3  ;;  %28490 = vmatmul.mubr.f32.vlgmr.msra.gmra.mxu0 %v33040_v51  ;;  %v8262_v39 = vpop.f32.mrf.mxu0  ;;  %37309 = vst [vmem:[#allocation41_spill] sm:$0xff] %v33241_v23  ;;  %v33257_v10 = vand.u32 4294901760, %v12311_v16 }
 0x277   : > { %28499 = vmatmul.mubr.f32.vlgmr.msra.gmra.mxu1 %v33040_v51  ;;  %28501 = vmatprep.subr.mxu0 %v37025_v3  ;;  %v8263_v41 = vadd.f32 %v8262_v39, %v8183_v1  ;;  %v8336_v44 = vpop.f32.mrf.mxu1  ;;  %37314 = vst [vmem:[#allocation46_spill] sm:$0xff] %v33265_v30  ;;  %37316 = vst [vmem:[#allocation48_spill] sm:$0xff] %v33276_v6  ;;  %v33287_v27 = vand.u32 4294901760, %v33265_v30  ;;  %v12346_v43 = vsub.f32 %v33249_v19, %v33276_v6 }
 0x278   : > { %28525 = vmatpush3.msra.mxu1 %v33202_v40  ;;  %28502 = vmatpush3.msra.mxu0 %v33092_v46  ;;  %v28059_v51 = vpop.f32.mrf.mxu0  ;;  %37312 = vst [vmem:[#allocation44_spill] sm:$0xff] %v33257_v10  ;;  %37320 = vst [vmem:[#allocation52_spill] sm:$0xff] %v33301_v35 }
 0x279   : > { %28526 = vmatprep.subr.mxu1 %v37025_v3  ;;  %28503 = vmatprep.subr.mxu0 %v37025_v3  ;;  %v33253_v29 = vadd.f32 %v8336_v44, %v8263_v41  ;;  %v28068_v8 = vpop.f32.mrf.mxu1  ;;  %37318 = vst [vmem:[#allocation50_spill] sm:$0xff] %v33287_v27  ;;  %v12353_v59 = vsub.f32 %v33265_v30, %v33287_v27  ;;  %v33309_v4 = vand.u32 4294901760, %v12346_v43 }
 0x27a   : > { %28527 = vmatpush3.msra.mxu1 %v33223_v62  ;;  %28504 = vmatpush3.msra.mxu0 %v33103_v24 }
 0x27b   : > { %28528 = vmatprep.subr.mxu1 %v37025_v3  ;;  %28505 = vmatprep.subr.mxu0 %v37025_v3  ;;  %37321 = vst [vmem:[#allocation53_spill] sm:$0xff] %v33309_v4  ;;  %v33315_v16 = vand.u32 4294901760, %v12353_v59 }
 0x27c   : > { %28529 = vmatpush3.msra.mxu1 %v33241_v23  ;;  %28506 = vmatpush3.msra.mxu0 %v33119_v9 }
 0x27d   : > { %28530 = vmatprep.subr.mxu1 %v37025_v3  ;;  %28507 = vmatprep.subr.mxu0 %v37025_v3  ;;  %37322 = vst [vmem:[#allocation54_spill] sm:$0xff] %v33315_v16 }
 0x27e   : > { %28531 = vmatpush3.msra.mxu1 %v33257_v10  ;;  %28508 = vmatpush3.msra.mxu0 %v33131_v61  ;;  %v8418_v47 = vpop.f32.mrf.mxu0 }
 0x27f   : > { %28532 = vmatprep.subr.mxu1 %v37025_v3  ;;  %28509 = vmatprep.subr.mxu0 %v37025_v3  ;;  %v8504_v60 = vpop.f32.mrf.mxu1 }
 0x280   : > { %28533 = vmatpush3.msra.mxu1 %v33271_v25  ;;  %28510 = vmatpush3.msra.mxu0 %v33146_v63  ;;  %v8505_v15 = vadd.f32 %v8504_v60, %v8418_v47  ;;  %v28077_v56 = vpop.f32.mrf.mxu0  ;;  %v8340_v60 = vadd.f32 %v32821_v48, %v33253_v29 }
 0x281   : > { %28534 = vmatprep.subr.mxu1 %v37025_v3  ;;  %28511 = vmatprep.subr.mxu0 %v37025_v3  ;;  %v28086_v1 = vpop.f32.mrf.mxu1 }
 0x282   : > { %28535 = vmatpush3.msra.mxu1 %v33282_v13  ;;  %28512 = vmatpush3.msra.mxu0 %v33163_v42 }
 0x283   : > { %28536 = vmatprep.subr.mxu1 %v37025_v3  ;;  %28513 = vmatprep.subr.mxu0 %v37025_v3 }
 0x284   : > { %28537 = vmatpush3.msra.mxu1 %v33293_v49  ;;  %28514 = vmatpush3.msra.mxu0 %v33181_v58 }
 0x285   : > { %28538 = vmatprep.subr.mxu1 %v37025_v3  ;;  %28515 = vmatprep.subr.mxu0 %v37025_v3 }
 0x286   : > { %28539 = vmatpush3.msra.mxu1 %v33301_v35  ;;  %28516 = vmatpush3.msra.mxu0 %v33198_v17  ;;  %v8582_v39 = vpop.f32.mrf.mxu0 }
 0x287   : > { %28540 = vmatprep.subr.mxu1 %v37025_v3  ;;  %28517 = vmatprep.subr.mxu0 %v37025_v3  ;;  %v8583_v41 = vadd.f32 %v8582_v39, %v8505_v15  ;;  %v8658_v44 = vpop.f32.mrf.mxu1 }
 0x288   : > { %28541 = vmatpush3.msra.mxu1 %v33309_v4  ;;  %28518 = vmatpush3.msra.mxu0 %v33217_v21  ;;  %v28095_v45 = vpop.f32.mrf.mxu0 }
 0x289   : > { %28542 = vmatprep.subr.mxu1 %v37025_v3  ;;  %28519 = vmatprep.subr.mxu0 %v37025_v3  ;;  %v8659_v51 = vadd.f32 %v8658_v44, %v8583_v41  ;;  %v28104_v8 = vpop.f32.mrf.mxu1 }
 0x28a   : > { %28543 = vmatpush3.msra.mxu1 %v33315_v16  ;;  %28520 = vmatpush3.msra.mxu0 %v33235_v36 }
 0x28b   : > { %28521 = vmatprep.mubr.msk.f32.mxu0 %vm31316_vm1, %v37025_v3  ;;  %28544 = vmatprep.mubr.msk.f32.mxu1 %vm31316_vm1, %v37025_v3 }
 0x28c   : > { %28570 = vmatprep.subr.mxu1 %v37025_v3  ;;  %28522 = vmatmul.mubr.f32.vlgmr.msra.gmra.mxu0 %v37025_v3 }
 0x28d   : > { %28545 = vmatmul.mubr.f32.vlgmr.msra.gmra.mxu1 %v37025_v3  ;;  %28547 = vmatprep.subr.mxu0 %v37025_v3 }
 0x28e   : > { %28571 = vmatpush3.msra.mxu1 %v33092_v46  ;;  %28548 = vmatpush3.msra.mxu0 %v33112_v26  ;;  %v8738_v57 = vpop.f32.mrf.mxu0 }
 0x28f   : > { %28572 = vmatprep.subr.mxu1 %v37025_v3  ;;  %28549 = vmatprep.subr.mxu0 %v37025_v3  ;;  %v8739_v5 = vadd.f32 %v8738_v57, %v8659_v51  ;;  %v8812_v22 = vpop.f32.mrf.mxu1 }
 0x290   : > { %28573 = vmatpush3.msra.mxu1 %v33103_v24  ;;  %28550 = vmatpush3.msra.mxu0 %v33124_v38  ;;  %v28113_v47 = vpop.f32.mrf.mxu0 }
 0x291   : > { %28574 = vmatprep.subr.mxu1 %v37025_v3  ;;  %28551 = vmatprep.subr.mxu0 %v37025_v3  ;;  %v8813_v43 = vadd.f32 %v8812_v22, %v8739_v5  ;;  %v28122_v15 = vpop.f32.mrf.mxu1  ;;  %v25391_v5 = vld [vmem:[%s37285_s26 + $0x98] sm:$0xff]  ;;  %v25390_v22 = vld [vmem:[%s37285_s26 + $0x90] sm:$0xff] }
 0x292   : > { %28575 = vmatpush3.msra.mxu1 %v33119_v9  ;;  %28552 = vmatpush3.msra.mxu0 %v33144_v11  ;;  %v33393_v47 = vand.u32 4294901760, %v25391_v5  ;;  %v25389_v15 = vld [vmem:[%s37285_s26 + $0x88] sm:$0xff] }
 0x293   : > { %28576 = vmatprep.subr.mxu1 %v37025_v3  ;;  %28553 = vmatprep.subr.mxu0 %v37025_v3  ;;  %v33347_v56 = vadd.f32 %v8813_v43, %v8340_v60  ;;  %v33399_v43 = vand.u32 4294901760, %v25390_v22 }
 0x294   : > { %28577 = vmatpush3.msra.mxu1 %v33131_v61  ;;  %28554 = vmatpush3.msra.mxu0 %v33161_v2  ;;  %37323 = vst [vmem:[#allocation55_spill] sm:$0xff] %v33393_v47 }
 0x295   : > { %28578 = vmatprep.subr.mxu1 %v37025_v3  ;;  %28555 = vmatprep.subr.mxu0 %v37025_v3  ;;  %37324 = vst [vmem:[#allocation56_spill] sm:$0xff] %v33399_v43 }
 0x296   : > { %28579 = vmatpush3.msra.mxu1 %v33146_v63  ;;  %28556 = vmatpush3.msra.mxu0 %v33179_v52  ;;  %v8894_v48 = vpop.f32.mrf.mxu0 }
 0x297   : > { %28580 = vmatprep.subr.mxu1 %v37025_v3  ;;  %28557 = vmatprep.subr.mxu0 %v37025_v3  ;;  %v8980_v29 = vpop.f32.mrf.mxu1 }
 0x298   : > { %28581 = vmatpush3.msra.mxu1 %v33163_v42  ;;  %28558 = vmatpush3.msra.mxu0 %v33196_v53  ;;  %v8981_v1 = vadd.f32 %v8980_v29, %v8894_v48  ;;  %v28131_v59 = vpop.f32.mrf.mxu0 }
 0x299   : > { %28582 = vmatprep.subr.mxu1 %v37025_v3  ;;  %28559 = vmatprep.subr.mxu0 %v37025_v3  ;;  %v28140_v39 = vpop.f32.mrf.mxu1  ;;  %v33409_v59 = vsub.f32 %v25391_v5, %v33393_v47 }
 0x29a   : > { %28583 = vmatpush3.msra.mxu1 %v33181_v58  ;;  %28560 = vmatpush3.msra.mxu0 %v33215_v20  ;;  %v25388_v39 = vld [vmem:[%s37285_s26 + $0x80] sm:$0xff] }
 0x29b   : > { %28584 = vmatprep.subr.mxu1 %v37025_v3  ;;  %28561 = vmatprep.subr.mxu0 %v37025_v3  ;;  %37325 = vst [vmem:[#allocation57_spill] sm:$0xff] %v33409_v59  ;;  %v33431_v5 = vand.u32 4294901760, %v25388_v39 }
 0x29c   : > { %28585 = vmatpush3.msra.mxu1 %v33198_v17  ;;  %28562 = vmatpush3.msra.mxu0 %v33233_v32 }
 0x29d   : > { %28586 = vmatprep.subr.mxu1 %v37025_v3  ;;  %28563 = vmatprep.subr.mxu0 %v37025_v3  ;;  %37329 = vst [vmem:[#allocation61_spill] sm:$0xff] %v33431_v5 }
 0x29e   : > { %28587 = vmatpush3.msra.mxu1 %v33217_v21  ;;  %28564 = vmatpush3.msra.mxu0 %v33249_v19  ;;  %v9058_v41 = vpop.f32.mrf.mxu0 }
 0x29f   : > { %28588 = vmatprep.subr.mxu1 %v37025_v3  ;;  %28565 = vmatprep.subr.mxu0 %v37025_v3  ;;  %v9059_v44 = vadd.f32 %v9058_v41, %v8981_v1  ;;  %v9134_v45 = vpop.f32.mrf.mxu1 }
 0x2a0   : > { %28589 = vmatpush3.msra.mxu1 %v33235_v36  ;;  %28566 = vmatpush3.msra.mxu0 %v33265_v30  ;;  %v28149_v51 = vpop.f32.mrf.mxu0 }
 0x2a1   : > { %28567 = vmatprep.mubr.msk.f32.mxu0 %vm31316_vm1, %v37025_v3  ;;  %28590 = vmatprep.mubr.msk.f32.mxu1 %vm31316_vm1, %v37025_v3  ;;  %v9135_v8 = vadd.f32 %v9134_v45, %v9059_v44  ;;  %v28158_v57 = vpop.f32.mrf.mxu1  ;;  %v33416_v45 = vand.u32 4294901760, %v25389_v15  ;;  %v33421_v51 = vsub.f32 %v25390_v22, %v33399_v43  ;;  %v33436_v22 = vand.u32 4294901760, %v33409_v59 }
 0x2a2   : > { %28616 = vmatprep.subr.mxu1 %v37025_v3  ;;  %28568 = vmatmul.mubr.f32.vlgmr.msra.gmra.mxu0 %v37025_v3 }
 0x2a3   : > { %28591 = vmatmul.mubr.f32.vlgmr.msra.gmra.mxu1 %v37025_v3  ;;  %28593 = vmatprep.subr.mxu0 %v37025_v3  ;;  %37326 = vst [vmem:[#allocation58_spill] sm:$0xff] %v33416_v45  ;;  %37327 = vst [vmem:[#allocation59_spill] sm:$0xff] %v33421_v51 }
 0x2a4   : > { %28617 = vmatpush3.msra.mxu1 %v33092_v46  ;;  %28594 = vmatpush3.msra.mxu0 %v33136_v7  ;;  %37330 = vst [vmem:[#allocation62_spill] sm:$0xff] %v33436_v22 }
 0x2a5   : > { %28618 = vmatprep.subr.mxu1 %v37025_v3  ;;  %28595 = vmatprep.subr.mxu0 %v37025_v3 }
 0x2a6   : > { %28619 = vmatpush3.msra.mxu1 %v33103_v24  ;;  %28596 = vmatpush3.msra.mxu0 %v33153_v12  ;;  %v9214_v60 = vpop.f32.mrf.mxu0 }
 0x2a7   : > { %28620 = vmatprep.subr.mxu1 %v37025_v3  ;;  %28597 = vmatprep.subr.mxu0 %v37025_v3  ;;  %v9215_v48 = vadd.f32 %v9214_v60, %v9135_v8  ;;  %v9288_v29 = vpop.f32.mrf.mxu1  ;;  %v25387_v8 = vld [vmem:[%s37285_s26 + $0x78] sm:$0xff]  ;;  %v25386_v60 = vld [vmem:[%s37285_s26 + $0x70] sm:$0xff] }
 0x2a8   : > { %28621 = vmatpush3.msra.mxu1 %v33119_v9  ;;  %28598 = vmatpush3.msra.mxu0 %v33176_v14  ;;  %v28167_v1 = vpop.f32.mrf.mxu0 }
 0x2a9   : > { %28622 = vmatprep.subr.mxu1 %v37025_v3  ;;  %28599 = vmatprep.subr.mxu0 %v37025_v3  ;;  %v9289_v41 = vadd.f32 %v9288_v29, %v9215_v48  ;;  %v28176_v44 = vpop.f32.mrf.mxu1  ;;  %v33446_v48 = vand.u32 4294901760, %v25387_v8  ;;  %v33451_v1 = vand.u32 4294901760, %v33421_v51 }
 0x2aa   : > { %28623 = vmatpush3.msra.mxu1 %v33131_v61  ;;  %28600 = vmatpush3.msra.mxu0 %v33193_v37 }
 0x2ab   : > { %28624 = vmatprep.subr.mxu1 %v37025_v3  ;;  %28601 = vmatprep.subr.mxu0 %v37025_v3  ;;  %v33427_v57 = vadd.f32 %v9289_v41, %v33347_v56  ;;  %v33444_v56 = vsub.f32 %v25389_v15, %v33416_v45  ;;  %37332 = vst [vmem:[#allocation64_spill] sm:$0xff] %v33446_v48  ;;  %37333 = vst [vmem:[#allocation65_spill] sm:$0xff] %v33451_v1  ;;  %v25385_v41 = vld [vmem:[%s37285_s26 + $0x68] sm:$0xff] }
 0x2ac   : > { %28625 = vmatpush3.msra.mxu1 %v33146_v63  ;;  %28602 = vmatpush3.msra.mxu0 %v33212_v33  ;;  %v33459_v15 = vsub.f32 %v25388_v39, %v33431_v5  ;;  %v33478_v39 = vsub.f32 %v25387_v8, %v33446_v48 }
 0x2ad   : > { %37328 = vst [vmem:[#allocation60_spill] sm:$0xff] %v33427_v57  ;;  %28626 = vmatprep.subr.mxu1 %v37025_v3  ;;  %28603 = vmatprep.subr.mxu0 %v37025_v3  ;;  %37331 = vst [vmem:[#allocation63_spill] sm:$0xff] %v33444_v56  ;;  %v33461_v57 = vand.u32 4294901760, %v25386_v60 }
 0x2ae   : > { %28627 = vmatpush3.msra.mxu1 %v33163_v42  ;;  %28604 = vmatpush3.msra.mxu0 %v33230_v28  ;;  %v9370_v29 = vpop.f32.mrf.mxu0  ;;  %37334 = vst [vmem:[#allocation66_spill] sm:$0xff] %v33459_v15  ;;  %v12857_v28 = vsub.f32 %v33409_v59, %v33436_v22  ;;  %37338 = vst [vmem:[#allocation69_spill] sm:$0xff] %v33478_v39  ;;  %v33492_v8 = vand.u32 4294901760, %v33459_v15 }
 0x2af   : > { %28628 = vmatprep.subr.mxu1 %v37025_v3  ;;  %28605 = vmatprep.subr.mxu0 %v37025_v3  ;;  %v9456_v44 = vpop.f32.mrf.mxu1  ;;  %37335 = vst [vmem:[#allocation67_spill] sm:$0xff] %v33461_v57  ;;  %v2154_v3 = vmul.f32 0.05, %v32317_v18 }
 0x2b0   : > { %28629 = vmatpush3.msra.mxu1 %v33181_v58  ;;  %28606 = vmatpush3.msra.mxu0 %v33246_v54  ;;  %v9457_v0 = vadd.f32 %v9456_v44, %v9370_v29  ;;  %v28185_v31 = vpop.f32.mrf.mxu0  ;;  %v25384_v54 = vld [vmem:[%s37285_s26 + $0x60] sm:$0xff]  ;;  %v33480_v29 = vand.u32 4294901760, %v25385_v41  ;;  %v25383_v44 = vld [vmem:[%s37285_s26 + $0x58] sm:$0xff]  ;;  %37340 = vst [vmem:[#allocation71_spill] sm:$0xff] %v33492_v8  ;;  %v33502_v12 = vand.u32 4294901760, %v12857_v28 }
 0x2b1   : > { %28630 = vmatprep.subr.mxu1 %v37336_v50  ;;  %28607 = vmatprep.subr.mxu0 %v37336_v50  ;;  %v28194_v33 = vpop.f32.mrf.mxu1  ;;  %v33475_v31 = vand.u32 4294901760, %v33444_v56  ;;  %v33497_v37 = vand.u32 4294901760, %v25384_v54  ;;  %v2155_v14 = vsel %vm2153_vm3, %v32317_v18, %v2154_v3  ;;  %v33512_v3 = vand.u32 4294901760, %v33478_v39 }
 0x2b2   : > { %28631 = vmatpush3.msra.mxu1 %v33198_v17  ;;  %28608 = vmatpush3.msra.mxu0 %v33262_v34  ;;  %37339 = vst [vmem:[#allocation70_spill] sm:$0xff] %v33480_v29  ;;  %v12864_v33 = vsub.f32 %v33421_v51, %v33451_v1  ;;  %v33495_v34 = vsub.f32 %v25386_v60, %v33461_v57  ;;  %37343 = vst [vmem:[#allocation74_spill] sm:$0xff] %v33502_v12  ;;  %v33517_v7 = vand.u32 4294901760, %v25383_v44  ;;  %vm22117_vm3 = vcmask 261120  }
 0x2b3   : > { %37337 = vst [vmem:[#allocation68_spill] sm:$0xff] %v33475_v31  ;;  %28632 = vmatprep.subr.mxu1 %v37336_v50  ;;  %28609 = vmatprep.subr.mxu0 %v37336_v50  ;;  %37342 = vst [vmem:[#allocation73_spill] sm:$0xff] %v33497_v37  ;;  %v12871_v60 = vsub.f32 %v33444_v56, %v33475_v31  ;;  %v33515_v18 = vsub.f32 %v25385_v41, %v33480_v29 }
 0x2b4   : > { %28633 = vmatpush3.msra.mxu1 %v33217_v21  ;;  %28610 = vmatpush3.msra.mxu0 %v33276_v6  ;;  %37341 = vst [vmem:[#allocation72_spill] sm:$0xff] %v33495_v34  ;;  %v25382_v6 = vld [vmem:[%s37285_s26 + $0x50] sm:$0xff]  ;;  %37344 = vst [vmem:[#allocation75_spill] sm:$0xff] %v33512_v3  ;;  %v33523_v30 = vand.u32 4294901760, %v12864_v33  ;;  %v12878_v41 = vsub.f32 %v33459_v15, %v33492_v8  ;;  %v33530_v32 = vand.u32 4294901760, %v33495_v34  ;;  %v12754_v33 = vsel %vm12185_vm4, %v2155_v14, 0 }
 0x2b5   : > { %28634 = vmatprep.subr.mxu1 %v37336_v50  ;;  %28611 = vmatprep.subr.mxu0 %v37336_v50  ;;  %37345 = vst [vmem:[#allocation76_spill] sm:$0xff] %v33515_v18  ;;  %37346 = vst [vmem:[#allocation77_spill] sm:$0xff] %v33517_v7  ;;  %v33533_v20 = vsub.f32 %v25384_v54, %v33497_v37  ;;  %v33535_v53 = vand.u32 4294901760, %v25382_v6  ;;  %v33542_v2 = vand.u32 4294901760, %v12871_v60  ;;  %v33547_v11 = vand.u32 4294901760, %v33515_v18 }
 0x2b6   : > { %28635 = vmatpush3.msra.mxu1 %v33235_v36  ;;  %28612 = vmatpush3.msra.mxu0 %v33287_v27  ;;  %v9534_v28 = vpop.f32.mrf.mxu0  ;;  %37347 = vst [vmem:[#allocation78_spill] sm:$0xff] %v33523_v30  ;;  %37348 = vst [vmem:[#allocation79_spill] sm:$0xff] %v33530_v32  ;;  %v12885_v54 = vsub.f32 %v33478_v39, %v33512_v3  ;;  %v33550_v14 = vsub.f32 %v25383_v44, %v33517_v7  ;;  %v33566_v44 = vand.u32 4294901760, %v12754_v33 }
 0x2b7   : > { %28613 = vmatprep.mubr.msk.f32.mxu0 %vm31316_vm1, %v37336_v50  ;;  %28636 = vmatprep.mubr.msk.f32.mxu1 %vm31316_vm1, %v37336_v50  ;;  %v9535_v27 = vadd.f32 %v9534_v28, %v9457_v0  ;;  %v9610_v19 = vpop.f32.mrf.mxu1  ;;  %37349 = vst [vmem:[#allocation80_spill] sm:$0xff] %v33533_v20  ;;  %37350 = vst [vmem:[#allocation81_spill] sm:$0xff] %v33535_v53  ;;  %v33564_v60 = vsub.f32 %v25382_v6, %v33535_v53 }
 0x2b8   : > { %28662 = vmatprep.subr.mxu1 %v37336_v50  ;;  %28614 = vmatmul.mubr.f32.vlgmr.msra.gmra.mxu0 %v37336_v50  ;;  %v28203_v52 = vpop.f32.mrf.mxu0  ;;  %37351 = vst [vmem:[#allocation82_spill] sm:$0xff] %v33542_v2  ;;  %37352 = vst [vmem:[#allocation83_spill] sm:$0xff] %v33547_v11  ;;  %v33591_v16 = vsub.f32 %v12754_v33, %v33566_v44 }
 0x2b9   : > { %28637 = vmatmul.mubr.f32.vlgmr.msra.gmra.mxu1 %v37336_v50  ;;  %28639 = vmatprep.subr.mxu0 %v37336_v50  ;;  %v9611_v0 = vadd.f32 %v9610_v19, %v9535_v27  ;;  %v28212_v28 = vpop.f32.mrf.mxu1  ;;  %37353 = vst [vmem:[#allocation84_spill] sm:$0xff] %v33550_v14  ;;  %v33556_v52 = vand.u32 4294901760, %v12878_v41  ;;  %v12892_v19 = vsub.f32 %v33495_v34, %v33530_v32  ;;  %v33561_v27 = vand.u32 4294901760, %v33533_v20 }
 0x2ba   : > { %28663 = vmatpush3.msra.mxu1 %v33502_v12  ;;  %28640 = vmatpush3.msra.mxu0 %v33393_v47  ;;  %37356 = vst [vmem:[#allocation87_spill] sm:$0xff] %v33564_v60  ;;  %v33572_v41 = vand.u32 4294901760, %v12885_v54  ;;  %v12899_v28 = vsub.f32 %v33515_v18, %v33547_v11  ;;  %v33588_v26 = vand.u32 4294901760, %v33564_v60 }
 0x2bb   : > { %28664 = vmatprep.subr.mxu1 %v37336_v50  ;;  %28641 = vmatprep.subr.mxu0 %v37336_v50  ;;  %37354 = vst [vmem:[#allocation85_spill] sm:$0xff] %v33556_v52  ;;  %37355 = vst [vmem:[#allocation86_spill] sm:$0xff] %v33561_v27  ;;  %v12906_v54 = vsub.f32 %v33533_v20, %v33561_v27 }
 0x2bc   : > { %28665 = vmatpush3.msra.mxu1 %v33523_v30  ;;  %28642 = vmatpush3.msra.mxu0 %v33399_v43  ;;  %37357 = vst [vmem:[#allocation88_spill] sm:$0xff] %v33572_v41  ;;  %v33577_v30 = vand.u32 4294901760, %v33550_v14  ;;  %37360 = vst [vmem:[#allocation91_spill] sm:$0xff] %v33588_v26 }
 0x2bd   : > { %28666 = vmatprep.subr.mxu1 %v37336_v50  ;;  %28643 = vmatprep.subr.mxu0 %v37336_v50 }
 0x2be   : > { %28667 = vmatpush3.msra.mxu1 %v33542_v2  ;;  %28644 = vmatpush3.msra.mxu0 %v33416_v45  ;;  %37358 = vst [vmem:[#allocation89_spill] sm:$0xff] %v33577_v30  ;;  %v9690_v6 = vpop.f32.mrf.mxu0  ;;  %v33583_v2 = vand.u32 4294901760, %v12892_v19  ;;  %v33599_v19 = vand.u32 4294901760, %v12899_v28 }
 0x2bf   : > { %28668 = vmatprep.subr.mxu1 %v37336_v50  ;;  %28645 = vmatprep.subr.mxu0 %v37336_v50  ;;  %v9691_v12 = vadd.f32 %v9690_v6, %v9611_v0  ;;  %v9764_v38 = vpop.f32.mrf.mxu1 }
 0x2c0   : > { %28669 = vmatpush3.msra.mxu1 %v33556_v52  ;;  %28646 = vmatpush3.msra.mxu0 %v33431_v5  ;;  %37359 = vst [vmem:[#allocation90_spill] sm:$0xff] %v33583_v2  ;;  %v28221_v36 = vpop.f32.mrf.mxu0  ;;  %37361 = vst [vmem:[#allocation92_spill] sm:$0xff] %v33599_v19  ;;  %v12913_v52 = vsub.f32 %v33550_v14, %v33577_v30 }
 0x2c1   : > { %28670 = vmatprep.subr.mxu1 %v37336_v50  ;;  %28647 = vmatprep.subr.mxu0 %v37336_v50  ;;  %v33595_v0 = vadd.f32 %v9764_v38, %v9691_v12  ;;  %v28230_v6 = vpop.f32.mrf.mxu1  ;;  %v33607_v38 = vand.u32 4294901760, %v12906_v54  ;;  %v12920_v12 = vsub.f32 %v33564_v60, %v33588_v26 }
 0x2c2   : > { %28671 = vmatpush3.msra.mxu1 %v33572_v41  ;;  %28648 = vmatpush3.msra.mxu0 %v33446_v48  ;;  %v33616_v33 = vand.u32 4294901760, %v12913_v52  ;;  %v37365_v52 = vand.u32 4294901760, %v33591_v16 }
 0x2c3   : > { %28672 = vmatprep.subr.mxu1 %v37336_v50  ;;  %28649 = vmatprep.subr.mxu0 %v37336_v50  ;;  %37362 = vst [vmem:[#allocation93_spill] sm:$0xff] %v33607_v38  ;;  %v33622_v6 = vand.u32 4294901760, %v12920_v12 }
 0x2c4   : > { %28673 = vmatpush3.msra.mxu1 %v33583_v2  ;;  %28650 = vmatpush3.msra.mxu0 %v33461_v57  ;;  %37363 = vst [vmem:[#allocation94_spill] sm:$0xff] %v33616_v33 }
 0x2c5   : > { %28674 = vmatprep.subr.mxu1 %v37336_v50  ;;  %28651 = vmatprep.subr.mxu0 %v37336_v50  ;;  %37364 = vst [vmem:[#allocation95_spill] sm:$0xff] %v33622_v6 }
 0x2c6   : > { %28675 = vmatpush3.msra.mxu1 %v33599_v19  ;;  %28652 = vmatpush3.msra.mxu0 %v33480_v29  ;;  %v9846_v28 = vpop.f32.mrf.mxu0  ;;  %v12834_v19 = vsub.f32 %v33591_v16, %v37365_v52 }
 0x2c7   : > { %28676 = vmatprep.subr.mxu1 %v37336_v50  ;;  %28653 = vmatprep.subr.mxu0 %v37336_v50  ;;  %v9932_v54 = vpop.f32.mrf.mxu1 }
 0x2c8   : > { %28677 = vmatpush3.msra.mxu1 %v33607_v38  ;;  %28654 = vmatpush3.msra.mxu0 %v33497_v37  ;;  %v9933_v36 = vadd.f32 %v9932_v54, %v9846_v28  ;;  %v28239_v2 = vpop.f32.mrf.mxu0 }
 0x2c9   : > { %28678 = vmatprep.subr.mxu1 %v37336_v50  ;;  %28655 = vmatprep.subr.mxu0 %v37336_v50  ;;  %v28248_v41 = vpop.f32.mrf.mxu1  ;;  %v12835_v2 = vand.u32 4294901760, %v12834_v19 }
 0x2ca   : > { %28679 = vmatpush3.msra.mxu1 %v33616_v33  ;;  %28656 = vmatpush3.msra.mxu0 %v33517_v7 }
 0x2cb   : > { %28680 = vmatprep.subr.mxu1 %v37336_v50  ;;  %28657 = vmatprep.subr.mxu0 %v37336_v50 }
 0x2cc   : > { %28681 = vmatpush3.msra.mxu1 %v33622_v6  ;;  %28682 = vmatprep.mubr.msk.f32.mxu1 %vm31316_vm1, %v37336_v50 }
 0x2cd   : > { %28658 = vmatpush3.msra.mxu0 %v33535_v53  ;;  %28659 = vmatprep.mubr.msk.f32.mxu0 %vm31316_vm1, %v37336_v50 }
 0x2ce   : > { %28683 = vmatmul.mubr.f32.vlgmr.msra.gmra.mxu1 %v33566_v44  ;;  %28708 = vmatprep.subr.mxu1 %v37336_v50  ;;  %v10010_v41 = vpop.f32.mrf.mxu0 }
 0x2cf   : > { %28660 = vmatmul.mubr.f32.vlgmr.msra.gmra.mxu0 %v12835_v2  ;;  %28685 = vmatprep.subr.mxu0 %v37336_v50  ;;  %v10011_v12 = vadd.f32 %v10010_v41, %v9933_v36  ;;  %v10086_v28 = vpop.f32.mrf.mxu1 }
 0x2d0   : > { %28709 = vmatpush3.msra.mxu1 %v33393_v47  ;;  %28686 = vmatpush3.msra.mxu0 %v33409_v59  ;;  %v28257_v54 = vpop.f32.mrf.mxu0 }
 0x2d1   : > { %28710 = vmatprep.subr.mxu1 %v37336_v50  ;;  %28687 = vmatprep.subr.mxu0 %v37336_v50  ;;  %v10087_v19 = vadd.f32 %v10086_v28, %v10011_v12  ;;  %v28266_v52 = vpop.f32.mrf.mxu1  ;;  %v33665_v28 = vld [vmem:[%s37282_s3] sm:$0x1] }
 0x2d2   : > { %28711 = vmatpush3.msra.mxu1 %v33399_v43  ;;  %28688 = vmatpush3.msra.mxu0 %v33421_v51  ;;  %v9768_v54 = vadd.f32 %v33665_v28, %v33595_v0 }
 0x2d3   : > { %28712 = vmatprep.subr.mxu1 %v37336_v50  ;;  %28689 = vmatprep.subr.mxu0 %v37336_v50 }
 0x2d4   : > { %28713 = vmatpush3.msra.mxu1 %v33416_v45  ;;  %28690 = vmatpush3.msra.mxu0 %v33444_v56 }
 0x2d5   : > { %28714 = vmatprep.subr.mxu1 %v37336_v50  ;;  %28691 = vmatprep.subr.mxu0 %v37336_v50 }
 0x2d6   : > { %28715 = vmatpush3.msra.mxu1 %v33431_v5  ;;  %28692 = vmatpush3.msra.mxu0 %v33459_v15  ;;  %v10166_v36 = vpop.f32.mrf.mxu0  ;;  %v3582_v15 = vmul.f32 0.05, %v32509_v55 }
 0x2d7   : > { %28716 = vmatprep.subr.mxu1 %v37336_v50  ;;  %28693 = vmatprep.subr.mxu0 %v37336_v50  ;;  %v10167_v2 = vadd.f32 %v10166_v36, %v10087_v19  ;;  %v10240_v41 = vpop.f32.mrf.mxu1 }
 0x2d8   : > { %28717 = vmatpush3.msra.mxu1 %v33446_v48  ;;  %28694 = vmatpush3.msra.mxu0 %v33478_v39  ;;  %v28275_v12 = vpop.f32.mrf.mxu0  ;;  %v25395_v39 = vld [vmem:[%s37285_s26 + $0xb8] sm:$0xff]  ;;  %v3583_v59 = vsel %vm3581_vm5, %v32509_v55, %v3582_v15  ;;  %vm25096_vm5 = vcmask 57344  }
 0x2d9   : > { %28718 = vmatprep.subr.mxu1 %v37336_v50  ;;  %28695 = vmatprep.subr.mxu0 %v37336_v50  ;;  %v10241_v52 = vadd.f32 %v10240_v41, %v10167_v2  ;;  %v28284_v19 = vpop.f32.mrf.mxu1 }
 0x2da   : > { %28719 = vmatpush3.msra.mxu1 %v33461_v57  ;;  %28696 = vmatpush3.msra.mxu0 %v33495_v34  ;;  %v25401_v19 = vld [vmem:[%s37285_s26 + $0xe8] sm:$0xff] }
 0x2db   : > { %28720 = vmatprep.subr.mxu1 %v37336_v50  ;;  %28697 = vmatprep.subr.mxu0 %v37336_v50  ;;  %v33673_v36 = vadd.f32 %v10241_v52, %v9768_v54  ;;  %v37366_v52 = vand.u32 4294901760, %v33591_v16 }
 0x2dc   : > { %28721 = vmatpush3.msra.mxu1 %v33480_v29  ;;  %28698 = vmatpush3.msra.mxu0 %v33515_v18 }
 0x2dd   : > { %28722 = vmatprep.subr.mxu1 %v37336_v50  ;;  %28699 = vmatprep.subr.mxu0 %v37336_v50 }
 0x2de   : > { %28723 = vmatpush3.msra.mxu1 %v33497_v37  ;;  %28700 = vmatpush3.msra.mxu0 %v33533_v20  ;;  %v10322_v0 = vpop.f32.mrf.mxu0 }
 0x2df   : > { %28724 = vmatprep.subr.mxu1 %v37336_v50  ;;  %28701 = vmatprep.subr.mxu0 %v37336_v50  ;;  %v10408_v2 = vpop.f32.mrf.mxu1 }
 0x2e0   : > { %28725 = vmatpush3.msra.mxu1 %v33517_v7  ;;  %28702 = vmatpush3.msra.mxu0 %v33550_v14  ;;  %v10409_v41 = vadd.f32 %v10408_v2, %v10322_v0  ;;  %v28293_v12 = vpop.f32.mrf.mxu0  ;;  %v25400_v0 = vld [vmem:[%s37285_s26 + $0xe0] sm:$0xff] }
 0x2e1   : > { %28726 = vmatprep.subr.mxu1 %v37336_v50  ;;  %28703 = vmatprep.subr.mxu0 %v37336_v50  ;;  %v28302_v54 = vpop.f32.mrf.mxu1  ;;  %v33708_v12 = vand.u32 4294901760, %v25401_v19 }
 0x2e2   : > { %28727 = vmatpush3.msra.mxu1 %v33535_v53  ;;  %28728 = vmatprep.mubr.msk.f32.mxu1 %vm31316_vm1, %v37336_v50 }
 0x2e3   : > { %28704 = vmatpush3.msra.mxu0 %v33564_v60  ;;  %28705 = vmatprep.mubr.msk.f32.mxu0 %vm31316_vm1, %v37336_v50  ;;  %v33717_v60 = vand.u32 4294901760, %v25400_v0 }
 0x2e4   : > { %28729 = vmatmul.mubr.f32.vlgmr.msra.gmra.mxu1 %v37366_v52  ;;  %28754 = vmatprep.subr.mxu1 %v37336_v50 }
 0x2e5   : > { %28706 = vmatmul.mubr.f32.vlgmr.msra.gmra.mxu0 %v33591_v16  ;;  %28731 = vmatprep.subr.mxu0 %v37336_v50  ;;  %v25399_v16 = vld [vmem:[%s37285_s26 + $0xd8] sm:$0xff] }
 0x2e6   : > { %28755 = vmatpush3.msra.mxu1 %v33393_v47  ;;  %28732 = vmatpush3.msra.mxu0 %v33436_v22  ;;  %v10486_v2 = vpop.f32.mrf.mxu0 }
 0x2e7   : > { %28756 = vmatprep.subr.mxu1 %v37336_v50  ;;  %28733 = vmatprep.subr.mxu0 %v37336_v50  ;;  %v10487_v54 = vadd.f32 %v10486_v2, %v10409_v41  ;;  %v10562_v52 = vpop.f32.mrf.mxu1  ;;  %v33724_v41 = vsub.f32 %v25401_v19, %v33708_v12  ;;  %v25398_v2 = vld [vmem:[%s37285_s26 + $0xd0] sm:$0xff]  ;;  %v25397_v19 = vld [vmem:[%s37285_s26 + $0xc8] sm:$0xff] }
 0x2e8   : > { %28757 = vmatpush3.msra.mxu1 %v33399_v43  ;;  %28734 = vmatpush3.msra.mxu0 %v33451_v1  ;;  %v28311_v22 = vpop.f32.mrf.mxu0 }
 0x2e9   : > { %28758 = vmatprep.subr.mxu1 %v37336_v50  ;;  %28735 = vmatprep.subr.mxu0 %v37336_v50  ;;  %v10563_v14 = vadd.f32 %v10562_v52, %v10487_v54  ;;  %v28320_v20 = vpop.f32.mrf.mxu1  ;;  %v33726_v22 = vand.u32 4294901760, %v25399_v16  ;;  %v33743_v54 = vand.u32 4294901760, %v25398_v2 }
 0x2ea   : > { %28759 = vmatpush3.msra.mxu1 %v33416_v45  ;;  %28736 = vmatpush3.msra.mxu0 %v33475_v31  ;;  %v33736_v20 = vsub.f32 %v25400_v0, %v33717_v60  ;;  %v25396_v31 = vld [vmem:[%s37285_s26 + $0xc0] sm:$0xff] }
 0x2eb   : > { %28760 = vmatprep.subr.mxu1 %v37336_v50  ;;  %28737 = vmatprep.subr.mxu0 %v37336_v50  ;;  %v33751_v0 = vsub.f32 %v25399_v16, %v33726_v22 }
 0x2ec   : > { %28761 = vmatpush3.msra.mxu1 %v33431_v5  ;;  %28738 = vmatpush3.msra.mxu0 %v33492_v8  ;;  %37367 = vst [vmem:[#allocation96_spill] sm:$0xff] %v33736_v20  ;;  %v33748_v8 = vand.u32 4294901760, %v33724_v41  ;;  %v33763_v16 = vand.u32 4294901760, %v33736_v20 }
 0x2ed   : > { %28762 = vmatprep.subr.mxu1 %v37336_v50  ;;  %28739 = vmatprep.subr.mxu0 %v37336_v50 }
 0x2ee   : > { %28763 = vmatpush3.msra.mxu1 %v33446_v48  ;;  %28740 = vmatpush3.msra.mxu0 %v33512_v3  ;;  %v10642_v52 = vpop.f32.mrf.mxu0  ;;  %v33758_v3 = vand.u32 4294901760, %v25397_v19  ;;  %v13424_v56 = vsub.f32 %v33724_v41, %v33748_v8  ;;  %v13431_v51 = vsub.f32 %v33736_v20, %v33763_v16 }
 0x2ef   : > { %28764 = vmatprep.subr.mxu1 %v37336_v50  ;;  %28741 = vmatprep.subr.mxu0 %v37336_v50  ;;  %v10643_v1 = vadd.f32 %v10642_v52, %v10563_v14  ;;  %v10716_v18 = vpop.f32.mrf.mxu1 }
 0x2f0   : > { %28765 = vmatpush3.msra.mxu1 %v33461_v57  ;;  %28742 = vmatpush3.msra.mxu0 %v33530_v32  ;;  %v28329_v34 = vpop.f32.mrf.mxu0  ;;  %v33771_v32 = vsub.f32 %v25398_v2, %v33743_v54  ;;  %v33817_v6 = vand.u32 4294901760, %v13424_v56  ;;  %v33838_v38 = vand.u32 4294901760, %v13431_v51 }
 0x2f1   : > { %28766 = vmatprep.subr.mxu1 %v37336_v50  ;;  %28743 = vmatprep.subr.mxu0 %v37336_v50  ;;  %v10717_v14 = vadd.f32 %v10716_v18, %v10643_v1  ;;  %v28338_v52 = vpop.f32.mrf.mxu1  ;;  %v33773_v34 = vand.u32 4294901760, %v25396_v31  ;;  %v33781_v1 = vand.u32 4294901760, %v33751_v0  ;;  %v25394_v18 = vld [vmem:[%s37285_s26 + $0xb0] sm:$0xff] }
 0x2f2   : > { %28767 = vmatpush3.msra.mxu1 %v33480_v29  ;;  %28744 = vmatpush3.msra.mxu0 %v33547_v11  ;;  %v33793_v52 = vsub.f32 %v25397_v19, %v33758_v3  ;;  %v33795_v11 = vand.u32 4294901760, %v25395_v39  ;;  %v33807_v19 = vand.u32 4294901760, %v33771_v32  ;;  %37371 = vst [vmem:[#allocation100_spill] sm:$0xff] %v33817_v6  ;;  %37373 = vst [vmem:[#allocation102_spill] sm:$0xff] %v33838_v38 }
 0x2f3   : > { %28768 = vmatprep.subr.mxu1 %v37336_v50  ;;  %28745 = vmatprep.subr.mxu0 %v37336_v50  ;;  %v33787_v2 = vadd.f32 %v10717_v14, %v33673_v36  ;;  %v25393_v36 = vld [vmem:[%s37285_s26 + $0xa8] sm:$0xff]  ;;  %v33810_v14 = vsub.f32 %v25396_v31, %v33773_v34 }
 0x2f4   : > { %28769 = vmatpush3.msra.mxu1 %v33497_v37  ;;  %28746 = vmatpush3.msra.mxu0 %v33561_v27  ;;  %37369 = vst [vmem:[#allocation98_spill] sm:$0xff] %v33793_v52  ;;  %v33828_v55 = vand.u32 4294901760, %v33793_v52  ;;  %v33831_v15 = vsub.f32 %v25395_v39, %v33795_v11  ;;  %v33833_v56 = vand.u32 4294901760, %v25393_v36  ;;  %v13445_v39 = vsub.f32 %v33771_v32, %v33807_v19 }
 0x2f5   : > { %37368 = vst [vmem:[#allocation97_spill] sm:$0xff] %v33787_v2  ;;  %28770 = vmatprep.subr.mxu1 %v37336_v50  ;;  %28747 = vmatprep.subr.mxu0 %v37336_v50  ;;  %37370 = vst [vmem:[#allocation99_spill] sm:$0xff] %v33810_v14  ;;  %v33812_v2 = vand.u32 4294901760, %v25394_v18  ;;  %v33845_v29 = vand.u32 4294901760, %v33810_v14 }
 0x2f6   : > { %28771 = vmatpush3.msra.mxu1 %v33517_v7  ;;  %28748 = vmatpush3.msra.mxu0 %v33577_v30  ;;  %v10798_v27 = vpop.f32.mrf.mxu0  ;;  %v13438_v30 = vsub.f32 %v33751_v0, %v33781_v1  ;;  %v25392_v7 = vld [vmem:[%s37285_s26 + $0xa0] sm:$0xff]  ;;  %37372 = vst [vmem:[#allocation101_spill] sm:$0xff] %v33831_v15  ;;  %v13452_v51 = vsub.f32 %v33793_v52, %v33828_v55 }
 0x2f7   : > { %28772 = vmatprep.subr.mxu1 %v37336_v50  ;;  %28749 = vmatprep.subr.mxu0 %v37336_v50  ;;  %v10884_v31 = vpop.f32.mrf.mxu1  ;;  %37374 = vst [vmem:[#allocation103_spill] sm:$0xff] %v33845_v29 }
 0x2f8   : > { %28773 = vmatpush3.msra.mxu1 %v33535_v53  ;;  %28774 = vmatprep.mubr.msk.f32.mxu1 %vm31316_vm1, %v37336_v50  ;;  %v10885_v33 = vadd.f32 %v10884_v31, %v10798_v27  ;;  %v28347_v37 = vpop.f32.mrf.mxu0  ;;  %v33850_v27 = vand.u32 4294901760, %v25392_v7  ;;  %v13321_v31 = vsel %vm12185_vm4, %v3583_v59, 0  ;;  %v33871_v59 = vand.u32 4294901760, %v13445_v39 }
 0x2f9   : > { %28750 = vmatpush3.msra.mxu0 %v33588_v26  ;;  %28751 = vmatprep.mubr.msk.f32.mxu0 %vm31316_vm1, %v37336_v50  ;;  %v28356_v53 = vpop.f32.mrf.mxu1  ;;  %v33848_v37 = vsub.f32 %v25394_v18, %v33812_v2  ;;  %v33862_v18 = vand.u32 4294901760, %v33831_v15  ;;  %v33865_v26 = vsub.f32 %v25393_v36, %v33833_v56  ;;  %v33881_v57 = vand.u32 4294901760, %v13321_v31 }
 0x2fa   : > { %28775 = vmatmul.mubr.f32.vlgmr.msra.gmra.mxu1 %v33566_v44  ;;  %28800 = vmatprep.subr.mxu1 %v37336_v50  ;;  %v33857_v53 = vand.u32 4294901760, %v13438_v30  ;;  %37378 = vst [vmem:[#allocation107_spill] sm:$0xff] %v33871_v59  ;;  %v13459_v30 = vsub.f32 %v33810_v14, %v33845_v29  ;;  %v33887_v39 = vand.u32 4294901760, %v13452_v51 }
 0x2fb   : > { %37375 = vst [vmem:[#allocation104_spill] sm:$0xff] %v33848_v37  ;;  %28752 = vmatmul.mubr.f32.vlgmr.msra.gmra.mxu0 %v33566_v44  ;;  %28777 = vmatprep.subr.mxu0 %v37336_v50  ;;  %37377 = vst [vmem:[#allocation106_spill] sm:$0xff] %v33862_v18  ;;  %v33876_v44 = vand.u32 4294901760, %v33848_v37  ;;  %v13466_v5 = vsub.f32 %v33831_v15, %v33862_v18 }
 0x2fc   : > { %28801 = vmatpush3.msra.mxu1 %v33817_v6  ;;  %28778 = vmatpush3.msra.mxu0 %v33708_v12  ;;  %37376 = vst [vmem:[#allocation105_spill] sm:$0xff] %v33857_v53  ;;  %v33879_v6 = vsub.f32 %v25392_v7, %v33850_v27  ;;  %37380 = vst [vmem:[#allocation109_spill] sm:$0xff] %v33887_v39  ;;  %v33892_v7 = vand.u32 4294901760, %v33865_v26 }
 0x2fd   : > { %28802 = vmatprep.subr.mxu1 %v37336_v50  ;;  %28779 = vmatprep.subr.mxu0 %v37336_v50  ;;  %37379 = vst [vmem:[#allocation108_spill] sm:$0xff] %v33876_v44  ;;  %v13473_v51 = vsub.f32 %v33848_v37, %v33876_v44 }
 0x2fe   : > { %28803 = vmatpush3.msra.mxu1 %v33838_v38  ;;  %28780 = vmatpush3.msra.mxu0 %v33717_v60  ;;  %v10962_v36 = vpop.f32.mrf.mxu0  ;;  %37381 = vst [vmem:[#allocation110_spill] sm:$0xff] %v33892_v7 }
 0x2ff   : > { %28804 = vmatprep.subr.mxu1 %v37336_v50  ;;  %28781 = vmatprep.subr.mxu0 %v37336_v50  ;;  %v10963_v38 = vadd.f32 %v10962_v36, %v10885_v33  ;;  %v11038_v48 = vpop.f32.mrf.mxu1  ;;  %v33898_v36 = vand.u32 4294901760, %v13459_v30 }
 0x300   : > { %28805 = vmatpush3.msra.mxu1 %v33857_v53  ;;  %28782 = vmatpush3.msra.mxu0 %v33726_v22  ;;  %v28365_v45 = vpop.f32.mrf.mxu0  ;;  %v33903_v53 = vand.u32 4294901760, %v33879_v6 }
 0x301   : > { %28806 = vmatprep.subr.mxu1 %v37336_v50  ;;  %28783 = vmatprep.subr.mxu0 %v37336_v50  ;;  %v11039_v43 = vadd.f32 %v11038_v48, %v10963_v38  ;;  %v28374_v33 = vpop.f32.mrf.mxu1  ;;  %37382 = vst [vmem:[#allocation111_spill] sm:$0xff] %v33898_v36  ;;  %v33906_v45 = vsub.f32 %v13321_v31, %v33881_v57  ;;  %v33912_v48 = vand.u32 4294901760, %v13466_v5  ;;  %v33920_v31 = vand.u32 4294901760, %v13473_v51 }
 0x302   : > { %28807 = vmatpush3.msra.mxu1 %v33871_v59  ;;  %28784 = vmatpush3.msra.mxu0 %v33743_v54  ;;  %37383 = vst [vmem:[#allocation112_spill] sm:$0xff] %v33903_v53  ;;  %v13480_v38 = vsub.f32 %v33865_v26, %v33892_v7  ;;  %v13487_v30 = vsub.f32 %v33879_v6, %v33903_v53 }
 0x303   : > { %28808 = vmatprep.subr.mxu1 %v37336_v50  ;;  %28785 = vmatprep.subr.mxu0 %v37336_v50  ;;  %37384 = vst [vmem:[#allocation113_spill] sm:$0xff] %v33912_v48  ;;  %37385 = vst [vmem:[#allocation114_spill] sm:$0xff] %v33920_v31  ;;  %v33927_v5 = vand.u32 4294901760, %v33906_v45 }
 0x304   : > { %28809 = vmatpush3.msra.mxu1 %v33887_v39  ;;  %28786 = vmatpush3.msra.mxu0 %v33758_v3 }
 0x305   : > { %28810 = vmatprep.subr.mxu1 %v37336_v50  ;;  %28787 = vmatprep.subr.mxu0 %v37336_v50 }
 0x306   : > { %28811 = vmatpush3.msra.mxu1 %v33898_v36  ;;  %28788 = vmatpush3.msra.mxu0 %v33773_v34  ;;  %v11118_v33 = vpop.f32.mrf.mxu0  ;;  %v33931_v36 = vand.u32 4294901760, %v13480_v38  ;;  %v13401_v38 = vsub.f32 %v33906_v45, %v33927_v5 }
 0x307   : > { %28812 = vmatprep.subr.mxu1 %v37336_v50  ;;  %28789 = vmatprep.subr.mxu0 %v37336_v50  ;;  %v11119_v39 = vadd.f32 %v11118_v33, %v11039_v43  ;;  %v11192_v59 = vpop.f32.mrf.mxu1  ;;  %v33939_v43 = vand.u32 4294901760, %v13487_v30 }
 0x308   : > { %28813 = vmatpush3.msra.mxu1 %v33912_v48  ;;  %28790 = vmatpush3.msra.mxu0 %v33795_v11  ;;  %37386 = vst [vmem:[#allocation115_spill] sm:$0xff] %v33931_v36  ;;  %v28383_v51 = vpop.f32.mrf.mxu0 }
 0x309   : > { %28814 = vmatprep.subr.mxu1 %v37336_v50  ;;  %28791 = vmatprep.subr.mxu0 %v37336_v50  ;;  %v33935_v47 = vadd.f32 %v11192_v59, %v11119_v39  ;;  %v28392_v21 = vpop.f32.mrf.mxu1  ;;  %v33955_v59 = vand.u32 4294901760, %v13401_v38 }
 0x30a   : > { %28815 = vmatpush3.msra.mxu1 %v33920_v31  ;;  %28792 = vmatpush3.msra.mxu0 %v33812_v2 }
 0x30b   : > { %28816 = vmatprep.subr.mxu1 %v37336_v50  ;;  %28793 = vmatprep.subr.mxu0 %v37336_v50 }
 0x30c   : > { %28817 = vmatpush3.msra.mxu1 %v33931_v36  ;;  %28794 = vmatpush3.msra.mxu0 %v33833_v56 }
 0x30d   : > { %28818 = vmatprep.subr.mxu1 %v37336_v50  ;;  %28795 = vmatprep.subr.mxu0 %v37336_v50 }
 0x30e   : > { %28819 = vmatpush3.msra.mxu1 %v33939_v43  ;;  %28820 = vmatprep.mubr.msk.f32.mxu1 %vm31316_vm1, %v37336_v50  ;;  %v11274_v21 = vpop.f32.mrf.mxu0 }
 0x30f   : > { %28796 = vmatpush3.msra.mxu0 %v33850_v27  ;;  %28797 = vmatprep.mubr.msk.f32.mxu0 %vm31316_vm1, %v37336_v50  ;;  %v11360_v39 = vpop.f32.mrf.mxu1 }
 0x310   : > { %28821 = vmatmul.mubr.f32.vlgmr.msra.gmra.mxu1 %v33881_v57  ;;  %28846 = vmatprep.subr.mxu1 %v37336_v50  ;;  %v11361_v30 = vadd.f32 %v11360_v39, %v11274_v21  ;;  %v28401_v33 = vpop.f32.mrf.mxu0 }
 0x311   : > { %28798 = vmatmul.mubr.f32.vlgmr.msra.gmra.mxu0 %v33955_v59  ;;  %28823 = vmatprep.subr.mxu0 %v37336_v50  ;;  %v28410_v51 = vpop.f32.mrf.mxu1 }
 0x312   : > { %28847 = vmatpush3.msra.mxu1 %v33708_v12  ;;  %28824 = vmatpush3.msra.mxu0 %v33724_v41 }
 0x313   : > { %28848 = vmatprep.subr.mxu1 %v37336_v50  ;;  %28825 = vmatprep.subr.mxu0 %v37336_v50 }
 0x314   : > { %28849 = vmatpush3.msra.mxu1 %v33717_v60  ;;  %28826 = vmatpush3.msra.mxu0 %v33736_v20 }
 0x315   : > { %28850 = vmatprep.subr.mxu1 %v37336_v50  ;;  %28827 = vmatprep.subr.mxu0 %v37336_v50 }
 0x316   : > { %28851 = vmatpush3.msra.mxu1 %v33726_v22  ;;  %28828 = vmatpush3.msra.mxu0 %v33751_v0  ;;  %v11438_v38 = vpop.f32.mrf.mxu0 }
 0x317   : > { %28852 = vmatprep.subr.mxu1 %v37336_v50  ;;  %28829 = vmatprep.subr.mxu0 %v37336_v50  ;;  %v11439_v21 = vadd.f32 %v11438_v38, %v11361_v30  ;;  %v11514_v39 = vpop.f32.mrf.mxu1 }
 0x318   : > { %28853 = vmatpush3.msra.mxu1 %v33743_v54  ;;  %28830 = vmatpush3.msra.mxu0 %v33771_v32  ;;  %v28419_v33 = vpop.f32.mrf.mxu0 }
 0x319   : > { %28854 = vmatprep.subr.mxu1 %v37336_v50  ;;  %28831 = vmatprep.subr.mxu0 %v37336_v50  ;;  %v11515_v51 = vadd.f32 %v11514_v39, %v11439_v21  ;;  %v28428_v20 = vpop.f32.mrf.mxu1  ;;  %v11196_v39 = vadd.f32 %v33665_v28, %v33935_v47 }
 0x31a   : > { %28855 = vmatpush3.msra.mxu1 %v33758_v3  ;;  %28832 = vmatpush3.msra.mxu0 %v33793_v52 }
 0x31b   : > { %28856 = vmatprep.subr.mxu1 %v37336_v50  ;;  %28833 = vmatprep.subr.mxu0 %v37336_v50 }
 0x31c   : > { %28857 = vmatpush3.msra.mxu1 %v33773_v34  ;;  %28834 = vmatpush3.msra.mxu0 %v33810_v14 }
 0x31d   : > { %28858 = vmatprep.subr.mxu1 %v37336_v50  ;;  %28835 = vmatprep.subr.mxu0 %v37336_v50 }
 0x31e   : > { %28859 = vmatpush3.msra.mxu1 %v33795_v11  ;;  %28836 = vmatpush3.msra.mxu0 %v33831_v15  ;;  %v11594_v20 = vpop.f32.mrf.mxu0 }
 0x31f   : > { %28860 = vmatprep.subr.mxu1 %v37336_v50  ;;  %28837 = vmatprep.subr.mxu0 %v37336_v50  ;;  %v11595_v30 = vadd.f32 %v11594_v20, %v11515_v51  ;;  %v11668_v38 = vpop.f32.mrf.mxu1 }
 0x320   : > { %28861 = vmatpush3.msra.mxu1 %v33812_v2  ;;  %28838 = vmatpush3.msra.mxu0 %v33848_v37  ;;  %v28437_v21 = vpop.f32.mrf.mxu0 }
 0x321   : > { %28862 = vmatprep.subr.mxu1 %v37336_v50  ;;  %28839 = vmatprep.subr.mxu0 %v37336_v50  ;;  %v11669_v33 = vadd.f32 %v11668_v38, %v11595_v30  ;;  %v28446_v15 = vpop.f32.mrf.mxu1 }
 0x322   : > { %28863 = vmatpush3.msra.mxu1 %v33833_v56  ;;  %28840 = vmatpush3.msra.mxu0 %v33865_v26 }
 0x323   : > { %28864 = vmatprep.subr.mxu1 %v37336_v50  ;;  %28841 = vmatprep.subr.mxu0 %v37336_v50  ;;  %v33999_v51 = vadd.f32 %v11669_v33, %v11196_v39 }
 0x324   : > { %28865 = vmatpush3.msra.mxu1 %v33850_v27  ;;  %28866 = vmatprep.mubr.msk.f32.mxu1 %vm31316_vm1, %v37336_v50 }
 0x325   : > { %28842 = vmatpush3.msra.mxu0 %v33879_v6  ;;  %28843 = vmatprep.mubr.msk.f32.mxu0 %vm31316_vm1, %v37336_v50 }
 0x326   : > { %28867 = vmatmul.mubr.f32.vlgmr.msra.gmra.mxu1 %v33927_v5  ;;  %28892 = vmatprep.subr.mxu1 %v37336_v50  ;;  %v11750_v47 = vpop.f32.mrf.mxu0 }
 0x327   : > { %28844 = vmatmul.mubr.f32.vlgmr.msra.gmra.mxu0 %v33906_v45  ;;  %28869 = vmatprep.subr.mxu0 %v37336_v50  ;;  %v11836_v28 = vpop.f32.mrf.mxu1 }
 0x328   : > { %28893 = vmatpush3.msra.mxu1 %v33708_v12  ;;  %28870 = vmatpush3.msra.mxu0 %v33748_v8  ;;  %v11837_v15 = vadd.f32 %v11836_v28, %v11750_v47  ;;  %v28455_v20 = vpop.f32.mrf.mxu0 }
 0x329   : > { %28894 = vmatprep.subr.mxu1 %v37336_v50  ;;  %28871 = vmatprep.subr.mxu0 %v37336_v50  ;;  %v28464_v30 = vpop.f32.mrf.mxu1 }
 0x32a   : > { %28895 = vmatpush3.msra.mxu1 %v33717_v60  ;;  %28872 = vmatpush3.msra.mxu0 %v33763_v16 }
 0x32b   : > { %28896 = vmatprep.subr.mxu1 %v37336_v50  ;;  %28873 = vmatprep.subr.mxu0 %v37336_v50 }
 0x32c   : > { %28897 = vmatpush3.msra.mxu1 %v33726_v22  ;;  %28874 = vmatpush3.msra.mxu0 %v33781_v1 }
 0x32d   : > { %28898 = vmatprep.subr.mxu1 %v37336_v50  ;;  %28875 = vmatprep.subr.mxu0 %v37336_v50 }
 0x32e   : > { %28899 = vmatpush3.msra.mxu1 %v33743_v54  ;;  %28876 = vmatpush3.msra.mxu0 %v33807_v19  ;;  %v11914_v38 = vpop.f32.mrf.mxu0 }
 0x32f   : > { %28900 = vmatprep.subr.mxu1 %v37336_v50  ;;  %28877 = vmatprep.subr.mxu0 %v37336_v50  ;;  %v11915_v21 = vadd.f32 %v11914_v38, %v11837_v15  ;;  %v11990_v39 = vpop.f32.mrf.mxu1 }
 0x330   : > { %28901 = vmatpush3.msra.mxu1 %v33758_v3  ;;  %28878 = vmatpush3.msra.mxu0 %v33828_v55  ;;  %v28473_v33 = vpop.f32.mrf.mxu0 }
 0x331   : > { %28902 = vmatprep.subr.mxu1 %v37336_v50  ;;  %28879 = vmatprep.subr.mxu0 %v37336_v50  ;;  %v11991_v47 = vadd.f32 %v11990_v39, %v11915_v21  ;;  %v28482_v28 = vpop.f32.mrf.mxu1 }
 0x332   : > { %28903 = vmatpush3.msra.mxu1 %v33773_v34  ;;  %28880 = vmatpush3.msra.mxu0 %v33845_v29  ;;  %v37388_v28 = vld [vmem:[#allocation36_spill] sm:$0xff] }
 0x333   : > { %28904 = vmatprep.subr.mxu1 %v37336_v50  ;;  %28881 = vmatprep.subr.mxu0 %v37336_v50 }
 0x334   : > { %28905 = vmatpush3.msra.mxu1 %v33795_v11  ;;  %28882 = vmatpush3.msra.mxu0 %v33862_v18 }
 0x335   : > { %28906 = vmatprep.subr.mxu1 %v37336_v50  ;;  %28883 = vmatprep.subr.mxu0 %v37336_v50 }
 0x336   : > { %28907 = vmatpush3.msra.mxu1 %v33812_v2  ;;  %28884 = vmatpush3.msra.mxu0 %v33876_v44  ;;  %v12070_v15 = vpop.f32.mrf.mxu0 }
 0x337   : > { %28908 = vmatprep.subr.mxu1 %v37336_v50  ;;  %28885 = vmatprep.subr.mxu0 %v37336_v50  ;;  %v12071_v20 = vadd.f32 %v12070_v15, %v11991_v47  ;;  %v12144_v30 = vpop.f32.mrf.mxu1 }
 0x338   : > { %28909 = vmatpush3.msra.mxu1 %v33833_v56  ;;  %28886 = vmatpush3.msra.mxu0 %v33892_v7  ;;  %v28491_v38 = vpop.f32.mrf.mxu0 }
 0x339   : > { %28910 = vmatprep.subr.mxu1 %v37336_v50  ;;  %28887 = vmatprep.subr.mxu0 %v37336_v50  ;;  %v12145_v21 = vadd.f32 %v12144_v30, %v12071_v20  ;;  %v28500_v39 = vpop.f32.mrf.mxu1  ;;  %v37389_v38 = vld [vmem:[#allocation54_spill] sm:$0xff] }
 0x33a   : > { %28911 = vmatpush3.msra.mxu1 %v33850_v27  ;;  %28912 = vmatprep.mubr.msk.f32.mxu1 %vm31316_vm1, %v37336_v50  ;;  %v37391_v39 = vld [vmem:[#allocation19_spill] sm:$0xff] }
 0x33b   : > { %28888 = vmatpush3.msra.mxu0 %v33903_v53  ;;  %28889 = vmatprep.mubr.msk.f32.mxu0 %vm31316_vm1, %v37336_v50  ;;  %v34054_v33 = vadd.f32 %v12145_v21, %v33999_v51  ;;  %v37390_v21 = vld [vmem:[#allocation40_spill] sm:$0xff] }
 0x33c   : > { %28913 = vmatmul.mubr.f32.vlgmr.msra.gmra.mxu1 %v33881_v57  ;;  %28938 = vmatprep.subr.mxu1 %v37336_v50 }
 0x33d   : > { %37387 = vst [vmem:[#allocation116_spill] sm:$0xff] %v34054_v33  ;;  %28890 = vmatmul.mubr.f32.vlgmr.msra.gmra.mxu0 %v33881_v57  ;;  %28915 = vmatprep.subr.mxu0 %v37336_v50  ;;  %v37397_v33 = vld [vmem:[#allocation35_spill] sm:$0xff] }
 0x33e   : > { %28939 = vmatpush3.msra.mxu1 %v33202_v40  ;;  %28916 = vmatpush3.msra.mxu0 %v33092_v46 }
 0x33f   : > { %28940 = vmatprep.subr.mxu1 %v37336_v50  ;;  %28917 = vmatprep.subr.mxu0 %v37336_v50 }
 0x340   : > { %28941 = vmatpush3.msra.mxu1 %v33223_v62  ;;  %28918 = vmatpush3.msra.mxu0 %v33103_v24 }
 0x341   : > { %28942 = vmatprep.subr.mxu1 %v37336_v50  ;;  %28919 = vmatprep.subr.mxu0 %v37336_v50 }
 0x342   : > { %28943 = vmatpush3.msra.mxu1 %v33241_v23  ;;  %28920 = vmatpush3.msra.mxu0 %v33119_v9 }
 0x343   : > { %28944 = vmatprep.subr.mxu1 %v37336_v50  ;;  %28921 = vmatprep.subr.mxu0 %v37336_v50 }
 0x344   : > { %28945 = vmatpush3.msra.mxu1 %v33257_v10  ;;  %28922 = vmatpush3.msra.mxu0 %v33131_v61 }
 0x345   : > { %28946 = vmatprep.subr.mxu1 %v37336_v50  ;;  %28923 = vmatprep.subr.mxu0 %v37336_v50 }
 0x346   : > { %28947 = vmatpush3.msra.mxu1 %v33271_v25  ;;  %28924 = vmatpush3.msra.mxu0 %v33146_v63 }
 0x347   : > { %28948 = vmatprep.subr.mxu1 %v37336_v50  ;;  %28925 = vmatprep.subr.mxu0 %v37336_v50 }
 0x348   : > { %28949 = vmatpush3.msra.mxu1 %v33282_v13  ;;  %28926 = vmatpush3.msra.mxu0 %v33163_v42  ;;  %v37430_v13 = vld [vmem:[#allocation95_spill] sm:$0xff] }
 0x349   : > { %28950 = vmatprep.subr.mxu1 %v37336_v50  ;;  %28927 = vmatprep.subr.mxu0 %v37336_v50 }
 0x34a   : > { %28951 = vmatpush3.msra.mxu1 %v33293_v49  ;;  %28928 = vmatpush3.msra.mxu0 %v33181_v58 }
 0x34b   : > { %28952 = vmatprep.subr.mxu1 %v37336_v50  ;;  %28929 = vmatprep.subr.mxu0 %v37336_v50 }
 0x34c   : > { %28953 = vmatpush3.msra.mxu1 %v33301_v35  ;;  %28930 = vmatpush3.msra.mxu0 %v33198_v17  ;;  %v12270_v51 = vpop.f32.mrf.mxu0  ;;  %v37428_v35 = vld [vmem:[#allocation94_spill] sm:$0xff] }
 0x34d   : > { %28954 = vmatprep.subr.mxu1 %v37336_v50  ;;  %28931 = vmatprep.subr.mxu0 %v37336_v50  ;;  %v12391_v47 = vpop.f32.mrf.mxu1 }
 0x34e   : > { %28955 = vmatpush3.msra.mxu1 %v33309_v4  ;;  %28932 = vmatpush3.msra.mxu0 %v37388_v28  ;;  %v12392_v15 = vadd.f32 %v12391_v47, %v12270_v51  ;;  %v28523_v20 = vpop.f32.mrf.mxu0  ;;  %v37392_v51 = vld [vmem:[#allocation20_spill] sm:$0xff]  ;;  %v37394_v47 = vld [vmem:[#allocation25_spill] sm:$0xff] }
 0x34f   : > { %28956 = vmatprep.subr.mxu1 %v37336_v50  ;;  %28933 = vmatprep.subr.mxu0 %v37336_v50  ;;  %v28546_v30 = vpop.f32.mrf.mxu1  ;;  %v37395_v20 = vld [vmem:[#allocation28_spill] sm:$0xff]  ;;  %v37427_v4 = vld [vmem:[#allocation73_spill] sm:$0xff] }
 0x350   : > { %28957 = vmatpush3.msra.mxu1 %v37389_v38  ;;  %28958 = vmatprep.mubr.msk.f32.mxu1 %vm31316_vm1, %v37336_v50  ;;  %v37396_v30 = vld [vmem:[#allocation31_spill] sm:$0xff] }
 0x351   : > { %28934 = vmatpush3.msra.mxu0 %v37390_v21  ;;  %28935 = vmatprep.mubr.msk.f32.mxu0 %vm31316_vm1, %v37336_v50 }
 0x352   : > { %28959 = vmatmul.mubr.f32.vlgmr.msra.gmra.mxu1 %v33881_v57  ;;  %28984 = vmatprep.subr.mxu1 %v37336_v50 }
 0x353   : > { %28936 = vmatmul.mubr.f32.vlgmr.msra.gmra.mxu0 %v33955_v59  ;;  %28961 = vmatprep.subr.mxu0 %v37336_v50  ;;  %v37393_v59 = vld [vmem:[#allocation22_spill] sm:$0xff] }
 0x354   : > { %28985 = vmatpush3.msra.mxu1 %v33092_v46  ;;  %28962 = vmatpush3.msra.mxu0 %v37391_v39 }
 0x355   : > { %28986 = vmatprep.subr.mxu1 %v37336_v50  ;;  %28963 = vmatprep.subr.mxu0 %v37336_v50 }
 0x356   : > { %28987 = vmatpush3.msra.mxu1 %v33103_v24  ;;  %28964 = vmatpush3.msra.mxu0 %v37392_v51  ;;  %v37399_v51 = vld [vmem:[#allocation43_spill] sm:$0xff] }
 0x357   : > { %28988 = vmatprep.subr.mxu1 %v37336_v50  ;;  %28965 = vmatprep.subr.mxu0 %v37336_v50 }
 0x358   : > { %28989 = vmatpush3.msra.mxu1 %v33119_v9  ;;  %28966 = vmatpush3.msra.mxu0 %v37393_v59 }
 0x359   : > { %28990 = vmatprep.subr.mxu1 %v37336_v50  ;;  %28967 = vmatprep.subr.mxu0 %v37336_v50 }
 0x35a   : > { %28991 = vmatpush3.msra.mxu1 %v33131_v61  ;;  %28968 = vmatpush3.msra.mxu0 %v37394_v47 }
 0x35b   : > { %28992 = vmatprep.subr.mxu1 %v37336_v50  ;;  %28969 = vmatprep.subr.mxu0 %v37336_v50 }
 0x35c   : > { %28993 = vmatpush3.msra.mxu1 %v33146_v63  ;;  %28970 = vmatpush3.msra.mxu0 %v37395_v20  ;;  %v37398_v20 = vld [vmem:[#allocation39_spill] sm:$0xff] }
 0x35d   : > { %28994 = vmatprep.subr.mxu1 %v37336_v50  ;;  %28971 = vmatprep.subr.mxu0 %v37336_v50 }
 0x35e   : > { %28995 = vmatpush3.msra.mxu1 %v33163_v42  ;;  %28972 = vmatpush3.msra.mxu0 %v37396_v30 }
 0x35f   : > { %28996 = vmatprep.subr.mxu1 %v37336_v50  ;;  %28973 = vmatprep.subr.mxu0 %v37336_v50 }
 0x360   : > { %28997 = vmatpush3.msra.mxu1 %v33181_v58  ;;  %28974 = vmatpush3.msra.mxu0 %v37397_v33 }
 0x361   : > { %28998 = vmatprep.subr.mxu1 %v37336_v50  ;;  %28975 = vmatprep.subr.mxu0 %v37336_v50 }
 0x362   : > { %28999 = vmatpush3.msra.mxu1 %v33198_v17  ;;  %28976 = vmatpush3.msra.mxu0 %v37398_v20  ;;  %v12483_v47 = vpop.f32.mrf.mxu0  ;;  %v37400_v20 = vld [vmem:[#allocation46_spill] sm:$0xff] }
 0x363   : > { %29000 = vmatprep.subr.mxu1 %v37336_v50  ;;  %28977 = vmatprep.subr.mxu0 %v37336_v50  ;;  %v12484_v30 = vadd.f32 %v12483_v47, %v12392_v15  ;;  %v12566_v59 = vpop.f32.mrf.mxu1  ;;  %v37402_v15 = vld [vmem:[#allocation24_spill] sm:$0xff]  ;;  %v37407_v47 = vld [vmem:[#allocation42_spill] sm:$0xff] }
 0x364   : > { %29001 = vmatpush3.msra.mxu1 %v37388_v28  ;;  %28978 = vmatpush3.msra.mxu0 %v37399_v51  ;;  %v28569_v33 = vpop.f32.mrf.mxu0  ;;  %v37422_v51 = vld [vmem:[#allocation90_spill] sm:$0xff] }
 0x365   : > { %29002 = vmatprep.subr.mxu1 %v37336_v50  ;;  %28979 = vmatprep.subr.mxu0 %v37336_v50  ;;  %v12567_v39 = vadd.f32 %v12566_v59, %v12484_v30  ;;  %v28592_v38 = vpop.f32.mrf.mxu1  ;;  %v37401_v33 = vld [vmem:[#allocation21_spill] sm:$0xff]  ;;  %v37406_v59 = vld [vmem:[#allocation38_spill] sm:$0xff] }
 0x366   : > { %29003 = vmatpush3.msra.mxu1 %v37390_v21  ;;  %29004 = vmatprep.mubr.msk.f32.mxu1 %vm31316_vm1, %v37336_v50  ;;  %v37405_v38 = vld [vmem:[#allocation34_spill] sm:$0xff]  ;;  %v37408_v30 = vld [vmem:[#allocation45_spill] sm:$0xff] }
 0x367   : > { %28980 = vmatpush3.msra.mxu0 %v37400_v20  ;;  %28981 = vmatprep.mubr.msk.f32.mxu0 %vm31316_vm1, %v37336_v50 }
 0x368   : > { %29005 = vmatmul.mubr.f32.vlgmr.msra.gmra.mxu1 %v33927_v5  ;;  %29030 = vmatprep.subr.mxu1 %v37336_v50  ;;  %v37404_v5 = vld [vmem:[#allocation30_spill] sm:$0xff] }
 0x369   : > { %28982 = vmatmul.mubr.f32.vlgmr.msra.gmra.mxu0 %v33906_v45  ;;  %29007 = vmatprep.subr.mxu0 %v37336_v50  ;;  %v37403_v45 = vld [vmem:[#allocation27_spill] sm:$0xff] }
 0x36a   : > { %29031 = vmatpush3.msra.mxu1 %v33092_v46  ;;  %29008 = vmatpush3.msra.mxu0 %v37401_v33 }
 0x36b   : > { %29032 = vmatprep.subr.mxu1 %v37336_v50  ;;  %29009 = vmatprep.subr.mxu0 %v37336_v50 }
 0x36c   : > { %29033 = vmatpush3.msra.mxu1 %v33103_v24  ;;  %29010 = vmatpush3.msra.mxu0 %v37402_v15 }
 0x36d   : > { %29034 = vmatprep.subr.mxu1 %v37336_v50  ;;  %29011 = vmatprep.subr.mxu0 %v37336_v50 }
 0x36e   : > { %29035 = vmatpush3.msra.mxu1 %v33119_v9  ;;  %29012 = vmatpush3.msra.mxu0 %v37403_v45 }
 0x36f   : > { %29036 = vmatprep.subr.mxu1 %v37336_v50  ;;  %29013 = vmatprep.subr.mxu0 %v37336_v50 }
 0x370   : > { %29037 = vmatpush3.msra.mxu1 %v33131_v61  ;;  %29014 = vmatpush3.msra.mxu0 %v37404_v5  ;;  %v37409_v5 = vld [vmem:[#allocation16_spill] sm:$0xff] }
 0x371   : > { %29038 = vmatprep.subr.mxu1 %v37336_v50  ;;  %29015 = vmatprep.subr.mxu0 %v37336_v50  ;;  %v5010_v45 = vmul.f32 0.05, %v37409_v5  ;;  %vm5009_vm6 = vcmp.ge.f32.partialorder %v37409_v5, 0.0 }
 0x372   : > { %29039 = vmatpush3.msra.mxu1 %v33146_v63  ;;  %29016 = vmatpush3.msra.mxu0 %v37405_v38  ;;  %v37431_v63 = vld [vmem:[#allocation81_spill] sm:$0xff] }
 0x373   : > { %29040 = vmatprep.subr.mxu1 %v37336_v50  ;;  %29017 = vmatprep.subr.mxu0 %v37336_v50 }
 0x374   : > { %29041 = vmatpush3.msra.mxu1 %v33163_v42  ;;  %29018 = vmatpush3.msra.mxu0 %v37406_v59 }
 0x375   : > { %29042 = vmatprep.subr.mxu1 %v37336_v50  ;;  %29019 = vmatprep.subr.mxu0 %v37336_v50 }
 0x376   : > { %29043 = vmatpush3.msra.mxu1 %v33181_v58  ;;  %29020 = vmatpush3.msra.mxu0 %v37407_v47  ;;  %v37410_v47 = vld [vmem:[#allocation48_spill] sm:$0xff]  ;;  %v37429_v58 = vld [vmem:[#allocation77_spill] sm:$0xff] }
 0x377   : > { %29044 = vmatprep.subr.mxu1 %v37336_v50  ;;  %29021 = vmatprep.subr.mxu0 %v37336_v50 }
 0x378   : > { %29045 = vmatpush3.msra.mxu1 %v33198_v17  ;;  %29022 = vmatpush3.msra.mxu0 %v37408_v30  ;;  %v12667_v38 = vpop.f32.mrf.mxu0 }
 0x379   : > { %29046 = vmatprep.subr.mxu1 %v37336_v50  ;;  %29023 = vmatprep.subr.mxu0 %v37336_v50  ;;  %v12668_v59 = vadd.f32 %v12667_v38, %v12567_v39  ;;  %v12748_v15 = vpop.f32.mrf.mxu1  ;;  %v5011_v39 = vsel %vm5009_vm6, %v37409_v5, %v5010_v45  ;;  %v37411_v38 = vld [vmem:[#allocation50_spill] sm:$0xff]  ;;  %v37415_v5 = vld [vmem:[#allocation56_spill] sm:$0xff]  ;;  %vm25094_vm6 = vcmask 122880  }
 0x37a   : > { %29047 = vmatpush3.msra.mxu1 %v37388_v28  ;;  %29024 = vmatpush3.msra.mxu0 %v37410_v47  ;;  %v28615_v33 = vpop.f32.mrf.mxu0  ;;  %v37414_v45 = vld [vmem:[#allocation78_spill] sm:$0xff]  ;;  %v37420_v47 = vld [vmem:[#allocation88_spill] sm:$0xff] }
 0x37b   : > { %29048 = vmatprep.subr.mxu1 %v37336_v50  ;;  %29025 = vmatprep.subr.mxu0 %v37336_v50  ;;  %v34190_v30 = vadd.f32 %v12748_v15, %v12668_v59  ;;  %v28638_v20 = vpop.f32.mrf.mxu1  ;;  %v37412_v33 = vld [vmem:[#allocation74_spill] sm:$0xff]  ;;  %v37413_v15 = vld [vmem:[#allocation55_spill] sm:$0xff] }
 0x37c   : > { %29049 = vmatpush3.msra.mxu1 %v37390_v21  ;;  %29050 = vmatprep.mubr.msk.f32.mxu1 %vm31316_vm1, %v37336_v50  ;;  %v14455_v20 = vsel %vm12185_vm4, %v5011_v39, 0  ;;  %v37417_v39 = vld [vmem:[#allocation58_spill] sm:$0xff] }
 0x37d   : > { %29026 = vmatpush3.msra.mxu0 %v37411_v38  ;;  %29027 = vmatprep.mubr.msk.f32.mxu0 %vm31316_vm1, %v37336_v50  ;;  %v34210_v59 = vand.u32 4294901760, %v14455_v20  ;;  %v37419_v38 = vld [vmem:[#allocation61_spill] sm:$0xff]  ;;  %v37425_v28 = vld [vmem:[#allocation70_spill] sm:$0xff] }
 0x37e   : > { %29051 = vmatmul.mubr.f32.vlgmr.msra.gmra.mxu1 %v33881_v57  ;;  %29076 = vmatprep.subr.mxu1 %v37336_v50 }
 0x37f   : > { %29028 = vmatmul.mubr.f32.vlgmr.msra.gmra.mxu0 %v33881_v57  ;;  %29053 = vmatprep.subr.mxu0 %v37336_v50  ;;  %v37416_v57 = vld [vmem:[#allocation82_spill] sm:$0xff] }
 0x380   : > { %29077 = vmatpush3.msra.mxu1 %v37412_v33  ;;  %29054 = vmatpush3.msra.mxu0 %v37413_v15  ;;  %v37418_v33 = vld [vmem:[#allocation85_spill] sm:$0xff] }
 0x381   : > { %29078 = vmatprep.subr.mxu1 %v37336_v50  ;;  %29055 = vmatprep.subr.mxu0 %v37336_v50 }
 0x382   : > { %29079 = vmatpush3.msra.mxu1 %v37414_v45  ;;  %29056 = vmatpush3.msra.mxu0 %v37415_v5  ;;  %v34221_v45 = vsub.f32 %v14455_v20, %v34210_v59  ;;  %v37424_v20 = vld [vmem:[#allocation92_spill] sm:$0xff] }
 0x383   : > { %29080 = vmatprep.subr.mxu1 %v37336_v50  ;;  %29057 = vmatprep.subr.mxu0 %v37336_v50 }
 0x384   : > { %29081 = vmatpush3.msra.mxu1 %v37416_v57  ;;  %29058 = vmatpush3.msra.mxu0 %v37417_v39  ;;  %v37421_v57 = vld [vmem:[#allocation64_spill] sm:$0xff]  ;;  %v37190_v21 = vand.u32 4294901760, %v34221_v45 }
 0x385   : > { %29082 = vmatprep.subr.mxu1 %v37336_v50  ;;  %29059 = vmatprep.subr.mxu0 %v37336_v50 }
 0x386   : > { %29083 = vmatpush3.msra.mxu1 %v37418_v33  ;;  %29060 = vmatpush3.msra.mxu0 %v37419_v38  ;;  %v37423_v33 = vld [vmem:[#allocation67_spill] sm:$0xff]  ;;  %v14535_v17 = vsub.f32 %v34221_v45, %v37190_v21 }
 0x387   : > { %29084 = vmatprep.subr.mxu1 %v37336_v50  ;;  %29061 = vmatprep.subr.mxu0 %v37336_v50 }
 0x388   : > { %29085 = vmatpush3.msra.mxu1 %v37420_v47  ;;  %29062 = vmatpush3.msra.mxu0 %v37421_v57  ;;  %v37426_v47 = vld [vmem:[#allocation93_spill] sm:$0xff]  ;;  %v14536_v21 = vand.u32 4294901760, %v14535_v17  ;;  %v37434_v17 = vld [vmem:[#allocation63_spill] sm:$0xff] }
 0x389   : > { %29086 = vmatprep.subr.mxu1 %v37336_v50  ;;  %29063 = vmatprep.subr.mxu0 %v37336_v50 }
 0x38a   : > { %29087 = vmatpush3.msra.mxu1 %v37422_v51  ;;  %29064 = vmatpush3.msra.mxu0 %v37423_v33 }
 0x38b   : > { %29088 = vmatprep.subr.mxu1 %v37336_v50  ;;  %29065 = vmatprep.subr.mxu0 %v37336_v50 }
 0x38c   : > { %29089 = vmatpush3.msra.mxu1 %v37424_v20  ;;  %29066 = vmatpush3.msra.mxu0 %v37425_v28 }
 0x38d   : > { %29090 = vmatprep.subr.mxu1 %v37336_v50  ;;  %29067 = vmatprep.subr.mxu0 %v37336_v50 }
 0x38e   : > { %29091 = vmatpush3.msra.mxu1 %v37426_v47  ;;  %29068 = vmatpush3.msra.mxu0 %v37427_v4  ;;  %v12958_v51 = vpop.f32.mrf.mxu1 }
 0x38f   : > { %29092 = vmatprep.subr.mxu1 %v37336_v50  ;;  %29069 = vmatprep.subr.mxu0 %v37336_v50  ;;  %v12837_v20 = vpop.f32.mrf.mxu0 }
 0x390   : > { %29093 = vmatpush3.msra.mxu1 %v37428_v35  ;;  %29070 = vmatpush3.msra.mxu0 %v37429_v58  ;;  %v12959_v49 = vadd.f32 %v12958_v51, %v12837_v20  ;;  %v28684_v42 = vpop.f32.mrf.mxu1  ;;  %v37433_v51 = vld [vmem:[#allocation59_spill] sm:$0xff]  ;;  %v37437_v20 = vld [vmem:[#allocation72_spill] sm:$0xff] }
 0x391   : > { %29094 = vmatprep.subr.mxu1 %v37336_v50  ;;  %29071 = vmatprep.subr.mxu0 %v37336_v50  ;;  %v28661_v47 = vpop.f32.mrf.mxu0  ;;  %v37432_v42 = vld [vmem:[#allocation57_spill] sm:$0xff]  ;;  %v37441_v35 = vld [vmem:[#allocation87_spill] sm:$0xff] }
 0x392   : > { %29095 = vmatpush3.msra.mxu1 %v37430_v13  ;;  %29096 = vmatprep.mubr.msk.f32.mxu1 %vm31316_vm1, %v37336_v50  ;;  %v37436_v47 = vld [vmem:[#allocation69_spill] sm:$0xff] }
 0x393   : > { %29072 = vmatpush3.msra.mxu0 %v37431_v63  ;;  %29073 = vmatprep.mubr.msk.f32.mxu0 %vm31316_vm1, %v37336_v50 }
 0x394   : > { %29097 = vmatmul.mubr.f32.vlgmr.msra.gmra.mxu1 %v34210_v59  ;;  %29122 = vmatprep.subr.mxu1 %v37336_v50 }
 0x395   : > { %29074 = vmatmul.mubr.f32.vlgmr.msra.gmra.mxu0 %v14536_v21  ;;  %29099 = vmatprep.subr.mxu0 %v37336_v50  ;;  %v37435_v21 = vld [vmem:[#allocation66_spill] sm:$0xff] }
 0x396   : > { %29123 = vmatpush3.msra.mxu1 %v37413_v15  ;;  %29100 = vmatpush3.msra.mxu0 %v37432_v42 }
 0x397   : > { %29124 = vmatprep.subr.mxu1 %v37336_v50  ;;  %29101 = vmatprep.subr.mxu0 %v37336_v50 }
 0x398   : > { %29125 = vmatpush3.msra.mxu1 %v37415_v5  ;;  %29102 = vmatpush3.msra.mxu0 %v37433_v51  ;;  %v37440_v51 = vld [vmem:[#allocation84_spill] sm:$0xff] }
 0x399   : > { %29126 = vmatprep.subr.mxu1 %v37336_v50  ;;  %29103 = vmatprep.subr.mxu0 %v37336_v50 }
 0x39a   : > { %29127 = vmatpush3.msra.mxu1 %v37417_v39  ;;  %29104 = vmatpush3.msra.mxu0 %v37434_v17 }
 0x39b   : > { %29128 = vmatprep.subr.mxu1 %v37336_v50  ;;  %29105 = vmatprep.subr.mxu0 %v37336_v50 }
 0x39c   : > { %29129 = vmatpush3.msra.mxu1 %v37419_v38  ;;  %29106 = vmatpush3.msra.mxu0 %v37435_v21  ;;  %v37438_v21 = vld [vmem:[#allocation76_spill] sm:$0xff] }
 0x39d   : > { %29130 = vmatprep.subr.mxu1 %v37336_v50  ;;  %29107 = vmatprep.subr.mxu0 %v37336_v50 }
 0x39e   : > { %29131 = vmatpush3.msra.mxu1 %v37421_v57  ;;  %29108 = vmatpush3.msra.mxu0 %v37436_v47  ;;  %v37439_v47 = vld [vmem:[#allocation80_spill] sm:$0xff] }
 0x39f   : > { %29132 = vmatprep.subr.mxu1 %v37336_v50  ;;  %29109 = vmatprep.subr.mxu0 %v37336_v50 }
 0x3a0   : > { %29133 = vmatpush3.msra.mxu1 %v37423_v33  ;;  %29110 = vmatpush3.msra.mxu0 %v37437_v20 }
 0x3a1   : > { %29134 = vmatprep.subr.mxu1 %v37336_v50  ;;  %29111 = vmatprep.subr.mxu0 %v37336_v50 }
 0x3a2   : > { %29135 = vmatpush3.msra.mxu1 %v37425_v28  ;;  %29112 = vmatpush3.msra.mxu0 %v37438_v21 }
 0x3a3   : > { %29136 = vmatprep.subr.mxu1 %v37336_v50  ;;  %29113 = vmatprep.subr.mxu0 %v37336_v50 }
 0x3a4   : > { %29137 = vmatpush3.msra.mxu1 %v37427_v4  ;;  %29114 = vmatpush3.msra.mxu0 %v37439_v47  ;;  %v13133_v17 = vpop.f32.mrf.mxu1 }
 0x3a5   : > { %29138 = vmatprep.subr.mxu1 %v37336_v50  ;;  %29115 = vmatprep.subr.mxu0 %v37336_v50  ;;  %v13050_v20 = vpop.f32.mrf.mxu0 }
 0x3a6   : > { %29139 = vmatpush3.msra.mxu1 %v37429_v58  ;;  %29116 = vmatpush3.msra.mxu0 %v37440_v51  ;;  %v13051_v42 = vadd.f32 %v13050_v20, %v12959_v49  ;;  %v28730_v21 = vpop.f32.mrf.mxu1  ;;  %v37442_v51 = vand.u32 4294901760, %v34221_v45  ;;  %v37444_v49 = vld [vmem:[#allocation65_spill] sm:$0xff]  ;;  %v37450_v20 = vld [vmem:[#allocation86_spill] sm:$0xff] }
 0x3a7   : > { %29140 = vmatprep.subr.mxu1 %v37336_v50  ;;  %29117 = vmatprep.subr.mxu0 %v37336_v50  ;;  %v28707_v13 = vpop.f32.mrf.mxu0  ;;  %v37449_v21 = vld [vmem:[#allocation83_spill] sm:$0xff] }
 0x3a8   : > { %29141 = vmatpush3.msra.mxu1 %v37431_v63  ;;  %29142 = vmatprep.mubr.msk.f32.mxu1 %vm31316_vm1, %v37336_v50  ;;  %v13134_v47 = vadd.f32 %v13133_v17, %v13051_v42  ;;  %v37443_v13 = vld [vmem:[#allocation62_spill] sm:$0xff]  ;;  %v37446_v42 = vld [vmem:[#allocation71_spill] sm:$0xff] }
 0x3a9   : > { %29118 = vmatpush3.msra.mxu0 %v37441_v35  ;;  %29119 = vmatprep.mubr.msk.f32.mxu0 %vm31316_vm1, %v37336_v50  ;;  %v37448_v17 = vld [vmem:[#allocation79_spill] sm:$0xff] }
 0x3aa   : > { %29143 = vmatmul.mubr.f32.vlgmr.msra.gmra.mxu1 %v37442_v51  ;;  %29168 = vmatprep.subr.mxu1 %v37336_v50  ;;  %v37447_v51 = vld [vmem:[#allocation75_spill] sm:$0xff] }
 0x3ab   : > { %29120 = vmatmul.mubr.f32.vlgmr.msra.gmra.mxu0 %v34221_v45  ;;  %29145 = vmatprep.subr.mxu0 %v37336_v50  ;;  %v37445_v45 = vld [vmem:[#allocation68_spill] sm:$0xff] }
 0x3ac   : > { %29169 = vmatpush3.msra.mxu1 %v37413_v15  ;;  %29146 = vmatpush3.msra.mxu0 %v37443_v13 }
 0x3ad   : > { %29170 = vmatprep.subr.mxu1 %v37336_v50  ;;  %29147 = vmatprep.subr.mxu0 %v37336_v50 }
 0x3ae   : > { %29171 = vmatpush3.msra.mxu1 %v37415_v5  ;;  %29148 = vmatpush3.msra.mxu0 %v37444_v49  ;;  %v37453_v49 = vld [vmem:[#allocation89_spill] sm:$0xff] }
 0x3af   : > { %29172 = vmatprep.subr.mxu1 %v37336_v50  ;;  %29149 = vmatprep.subr.mxu0 %v37336_v50 }
 0x3b0   : > { %29173 = vmatpush3.msra.mxu1 %v37417_v39  ;;  %29150 = vmatpush3.msra.mxu0 %v37445_v45 }
 0x3b1   : > { %29174 = vmatprep.subr.mxu1 %v37336_v50  ;;  %29151 = vmatprep.subr.mxu0 %v37336_v50 }
 0x3b2   : > { %29175 = vmatpush3.msra.mxu1 %v37419_v38  ;;  %29152 = vmatpush3.msra.mxu0 %v37446_v42  ;;  %v37451_v42 = vld [vmem:[#allocation17_spill] sm:$0xff] }
 0x3b3   : > { %29176 = vmatprep.subr.mxu1 %v37336_v50  ;;  %29153 = vmatprep.subr.mxu0 %v37336_v50  ;;  %v6438_v45 = vmul.f32 0.05, %v37451_v42  ;;  %vm6437_vm7 = vcmp.ge.f32.partialorder %v37451_v42, 0.0 }
 0x3b4   : > { %29177 = vmatpush3.msra.mxu1 %v37421_v57  ;;  %29154 = vmatpush3.msra.mxu0 %v37447_v51 }
 0x3b5   : > { %29178 = vmatprep.subr.mxu1 %v37336_v50  ;;  %29155 = vmatprep.subr.mxu0 %v37336_v50 }
 0x3b6   : > { %29179 = vmatpush3.msra.mxu1 %v37423_v33  ;;  %29156 = vmatpush3.msra.mxu0 %v37448_v17  ;;  %v34339_v17 = vld [vmem:[%s37452_s30] sm:$0x1]  ;;  %v37454_v33 = vld [vmem:[#allocation91_spill] sm:$0xff] }
 0x3b7   : > { %29180 = vmatprep.subr.mxu1 %v37336_v50  ;;  %29157 = vmatprep.subr.mxu0 %v37336_v50 }
 0x3b8   : > { %29181 = vmatpush3.msra.mxu1 %v37425_v28  ;;  %29158 = vmatpush3.msra.mxu0 %v37449_v21 }
 0x3b9   : > { %29182 = vmatprep.subr.mxu1 %v37336_v50  ;;  %29159 = vmatprep.subr.mxu0 %v37336_v50 }
 0x3ba   : > { %29183 = vmatpush3.msra.mxu1 %v37427_v4  ;;  %29160 = vmatpush3.msra.mxu0 %v37450_v20  ;;  %v13315_v51 = vpop.f32.mrf.mxu1  ;;  %v12752_v4 = vadd.f32 %v34190_v30, %v34339_v17 }
 0x3bb   : > { %29184 = vmatprep.subr.mxu1 %v37336_v50  ;;  %29161 = vmatprep.subr.mxu0 %v37336_v50  ;;  %v13234_v21 = vpop.f32.mrf.mxu0 }
 0x3bc   : > { %29185 = vmatpush3.msra.mxu1 %v37429_v58  ;;  %29162 = vmatpush3.msra.mxu0 %v37453_v49  ;;  %v13235_v20 = vadd.f32 %v13234_v21, %v13134_v47  ;;  %v28776_v13 = vpop.f32.mrf.mxu1  ;;  %v6439_v58 = vsel %vm6437_vm7, %v37451_v42, %v6438_v45  ;;  %v37455_v47 = vld [vmem:[#allocation100_spill] sm:$0xff]  ;;  %v37459_v45 = vld [vmem:[#allocation109_spill] sm:$0xff]  ;;  %v37460_v42 = vld [vmem:[#allocation111_spill] sm:$0xff]  ;;  %vm24644_vm7 = vcmask 64512  }
 0x3bd   : > { %29186 = vmatprep.subr.mxu1 %v37336_v50  ;;  %29163 = vmatprep.subr.mxu0 %v37336_v50  ;;  %v28753_v35 = vpop.f32.mrf.mxu0  ;;  %v15022_v30 = vsel %vm12185_vm4, %v6439_v58, 0  ;;  %v37456_v13 = vld [vmem:[#allocation102_spill] sm:$0xff]  ;;  %v37458_v58 = vld [vmem:[#allocation107_spill] sm:$0xff] }
 0x3be   : > { %29187 = vmatpush3.msra.mxu1 %v37431_v63  ;;  %29188 = vmatprep.mubr.msk.f32.mxu1 %vm31316_vm1, %v37336_v50  ;;  %v13316_v28 = vadd.f32 %v13315_v51, %v13235_v20 }
 0x3bf   : > { %29164 = vmatpush3.msra.mxu0 %v37454_v33  ;;  %29165 = vmatprep.mubr.msk.f32.mxu0 %vm31316_vm1, %v37336_v50 }
 0x3c0   : > { %29189 = vmatmul.mubr.f32.vlgmr.msra.gmra.mxu1 %v34210_v59  ;;  %29214 = vmatprep.subr.mxu1 %v37336_v50  ;;  %v34359_v35 = vadd.f32 %v13316_v28, %v12752_v4  ;;  %v34370_v4 = vand.u32 4294901760, %v15022_v30  ;;  %v37457_v28 = vld [vmem:[#allocation105_spill] sm:$0xff] }
 0x3c1   : > { %29166 = vmatmul.mubr.f32.vlgmr.msra.gmra.mxu0 %v34210_v59  ;;  %29191 = vmatprep.subr.mxu0 %v37336_v50 }
 0x3c2   : > { %29215 = vmatpush3.msra.mxu1 %v37455_v47  ;;  %29192 = vmatpush3.msra.mxu0 %v33708_v12  ;;  %v34381_v59 = vsub.f32 %v15022_v30, %v34370_v4 }
 0x3c3   : > { %29216 = vmatprep.subr.mxu1 %v37336_v50  ;;  %29193 = vmatprep.subr.mxu0 %v37336_v50 }
 0x3c4   : > { %29217 = vmatpush3.msra.mxu1 %v37456_v13  ;;  %29194 = vmatpush3.msra.mxu0 %v33717_v60  ;;  %v34394_v51 = vand.u32 4294901760, %v34381_v59 }
 0x3c5   : > { %29218 = vmatprep.subr.mxu1 %v37336_v50  ;;  %29195 = vmatprep.subr.mxu0 %v37336_v50 }
 0x3c6   : > { %29219 = vmatpush3.msra.mxu1 %v37457_v28  ;;  %29196 = vmatpush3.msra.mxu0 %v33726_v22  ;;  %v15102_v20 = vsub.f32 %v34381_v59, %v34394_v51 }
 0x3c7   : > { %29220 = vmatprep.subr.mxu1 %v37336_v50  ;;  %29197 = vmatprep.subr.mxu0 %v37336_v50 }
 0x3c8   : > { %29221 = vmatpush3.msra.mxu1 %v37458_v58  ;;  %29198 = vmatpush3.msra.mxu0 %v33743_v54 }
 0x3c9   : > { %29222 = vmatprep.subr.mxu1 %v37336_v50  ;;  %29199 = vmatprep.subr.mxu0 %v37336_v50 }
 0x3ca   : > { %29223 = vmatpush3.msra.mxu1 %v37459_v45  ;;  %29200 = vmatpush3.msra.mxu0 %v33758_v3 }
 0x3cb   : > { %29224 = vmatprep.subr.mxu1 %v37336_v50  ;;  %29201 = vmatprep.subr.mxu0 %v37336_v50 }
 0x3cc   : > { %29225 = vmatpush3.msra.mxu1 %v37460_v42  ;;  %29202 = vmatpush3.msra.mxu0 %v33773_v34 }
 0x3cd   : > { %29226 = vmatprep.subr.mxu1 %v37336_v50  ;;  %29203 = vmatprep.subr.mxu0 %v37336_v50 }
 0x3ce   : > { %29227 = vmatpush3.msra.mxu1 %v33912_v48  ;;  %29204 = vmatpush3.msra.mxu0 %v33795_v11 }
 0x3cf   : > { %29228 = vmatprep.subr.mxu1 %v37336_v50  ;;  %29205 = vmatprep.subr.mxu0 %v37336_v50 }
 0x3d0   : > { %29229 = vmatpush3.msra.mxu1 %v33920_v31  ;;  %29206 = vmatpush3.msra.mxu0 %v33812_v2  ;;  %v13525_v21 = vpop.f32.mrf.mxu1 }
 0x3d1   : > { %29230 = vmatprep.subr.mxu1 %v37336_v50  ;;  %29207 = vmatprep.subr.mxu0 %v37336_v50  ;;  %v13404_v30 = vpop.f32.mrf.mxu0 }
 0x3d2   : > { %29231 = vmatpush3.msra.mxu1 %v33931_v36  ;;  %29208 = vmatpush3.msra.mxu0 %v33833_v56  ;;  %v13526_v48 = vadd.f32 %v13525_v21, %v13404_v30  ;;  %v28822_v42 = vpop.f32.mrf.mxu1  ;;  %v34416_v36 = vand.u32 4294901760, %v15102_v20 }
 0x3d3   : > { %29232 = vmatprep.subr.mxu1 %v37336_v50  ;;  %29209 = vmatprep.subr.mxu0 %v37336_v50  ;;  %v28799_v31 = vpop.f32.mrf.mxu0  ;;  %v37462_v42 = vld [vmem:[#allocation101_spill] sm:$0xff] }
 0x3d4   : > { %29233 = vmatpush3.msra.mxu1 %v33939_v43  ;;  %29234 = vmatprep.mubr.msk.f32.mxu1 %vm31316_vm1, %v37336_v50  ;;  %v37461_v31 = vld [vmem:[#allocation96_spill] sm:$0xff] }
 0x3d5   : > { %29210 = vmatpush3.msra.mxu0 %v33850_v27  ;;  %29211 = vmatprep.mubr.msk.f32.mxu0 %vm31316_vm1, %v37336_v50 }
 0x3d6   : > { %29235 = vmatmul.mubr.f32.vlgmr.msra.gmra.mxu1 %v34370_v4  ;;  %29260 = vmatprep.subr.mxu1 %v37336_v50 }
 0x3d7   : > { %29212 = vmatmul.mubr.f32.vlgmr.msra.gmra.mxu0 %v34416_v36  ;;  %29237 = vmatprep.subr.mxu0 %v37336_v50 }
 0x3d8   : > { %29261 = vmatpush3.msra.mxu1 %v33708_v12  ;;  %29238 = vmatpush3.msra.mxu0 %v33724_v41 }
 0x3d9   : > { %29262 = vmatprep.subr.mxu1 %v37336_v50  ;;  %29239 = vmatprep.subr.mxu0 %v37336_v50 }
 0x3da   : > { %29263 = vmatpush3.msra.mxu1 %v33717_v60  ;;  %29240 = vmatpush3.msra.mxu0 %v37461_v31 }
 0x3db   : > { %29264 = vmatprep.subr.mxu1 %v37336_v50  ;;  %29241 = vmatprep.subr.mxu0 %v37336_v50 }
 0x3dc   : > { %29265 = vmatpush3.msra.mxu1 %v33726_v22  ;;  %29242 = vmatpush3.msra.mxu0 %v33751_v0 }
 0x3dd   : > { %29266 = vmatprep.subr.mxu1 %v37336_v50  ;;  %29243 = vmatprep.subr.mxu0 %v37336_v50 }
 0x3de   : > { %29267 = vmatpush3.msra.mxu1 %v33743_v54  ;;  %29244 = vmatpush3.msra.mxu0 %v33771_v32 }
 0x3df   : > { %29268 = vmatprep.subr.mxu1 %v37336_v50  ;;  %29245 = vmatprep.subr.mxu0 %v37336_v50 }
 0x3e0   : > { %29269 = vmatpush3.msra.mxu1 %v33758_v3  ;;  %29246 = vmatpush3.msra.mxu0 %v33793_v52 }
 0x3e1   : > { %29270 = vmatprep.subr.mxu1 %v37336_v50  ;;  %29247 = vmatprep.subr.mxu0 %v37336_v50 }
 0x3e2   : > { %29271 = vmatpush3.msra.mxu1 %v33773_v34  ;;  %29248 = vmatpush3.msra.mxu0 %v33810_v14 }
 0x3e3   : > { %29272 = vmatprep.subr.mxu1 %v37336_v50  ;;  %29249 = vmatprep.subr.mxu0 %v37336_v50 }
 0x3e4   : > { %29273 = vmatpush3.msra.mxu1 %v33795_v11  ;;  %29250 = vmatpush3.msra.mxu0 %v37462_v42 }
 0x3e5   : > { %29274 = vmatprep.subr.mxu1 %v37336_v50  ;;  %29251 = vmatprep.subr.mxu0 %v37336_v50 }
 0x3e6   : > { %29275 = vmatpush3.msra.mxu1 %v33812_v2  ;;  %29252 = vmatpush3.msra.mxu0 %v33848_v37  ;;  %v13700_v21 = vpop.f32.mrf.mxu1 }
 0x3e7   : > { %29276 = vmatprep.subr.mxu1 %v37336_v50  ;;  %29253 = vmatprep.subr.mxu0 %v37336_v50  ;;  %v13617_v20 = vpop.f32.mrf.mxu0 }
 0x3e8   : > { %29277 = vmatpush3.msra.mxu1 %v33833_v56  ;;  %29254 = vmatpush3.msra.mxu0 %v33865_v26  ;;  %v13618_v30 = vadd.f32 %v13617_v20, %v13526_v48  ;;  %v28868_v42 = vpop.f32.mrf.mxu1 }
 0x3e9   : > { %29278 = vmatprep.subr.mxu1 %v37336_v50  ;;  %29255 = vmatprep.subr.mxu0 %v37336_v50  ;;  %v28845_v14 = vpop.f32.mrf.mxu0 }
 0x3ea   : > { %29279 = vmatpush3.msra.mxu1 %v33850_v27  ;;  %29280 = vmatprep.mubr.msk.f32.mxu1 %vm31316_vm1, %v37336_v50  ;;  %v13701_v37 = vadd.f32 %v13700_v21, %v13618_v30 }
 0x3eb   : > { %29256 = vmatpush3.msra.mxu0 %v33879_v6  ;;  %29257 = vmatprep.mubr.msk.f32.mxu0 %vm31316_vm1, %v37336_v50 }
 0x3ec   : > { %29281 = vmatmul.mubr.f32.vlgmr.msra.gmra.mxu1 %v34394_v51  ;;  %29306 = vmatprep.subr.mxu1 %v37336_v50 }
 0x3ed   : > { %29258 = vmatmul.mubr.f32.vlgmr.msra.gmra.mxu0 %v34381_v59  ;;  %29283 = vmatprep.subr.mxu0 %v37336_v50 }
 0x3ee   : > { %29307 = vmatpush3.msra.mxu1 %v33708_v12  ;;  %29284 = vmatpush3.msra.mxu0 %v33748_v8 }
 0x3ef   : > { %29308 = vmatprep.subr.mxu1 %v37336_v50  ;;  %29285 = vmatprep.subr.mxu0 %v37336_v50 }
 0x3f0   : > { %29309 = vmatpush3.msra.mxu1 %v33717_v60  ;;  %29286 = vmatpush3.msra.mxu0 %v33763_v16 }
 0x3f1   : > { %29310 = vmatprep.subr.mxu1 %v37336_v50  ;;  %29287 = vmatprep.subr.mxu0 %v37336_v50 }
 0x3f2   : > { %29311 = vmatpush3.msra.mxu1 %v33726_v22  ;;  %29288 = vmatpush3.msra.mxu0 %v33781_v1 }
 0x3f3   : > { %29312 = vmatprep.subr.mxu1 %v37336_v50  ;;  %29289 = vmatprep.subr.mxu0 %v37336_v50 }
 0x3f4   : > { %29313 = vmatpush3.msra.mxu1 %v33743_v54  ;;  %29290 = vmatpush3.msra.mxu0 %v33807_v19 }
 0x3f5   : > { %29314 = vmatprep.subr.mxu1 %v37336_v50  ;;  %29291 = vmatprep.subr.mxu0 %v37336_v50 }
 0x3f6   : > { %29315 = vmatpush3.msra.mxu1 %v33758_v3  ;;  %29292 = vmatpush3.msra.mxu0 %v33828_v55 }
 0x3f7   : > { %29316 = vmatprep.subr.mxu1 %v37336_v50  ;;  %29293 = vmatprep.subr.mxu0 %v37336_v50 }
 0x3f8   : > { %29317 = vmatpush3.msra.mxu1 %v33773_v34  ;;  %29294 = vmatpush3.msra.mxu0 %v33845_v29 }
 0x3f9   : > { %29318 = vmatprep.subr.mxu1 %v37336_v50  ;;  %29295 = vmatprep.subr.mxu0 %v37336_v50 }
 0x3fa   : > { %29319 = vmatpush3.msra.mxu1 %v33795_v11  ;;  %29296 = vmatpush3.msra.mxu0 %v33862_v18 }
 0x3fb   : > { %29320 = vmatprep.subr.mxu1 %v37336_v50  ;;  %29297 = vmatprep.subr.mxu0 %v37336_v50 }
 0x3fc   : > { %29321 = vmatpush3.msra.mxu1 %v33812_v2  ;;  %29298 = vmatpush3.msra.mxu0 %v33876_v44  ;;  %v13882_v14 = vpop.f32.mrf.mxu1 }
 0x3fd   : > { %29322 = vmatprep.subr.mxu1 %v37336_v50  ;;  %29299 = vmatprep.subr.mxu0 %v37336_v50  ;;  %v13801_v48 = vpop.f32.mrf.mxu0 }
 0x3fe   : > { %29323 = vmatpush3.msra.mxu1 %v33833_v56  ;;  %29300 = vmatpush3.msra.mxu0 %v33892_v7  ;;  %v13802_v42 = vadd.f32 %v13801_v48, %v13701_v37  ;;  %v28914_v21 = vpop.f32.mrf.mxu1  ;;  %v37466_v48 = vld [vmem:[#allocation26_spill] sm:$0xff] }
 0x3ff   : > { %29324 = vmatprep.subr.mxu1 %v37336_v50  ;;  %29301 = vmatprep.subr.mxu0 %v37336_v50  ;;  %v28891_v20 = vpop.f32.mrf.mxu0  ;;  %v37468_v21 = vld [vmem:[#allocation29_spill] sm:$0xff] }
 0x400   : > { %29325 = vmatpush3.msra.mxu1 %v33850_v27  ;;  %29326 = vmatprep.mubr.msk.f32.mxu1 %vm31316_vm1, %v37336_v50  ;;  %v13883_v30 = vadd.f32 %v13882_v14, %v13802_v42  ;;  %v37465_v14 = vld [vmem:[#allocation49_spill] sm:$0xff]  ;;  %v37467_v42 = vld [vmem:[#allocation51_spill] sm:$0xff]  ;;  %v37469_v20 = vld [vmem:[#allocation52_spill] sm:$0xff] }
 0x401   : > { %29302 = vmatpush3.msra.mxu0 %v33903_v53  ;;  %29303 = vmatprep.mubr.msk.f32.mxu0 %vm31316_vm1, %v37336_v50  ;;  %v37484_v53 = vld [vmem:[#allocation46_spill] sm:$0xff] }
 0x402   : > { %29327 = vmatmul.mubr.f32.vlgmr.msra.gmra.mxu1 %v34370_v4  ;;  %29352 = vmatprep.subr.mxu1 %v37336_v50  ;;  %v34513_v37 = vadd.f32 %v13883_v30, %v34359_v35  ;;  %v37464_v35 = vld [vmem:[#allocation23_spill] sm:$0xff]  ;;  %v37470_v30 = vld [vmem:[#allocation32_spill] sm:$0xff] }
 0x403   : > { %29304 = vmatmul.mubr.f32.vlgmr.msra.gmra.mxu0 %v34370_v4  ;;  %29329 = vmatprep.subr.mxu0 %v37336_v50 }
 0x404   : > { %37463 = vst [vmem:[#allocation16_spill] sm:$0xff] %v34513_v37  ;;  %29353 = vmatpush3.msra.mxu1 %v33202_v40  ;;  %29330 = vmatpush3.msra.mxu0 %v33092_v46  ;;  %v37474_v40 = vld [vmem:[#allocation40_spill] sm:$0xff] }
 0x405   : > { %29354 = vmatprep.subr.mxu1 %v37336_v50  ;;  %29331 = vmatprep.subr.mxu0 %v37336_v50 }
 0x406   : > { %29355 = vmatpush3.msra.mxu1 %v33223_v62  ;;  %29332 = vmatpush3.msra.mxu0 %v33103_v24 }
 0x407   : > { %29356 = vmatprep.subr.mxu1 %v37336_v50  ;;  %29333 = vmatprep.subr.mxu0 %v37336_v50 }
 0x408   : > { %29357 = vmatpush3.msra.mxu1 %v33241_v23  ;;  %29334 = vmatpush3.msra.mxu0 %v33119_v9 }
 0x409   : > { %29358 = vmatprep.subr.mxu1 %v37336_v50  ;;  %29335 = vmatprep.subr.mxu0 %v37336_v50 }
 0x40a   : > { %29359 = vmatpush3.msra.mxu1 %v33257_v10  ;;  %29336 = vmatpush3.msra.mxu0 %v33131_v61  ;;  %v37472_v10 = vld [vmem:[#allocation36_spill] sm:$0xff] }
 0x40b   : > { %29360 = vmatprep.subr.mxu1 %v37336_v50  ;;  %29337 = vmatprep.subr.mxu0 %v37336_v50 }
 0x40c   : > { %29361 = vmatpush3.msra.mxu1 %v33271_v25  ;;  %29338 = vmatpush3.msra.mxu0 %v37464_v35  ;;  %v37471_v25 = vld [vmem:[#allocation53_spill] sm:$0xff] }
 0x40d   : > { %29362 = vmatprep.subr.mxu1 %v37336_v50  ;;  %29339 = vmatprep.subr.mxu0 %v37336_v50 }
 0x40e   : > { %29363 = vmatpush3.msra.mxu1 %v37465_v14  ;;  %29340 = vmatpush3.msra.mxu0 %v37466_v48 }
 0x40f   : > { %29364 = vmatprep.subr.mxu1 %v37336_v50  ;;  %29341 = vmatprep.subr.mxu0 %v37336_v50 }
 0x410   : > { %29365 = vmatpush3.msra.mxu1 %v37467_v42  ;;  %29342 = vmatpush3.msra.mxu0 %v37468_v21 }
 0x411   : > { %29366 = vmatprep.subr.mxu1 %v37336_v50  ;;  %29343 = vmatprep.subr.mxu0 %v37336_v50 }
 0x412   : > { %29367 = vmatpush3.msra.mxu1 %v37469_v20  ;;  %29344 = vmatpush3.msra.mxu0 %v37470_v30  ;;  %v14092_v37 = vpop.f32.mrf.mxu1  ;;  %v37473_v20 = vld [vmem:[#allocation54_spill] sm:$0xff] }
 0x413   : > { %29368 = vmatprep.subr.mxu1 %v37336_v50  ;;  %29345 = vmatprep.subr.mxu0 %v37336_v50  ;;  %v13971_v14 = vpop.f32.mrf.mxu0 }
 0x414   : > { %29369 = vmatpush3.msra.mxu1 %v37471_v25  ;;  %29346 = vmatpush3.msra.mxu0 %v37472_v10  ;;  %v14093_v42 = vadd.f32 %v14092_v37, %v13971_v14  ;;  %v28960_v23 = vpop.f32.mrf.mxu1  ;;  %v37478_v37 = vld [vmem:[#allocation25_spill] sm:$0xff]  ;;  %v37479_v14 = vld [vmem:[#allocation28_spill] sm:$0xff] }
 0x415   : > { %29370 = vmatprep.subr.mxu1 %v37336_v50  ;;  %29347 = vmatprep.subr.mxu0 %v37336_v50  ;;  %v28937_v62 = vpop.f32.mrf.mxu0  ;;  %v37476_v23 = vld [vmem:[#allocation20_spill] sm:$0xff] }
 0x416   : > { %29371 = vmatpush3.msra.mxu1 %v37473_v20  ;;  %29372 = vmatprep.mubr.msk.f32.mxu1 %vm31316_vm1, %v37336_v50  ;;  %v37475_v62 = vld [vmem:[#allocation19_spill] sm:$0xff] }
 0x417   : > { %29348 = vmatpush3.msra.mxu0 %v37474_v40  ;;  %29349 = vmatprep.mubr.msk.f32.mxu0 %vm31316_vm1, %v37336_v50 }
 0x418   : > { %29373 = vmatmul.mubr.f32.vlgmr.msra.gmra.mxu1 %v34370_v4  ;;  %29398 = vmatprep.subr.mxu1 %v37336_v50 }
 0x419   : > { %29350 = vmatmul.mubr.f32.vlgmr.msra.gmra.mxu0 %v34416_v36  ;;  %29375 = vmatprep.subr.mxu0 %v37336_v50  ;;  %v37477_v36 = vld [vmem:[#allocation22_spill] sm:$0xff] }
 0x41a   : > { %29399 = vmatpush3.msra.mxu1 %v33092_v46  ;;  %29376 = vmatpush3.msra.mxu0 %v37475_v62  ;;  %v37483_v62 = vld [vmem:[#allocation43_spill] sm:$0xff] }
 0x41b   : > { %29400 = vmatprep.subr.mxu1 %v37336_v50  ;;  %29377 = vmatprep.subr.mxu0 %v37336_v50 }
 0x41c   : > { %29401 = vmatpush3.msra.mxu1 %v33103_v24  ;;  %29378 = vmatpush3.msra.mxu0 %v37476_v23 }
 0x41d   : > { %29402 = vmatprep.subr.mxu1 %v37336_v50  ;;  %29379 = vmatprep.subr.mxu0 %v37336_v50 }
 0x41e   : > { %29403 = vmatpush3.msra.mxu1 %v33119_v9  ;;  %29380 = vmatpush3.msra.mxu0 %v37477_v36  ;;  %v37480_v36 = vld [vmem:[#allocation31_spill] sm:$0xff] }
 0x41f   : > { %29404 = vmatprep.subr.mxu1 %v37336_v50  ;;  %29381 = vmatprep.subr.mxu0 %v37336_v50 }
 0x420   : > { %29405 = vmatpush3.msra.mxu1 %v33131_v61  ;;  %29382 = vmatpush3.msra.mxu0 %v37478_v37  ;;  %v37481_v37 = vld [vmem:[#allocation35_spill] sm:$0xff] }
 0x421   : > { %29406 = vmatprep.subr.mxu1 %v37336_v50  ;;  %29383 = vmatprep.subr.mxu0 %v37336_v50 }
 0x422   : > { %29407 = vmatpush3.msra.mxu1 %v37464_v35  ;;  %29384 = vmatpush3.msra.mxu0 %v37479_v14  ;;  %v37482_v14 = vld [vmem:[#allocation39_spill] sm:$0xff] }
 0x423   : > { %29408 = vmatprep.subr.mxu1 %v37336_v50  ;;  %29385 = vmatprep.subr.mxu0 %v37336_v50 }
 0x424   : > { %29409 = vmatpush3.msra.mxu1 %v37466_v48  ;;  %29386 = vmatpush3.msra.mxu0 %v37480_v36 }
 0x425   : > { %29410 = vmatprep.subr.mxu1 %v37336_v50  ;;  %29387 = vmatprep.subr.mxu0 %v37336_v50 }
 0x426   : > { %29411 = vmatpush3.msra.mxu1 %v37468_v21  ;;  %29388 = vmatpush3.msra.mxu0 %v37481_v37 }
 0x427   : > { %29412 = vmatprep.subr.mxu1 %v37336_v50  ;;  %29389 = vmatprep.subr.mxu0 %v37336_v50 }
 0x428   : > { %29413 = vmatpush3.msra.mxu1 %v37470_v30  ;;  %29390 = vmatpush3.msra.mxu0 %v37482_v14  ;;  %v14267_v23 = vpop.f32.mrf.mxu1 }
 0x429   : > { %29414 = vmatprep.subr.mxu1 %v37336_v50  ;;  %29391 = vmatprep.subr.mxu0 %v37336_v50  ;;  %v14184_v36 = vpop.f32.mrf.mxu0 }
 0x42a   : > { %29415 = vmatpush3.msra.mxu1 %v37472_v10  ;;  %29392 = vmatpush3.msra.mxu0 %v37483_v62  ;;  %v14185_v20 = vadd.f32 %v14184_v36, %v14093_v42  ;;  %v29006_v37 = vpop.f32.mrf.mxu1  ;;  %v37486_v42 = vld [vmem:[#allocation24_spill] sm:$0xff]  ;;  %v37491_v36 = vld [vmem:[#allocation42_spill] sm:$0xff] }
 0x42b   : > { %29416 = vmatprep.subr.mxu1 %v37336_v50  ;;  %29393 = vmatprep.subr.mxu0 %v37336_v50  ;;  %v28983_v25 = vpop.f32.mrf.mxu0  ;;  %v37492_v37 = vld [vmem:[#allocation45_spill] sm:$0xff] }
 0x42c   : > { %29417 = vmatpush3.msra.mxu1 %v37474_v40  ;;  %29418 = vmatprep.mubr.msk.f32.mxu1 %vm31316_vm1, %v37336_v50  ;;  %v14268_v14 = vadd.f32 %v14267_v23, %v14185_v20  ;;  %v37485_v25 = vld [vmem:[#allocation21_spill] sm:$0xff]  ;;  %v37489_v20 = vld [vmem:[#allocation34_spill] sm:$0xff] }
 0x42d   : > { %29394 = vmatpush3.msra.mxu0 %v37484_v53  ;;  %29395 = vmatprep.mubr.msk.f32.mxu0 %vm31316_vm1, %v37336_v50  ;;  %v37490_v23 = vld [vmem:[#allocation38_spill] sm:$0xff] }
 0x42e   : > { %29419 = vmatmul.mubr.f32.vlgmr.msra.gmra.mxu1 %v34394_v51  ;;  %29444 = vmatprep.subr.mxu1 %v37336_v50  ;;  %v37488_v51 = vld [vmem:[#allocation30_spill] sm:$0xff] }
 0x42f   : > { %29396 = vmatmul.mubr.f32.vlgmr.msra.gmra.mxu0 %v34381_v59  ;;  %29421 = vmatprep.subr.mxu0 %v37336_v50  ;;  %v37487_v59 = vld [vmem:[#allocation27_spill] sm:$0xff] }
 0x430   : > { %29445 = vmatpush3.msra.mxu1 %v33092_v46  ;;  %29422 = vmatpush3.msra.mxu0 %v37485_v25 }
 0x431   : > { %29446 = vmatprep.subr.mxu1 %v37336_v50  ;;  %29423 = vmatprep.subr.mxu0 %v37336_v50 }
 0x432   : > { %29447 = vmatpush3.msra.mxu1 %v33103_v24  ;;  %29424 = vmatpush3.msra.mxu0 %v37486_v42 }
 0x433   : > { %29448 = vmatprep.subr.mxu1 %v37336_v50  ;;  %29425 = vmatprep.subr.mxu0 %v37336_v50 }
 0x434   : > { %29449 = vmatpush3.msra.mxu1 %v33119_v9  ;;  %29426 = vmatpush3.msra.mxu0 %v37487_v59 }
 0x435   : > { %29450 = vmatprep.subr.mxu1 %v37336_v50  ;;  %29427 = vmatprep.subr.mxu0 %v37336_v50 }
 0x436   : > { %29451 = vmatpush3.msra.mxu1 %v33131_v61  ;;  %29428 = vmatpush3.msra.mxu0 %v37488_v51  ;;  %v37493_v51 = vld [vmem:[#allocation18_spill] sm:$0xff] }
 0x437   : > { %29452 = vmatprep.subr.mxu1 %v37336_v50  ;;  %29429 = vmatprep.subr.mxu0 %v37336_v50  ;;  %v7866_v59 = vmul.f32 0.05, %v37493_v51  ;;  %vm7865_vm8 = vcmp.ge.f32.partialorder %v37493_v51, 0.0 }
 0x438   : > { %29453 = vmatpush3.msra.mxu1 %v37464_v35  ;;  %29430 = vmatpush3.msra.mxu0 %v37489_v20 }
 0x439   : > { %29454 = vmatprep.subr.mxu1 %v37336_v50  ;;  %29431 = vmatprep.subr.mxu0 %v37336_v50  ;;  %v7867_v62 = vsel %vm7865_vm8, %v37493_v51, %v7866_v59 }
 0x43a   : > { %29455 = vmatpush3.msra.mxu1 %v37466_v48  ;;  %29432 = vmatpush3.msra.mxu0 %v37490_v23 }
 0x43b   : > { %29456 = vmatprep.subr.mxu1 %v37336_v50  ;;  %29433 = vmatprep.subr.mxu0 %v37336_v50 }
 0x43c   : > { %29457 = vmatpush3.msra.mxu1 %v37468_v21  ;;  %29434 = vmatpush3.msra.mxu0 %v37491_v36  ;;  %v37494_v36 = vld [vmem:[#allocation48_spill] sm:$0xff]  ;;  %v37509_v21 = vld [vmem:[#allocation95_spill] sm:$0xff] }
 0x43d   : > { %29458 = vmatprep.subr.mxu1 %v37336_v50  ;;  %29435 = vmatprep.subr.mxu0 %v37336_v50 }
 0x43e   : > { %29459 = vmatpush3.msra.mxu1 %v37470_v30  ;;  %29436 = vmatpush3.msra.mxu0 %v37492_v37  ;;  %v14449_v20 = vpop.f32.mrf.mxu1  ;;  %v37495_v30 = vld [vmem:[#allocation50_spill] sm:$0xff] }
 0x43f   : > { %29460 = vmatprep.subr.mxu1 %v37336_v50  ;;  %29437 = vmatprep.subr.mxu0 %v37336_v50  ;;  %v14368_v23 = vpop.f32.mrf.mxu0 }
 0x440   : > { %29461 = vmatpush3.msra.mxu1 %v37472_v10  ;;  %29438 = vmatpush3.msra.mxu0 %v37494_v36  ;;  %v14369_v42 = vadd.f32 %v14368_v23, %v14268_v14  ;;  %v29052_v25 = vpop.f32.mrf.mxu1  ;;  %v16156_v14 = vsel %vm12185_vm4, %v7867_v62, 0  ;;  %v37499_v62 = vld [vmem:[#allocation85_spill] sm:$0xff]  ;;  %v37501_v23 = vld [vmem:[#allocation90_spill] sm:$0xff] }
 0x441   : > { %29462 = vmatprep.subr.mxu1 %v37336_v50  ;;  %29439 = vmatprep.subr.mxu0 %v37336_v50  ;;  %v29029_v37 = vpop.f32.mrf.mxu0  ;;  %v37496_v25 = vld [vmem:[#allocation74_spill] sm:$0xff]  ;;  %v34667_v59 = vand.u32 4294901760, %v16156_v14  ;;  %v37508_v36 = vld [vmem:[#allocation77_spill] sm:$0xff] }
 0x442   : > { %29463 = vmatpush3.msra.mxu1 %v37474_v40  ;;  %29464 = vmatprep.mubr.msk.f32.mxu1 %vm31316_vm1, %v37336_v50  ;;  %v34650_v53 = vadd.f32 %v14449_v20, %v14369_v42  ;;  %v37497_v42 = vld [vmem:[#allocation78_spill] sm:$0xff]  ;;  %v37500_v20 = vld [vmem:[#allocation88_spill] sm:$0xff]  ;;  %v37502_v37 = vld [vmem:[#allocation67_spill] sm:$0xff] }
 0x443   : > { %29440 = vmatpush3.msra.mxu0 %v37495_v30  ;;  %29441 = vmatprep.mubr.msk.f32.mxu0 %vm31316_vm1, %v37336_v50  ;;  %v34678_v51 = vsub.f32 %v16156_v14, %v34667_v59  ;;  %v37503_v14 = vld [vmem:[#allocation92_spill] sm:$0xff]  ;;  %v37507_v30 = vld [vmem:[#allocation94_spill] sm:$0xff] }
 0x444   : > { %29465 = vmatmul.mubr.f32.vlgmr.msra.gmra.mxu1 %v34370_v4  ;;  %29490 = vmatprep.subr.mxu1 %v37336_v50 }
 0x445   : > { %29442 = vmatmul.mubr.f32.vlgmr.msra.gmra.mxu0 %v34370_v4  ;;  %29467 = vmatprep.subr.mxu0 %v37336_v50  ;;  %v37498_v4 = vld [vmem:[#allocation82_spill] sm:$0xff] }
 0x446   : > { %29491 = vmatpush3.msra.mxu1 %v37496_v25  ;;  %29468 = vmatpush3.msra.mxu0 %v37413_v15 }
 0x447   : > { %29492 = vmatprep.subr.mxu1 %v37336_v50  ;;  %29469 = vmatprep.subr.mxu0 %v37336_v50 }
 0x448   : > { %29493 = vmatpush3.msra.mxu1 %v37497_v42  ;;  %29470 = vmatpush3.msra.mxu0 %v37415_v5  ;;  %v37506_v42 = vld [vmem:[#allocation73_spill] sm:$0xff] }
 0x449   : > { %29494 = vmatprep.subr.mxu1 %v37336_v50  ;;  %29471 = vmatprep.subr.mxu0 %v37336_v50 }
 0x44a   : > { %29495 = vmatpush3.msra.mxu1 %v37498_v4  ;;  %29472 = vmatpush3.msra.mxu0 %v37417_v39  ;;  %v37504_v4 = vld [vmem:[#allocation70_spill] sm:$0xff] }
 0x44b   : > { %29496 = vmatprep.subr.mxu1 %v37336_v50  ;;  %29473 = vmatprep.subr.mxu0 %v37336_v50 }
 0x44c   : > { %29497 = vmatpush3.msra.mxu1 %v37499_v62  ;;  %29474 = vmatpush3.msra.mxu0 %v37419_v38  ;;  %v37217_v62 = vand.u32 4294901760, %v34678_v51 }
 0x44d   : > { %29498 = vmatprep.subr.mxu1 %v37336_v50  ;;  %29475 = vmatprep.subr.mxu0 %v37336_v50 }
 0x44e   : > { %29499 = vmatpush3.msra.mxu1 %v37500_v20  ;;  %29476 = vmatpush3.msra.mxu0 %v37421_v57  ;;  %v37505_v20 = vld [vmem:[#allocation93_spill] sm:$0xff]  ;;  %v16236_v25 = vsub.f32 %v34678_v51, %v37217_v62 }
 0x44f   : > { %29500 = vmatprep.subr.mxu1 %v37336_v50  ;;  %29477 = vmatprep.subr.mxu0 %v37336_v50 }
 0x450   : > { %29501 = vmatpush3.msra.mxu1 %v37501_v23  ;;  %29478 = vmatpush3.msra.mxu0 %v37502_v37  ;;  %v16237_v62 = vand.u32 4294901760, %v16236_v25  ;;  %v37512_v25 = vld [vmem:[#allocation63_spill] sm:$0xff] }
 0x451   : > { %29502 = vmatprep.subr.mxu1 %v37336_v50  ;;  %29479 = vmatprep.subr.mxu0 %v37336_v50 }
 0x452   : > { %29503 = vmatpush3.msra.mxu1 %v37503_v14  ;;  %29480 = vmatpush3.msra.mxu0 %v37504_v4 }
 0x453   : > { %29504 = vmatprep.subr.mxu1 %v37336_v50  ;;  %29481 = vmatprep.subr.mxu0 %v37336_v50 }
 0x454   : > { %29505 = vmatpush3.msra.mxu1 %v37505_v20  ;;  %29482 = vmatpush3.msra.mxu0 %v37506_v42  ;;  %v14659_v23 = vpop.f32.mrf.mxu1 }
 0x455   : > { %29506 = vmatprep.subr.mxu1 %v37336_v50  ;;  %29483 = vmatprep.subr.mxu0 %v37336_v50  ;;  %v14538_v14 = vpop.f32.mrf.mxu0 }
 0x456   : > { %29507 = vmatpush3.msra.mxu1 %v37507_v30  ;;  %29484 = vmatpush3.msra.mxu0 %v37508_v36  ;;  %v14660_v40 = vadd.f32 %v14659_v23, %v14538_v14  ;;  %v29098_v10 = vpop.f32.mrf.mxu1  ;;  %v37514_v23 = vld [vmem:[#allocation69_spill] sm:$0xff]  ;;  %v37515_v14 = vld [vmem:[#allocation72_spill] sm:$0xff]  ;;  %v37519_v30 = vld [vmem:[#allocation87_spill] sm:$0xff] }
 0x457   : > { %29508 = vmatprep.subr.mxu1 %v37336_v50  ;;  %29485 = vmatprep.subr.mxu0 %v37336_v50  ;;  %v29075_v20 = vpop.f32.mrf.mxu0  ;;  %v37510_v10 = vld [vmem:[#allocation57_spill] sm:$0xff] }
 0x458   : > { %29509 = vmatpush3.msra.mxu1 %v37509_v21  ;;  %29510 = vmatprep.mubr.msk.f32.mxu1 %vm31316_vm1, %v37336_v50  ;;  %v37511_v20 = vld [vmem:[#allocation59_spill] sm:$0xff] }
 0x459   : > { %29486 = vmatpush3.msra.mxu0 %v37431_v63  ;;  %29487 = vmatprep.mubr.msk.f32.mxu0 %vm31316_vm1, %v37336_v50 }
 0x45a   : > { %29511 = vmatmul.mubr.f32.vlgmr.msra.gmra.mxu1 %v34667_v59  ;;  %29536 = vmatprep.subr.mxu1 %v37336_v50 }
 0x45b   : > { %29488 = vmatmul.mubr.f32.vlgmr.msra.gmra.mxu0 %v16237_v62  ;;  %29513 = vmatprep.subr.mxu0 %v37336_v50  ;;  %v37513_v62 = vld [vmem:[#allocation66_spill] sm:$0xff] }
 0x45c   : > { %29537 = vmatpush3.msra.mxu1 %v37413_v15  ;;  %29514 = vmatpush3.msra.mxu0 %v37510_v10 }
 0x45d   : > { %29538 = vmatprep.subr.mxu1 %v37336_v50  ;;  %29515 = vmatprep.subr.mxu0 %v37336_v50 }
 0x45e   : > { %29539 = vmatpush3.msra.mxu1 %v37415_v5  ;;  %29516 = vmatpush3.msra.mxu0 %v37511_v20  ;;  %v37518_v20 = vld [vmem:[#allocation84_spill] sm:$0xff] }
 0x45f   : > { %29540 = vmatprep.subr.mxu1 %v37336_v50  ;;  %29517 = vmatprep.subr.mxu0 %v37336_v50 }
 0x460   : > { %29541 = vmatpush3.msra.mxu1 %v37417_v39  ;;  %29518 = vmatpush3.msra.mxu0 %v37512_v25 }
 0x461   : > { %29542 = vmatprep.subr.mxu1 %v37336_v50  ;;  %29519 = vmatprep.subr.mxu0 %v37336_v50 }
 0x462   : > { %29543 = vmatpush3.msra.mxu1 %v37419_v38  ;;  %29520 = vmatpush3.msra.mxu0 %v37513_v62  ;;  %v37516_v62 = vld [vmem:[#allocation76_spill] sm:$0xff] }
 0x463   : > { %29544 = vmatprep.subr.mxu1 %v37336_v50  ;;  %29521 = vmatprep.subr.mxu0 %v37336_v50 }
 0x464   : > { %29545 = vmatpush3.msra.mxu1 %v37421_v57  ;;  %29522 = vmatpush3.msra.mxu0 %v37514_v23  ;;  %v37517_v23 = vld [vmem:[#allocation80_spill] sm:$0xff] }
 0x465   : > { %29546 = vmatprep.subr.mxu1 %v37336_v50  ;;  %29523 = vmatprep.subr.mxu0 %v37336_v50 }
 0x466   : > { %29547 = vmatpush3.msra.mxu1 %v37502_v37  ;;  %29524 = vmatpush3.msra.mxu0 %v37515_v14 }
 0x467   : > { %29548 = vmatprep.subr.mxu1 %v37336_v50  ;;  %29525 = vmatprep.subr.mxu0 %v37336_v50 }
 0x468   : > { %29549 = vmatpush3.msra.mxu1 %v37504_v4  ;;  %29526 = vmatpush3.msra.mxu0 %v37516_v62 }
 0x469   : > { %29550 = vmatprep.subr.mxu1 %v37336_v50  ;;  %29527 = vmatprep.subr.mxu0 %v37336_v50 }
 0x46a   : > { %29551 = vmatpush3.msra.mxu1 %v37506_v42  ;;  %29528 = vmatpush3.msra.mxu0 %v37517_v23  ;;  %v14834_v25 = vpop.f32.mrf.mxu1 }
 0x46b   : > { %29552 = vmatprep.subr.mxu1 %v37336_v50  ;;  %29529 = vmatprep.subr.mxu0 %v37336_v50  ;;  %v14751_v14 = vpop.f32.mrf.mxu0 }
 0x46c   : > { %29553 = vmatpush3.msra.mxu1 %v37508_v36  ;;  %29530 = vmatpush3.msra.mxu0 %v37518_v20  ;;  %v14752_v10 = vadd.f32 %v14751_v14, %v14660_v40  ;;  %v29144_v62 = vpop.f32.mrf.mxu1  ;;  %v37520_v20 = vand.u32 4294901760, %v34678_v51  ;;  %v37521_v40 = vld [vmem:[#allocation62_spill] sm:$0xff] }
 0x46d   : > { %29554 = vmatprep.subr.mxu1 %v37336_v50  ;;  %29531 = vmatprep.subr.mxu0 %v37336_v50  ;;  %v29121_v21 = vpop.f32.mrf.mxu0  ;;  %v37527_v62 = vld [vmem:[#allocation83_spill] sm:$0xff]  ;;  %v37528_v14 = vld [vmem:[#allocation86_spill] sm:$0xff] }
 0x46e   : > { %29555 = vmatpush3.msra.mxu1 %v37431_v63  ;;  %29556 = vmatprep.mubr.msk.f32.mxu1 %vm31316_vm1, %v37336_v50  ;;  %v14835_v23 = vadd.f32 %v14834_v25, %v14752_v10  ;;  %v37522_v21 = vld [vmem:[#allocation65_spill] sm:$0xff]  ;;  %v37524_v10 = vld [vmem:[#allocation71_spill] sm:$0xff] }
 0x46f   : > { %29532 = vmatpush3.msra.mxu0 %v37519_v30  ;;  %29533 = vmatprep.mubr.msk.f32.mxu0 %vm31316_vm1, %v37336_v50  ;;  %v37526_v25 = vld [vmem:[#allocation79_spill] sm:$0xff] }
 0x470   : > { %29557 = vmatmul.mubr.f32.vlgmr.msra.gmra.mxu1 %v37520_v20  ;;  %29582 = vmatprep.subr.mxu1 %v37336_v50  ;;  %v37525_v20 = vld [vmem:[#allocation75_spill] sm:$0xff] }
 0x471   : > { %29534 = vmatmul.mubr.f32.vlgmr.msra.gmra.mxu0 %v34678_v51  ;;  %29559 = vmatprep.subr.mxu0 %v37336_v50  ;;  %v37523_v51 = vld [vmem:[#allocation68_spill] sm:$0xff] }
 0x472   : > { %29583 = vmatpush3.msra.mxu1 %v37413_v15  ;;  %29560 = vmatpush3.msra.mxu0 %v37521_v40  ;;  %v14453_v40 = vadd.f32 %v34650_v53, %v34339_v17 }
 0x473   : > { %29584 = vmatprep.subr.mxu1 %v37336_v50  ;;  %29561 = vmatprep.subr.mxu0 %v37336_v50 }
 0x474   : > { %29585 = vmatpush3.msra.mxu1 %v37415_v5  ;;  %29562 = vmatpush3.msra.mxu0 %v37522_v21 }
 0x475   : > { %29586 = vmatprep.subr.mxu1 %v37336_v50  ;;  %29563 = vmatprep.subr.mxu0 %v37336_v50 }
 0x476   : > { %29587 = vmatpush3.msra.mxu1 %v37417_v39  ;;  %29564 = vmatpush3.msra.mxu0 %v37523_v51 }
 0x477   : > { %29588 = vmatprep.subr.mxu1 %v37336_v50  ;;  %29565 = vmatprep.subr.mxu0 %v37336_v50 }
 0x478   : > { %29589 = vmatpush3.msra.mxu1 %v37419_v38  ;;  %29566 = vmatpush3.msra.mxu0 %v37524_v10  ;;  %v37529_v10 = vld [vmem:[#allocation60_spill] sm:$0xff] }
 0x479   : > { %29590 = vmatprep.subr.mxu1 %v37336_v50  ;;  %29567 = vmatprep.subr.mxu0 %v37336_v50  ;;  %v9294_v51 = vmul.f32 0.05, %v37529_v10  ;;  %vm9293_vm9 = vcmp.ge.f32.partialorder %v37529_v10, 0.0 }
 0x47a   : > { %29591 = vmatpush3.msra.mxu1 %v37421_v57  ;;  %29568 = vmatpush3.msra.mxu0 %v37525_v20 }
 0x47b   : > { %29592 = vmatprep.subr.mxu1 %v37336_v50  ;;  %29569 = vmatprep.subr.mxu0 %v37336_v50 }
 0x47c   : > { %29593 = vmatpush3.msra.mxu1 %v37502_v37  ;;  %29570 = vmatpush3.msra.mxu0 %v37526_v25 }
 0x47d   : > { %29594 = vmatprep.subr.mxu1 %v37336_v50  ;;  %29571 = vmatprep.subr.mxu0 %v37336_v50 }
 0x47e   : > { %29595 = vmatpush3.msra.mxu1 %v37504_v4  ;;  %29572 = vmatpush3.msra.mxu0 %v37527_v62 }
 0x47f   : > { %29596 = vmatprep.subr.mxu1 %v37336_v50  ;;  %29573 = vmatprep.subr.mxu0 %v37336_v50 }
 0x480   : > { %29597 = vmatpush3.msra.mxu1 %v37506_v42  ;;  %29574 = vmatpush3.msra.mxu0 %v37528_v14  ;;  %v15016_v20 = vpop.f32.mrf.mxu1 }
 0x481   : > { %29598 = vmatprep.subr.mxu1 %v37336_v50  ;;  %29575 = vmatprep.subr.mxu0 %v37336_v50  ;;  %v14935_v25 = vpop.f32.mrf.mxu0 }
 0x482   : > { %29599 = vmatpush3.msra.mxu1 %v37508_v36  ;;  %29576 = vmatpush3.msra.mxu0 %v37453_v49  ;;  %v14936_v62 = vadd.f32 %v14935_v25, %v14835_v23  ;;  %v29190_v21 = vpop.f32.mrf.mxu1  ;;  %v9295_v36 = vsel %vm9293_vm9, %v37529_v10, %v9294_v51  ;;  %v37533_v25 = vld [vmem:[#allocation115_spill] sm:$0xff] }
 0x483   : > { %29600 = vmatprep.subr.mxu1 %v37336_v50  ;;  %29577 = vmatprep.subr.mxu0 %v37336_v50  ;;  %v29167_v14 = vpop.f32.mrf.mxu0  ;;  %v16723_v53 = vsel %vm12185_vm4, %v9295_v36, 0  ;;  %v37530_v36 = vld [vmem:[#allocation111_spill] sm:$0xff]  ;;  %v37532_v21 = vld [vmem:[#allocation114_spill] sm:$0xff] }
 0x484   : > { %29601 = vmatpush3.msra.mxu1 %v37431_v63  ;;  %29602 = vmatprep.mubr.msk.f32.mxu1 %vm31316_vm1, %v37336_v50  ;;  %v15017_v30 = vadd.f32 %v15016_v20, %v14936_v62  ;;  %v34822_v17 = vand.u32 4294901760, %v16723_v53 }
 0x485   : > { %29578 = vmatpush3.msra.mxu0 %v37454_v33  ;;  %29579 = vmatprep.mubr.msk.f32.mxu0 %vm31316_vm1, %v37336_v50 }
 0x486   : > { %29603 = vmatmul.mubr.f32.vlgmr.msra.gmra.mxu1 %v34667_v59  ;;  %29628 = vmatprep.subr.mxu1 %v37336_v50  ;;  %v34811_v23 = vadd.f32 %v15017_v30, %v14453_v40  ;;  %v34833_v30 = vsub.f32 %v16723_v53, %v34822_v17  ;;  %v37531_v40 = vld [vmem:[#allocation113_spill] sm:$0xff] }
 0x487   : > { %29580 = vmatmul.mubr.f32.vlgmr.msra.gmra.mxu0 %v34667_v59  ;;  %29605 = vmatprep.subr.mxu0 %v37336_v50 }
 0x488   : > { %29629 = vmatpush3.msra.mxu1 %v37455_v47  ;;  %29606 = vmatpush3.msra.mxu0 %v33708_v12  ;;  %v34846_v59 = vand.u32 4294901760, %v34833_v30 }
 0x489   : > { %29630 = vmatprep.subr.mxu1 %v37336_v50  ;;  %29607 = vmatprep.subr.mxu0 %v37336_v50 }
 0x48a   : > { %29631 = vmatpush3.msra.mxu1 %v37456_v13  ;;  %29608 = vmatpush3.msra.mxu0 %v33717_v60  ;;  %v16803_v10 = vsub.f32 %v34833_v30, %v34846_v59 }
 0x48b   : > { %29632 = vmatprep.subr.mxu1 %v37336_v50  ;;  %29609 = vmatprep.subr.mxu0 %v37336_v50 }
 0x48c   : > { %29633 = vmatpush3.msra.mxu1 %v37457_v28  ;;  %29610 = vmatpush3.msra.mxu0 %v33726_v22 }
 0x48d   : > { %29634 = vmatprep.subr.mxu1 %v37336_v50  ;;  %29611 = vmatprep.subr.mxu0 %v37336_v50 }
 0x48e   : > { %29635 = vmatpush3.msra.mxu1 %v37458_v58  ;;  %29612 = vmatpush3.msra.mxu0 %v33743_v54 }
 0x48f   : > { %29636 = vmatprep.subr.mxu1 %v37336_v50  ;;  %29613 = vmatprep.subr.mxu0 %v37336_v50 }
 0x490   : > { %29637 = vmatpush3.msra.mxu1 %v37459_v45  ;;  %29614 = vmatpush3.msra.mxu0 %v33758_v3 }
 0x491   : > { %29638 = vmatprep.subr.mxu1 %v37336_v50  ;;  %29615 = vmatprep.subr.mxu0 %v37336_v50 }
 0x492   : > { %29639 = vmatpush3.msra.mxu1 %v37530_v36  ;;  %29616 = vmatpush3.msra.mxu0 %v33773_v34 }
 0x493   : > { %29640 = vmatprep.subr.mxu1 %v37336_v50  ;;  %29617 = vmatprep.subr.mxu0 %v37336_v50 }
 0x494   : > { %29641 = vmatpush3.msra.mxu1 %v37531_v40  ;;  %29618 = vmatpush3.msra.mxu0 %v33795_v11 }
 0x495   : > { %29642 = vmatprep.subr.mxu1 %v37336_v50  ;;  %29619 = vmatprep.subr.mxu0 %v37336_v50 }
 0x496   : > { %29643 = vmatpush3.msra.mxu1 %v37532_v21  ;;  %29620 = vmatpush3.msra.mxu0 %v33812_v2  ;;  %v15226_v51 = vpop.f32.mrf.mxu1 }
 0x497   : > { %29644 = vmatprep.subr.mxu1 %v37336_v50  ;;  %29621 = vmatprep.subr.mxu0 %v37336_v50  ;;  %v15105_v20 = vpop.f32.mrf.mxu0 }
 0x498   : > { %29645 = vmatpush3.msra.mxu1 %v37533_v25  ;;  %29622 = vmatpush3.msra.mxu0 %v33833_v56  ;;  %v15227_v62 = vadd.f32 %v15226_v51, %v15105_v20  ;;  %v29236_v14 = vpop.f32.mrf.mxu1  ;;  %v34868_v25 = vand.u32 4294901760, %v16803_v10  ;;  %v37534_v51 = vld [vmem:[#allocation99_spill] sm:$0xff]  ;;  %v37535_v10 = vld [vmem:[#allocation101_spill] sm:$0xff]  ;;  %v37536_v20 = vld [vmem:[#allocation104_spill] sm:$0xff] }
 0x499   : > { %29646 = vmatprep.subr.mxu1 %v37336_v50  ;;  %29623 = vmatprep.subr.mxu0 %v37336_v50  ;;  %v29213_v53 = vpop.f32.mrf.mxu0 }
 0x49a   : > { %29647 = vmatpush3.msra.mxu1 %v33939_v43  ;;  %29648 = vmatprep.mubr.msk.f32.mxu1 %vm31316_vm1, %v37336_v50 }
 0x49b   : > { %29624 = vmatpush3.msra.mxu0 %v33850_v27  ;;  %29625 = vmatprep.mubr.msk.f32.mxu0 %vm31316_vm1, %v37336_v50 }
 0x49c   : > { %29649 = vmatmul.mubr.f32.vlgmr.msra.gmra.mxu1 %v34822_v17  ;;  %29674 = vmatprep.subr.mxu1 %v37336_v50 }
 0x49d   : > { %29626 = vmatmul.mubr.f32.vlgmr.msra.gmra.mxu0 %v34868_v25  ;;  %29651 = vmatprep.subr.mxu0 %v37336_v50 }
 0x49e   : > { %29675 = vmatpush3.msra.mxu1 %v33708_v12  ;;  %29652 = vmatpush3.msra.mxu0 %v33724_v41 }
 0x49f   : > { %29676 = vmatprep.subr.mxu1 %v37336_v50  ;;  %29653 = vmatprep.subr.mxu0 %v37336_v50 }
 0x4a0   : > { %29677 = vmatpush3.msra.mxu1 %v33717_v60  ;;  %29654 = vmatpush3.msra.mxu0 %v37461_v31 }
 0x4a1   : > { %29678 = vmatprep.subr.mxu1 %v37336_v50  ;;  %29655 = vmatprep.subr.mxu0 %v37336_v50 }
 0x4a2   : > { %29679 = vmatpush3.msra.mxu1 %v33726_v22  ;;  %29656 = vmatpush3.msra.mxu0 %v33751_v0 }
 0x4a3   : > { %29680 = vmatprep.subr.mxu1 %v37336_v50  ;;  %29657 = vmatprep.subr.mxu0 %v37336_v50 }
 0x4a4   : > { %29681 = vmatpush3.msra.mxu1 %v33743_v54  ;;  %29658 = vmatpush3.msra.mxu0 %v33771_v32 }
 0x4a5   : > { %29682 = vmatprep.subr.mxu1 %v37336_v50  ;;  %29659 = vmatprep.subr.mxu0 %v37336_v50 }
 0x4a6   : > { %29683 = vmatpush3.msra.mxu1 %v33758_v3  ;;  %29660 = vmatpush3.msra.mxu0 %v33793_v52 }
 0x4a7   : > { %29684 = vmatprep.subr.mxu1 %v37336_v50  ;;  %29661 = vmatprep.subr.mxu0 %v37336_v50 }
 0x4a8   : > { %29685 = vmatpush3.msra.mxu1 %v33773_v34  ;;  %29662 = vmatpush3.msra.mxu0 %v37534_v51 }
 0x4a9   : > { %29686 = vmatprep.subr.mxu1 %v37336_v50  ;;  %29663 = vmatprep.subr.mxu0 %v37336_v50 }
 0x4aa   : > { %29687 = vmatpush3.msra.mxu1 %v33795_v11  ;;  %29664 = vmatpush3.msra.mxu0 %v37535_v10 }
 0x4ab   : > { %29688 = vmatprep.subr.mxu1 %v37336_v50  ;;  %29665 = vmatprep.subr.mxu0 %v37336_v50 }
 0x4ac   : > { %29689 = vmatpush3.msra.mxu1 %v33812_v2  ;;  %29666 = vmatpush3.msra.mxu0 %v37536_v20  ;;  %v15401_v14 = vpop.f32.mrf.mxu1 }
 0x4ad   : > { %29690 = vmatprep.subr.mxu1 %v37336_v50  ;;  %29667 = vmatprep.subr.mxu0 %v37336_v50  ;;  %v15318_v53 = vpop.f32.mrf.mxu0 }
 0x4ae   : > { %29691 = vmatpush3.msra.mxu1 %v33833_v56  ;;  %29668 = vmatpush3.msra.mxu0 %v33865_v26  ;;  %v15319_v51 = vadd.f32 %v15318_v53, %v15227_v62  ;;  %v29282_v10 = vpop.f32.mrf.mxu1 }
 0x4af   : > { %29692 = vmatprep.subr.mxu1 %v37336_v50  ;;  %29669 = vmatprep.subr.mxu0 %v37336_v50  ;;  %v29259_v52 = vpop.f32.mrf.mxu0 }
 0x4b0   : > { %29693 = vmatpush3.msra.mxu1 %v33850_v27  ;;  %29694 = vmatprep.mubr.msk.f32.mxu1 %vm31316_vm1, %v37336_v50  ;;  %v15402_v20 = vadd.f32 %v15401_v14, %v15319_v51 }
 0x4b1   : > { %29670 = vmatpush3.msra.mxu0 %v33879_v6  ;;  %29671 = vmatprep.mubr.msk.f32.mxu0 %vm31316_vm1, %v37336_v50 }
 0x4b2   : > { %29695 = vmatmul.mubr.f32.vlgmr.msra.gmra.mxu1 %v34846_v59  ;;  %29720 = vmatprep.subr.mxu1 %v37336_v50 }
 0x4b3   : > { %29672 = vmatmul.mubr.f32.vlgmr.msra.gmra.mxu0 %v34833_v30  ;;  %29697 = vmatprep.subr.mxu0 %v37336_v50 }
 0x4b4   : > { %29721 = vmatpush3.msra.mxu1 %v33708_v12  ;;  %29698 = vmatpush3.msra.mxu0 %v33748_v8 }
 0x4b5   : > { %29722 = vmatprep.subr.mxu1 %v37336_v50  ;;  %29699 = vmatprep.subr.mxu0 %v37336_v50 }
 0x4b6   : > { %29723 = vmatpush3.msra.mxu1 %v33717_v60  ;;  %29700 = vmatpush3.msra.mxu0 %v33763_v16 }
 0x4b7   : > { %29724 = vmatprep.subr.mxu1 %v37336_v50  ;;  %29701 = vmatprep.subr.mxu0 %v37336_v50 }
 0x4b8   : > { %29725 = vmatpush3.msra.mxu1 %v33726_v22  ;;  %29702 = vmatpush3.msra.mxu0 %v33781_v1 }
 0x4b9   : > { %29726 = vmatprep.subr.mxu1 %v37336_v50  ;;  %29703 = vmatprep.subr.mxu0 %v37336_v50 }
 0x4ba   : > { %29727 = vmatpush3.msra.mxu1 %v33743_v54  ;;  %29704 = vmatpush3.msra.mxu0 %v33807_v19 }
 0x4bb   : > { %29728 = vmatprep.subr.mxu1 %v37336_v50  ;;  %29705 = vmatprep.subr.mxu0 %v37336_v50 }
 0x4bc   : > { %29729 = vmatpush3.msra.mxu1 %v33758_v3  ;;  %29706 = vmatpush3.msra.mxu0 %v33828_v55 }
 0x4bd   : > { %29730 = vmatprep.subr.mxu1 %v37336_v50  ;;  %29707 = vmatprep.subr.mxu0 %v37336_v50 }
 0x4be   : > { %29731 = vmatpush3.msra.mxu1 %v33773_v34  ;;  %29708 = vmatpush3.msra.mxu0 %v33845_v29  ;;  %v37562_v29 = vld [vmem:[#allocation46_spill] sm:$0xff] }
 0x4bf   : > { %29732 = vmatprep.subr.mxu1 %v37336_v50  ;;  %29709 = vmatprep.subr.mxu0 %v37336_v50 }
 0x4c0   : > { %29733 = vmatpush3.msra.mxu1 %v33795_v11  ;;  %29710 = vmatpush3.msra.mxu0 %v33862_v18  ;;  %v37552_v18 = vld [vmem:[#allocation40_spill] sm:$0xff] }
 0x4c1   : > { %29734 = vmatprep.subr.mxu1 %v37336_v50  ;;  %29711 = vmatprep.subr.mxu0 %v37336_v50 }
 0x4c2   : > { %29735 = vmatpush3.msra.mxu1 %v33812_v2  ;;  %29712 = vmatpush3.msra.mxu0 %v33876_v44  ;;  %v15583_v52 = vpop.f32.mrf.mxu1  ;;  %v37537_v44 = vld [vmem:[#allocation112_spill] sm:$0xff] }
 0x4c3   : > { %29736 = vmatprep.subr.mxu1 %v37336_v50  ;;  %29713 = vmatprep.subr.mxu0 %v37336_v50  ;;  %v15502_v62 = vpop.f32.mrf.mxu0 }
 0x4c4   : > { %29737 = vmatpush3.msra.mxu1 %v33833_v56  ;;  %29714 = vmatpush3.msra.mxu0 %v33892_v7  ;;  %v15503_v51 = vadd.f32 %v15502_v62, %v15402_v20  ;;  %v29328_v10 = vpop.f32.mrf.mxu1  ;;  %v37539_v62 = vld [vmem:[#allocation33_spill] sm:$0xff] }
 0x4c5   : > { %29738 = vmatprep.subr.mxu1 %v37336_v50  ;;  %29715 = vmatprep.subr.mxu0 %v37336_v50  ;;  %v29305_v14 = vpop.f32.mrf.mxu0  ;;  %v37543_v10 = vld [vmem:[#allocation47_spill] sm:$0xff] }
 0x4c6   : > { %29739 = vmatpush3.msra.mxu1 %v33850_v27  ;;  %29740 = vmatprep.mubr.msk.f32.mxu1 %vm31316_vm1, %v37336_v50  ;;  %v15584_v53 = vadd.f32 %v15583_v52, %v15503_v51  ;;  %v37540_v52 = vld [vmem:[#allocation37_spill] sm:$0xff]  ;;  %v37542_v51 = vld [vmem:[#allocation44_spill] sm:$0xff] }
 0x4c7   : > { %29716 = vmatpush3.msra.mxu0 %v37537_v44  ;;  %29717 = vmatprep.mubr.msk.f32.mxu0 %vm31316_vm1, %v37336_v50  ;;  %v37544_v14 = vld [vmem:[#allocation49_spill] sm:$0xff] }
 0x4c8   : > { %29741 = vmatmul.mubr.f32.vlgmr.msra.gmra.mxu1 %v34822_v17  ;;  %29766 = vmatprep.subr.mxu1 %v37336_v50  ;;  %v34965_v20 = vadd.f32 %v15584_v53, %v34811_v23  ;;  %v37541_v23 = vld [vmem:[#allocation41_spill] sm:$0xff]  ;;  %v37545_v53 = vld [vmem:[#allocation51_spill] sm:$0xff] }
 0x4c9   : > { %29718 = vmatmul.mubr.f32.vlgmr.msra.gmra.mxu0 %v34822_v17  ;;  %29743 = vmatprep.subr.mxu0 %v37336_v50 }
 0x4ca   : > { %37538 = vst [vmem:[#allocation55_spill] sm:$0xff] %v34965_v20  ;;  %29767 = vmatpush3.msra.mxu1 %v37539_v62  ;;  %29744 = vmatpush3.msra.mxu0 %v33092_v46  ;;  %v37546_v62 = vld [vmem:[#allocation29_spill] sm:$0xff]  ;;  %v37550_v20 = vld [vmem:[#allocation36_spill] sm:$0xff] }
 0x4cb   : > { %29768 = vmatprep.subr.mxu1 %v37336_v50  ;;  %29745 = vmatprep.subr.mxu0 %v37336_v50 }
 0x4cc   : > { %29769 = vmatpush3.msra.mxu1 %v37540_v52  ;;  %29746 = vmatpush3.msra.mxu0 %v33103_v24  ;;  %v37547_v52 = vld [vmem:[#allocation52_spill] sm:$0xff] }
 0x4cd   : > { %29770 = vmatprep.subr.mxu1 %v37336_v50  ;;  %29747 = vmatprep.subr.mxu0 %v37336_v50 }
 0x4ce   : > { %29771 = vmatpush3.msra.mxu1 %v37541_v23  ;;  %29748 = vmatpush3.msra.mxu0 %v33119_v9  ;;  %v37548_v23 = vld [vmem:[#allocation32_spill] sm:$0xff] }
 0x4cf   : > { %29772 = vmatprep.subr.mxu1 %v37336_v50  ;;  %29749 = vmatprep.subr.mxu0 %v37336_v50 }
 0x4d0   : > { %29773 = vmatpush3.msra.mxu1 %v37542_v51  ;;  %29750 = vmatpush3.msra.mxu0 %v33131_v61 }
 0x4d1   : > { %29774 = vmatprep.subr.mxu1 %v37336_v50  ;;  %29751 = vmatprep.subr.mxu0 %v37336_v50 }
 0x4d2   : > { %29775 = vmatpush3.msra.mxu1 %v37543_v10  ;;  %29752 = vmatpush3.msra.mxu0 %v37464_v35 }
 0x4d3   : > { %29776 = vmatprep.subr.mxu1 %v37336_v50  ;;  %29753 = vmatprep.subr.mxu0 %v37336_v50 }
 0x4d4   : > { %29777 = vmatpush3.msra.mxu1 %v37544_v14  ;;  %29754 = vmatpush3.msra.mxu0 %v37466_v48  ;;  %v37549_v14 = vld [vmem:[#allocation53_spill] sm:$0xff] }
 0x4d5   : > { %29778 = vmatprep.subr.mxu1 %v37336_v50  ;;  %29755 = vmatprep.subr.mxu0 %v37336_v50 }
 0x4d6   : > { %29779 = vmatpush3.msra.mxu1 %v37545_v53  ;;  %29756 = vmatpush3.msra.mxu0 %v37546_v62 }
 0x4d7   : > { %29780 = vmatprep.subr.mxu1 %v37336_v50  ;;  %29757 = vmatprep.subr.mxu0 %v37336_v50 }
 0x4d8   : > { %29781 = vmatpush3.msra.mxu1 %v37547_v52  ;;  %29758 = vmatpush3.msra.mxu0 %v37548_v23  ;;  %v15793_v51 = vpop.f32.mrf.mxu1  ;;  %v37551_v52 = vld [vmem:[#allocation54_spill] sm:$0xff] }
 0x4d9   : > { %29782 = vmatprep.subr.mxu1 %v37336_v50  ;;  %29759 = vmatprep.subr.mxu0 %v37336_v50  ;;  %v15672_v10 = vpop.f32.mrf.mxu0 }
 0x4da   : > { %29783 = vmatpush3.msra.mxu1 %v37549_v14  ;;  %29760 = vmatpush3.msra.mxu0 %v37550_v20  ;;  %v15794_v53 = vadd.f32 %v15793_v51, %v15672_v10  ;;  %v29374_v44 = vpop.f32.mrf.mxu1  ;;  %v37556_v51 = vld [vmem:[#allocation25_spill] sm:$0xff]  ;;  %v37557_v10 = vld [vmem:[#allocation28_spill] sm:$0xff]  ;;  %v37558_v14 = vld [vmem:[#allocation31_spill] sm:$0xff] }
 0x4db   : > { %29784 = vmatprep.subr.mxu1 %v37336_v50  ;;  %29761 = vmatprep.subr.mxu0 %v37336_v50  ;;  %v29351_v7 = vpop.f32.mrf.mxu0  ;;  %v37553_v44 = vld [vmem:[#allocation19_spill] sm:$0xff] }
 0x4dc   : > { %29785 = vmatpush3.msra.mxu1 %v37551_v52  ;;  %29786 = vmatprep.mubr.msk.f32.mxu1 %vm31316_vm1, %v37336_v50  ;;  %v37554_v7 = vld [vmem:[#allocation20_spill] sm:$0xff]  ;;  %v37559_v52 = vld [vmem:[#allocation35_spill] sm:$0xff] }
 0x4dd   : > { %29762 = vmatpush3.msra.mxu0 %v37552_v18  ;;  %29763 = vmatprep.mubr.msk.f32.mxu0 %vm31316_vm1, %v37336_v50 }
 0x4de   : > { %29787 = vmatmul.mubr.f32.vlgmr.msra.gmra.mxu1 %v34822_v17  ;;  %29812 = vmatprep.subr.mxu1 %v37336_v50 }
 0x4df   : > { %29764 = vmatmul.mubr.f32.vlgmr.msra.gmra.mxu0 %v34868_v25  ;;  %29789 = vmatprep.subr.mxu0 %v37336_v50  ;;  %v37555_v25 = vld [vmem:[#allocation22_spill] sm:$0xff] }
 0x4e0   : > { %29813 = vmatpush3.msra.mxu1 %v33092_v46  ;;  %29790 = vmatpush3.msra.mxu0 %v37553_v44  ;;  %v37560_v44 = vld [vmem:[#allocation39_spill] sm:$0xff] }
 0x4e1   : > { %29814 = vmatprep.subr.mxu1 %v37336_v50  ;;  %29791 = vmatprep.subr.mxu0 %v37336_v50 }
 0x4e2   : > { %29815 = vmatpush3.msra.mxu1 %v33103_v24  ;;  %29792 = vmatpush3.msra.mxu0 %v37554_v7 }
 0x4e3   : > { %29816 = vmatprep.subr.mxu1 %v37336_v50  ;;  %29793 = vmatprep.subr.mxu0 %v37336_v50 }
 0x4e4   : > { %29817 = vmatpush3.msra.mxu1 %v33119_v9  ;;  %29794 = vmatpush3.msra.mxu0 %v37555_v25 }
 0x4e5   : > { %29818 = vmatprep.subr.mxu1 %v37336_v50  ;;  %29795 = vmatprep.subr.mxu0 %v37336_v50 }
 0x4e6   : > { %29819 = vmatpush3.msra.mxu1 %v33131_v61  ;;  %29796 = vmatpush3.msra.mxu0 %v37556_v51  ;;  %v37561_v51 = vld [vmem:[#allocation43_spill] sm:$0xff] }
 0x4e7   : > { %29820 = vmatprep.subr.mxu1 %v37336_v50  ;;  %29797 = vmatprep.subr.mxu0 %v37336_v50 }
 0x4e8   : > { %29821 = vmatpush3.msra.mxu1 %v37464_v35  ;;  %29798 = vmatpush3.msra.mxu0 %v37557_v10 }
 0x4e9   : > { %29822 = vmatprep.subr.mxu1 %v37336_v50  ;;  %29799 = vmatprep.subr.mxu0 %v37336_v50 }
 0x4ea   : > { %29823 = vmatpush3.msra.mxu1 %v37466_v48  ;;  %29800 = vmatpush3.msra.mxu0 %v37558_v14 }
 0x4eb   : > { %29824 = vmatprep.subr.mxu1 %v37336_v50  ;;  %29801 = vmatprep.subr.mxu0 %v37336_v50 }
 0x4ec   : > { %29825 = vmatpush3.msra.mxu1 %v37546_v62  ;;  %29802 = vmatpush3.msra.mxu0 %v37559_v52 }
 0x4ed   : > { %29826 = vmatprep.subr.mxu1 %v37336_v50  ;;  %29803 = vmatprep.subr.mxu0 %v37336_v50 }
 0x4ee   : > { %29827 = vmatpush3.msra.mxu1 %v37548_v23  ;;  %29804 = vmatpush3.msra.mxu0 %v37560_v44  ;;  %v15968_v7 = vpop.f32.mrf.mxu1 }
 0x4ef   : > { %29828 = vmatprep.subr.mxu1 %v37336_v50  ;;  %29805 = vmatprep.subr.mxu0 %v37336_v50  ;;  %v15885_v25 = vpop.f32.mrf.mxu0 }
 0x4f0   : > { %29829 = vmatpush3.msra.mxu1 %v37550_v20  ;;  %29806 = vmatpush3.msra.mxu0 %v37561_v51  ;;  %v15886_v10 = vadd.f32 %v15885_v25, %v15794_v53  ;;  %v29420_v14 = vpop.f32.mrf.mxu1  ;;  %v37563_v53 = vld [vmem:[#allocation21_spill] sm:$0xff] }
 0x4f1   : > { %29830 = vmatprep.subr.mxu1 %v37336_v50  ;;  %29807 = vmatprep.subr.mxu0 %v37336_v50  ;;  %v29397_v52 = vpop.f32.mrf.mxu0 }
 0x4f2   : > { %29831 = vmatpush3.msra.mxu1 %v37552_v18  ;;  %29832 = vmatprep.mubr.msk.f32.mxu1 %vm31316_vm1, %v37336_v50  ;;  %v15969_v44 = vadd.f32 %v15968_v7, %v15886_v10 }
 0x4f3   : > { %29808 = vmatpush3.msra.mxu0 %v37562_v29  ;;  %29809 = vmatprep.mubr.msk.f32.mxu0 %vm31316_vm1, %v37336_v50  ;;  %v37564_v29 = vld [vmem:[#allocation24_spill] sm:$0xff] }
 0x4f4   : > { %29833 = vmatmul.mubr.f32.vlgmr.msra.gmra.mxu1 %v34846_v59  ;;  %29858 = vmatprep.subr.mxu1 %v37336_v50 }
 0x4f5   : > { %29810 = vmatmul.mubr.f32.vlgmr.msra.gmra.mxu0 %v34833_v30  ;;  %29835 = vmatprep.subr.mxu0 %v37336_v50  ;;  %v37565_v30 = vld [vmem:[#allocation27_spill] sm:$0xff] }
 0x4f6   : > { %29859 = vmatpush3.msra.mxu1 %v33092_v46  ;;  %29836 = vmatpush3.msra.mxu0 %v37563_v53  ;;  %v37566_v46 = vld [vmem:[#allocation30_spill] sm:$0xff] }
 0x4f7   : > { %29860 = vmatprep.subr.mxu1 %v37336_v50  ;;  %29837 = vmatprep.subr.mxu0 %v37336_v50  ;;  %v37573_v53 = vld [vmem:[#allocation50_spill] sm:$0xff] }
 0x4f8   : > { %29861 = vmatpush3.msra.mxu1 %v33103_v24  ;;  %29838 = vmatpush3.msra.mxu0 %v37564_v29  ;;  %v37567_v24 = vld [vmem:[#allocation34_spill] sm:$0xff] }
 0x4f9   : > { %29862 = vmatprep.subr.mxu1 %v37336_v50  ;;  %29839 = vmatprep.subr.mxu0 %v37336_v50 }
 0x4fa   : > { %29863 = vmatpush3.msra.mxu1 %v33119_v9  ;;  %29840 = vmatpush3.msra.mxu0 %v37565_v30  ;;  %v37568_v9 = vld [vmem:[#allocation38_spill] sm:$0xff]  ;;  %v37577_v30 = vld [vmem:[#allocation85_spill] sm:$0xff] }
 0x4fb   : > { %29864 = vmatprep.subr.mxu1 %v37336_v50  ;;  %29841 = vmatprep.subr.mxu0 %v37336_v50 }
 0x4fc   : > { %29865 = vmatpush3.msra.mxu1 %v33131_v61  ;;  %29842 = vmatpush3.msra.mxu0 %v37566_v46  ;;  %v37569_v61 = vld [vmem:[#allocation42_spill] sm:$0xff] }
 0x4fd   : > { %29866 = vmatprep.subr.mxu1 %v37336_v50  ;;  %29843 = vmatprep.subr.mxu0 %v37336_v50 }
 0x4fe   : > { %29867 = vmatpush3.msra.mxu1 %v37464_v35  ;;  %29844 = vmatpush3.msra.mxu0 %v37567_v24  ;;  %v37570_v35 = vld [vmem:[#allocation45_spill] sm:$0xff]  ;;  %v37578_v24 = vld [vmem:[#allocation88_spill] sm:$0xff] }
 0x4ff   : > { %29868 = vmatprep.subr.mxu1 %v37336_v50  ;;  %29845 = vmatprep.subr.mxu0 %v37336_v50 }
 0x500   : > { %29869 = vmatpush3.msra.mxu1 %v37466_v48  ;;  %29846 = vmatpush3.msra.mxu0 %v37568_v9  ;;  %v37571_v48 = vld [vmem:[#allocation97_spill] sm:$0xff]  ;;  %v37579_v9 = vld [vmem:[#allocation90_spill] sm:$0xff] }
 0x501   : > { %29870 = vmatprep.subr.mxu1 %v37336_v50  ;;  %29847 = vmatprep.subr.mxu0 %v37336_v50  ;;  %v10722_v7 = vmul.f32 0.05, %v37571_v48  ;;  %vm10721_vm10 = vcmp.ge.f32.partialorder %v37571_v48, 0.0 }
 0x502   : > { %29871 = vmatpush3.msra.mxu1 %v37546_v62  ;;  %29848 = vmatpush3.msra.mxu0 %v37569_v61  ;;  %v37572_v62 = vld [vmem:[#allocation48_spill] sm:$0xff] }
 0x503   : > { %29872 = vmatprep.subr.mxu1 %v37336_v50  ;;  %29849 = vmatprep.subr.mxu0 %v37336_v50  ;;  %v10723_v52 = vsel %vm10721_vm10, %v37571_v48, %v10722_v7 }
 0x504   : > { %29873 = vmatpush3.msra.mxu1 %v37548_v23  ;;  %29850 = vmatpush3.msra.mxu0 %v37570_v35  ;;  %v16150_v59 = vpop.f32.mrf.mxu1  ;;  %v37580_v35 = vld [vmem:[#allocation92_spill] sm:$0xff] }
 0x505   : > { %29874 = vmatprep.subr.mxu1 %v37336_v50  ;;  %29851 = vmatprep.subr.mxu0 %v37336_v50  ;;  %v16069_v25 = vpop.f32.mrf.mxu0 }
 0x506   : > { %29875 = vmatpush3.msra.mxu1 %v37550_v20  ;;  %29852 = vmatpush3.msra.mxu0 %v37572_v62  ;;  %v16070_v51 = vadd.f32 %v16069_v25, %v15969_v44  ;;  %v29466_v10 = vpop.f32.mrf.mxu1  ;;  %v37574_v20 = vld [vmem:[#allocation74_spill] sm:$0xff] }
 0x507   : > { %29876 = vmatprep.subr.mxu1 %v37336_v50  ;;  %29853 = vmatprep.subr.mxu0 %v37336_v50  ;;  %v29443_v23 = vpop.f32.mrf.mxu0  ;;  %v37575_v44 = vld [vmem:[#allocation78_spill] sm:$0xff] }
 0x508   : > { %29877 = vmatpush3.msra.mxu1 %v37552_v18  ;;  %29878 = vmatprep.mubr.msk.f32.mxu1 %vm31316_vm1, %v37336_v50  ;;  %v35102_v14 = vadd.f32 %v16150_v59, %v16070_v51  ;;  %v17857_v18 = vsel %vm12185_vm4, %v10723_v52, 0  ;;  %v37581_v59 = vld [vmem:[#allocation93_spill] sm:$0xff]  ;;  %v37582_v62 = vld [vmem:[#allocation94_spill] sm:$0xff] }
 0x509   : > { %29854 = vmatpush3.msra.mxu0 %v37573_v53  ;;  %29855 = vmatprep.mubr.msk.f32.mxu0 %vm31316_vm1, %v37336_v50  ;;  %v35119_v29 = vand.u32 4294901760, %v17857_v18  ;;  %v37583_v51 = vld [vmem:[#allocation77_spill] sm:$0xff]  ;;  %v37584_v53 = vld [vmem:[#allocation95_spill] sm:$0xff] }
 0x50a   : > { %29879 = vmatmul.mubr.f32.vlgmr.msra.gmra.mxu1 %v34822_v17  ;;  %29904 = vmatprep.subr.mxu1 %v37336_v50 }
 0x50b   : > { %29856 = vmatmul.mubr.f32.vlgmr.msra.gmra.mxu0 %v34822_v17  ;;  %29881 = vmatprep.subr.mxu0 %v37336_v50  ;;  %v37576_v17 = vld [vmem:[#allocation82_spill] sm:$0xff]  ;;  %v35130_v46 = vsub.f32 %v17857_v18, %v35119_v29 }
 0x50c   : > { %29905 = vmatpush3.msra.mxu1 %v37574_v20  ;;  %29882 = vmatpush3.msra.mxu0 %v37413_v15  ;;  %v37585_v20 = vld [vmem:[#allocation57_spill] sm:$0xff] }
 0x50d   : > { %29906 = vmatprep.subr.mxu1 %v37336_v50  ;;  %29883 = vmatprep.subr.mxu0 %v37336_v50  ;;  %v17936_v61 = vand.u32 4294901760, %v35130_v46 }
 0x50e   : > { %29907 = vmatpush3.msra.mxu1 %v37575_v44  ;;  %29884 = vmatpush3.msra.mxu0 %v37415_v5  ;;  %v37586_v44 = vld [vmem:[#allocation59_spill] sm:$0xff] }
 0x50f   : > { %29908 = vmatprep.subr.mxu1 %v37336_v50  ;;  %29885 = vmatprep.subr.mxu0 %v37336_v50  ;;  %v17937_v7 = vsub.f32 %v35130_v46, %v17936_v61 }
 0x510   : > { %29909 = vmatpush3.msra.mxu1 %v37576_v17  ;;  %29886 = vmatpush3.msra.mxu0 %v37417_v39  ;;  %v37587_v17 = vld [vmem:[#allocation63_spill] sm:$0xff] }
 0x511   : > { %29910 = vmatprep.subr.mxu1 %v37336_v50  ;;  %29887 = vmatprep.subr.mxu0 %v37336_v50  ;;  %v17938_v18 = vand.u32 4294901760, %v17937_v7 }
 0x512   : > { %29911 = vmatpush3.msra.mxu1 %v37577_v30  ;;  %29888 = vmatpush3.msra.mxu0 %v37419_v38  ;;  %v37588_v30 = vld [vmem:[#allocation66_spill] sm:$0xff] }
 0x513   : > { %29912 = vmatprep.subr.mxu1 %v37336_v50  ;;  %29889 = vmatprep.subr.mxu0 %v37336_v50 }
 0x514   : > { %29913 = vmatpush3.msra.mxu1 %v37578_v24  ;;  %29890 = vmatpush3.msra.mxu0 %v37421_v57  ;;  %v37589_v24 = vld [vmem:[#allocation69_spill] sm:$0xff] }
 0x515   : > { %29914 = vmatprep.subr.mxu1 %v37336_v50  ;;  %29891 = vmatprep.subr.mxu0 %v37336_v50 }
 0x516   : > { %29915 = vmatpush3.msra.mxu1 %v37579_v9  ;;  %29892 = vmatpush3.msra.mxu0 %v37502_v37  ;;  %v37590_v9 = vld [vmem:[#allocation72_spill] sm:$0xff] }
 0x517   : > { %29916 = vmatprep.subr.mxu1 %v37336_v50  ;;  %29893 = vmatprep.subr.mxu0 %v37336_v50 }
 0x518   : > { %29917 = vmatpush3.msra.mxu1 %v37580_v35  ;;  %29894 = vmatpush3.msra.mxu0 %v37504_v4  ;;  %v37591_v35 = vld [vmem:[#allocation76_spill] sm:$0xff] }
 0x519   : > { %29918 = vmatprep.subr.mxu1 %v37336_v50  ;;  %29895 = vmatprep.subr.mxu0 %v37336_v50 }
 0x51a   : > { %29919 = vmatpush3.msra.mxu1 %v37581_v59  ;;  %29896 = vmatpush3.msra.mxu0 %v37506_v42  ;;  %v16360_v48 = vpop.f32.mrf.mxu1  ;;  %v37592_v59 = vld [vmem:[#allocation80_spill] sm:$0xff] }
 0x51b   : > { %29920 = vmatprep.subr.mxu1 %v37336_v50  ;;  %29897 = vmatprep.subr.mxu0 %v37336_v50  ;;  %v16239_v25 = vpop.f32.mrf.mxu0 }
 0x51c   : > { %29921 = vmatpush3.msra.mxu1 %v37582_v62  ;;  %29898 = vmatpush3.msra.mxu0 %v37583_v51  ;;  %v16361_v10 = vadd.f32 %v16360_v48, %v16239_v25  ;;  %v29512_v23 = vpop.f32.mrf.mxu1  ;;  %v37593_v25 = vld [vmem:[#allocation84_spill] sm:$0xff] }
 0x51d   : > { %29922 = vmatprep.subr.mxu1 %v37336_v50  ;;  %29899 = vmatprep.subr.mxu0 %v37336_v50  ;;  %v29489_v52 = vpop.f32.mrf.mxu0 }
 0x51e   : > { %29923 = vmatpush3.msra.mxu1 %v37584_v53  ;;  %29924 = vmatprep.mubr.msk.f32.mxu1 %vm31316_vm1, %v37336_v50 }
 0x51f   : > { %29900 = vmatpush3.msra.mxu0 %v37431_v63  ;;  %29901 = vmatprep.mubr.msk.f32.mxu0 %vm31316_vm1, %v37336_v50 }
 0x520   : > { %29925 = vmatmul.mubr.f32.vlgmr.msra.gmra.mxu1 %v35119_v29  ;;  %29950 = vmatprep.subr.mxu1 %v37336_v50 }
 0x521   : > { %29902 = vmatmul.mubr.f32.vlgmr.msra.gmra.mxu0 %v17938_v18  ;;  %29927 = vmatprep.subr.mxu0 %v37336_v50  ;;  %v37594_v18 = vld [vmem:[#allocation87_spill] sm:$0xff] }
 0x522   : > { %29951 = vmatpush3.msra.mxu1 %v37413_v15  ;;  %29928 = vmatpush3.msra.mxu0 %v37585_v20  ;;  %v37596_v20 = vld [vmem:[#allocation65_spill] sm:$0xff] }
 0x523   : > { %29952 = vmatprep.subr.mxu1 %v37336_v50  ;;  %29929 = vmatprep.subr.mxu0 %v37336_v50 }
 0x524   : > { %29953 = vmatpush3.msra.mxu1 %v37415_v5  ;;  %29930 = vmatpush3.msra.mxu0 %v37586_v44 }
 0x525   : > { %29954 = vmatprep.subr.mxu1 %v37336_v50  ;;  %29931 = vmatprep.subr.mxu0 %v37336_v50 }
 0x526   : > { %29955 = vmatpush3.msra.mxu1 %v37417_v39  ;;  %29932 = vmatpush3.msra.mxu0 %v37587_v17 }
 0x527   : > { %29956 = vmatprep.subr.mxu1 %v37336_v50  ;;  %29933 = vmatprep.subr.mxu0 %v37336_v50 }
 0x528   : > { %29957 = vmatpush3.msra.mxu1 %v37419_v38  ;;  %29934 = vmatpush3.msra.mxu0 %v37588_v30 }
 0x529   : > { %29958 = vmatprep.subr.mxu1 %v37336_v50  ;;  %29935 = vmatprep.subr.mxu0 %v37336_v50 }
 0x52a   : > { %29959 = vmatpush3.msra.mxu1 %v37421_v57  ;;  %29936 = vmatpush3.msra.mxu0 %v37589_v24  ;;  %v31139_v24 = vld [vmem:[%s37452_s30] sm:$0x1] }
 0x52b   : > { %29960 = vmatprep.subr.mxu1 %v37336_v50  ;;  %29937 = vmatprep.subr.mxu0 %v37336_v50 }
 0x52c   : > { %29961 = vmatpush3.msra.mxu1 %v37502_v37  ;;  %29938 = vmatpush3.msra.mxu0 %v37590_v9  ;;  %v16154_v9 = vadd.f32 %v31139_v24, %v35102_v14 }
 0x52d   : > { %29962 = vmatprep.subr.mxu1 %v37336_v50  ;;  %29939 = vmatprep.subr.mxu0 %v37336_v50 }
 0x52e   : > { %29963 = vmatpush3.msra.mxu1 %v37504_v4  ;;  %29940 = vmatpush3.msra.mxu0 %v37591_v35 }
 0x52f   : > { %29964 = vmatprep.subr.mxu1 %v37336_v50  ;;  %29941 = vmatprep.subr.mxu0 %v37336_v50 }
 0x530   : > { %29965 = vmatpush3.msra.mxu1 %v37506_v42  ;;  %29942 = vmatpush3.msra.mxu0 %v37592_v59  ;;  %v16535_v48 = vpop.f32.mrf.mxu1 }
 0x531   : > { %29966 = vmatprep.subr.mxu1 %v37336_v50  ;;  %29943 = vmatprep.subr.mxu0 %v37336_v50  ;;  %v16452_v7 = vpop.f32.mrf.mxu0 }
 0x532   : > { %29967 = vmatpush3.msra.mxu1 %v37583_v51  ;;  %29944 = vmatpush3.msra.mxu0 %v37593_v25  ;;  %v16453_v62 = vadd.f32 %v16452_v7, %v16361_v10  ;;  %v29558_v23 = vpop.f32.mrf.mxu1  ;;  %v37595_v10 = vld [vmem:[#allocation62_spill] sm:$0xff] }
 0x533   : > { %29968 = vmatprep.subr.mxu1 %v37336_v50  ;;  %29945 = vmatprep.subr.mxu0 %v37336_v50  ;;  %v29535_v52 = vpop.f32.mrf.mxu0 }
 0x534   : > { %29969 = vmatpush3.msra.mxu1 %v37431_v63  ;;  %29970 = vmatprep.mubr.msk.f32.mxu1 %vm31316_vm1, %v37336_v50  ;;  %v16536_v53 = vadd.f32 %v16535_v48, %v16453_v62  ;;  %v18994_v52 = vld [vmem:[%s37609_s5] sm:$0xff] }
 0x535   : > { %29946 = vmatpush3.msra.mxu0 %v37594_v18  ;;  %29947 = vmatprep.mubr.msk.f32.mxu0 %vm31316_vm1, %v37336_v50 }
 0x536   : > { %29971 = vmatmul.mubr.f32.vlgmr.msra.gmra.mxu1 %v17936_v61  ;;  %29996 = vmatprep.subr.mxu1 %v37336_v50 }
 0x537   : > { %29948 = vmatmul.mubr.f32.vlgmr.msra.gmra.mxu0 %v35130_v46  ;;  %29973 = vmatprep.subr.mxu0 %v37336_v50  ;;  %v37597_v46 = vld [vmem:[#allocation68_spill] sm:$0xff] }
 0x538   : > { %29997 = vmatpush3.msra.mxu1 %v37413_v15  ;;  %29974 = vmatpush3.msra.mxu0 %v37595_v10  ;;  %v37598_v15 = vld [vmem:[#allocation71_spill] sm:$0xff]  ;;  %v37611_v10 = vld [vmem:[#allocation106_spill] sm:$0xff] }
 0x539   : > { %29998 = vmatprep.subr.mxu1 %v37336_v50  ;;  %29975 = vmatprep.subr.mxu0 %v37336_v50 }
 0x53a   : > { %29999 = vmatpush3.msra.mxu1 %v37415_v5  ;;  %29976 = vmatpush3.msra.mxu0 %v37596_v20  ;;  %v37599_v5 = vld [vmem:[#allocation75_spill] sm:$0xff] }
 0x53b   : > { %30000 = vmatprep.subr.mxu1 %v37336_v50  ;;  %29977 = vmatprep.subr.mxu0 %v37336_v50 }
 0x53c   : > { %30001 = vmatpush3.msra.mxu1 %v37417_v39  ;;  %29978 = vmatpush3.msra.mxu0 %v37597_v46  ;;  %v37600_v39 = vld [vmem:[#allocation79_spill] sm:$0xff]  ;;  %v35445_v46 = vand.u32 4294901760, %v18994_v52 }
 0x53d   : > { %30002 = vmatprep.subr.mxu1 %v37336_v50  ;;  %29979 = vmatprep.subr.mxu0 %v37336_v50 }
 0x53e   : > { %30003 = vmatpush3.msra.mxu1 %v37419_v38  ;;  %29980 = vmatpush3.msra.mxu0 %v37598_v15  ;;  %v37601_v38 = vld [vmem:[#allocation83_spill] sm:$0xff]  ;;  %v37612_v15 = vld [vmem:[#allocation108_spill] sm:$0xff] }
 0x53f   : > { %30004 = vmatprep.subr.mxu1 %v37336_v50  ;;  %29981 = vmatprep.subr.mxu0 %v37336_v50 }
 0x540   : > { %30005 = vmatpush3.msra.mxu1 %v37421_v57  ;;  %29982 = vmatpush3.msra.mxu0 %v37599_v5  ;;  %v37602_v57 = vld [vmem:[#allocation86_spill] sm:$0xff] }
 0x541   : > { %30006 = vmatprep.subr.mxu1 %v37336_v50  ;;  %29983 = vmatprep.subr.mxu0 %v37336_v50 }
 0x542   : > { %30007 = vmatpush3.msra.mxu1 %v37502_v37  ;;  %29984 = vmatpush3.msra.mxu0 %v37600_v39  ;;  %v37603_v37 = vld [vmem:[#allocation116_spill] sm:$0xff] }
 0x543   : > { %30008 = vmatprep.subr.mxu1 %v37336_v50  ;;  %29985 = vmatprep.subr.mxu0 %v37336_v50  ;;  %v12150_v44 = vmul.f32 0.05, %v37603_v37  ;;  %vm12149_vm11 = vcmp.ge.f32.partialorder %v37603_v37, 0.0 }
 0x544   : > { %30009 = vmatpush3.msra.mxu1 %v37504_v4  ;;  %29986 = vmatpush3.msra.mxu0 %v37601_v38 }
 0x545   : > { %30010 = vmatprep.subr.mxu1 %v37336_v50  ;;  %29987 = vmatprep.subr.mxu0 %v37336_v50 }
 0x546   : > { %30011 = vmatpush3.msra.mxu1 %v37506_v42  ;;  %29988 = vmatpush3.msra.mxu0 %v37602_v57  ;;  %v16717_v61 = vpop.f32.mrf.mxu1 }
 0x547   : > { %30012 = vmatprep.subr.mxu1 %v37336_v50  ;;  %29989 = vmatprep.subr.mxu0 %v37336_v50  ;;  %v16636_v17 = vpop.f32.mrf.mxu0 }
 0x548   : > { %30013 = vmatpush3.msra.mxu1 %v37583_v51  ;;  %29990 = vmatpush3.msra.mxu0 %v37453_v49  ;;  %v16637_v4 = vadd.f32 %v16636_v17, %v16536_v53  ;;  %v29604_v30 = vpop.f32.mrf.mxu1  ;;  %v12151_v49 = vsel %vm12149_vm11, %v37603_v37, %v12150_v44  ;;  %v37610_v53 = vld [vmem:[#allocation103_spill] sm:$0xff]  ;;  %v35469_v44 = vsub.f32 %v18994_v52, %v35445_v46 }
 0x549   : > { %30014 = vmatprep.subr.mxu1 %v37336_v50  ;;  %29991 = vmatprep.subr.mxu0 %v37336_v50  ;;  %v29581_v42 = vpop.f32.mrf.mxu0 }
 0x54a   : > { %30015 = vmatpush3.msra.mxu1 %v37431_v63  ;;  %30016 = vmatprep.mubr.msk.f32.mxu1 %vm31316_vm1, %v37336_v50  ;;  %v16718_v51 = vadd.f32 %v16717_v61, %v16637_v4  ;;  %v18424_v63 = vsel %vm12185_vm4, %v12151_v49, 0 }
 0x54b   : > { %29992 = vmatpush3.msra.mxu0 %v37454_v33  ;;  %29993 = vmatprep.mubr.msk.f32.mxu0 %vm31316_vm1, %v37336_v50  ;;  %v35276_v33 = vand.u32 4294901760, %v18424_v63 }
 0x54c   : > { %30017 = vmatmul.mubr.f32.vlgmr.msra.gmra.mxu1 %v35119_v29  ;;  %30042 = vmatprep.subr.mxu1 %v37336_v50  ;;  %v35265_v35 = vadd.f32 %v16718_v51, %v16154_v9  ;;  %v37614_v51 = vld [vmem:[#allocation112_spill] sm:$0xff] }
 0x54d   : > { %29994 = vmatmul.mubr.f32.vlgmr.msra.gmra.mxu0 %v35119_v29  ;;  %30019 = vmatprep.subr.mxu0 %v37336_v50 }
 0x54e   : > { %30043 = vmatpush3.msra.mxu1 %v37455_v47  ;;  %30020 = vmatpush3.msra.mxu0 %v33708_v12  ;;  %v35287_v47 = vsub.f32 %v18424_v63, %v35276_v33  ;;  %v35494_v63 = vand.u32 4294901760, %v35469_v44 }
 0x54f   : > { %30044 = vmatprep.subr.mxu1 %v37336_v50  ;;  %30021 = vmatprep.subr.mxu0 %v37336_v50 }
 0x550   : > { %30045 = vmatpush3.msra.mxu1 %v37456_v13  ;;  %30022 = vmatpush3.msra.mxu0 %v33717_v60  ;;  %v18503_v13 = vand.u32 4294901760, %v35287_v47 }
 0x551   : > { %30046 = vmatprep.subr.mxu1 %v37336_v50  ;;  %30023 = vmatprep.subr.mxu0 %v37336_v50 }
 0x552   : > { %30047 = vmatpush3.msra.mxu1 %v37457_v28  ;;  %30024 = vmatpush3.msra.mxu0 %v33726_v22 }
 0x553   : > { %30048 = vmatprep.subr.mxu1 %v37336_v50  ;;  %30025 = vmatprep.subr.mxu0 %v37336_v50 }
 0x554   : > { %30049 = vmatpush3.msra.mxu1 %v37458_v58  ;;  %30026 = vmatpush3.msra.mxu0 %v33743_v54  ;;  %v18504_v58 = vsub.f32 %v35287_v47, %v18503_v13 }
 0x555   : > { %30050 = vmatprep.subr.mxu1 %v37336_v50  ;;  %30027 = vmatprep.subr.mxu0 %v37336_v50 }
 0x556   : > { %30051 = vmatpush3.msra.mxu1 %v37459_v45  ;;  %30028 = vmatpush3.msra.mxu0 %v33758_v3  ;;  %v18505_v29 = vand.u32 4294901760, %v18504_v58 }
 0x557   : > { %30052 = vmatprep.subr.mxu1 %v37336_v50  ;;  %30029 = vmatprep.subr.mxu0 %v37336_v50 }
 0x558   : > { %30053 = vmatpush3.msra.mxu1 %v37530_v36  ;;  %30030 = vmatpush3.msra.mxu0 %v33773_v34  ;;  %v37604_v36 = vld [vmem:[#allocation115_spill] sm:$0xff] }
 0x559   : > { %30054 = vmatprep.subr.mxu1 %v37336_v50  ;;  %30031 = vmatprep.subr.mxu0 %v37336_v50 }
 0x55a   : > { %30055 = vmatpush3.msra.mxu1 %v37531_v40  ;;  %30032 = vmatpush3.msra.mxu0 %v33795_v11 }
 0x55b   : > { %30056 = vmatprep.subr.mxu1 %v37336_v50  ;;  %30033 = vmatprep.subr.mxu0 %v37336_v50 }
 0x55c   : > { %30057 = vmatpush3.msra.mxu1 %v37532_v21  ;;  %30034 = vmatpush3.msra.mxu0 %v33812_v2  ;;  %v16927_v28 = vpop.f32.mrf.mxu1 }
 0x55d   : > { %30058 = vmatprep.subr.mxu1 %v37336_v50  ;;  %30035 = vmatprep.subr.mxu0 %v37336_v50  ;;  %v16806_v45 = vpop.f32.mrf.mxu0 }
 0x55e   : > { %30059 = vmatpush3.msra.mxu1 %v37604_v36  ;;  %30036 = vmatpush3.msra.mxu0 %v33833_v56  ;;  %v16928_v40 = vadd.f32 %v16927_v28, %v16806_v45  ;;  %v29650_v14 = vpop.f32.mrf.mxu1 }
 0x55f   : > { %30060 = vmatprep.subr.mxu1 %v37336_v50  ;;  %30037 = vmatprep.subr.mxu0 %v37336_v50  ;;  %v29627_v21 = vpop.f32.mrf.mxu0 }
 0x560   : > { %30061 = vmatpush3.msra.mxu1 %v33939_v43  ;;  %30062 = vmatprep.mubr.msk.f32.mxu1 %vm31316_vm1, %v37336_v50  ;;  %v37608_v43 = vld [vmem:[#allocation104_spill] sm:$0xff] }
 0x561   : > { %30038 = vmatpush3.msra.mxu0 %v33850_v27  ;;  %30039 = vmatprep.mubr.msk.f32.mxu0 %vm31316_vm1, %v37336_v50 }
 0x562   : > { %30063 = vmatmul.mubr.f32.vlgmr.msra.gmra.mxu1 %v35276_v33  ;;  %30088 = vmatprep.subr.mxu1 %v37336_v50 }
 0x563   : > { %30040 = vmatmul.mubr.f32.vlgmr.msra.gmra.mxu0 %v18505_v29  ;;  %30065 = vmatprep.subr.mxu0 %v37336_v50 }
 0x564   : > { %30089 = vmatpush3.msra.mxu1 %v33708_v12  ;;  %30066 = vmatpush3.msra.mxu0 %v33724_v41  ;;  %v37605_v41 = vld [vmem:[#allocation98_spill] sm:$0xff] }
 0x565   : > { %30090 = vmatprep.subr.mxu1 %v37336_v50  ;;  %30067 = vmatprep.subr.mxu0 %v37336_v50 }
 0x566   : > { %30091 = vmatpush3.msra.mxu1 %v33717_v60  ;;  %30068 = vmatpush3.msra.mxu0 %v37461_v31 }
 0x567   : > { %30092 = vmatprep.subr.mxu1 %v37336_v50  ;;  %30069 = vmatprep.subr.mxu0 %v37336_v50 }
 0x568   : > { %30093 = vmatpush3.msra.mxu1 %v33726_v22  ;;  %30070 = vmatpush3.msra.mxu0 %v33751_v0  ;;  %v37606_v0 = vld [vmem:[#allocation99_spill] sm:$0xff] }
 0x569   : > { %30094 = vmatprep.subr.mxu1 %v37336_v50  ;;  %30071 = vmatprep.subr.mxu0 %v37336_v50 }
 0x56a   : > { %30095 = vmatpush3.msra.mxu1 %v33743_v54  ;;  %30072 = vmatpush3.msra.mxu0 %v33771_v32  ;;  %v37607_v32 = vld [vmem:[#allocation101_spill] sm:$0xff] }
 0x56b   : > { %30096 = vmatprep.subr.mxu1 %v37336_v50  ;;  %30073 = vmatprep.subr.mxu0 %v37336_v50 }
 0x56c   : > { %30097 = vmatpush3.msra.mxu1 %v33758_v3  ;;  %30074 = vmatpush3.msra.mxu0 %v37605_v41  ;;  %v25407_v41 = vld [vmem:[%s37609_s5 + $0x58] sm:$0xff] }
 0x56d   : > { %30098 = vmatprep.subr.mxu1 %v37336_v50  ;;  %30075 = vmatprep.subr.mxu0 %v37336_v50 }
 0x56e   : > { %30099 = vmatpush3.msra.mxu1 %v33773_v34  ;;  %30076 = vmatpush3.msra.mxu0 %v37606_v0  ;;  %v25406_v0 = vld [vmem:[%s37609_s5 + $0x50] sm:$0xff] }
 0x56f   : > { %30100 = vmatprep.subr.mxu1 %v37336_v50  ;;  %30077 = vmatprep.subr.mxu0 %v37336_v50 }
 0x570   : > { %30101 = vmatpush3.msra.mxu1 %v33795_v11  ;;  %30078 = vmatpush3.msra.mxu0 %v37607_v32  ;;  %v35569_v32 = vand.u32 4294901760, %v25407_v41 }
 0x571   : > { %30102 = vmatprep.subr.mxu1 %v37336_v50  ;;  %30079 = vmatprep.subr.mxu0 %v37336_v50 }
 0x572   : > { %30103 = vmatpush3.msra.mxu1 %v33812_v2  ;;  %30080 = vmatpush3.msra.mxu0 %v37608_v43  ;;  %v17102_v31 = vpop.f32.mrf.mxu1  ;;  %v25405_v43 = vld [vmem:[%s37609_s5 + $0x48] sm:$0xff] }
 0x573   : > { %30104 = vmatprep.subr.mxu1 %v37336_v50  ;;  %30081 = vmatprep.subr.mxu0 %v37336_v50  ;;  %v17019_v59 = vpop.f32.mrf.mxu0 }
 0x574   : > { %30105 = vmatpush3.msra.mxu1 %v33833_v56  ;;  %30082 = vmatpush3.msra.mxu0 %v33865_v26  ;;  %v17020_v48 = vadd.f32 %v17019_v59, %v16928_v40  ;;  %v29696_v7 = vpop.f32.mrf.mxu1  ;;  %v18999_v26 = vld [vmem:[%s37609_s5 + $0x28] sm:$0xff]  ;;  %v25404_v59 = vld [vmem:[%s37609_s5 + $0x40] sm:$0xff] }
 0x575   : > { %30106 = vmatprep.subr.mxu1 %v37336_v50  ;;  %30083 = vmatprep.subr.mxu0 %v37336_v50  ;;  %v29673_v25 = vpop.f32.mrf.mxu0  ;;  %v35385_v23 = vand.u32 4294901760, %v18999_v26  ;;  %v35592_v7 = vand.u32 4294901760, %v25405_v43 }
 0x576   : > { %30107 = vmatpush3.msra.mxu1 %v33850_v27  ;;  %30108 = vmatprep.mubr.msk.f32.mxu1 %vm31316_vm1, %v37336_v50  ;;  %v35363_v62 = vadd.f32 %v17102_v31, %v17020_v48  ;;  %v35578_v31 = vand.u32 4294901760, %v25406_v0  ;;  %v35590_v48 = vsub.f32 %v25407_v41, %v35569_v32  ;;  %v37617_v25 = vld [vmem:[#allocation16_spill] sm:$0xff] }
 0x577   : > { %30084 = vmatpush3.msra.mxu0 %v33879_v6  ;;  %30085 = vmatprep.mubr.msk.f32.mxu0 %vm31316_vm1, %v37336_v50  ;;  %v18998_v6 = vld [vmem:[%s37609_s5 + $0x20] sm:$0xff]  ;;  %37616 = vst [vmem:[#allocation58_spill] sm:$0xff] %v35592_v7  ;;  %vm13887_vm12 = vcmp.ge.f32.partialorder %v37617_v25, 0.0  ;;  %v35619_v52 = vsub.f32 %v25405_v43, %v35592_v7 }
 0x578   : > { %30109 = vmatmul.mubr.f32.vlgmr.msra.gmra.mxu1 %v18503_v13  ;;  %30134 = vmatprep.subr.mxu1 %v37336_v50  ;;  %37615 = vst [vmem:[#allocation56_spill] sm:$0xff] %v35590_v48 }
 0x579   : > { %30086 = vmatmul.mubr.f32.vlgmr.msra.gmra.mxu0 %v35287_v47  ;;  %30111 = vmatprep.subr.mxu0 %v37336_v50  ;;  %37621 = vst [vmem:[#allocation17_spill] sm:$0xff] %v35619_v52 }
 0x57a   : > { %30135 = vmatpush3.msra.mxu1 %v33708_v12  ;;  %30112 = vmatpush3.msra.mxu0 %v33748_v8  ;;  %v18997_v8 = vld [vmem:[%s37609_s5 + $0x18] sm:$0xff]  ;;  %v35394_v12 = vand.u32 4294901760, %v18998_v6 }
 0x57b   : > { %30136 = vmatprep.subr.mxu1 %v37336_v50  ;;  %30113 = vmatprep.subr.mxu0 %v37336_v50 }
 0x57c   : > { %30137 = vmatpush3.msra.mxu1 %v33717_v60  ;;  %30114 = vmatpush3.msra.mxu0 %v33763_v16  ;;  %v18996_v60 = vld [vmem:[%s37609_s5 + $0x10] sm:$0xff]  ;;  %v35404_v16 = vsub.f32 %v18999_v26, %v35385_v23  ;;  %v25403_v26 = vld [vmem:[%s37609_s5 + $0x38] sm:$0xff] }
 0x57d   : > { %30138 = vmatprep.subr.mxu1 %v37336_v50  ;;  %30115 = vmatprep.subr.mxu0 %v37336_v50 }
 0x57e   : > { %30139 = vmatpush3.msra.mxu1 %v33726_v22  ;;  %30116 = vmatpush3.msra.mxu0 %v33781_v1  ;;  %v35406_v22 = vand.u32 4294901760, %v18997_v8  ;;  %v18995_v1 = vld [vmem:[%s37609_s5 + $0x8] sm:$0xff] }
 0x57f   : > { %30140 = vmatprep.subr.mxu1 %v37336_v50  ;;  %30117 = vmatprep.subr.mxu0 %v37336_v50  ;;  %v35433_v18 = vand.u32 4294901760, %v18995_v1 }
 0x580   : > { %30141 = vmatpush3.msra.mxu1 %v33743_v54  ;;  %30118 = vmatpush3.msra.mxu0 %v33807_v19  ;;  %v35416_v54 = vsub.f32 %v18998_v6, %v35394_v12  ;;  %v35418_v19 = vand.u32 4294901760, %v18996_v60  ;;  %v35604_v6 = vsub.f32 %v25406_v0, %v35578_v31 }
 0x581   : > { %30142 = vmatprep.subr.mxu1 %v37336_v50  ;;  %30119 = vmatprep.subr.mxu0 %v37336_v50  ;;  %v35457_v39 = vsub.f32 %v18995_v1, %v35433_v18  ;;  %v35616_v1 = vand.u32 4294901760, %v35590_v48 }
 0x582   : > { %30143 = vmatpush3.msra.mxu1 %v33758_v3  ;;  %30120 = vmatpush3.msra.mxu0 %v33828_v55  ;;  %v35428_v3 = vand.u32 4294901760, %v35404_v16  ;;  %v35431_v55 = vsub.f32 %v18997_v8, %v35406_v22  ;;  %v35443_v20 = vsub.f32 %v18996_v60, %v35418_v19  ;;  %37618 = vst [vmem:[#allocation61_spill] sm:$0xff] %v35604_v6  ;;  %v35606_v8 = vand.u32 4294901760, %v25404_v59  ;;  %v25402_v60 = vld [vmem:[%s37609_s5 + $0x30] sm:$0xff] }
 0x583   : > { %30144 = vmatprep.subr.mxu1 %v37336_v50  ;;  %30121 = vmatprep.subr.mxu0 %v37336_v50  ;;  %v35482_v24 = vand.u32 4294901760, %v35457_v39  ;;  %37620 = vst [vmem:[#allocation81_spill] sm:$0xff] %v35616_v1 }
 0x584   : > { %30145 = vmatpush3.msra.mxu1 %v33773_v34  ;;  %30122 = vmatpush3.msra.mxu0 %v37610_v53  ;;  %v35440_v34 = vand.u32 4294901760, %v35416_v54  ;;  %v35454_v5 = vand.u32 4294901760, %v35431_v55  ;;  %v35466_v37 = vand.u32 4294901760, %v35443_v20  ;;  %37619 = vst [vmem:[#allocation64_spill] sm:$0xff] %v35606_v8  ;;  %v35621_v53 = vand.u32 4294901760, %v25403_v26 }
 0x585   : > { %30146 = vmatprep.subr.mxu1 %v37336_v50  ;;  %30123 = vmatprep.subr.mxu0 %v37336_v50  ;;  %v19150_v28 = vsub.f32 %v35457_v39, %v35482_v24 }
 0x586   : > { %30147 = vmatpush3.msra.mxu1 %v33795_v11  ;;  %30124 = vmatpush3.msra.mxu0 %v37611_v10  ;;  %v19122_v11 = vsub.f32 %v35404_v16, %v35428_v3  ;;  %v19129_v61 = vsub.f32 %v35416_v54, %v35440_v34  ;;  %v19136_v42 = vsub.f32 %v35431_v55, %v35454_v5 }
 0x587   : > { %30148 = vmatprep.subr.mxu1 %v37336_v50  ;;  %30125 = vmatprep.subr.mxu0 %v37336_v50  ;;  %v19143_v49 = vsub.f32 %v35443_v20, %v35466_v37  ;;  %v35519_v58 = vand.u32 4294901760, %v19150_v28  ;;  %37622 = vst [vmem:[#allocation89_spill] sm:$0xff] %v35621_v53 }
 0x588   : > { %30149 = vmatpush3.msra.mxu1 %v33812_v2  ;;  %30126 = vmatpush3.msra.mxu0 %v37612_v15  ;;  %v17284_v38 = vpop.f32.mrf.mxu1  ;;  %v37613_v2 = vld [vmem:[#allocation110_spill] sm:$0xff]  ;;  %v35503_v13 = vand.u32 4294901760, %v19136_v42  ;;  %v35629_v15 = vand.u32 4294901760, %v35604_v6 }
 0x589   : > { %30150 = vmatprep.subr.mxu1 %v37336_v50  ;;  %30127 = vmatprep.subr.mxu0 %v37336_v50  ;;  %v17203_v57 = vpop.f32.mrf.mxu0 }
 0x58a   : > { %30151 = vmatpush3.msra.mxu1 %v33833_v56  ;;  %30128 = vmatpush3.msra.mxu0 %v37613_v2  ;;  %v17204_v17 = vadd.f32 %v17203_v57, %v35363_v62  ;;  %v29742_v4 = vpop.f32.mrf.mxu1  ;;  %v35477_v56 = vand.u32 4294901760, %v19122_v11  ;;  %v13888_v62 = vmul.f32 0.05, %v37617_v25  ;;  %37623 = vst [vmem:[#allocation91_spill] sm:$0xff] %v35629_v15  ;;  %v35632_v11 = vsub.f32 %v25404_v59, %v35606_v8 }
 0x58b   : > { %30152 = vmatprep.subr.mxu1 %v37336_v50  ;;  %30129 = vmatprep.subr.mxu0 %v37336_v50  ;;  %v29719_v30 = vpop.f32.mrf.mxu0  ;;  %v19637_v2 = vsub.f32 %v35590_v48, %v35616_v1  ;;  %v19644_v4 = vsub.f32 %v35604_v6, %v35629_v15 }
 0x58c   : > { %30153 = vmatpush3.msra.mxu1 %v33850_v27  ;;  %30154 = vmatprep.mubr.msk.f32.mxu1 %vm31316_vm1, %v37336_v50  ;;  %v17285_v9 = vadd.f32 %v17284_v38, %v17204_v17  ;;  %v35489_v27 = vand.u32 4294901760, %v19129_v61  ;;  %v13889_v10 = vsel %vm13887_vm12, %v37617_v25, %v13888_v62  ;;  %37624 = vst [vmem:[#allocation100_spill] sm:$0xff] %v35632_v11  ;;  %v35634_v38 = vand.u32 4294901760, %v25402_v60 }
 0x58d   : > { %30130 = vmatpush3.msra.mxu0 %v37614_v51  ;;  %30131 = vmatprep.mubr.msk.f32.mxu0 %vm31316_vm1, %v37336_v50  ;;  %v19530_v57 = vsel %vm19014_vm13, %v13889_v10, 0  ;;  %v35644_v61 = vand.u32 4294901760, %v35619_v52  ;;  %v35647_v17 = vsub.f32 %v25403_v26, %v35621_v53  ;;  %v35656_v30 = vand.u32 4294901760, %v35632_v11 }
 0x58e   : > { %30155 = vmatmul.mubr.f32.vlgmr.msra.gmra.mxu1 %v35276_v33  ;;  %30172 = vmatprep.subr.mxu1 %v37336_v50  ;;  %v35497_v47 = vadd.f32 %v17285_v9, %v35265_v35  ;;  %v35511_v35 = vand.u32 4294901760, %v19143_v49  ;;  %37625 = vst [vmem:[#allocation102_spill] sm:$0xff] %v35634_v38  ;;  %v35659_v42 = vsub.f32 %v25402_v60, %v35634_v38  ;;  %v35661_v51 = vand.u32 4294901760, %v19530_v57 }
 0x58f   : > { %30132 = vmatmul.mubr.f32.vlgmr.msra.gmra.mxu0 %v35276_v33  ;;  %30157 = vmatprep.subr.mxu0 %v37336_v50  ;;  %v19157_v33 = vsub.f32 %v35469_v44, %v35494_v63  ;;  %37626 = vst [vmem:[#allocation105_spill] sm:$0xff] %v35644_v61  ;;  %37627 = vst [vmem:[#allocation107_spill] sm:$0xff] %v35647_v17  ;;  %v35667_v28 = vand.u32 4294901760, %v19637_v2  ;;  %v35681_v41 = vand.u32 4294901760, %v19644_v4 }
 0x590   : > { %30173 = vmatpush3.msra.mxu1 %v35477_v56  ;;  %30158 = vmatpush3.msra.mxu0 %v35385_v23  ;;  %37628 = vst [vmem:[#allocation109_spill] sm:$0xff] %v35656_v30  ;;  %37629 = vst [vmem:[#allocation96_spill] sm:$0xff] %v35659_v42  ;;  %v19658_v0 = vsub.f32 %v35632_v11, %v35656_v30  ;;  %v35686_v43 = vand.u32 4294901760, %v35659_v42  ;;  %v35689_v59 = vsub.f32 %v19530_v57, %v35661_v51 }
 0x591   : > { %30174 = vmatprep.subr.mxu1 %v37336_v50  ;;  %30159 = vmatprep.subr.mxu0 %v37336_v50  ;;  %v35525_v45 = vand.u32 4294901760, %v19157_v33  ;;  %v19651_v33 = vsub.f32 %v35619_v52, %v35644_v61  ;;  %vm17289_vm15 = vcmp.ge.f32.partialorder %v35497_v47, 0.0 }
 0x592   : > { %30175 = vmatpush3.msra.mxu1 %v35489_v27  ;;  %30160 = vmatpush3.msra.mxu0 %v35394_v12  ;;  %37631 = vst [vmem:[#allocation26_spill] sm:$0xff] %v35686_v43  ;;  %v35703_v26 = vand.u32 4294901760, %v19658_v0  ;;  %v19672_v60 = vsub.f32 %v35659_v42, %v35686_v43  ;;  %v19605_v10 = vand.u32 4294901760, %v35689_v59 }
 0x593   : > { %30176 = vmatprep.subr.mxu1 %v37336_v50  ;;  %30161 = vmatprep.subr.mxu0 %v37336_v50  ;;  %v35695_v25 = vand.u32 4294901760, %v19651_v33 }
 0x594   : > { %30177 = vmatpush3.msra.mxu1 %v35503_v13  ;;  %30162 = vmatpush3.msra.mxu0 %v35406_v22  ;;  %37633 = vst [vmem:[#allocation67_spill] sm:$0xff] %v35703_v26  ;;  %v35718_v2 = vand.u32 4294901760, %v19672_v60  ;;  %v19606_v4 = vsub.f32 %v35689_v59, %v19605_v10 }
 0x595   : > { %30178 = vmatprep.subr.mxu1 %v37336_v50  ;;  %30163 = vmatprep.subr.mxu0 %v37336_v50  ;;  %37632 = vst [vmem:[#allocation18_spill] sm:$0xff] %v35695_v25 }
 0x596   : > { %30179 = vmatpush3.msra.mxu1 %v35511_v35  ;;  %30164 = vmatpush3.msra.mxu0 %v35418_v19  ;;  %37635 = vst [vmem:[#allocation73_spill] sm:$0xff] %v35718_v2 }
 0x597   : > { %30180 = vmatprep.subr.mxu1 %v37336_v50  ;;  %30165 = vmatprep.subr.mxu0 %v37336_v50 }
 0x598   : > { %30181 = vmatpush3.msra.mxu1 %v35519_v58  ;;  %30166 = vmatpush3.msra.mxu0 %v35433_v18 }
 0x599   : > { %30182 = vmatprep.subr.mxu1 %v37336_v50  ;;  %30167 = vmatprep.subr.mxu0 %v37336_v50 }
 0x59a   : > { %30183 = vmatpush3.msra.mxu1 %v35525_v45  ;;  %30168 = vmatpush3.msra.mxu0 %v35445_v46 }
 0x59b   : > { %30169 = vmatprep.mubr.msk.f32.mxu0 %vm31316_vm1, %v37336_v50  ;;  %30184 = vmatprep.mubr.msk.f32.mxu1 %vm31316_vm1, %v37336_v50 }
 0x59c   : > { %30202 = vmatprep.subr.mxu1 %v37336_v50  ;;  %30170 = vmatmul.mubr.f32.vlgmr.msra.gmra.mxu0 %v37336_v50 }
 0x59d   : > { %30185 = vmatmul.mubr.f32.vlgmr.msra.gmra.mxu1 %v37336_v50  ;;  %30187 = vmatprep.subr.mxu0 %v37336_v50 }
 0x59e   : > { %30203 = vmatpush3.msra.mxu1 %v35385_v23  ;;  %30188 = vmatpush3.msra.mxu0 %v35404_v16  ;;  %v17494_v36 = vpop.f32.mrf.mxu1 }
 0x59f   : > { %30204 = vmatprep.subr.mxu1 %v37336_v50  ;;  %30189 = vmatprep.subr.mxu0 %v37336_v50  ;;  %v17373_v40 = vpop.f32.mrf.mxu0 }
 0x5a0   : > { %30205 = vmatpush3.msra.mxu1 %v35394_v12  ;;  %30190 = vmatpush3.msra.mxu0 %v35416_v54  ;;  %v35549_v14 = vadd.f32 %v17494_v36, %v17373_v40  ;;  %v29788_v21 = vpop.f32.mrf.mxu1  ;;  %v35672_v36 = vand.u32 4294901760, %v35647_v17 }
 0x5a1   : > { %30206 = vmatprep.subr.mxu1 %v37336_v50  ;;  %30191 = vmatprep.subr.mxu0 %v37336_v50  ;;  %v29765_v29 = vpop.f32.mrf.mxu0 }
 0x5a2   : > { %30207 = vmatpush3.msra.mxu1 %v35406_v22  ;;  %30192 = vmatpush3.msra.mxu0 %v35431_v55  ;;  %37630 = vst [vmem:[#allocation23_spill] sm:$0xff] %v35672_v36  ;;  %v19665_v62 = vsub.f32 %v35647_v17, %v35672_v36 }
 0x5a3   : > { %30208 = vmatprep.subr.mxu1 %v37336_v50  ;;  %30193 = vmatprep.subr.mxu0 %v37336_v50 }
 0x5a4   : > { %30209 = vmatpush3.msra.mxu1 %v35418_v19  ;;  %30194 = vmatpush3.msra.mxu0 %v35443_v20  ;;  %v35712_v57 = vand.u32 4294901760, %v19665_v62 }
 0x5a5   : > { %30210 = vmatprep.subr.mxu1 %v37336_v50  ;;  %30195 = vmatprep.subr.mxu0 %v37336_v50 }
 0x5a6   : > { %30211 = vmatpush3.msra.mxu1 %v35433_v18  ;;  %30196 = vmatpush3.msra.mxu0 %v35457_v39  ;;  %37634 = vst [vmem:[#allocation70_spill] sm:$0xff] %v35712_v57 }
 0x5a7   : > { %30212 = vmatprep.subr.mxu1 %v37336_v50  ;;  %30197 = vmatprep.subr.mxu0 %v37336_v50 }
 0x5a8   : > { %30213 = vmatpush3.msra.mxu1 %v35445_v46  ;;  %30198 = vmatpush3.msra.mxu0 %v35469_v44 }
 0x5a9   : > { %30199 = vmatprep.mubr.msk.f32.mxu0 %vm31316_vm1, %v37336_v50  ;;  %30214 = vmatprep.mubr.msk.f32.mxu1 %vm31316_vm1, %v37336_v50 }
 0x5aa   : > { %30232 = vmatprep.subr.mxu1 %v37336_v50  ;;  %30200 = vmatmul.mubr.f32.vlgmr.msra.gmra.mxu0 %v37336_v50 }
 0x5ab   : > { %30215 = vmatmul.mubr.f32.vlgmr.msra.gmra.mxu1 %v37336_v50  ;;  %30217 = vmatprep.subr.mxu0 %v37336_v50 }
 0x5ac   : > { %30233 = vmatpush3.msra.mxu1 %v35385_v23  ;;  %30218 = vmatpush3.msra.mxu0 %v35428_v3 }
 0x5ad   : > { %30234 = vmatprep.subr.mxu1 %v37336_v50  ;;  %30219 = vmatprep.subr.mxu0 %v37336_v50 }
 0x5ae   : > { %30235 = vmatpush3.msra.mxu1 %v35394_v12  ;;  %30220 = vmatpush3.msra.mxu0 %v35440_v34 }
 0x5af   : > { %30236 = vmatprep.subr.mxu1 %v37336_v50  ;;  %30221 = vmatprep.subr.mxu0 %v37336_v50 }
 0x5b0   : > { %30237 = vmatpush3.msra.mxu1 %v35406_v22  ;;  %30222 = vmatpush3.msra.mxu0 %v35454_v5 }
 0x5b1   : > { %30238 = vmatprep.subr.mxu1 %v37336_v50  ;;  %30223 = vmatprep.subr.mxu0 %v37336_v50 }
 0x5b2   : > { %30239 = vmatpush3.msra.mxu1 %v35418_v19  ;;  %30224 = vmatpush3.msra.mxu0 %v35466_v37 }
 0x5b3   : > { %30240 = vmatprep.subr.mxu1 %v37336_v50  ;;  %30225 = vmatprep.subr.mxu0 %v37336_v50 }
 0x5b4   : > { %30241 = vmatpush3.msra.mxu1 %v35433_v18  ;;  %30226 = vmatpush3.msra.mxu0 %v35482_v24  ;;  %v17669_v9 = vpop.f32.mrf.mxu1 }
 0x5b5   : > { %30242 = vmatprep.subr.mxu1 %v37336_v50  ;;  %30227 = vmatprep.subr.mxu0 %v37336_v50  ;;  %v17586_v49 = vpop.f32.mrf.mxu0 }
 0x5b6   : > { %30243 = vmatpush3.msra.mxu1 %v35445_v46  ;;  %30228 = vmatpush3.msra.mxu0 %v35494_v63  ;;  %v17587_v40 = vadd.f32 %v17586_v49, %v35549_v14  ;;  %v29834_v21 = vpop.f32.mrf.mxu1 }
 0x5b7   : > { %30229 = vmatprep.mubr.msk.f32.mxu0 %vm31316_vm1, %v37336_v50  ;;  %30244 = vmatprep.mubr.msk.f32.mxu1 %vm31316_vm1, %v37336_v50  ;;  %v29811_v29 = vpop.f32.mrf.mxu0 }
 0x5b8   : > { %30262 = vmatprep.subr.mxu1 %v37336_v50  ;;  %30230 = vmatmul.mubr.f32.vlgmr.msra.gmra.mxu0 %v37336_v50  ;;  %v17670_v14 = vadd.f32 %v17669_v9, %v17587_v40  ;;  %v19607_v9 = vand.u32 4294901760, %v19606_v4  ;;  %v25413_v29 = vld [vmem:[%s37609_s5 + $0x88] sm:$0xff]  ;;  %v25411_v4 = vld [vmem:[%s37609_s5 + $0x78] sm:$0xff] }
 0x5b9   : > { %30245 = vmatmul.mubr.f32.vlgmr.msra.gmra.mxu1 %v37336_v50  ;;  %30247 = vmatprep.subr.mxu0 %v37336_v50  ;;  %v35762_v60 = vand.u32 4294901760, %v25413_v29 }
 0x5ba   : > { %30263 = vmatpush3.msra.mxu1 %v35667_v28  ;;  %30248 = vmatpush3.msra.mxu0 %v35569_v32 }
 0x5bb   : > { %30264 = vmatprep.subr.mxu1 %v37336_v50  ;;  %30249 = vmatprep.subr.mxu0 %v37336_v50 }
 0x5bc   : > { %30265 = vmatpush3.msra.mxu1 %v35681_v41  ;;  %30250 = vmatpush3.msra.mxu0 %v35578_v31 }
 0x5bd   : > { %30266 = vmatprep.subr.mxu1 %v37336_v50  ;;  %30251 = vmatprep.subr.mxu0 %v37336_v50 }
 0x5be   : > { %30267 = vmatpush3.msra.mxu1 %v35695_v25  ;;  %30252 = vmatpush3.msra.mxu0 %v35592_v7 }
 0x5bf   : > { %30268 = vmatprep.subr.mxu1 %v37336_v50  ;;  %30253 = vmatprep.subr.mxu0 %v37336_v50 }
 0x5c0   : > { %30269 = vmatpush3.msra.mxu1 %v35703_v26  ;;  %30254 = vmatpush3.msra.mxu0 %v35606_v8 }
 0x5c1   : > { %30270 = vmatprep.subr.mxu1 %v37336_v50  ;;  %30255 = vmatprep.subr.mxu0 %v37336_v50 }
 0x5c2   : > { %30271 = vmatpush3.msra.mxu1 %v35712_v57  ;;  %30256 = vmatpush3.msra.mxu0 %v35621_v53 }
 0x5c3   : > { %30272 = vmatprep.subr.mxu1 %v37336_v50  ;;  %30257 = vmatprep.subr.mxu0 %v37336_v50 }
 0x5c4   : > { %30273 = vmatpush3.msra.mxu1 %v35718_v2  ;;  %30274 = vmatprep.mubr.msk.f32.mxu1 %vm31316_vm1, %v37336_v50 }
 0x5c5   : > { %30258 = vmatpush3.msra.mxu0 %v35634_v38  ;;  %30259 = vmatprep.mubr.msk.f32.mxu0 %vm31316_vm1, %v37336_v50 }
 0x5c6   : > { %30275 = vmatmul.mubr.f32.vlgmr.msra.gmra.mxu1 %v35661_v51  ;;  %30292 = vmatprep.subr.mxu1 %v37336_v50 }
 0x5c7   : > { %30260 = vmatmul.mubr.f32.vlgmr.msra.gmra.mxu0 %v19607_v9  ;;  %30277 = vmatprep.subr.mxu0 %v37336_v50 }
 0x5c8   : > { %30293 = vmatpush3.msra.mxu1 %v35569_v32  ;;  %30278 = vmatpush3.msra.mxu0 %v35590_v48 }
 0x5c9   : > { %30294 = vmatprep.subr.mxu1 %v37336_v50  ;;  %30279 = vmatprep.subr.mxu0 %v37336_v50 }
 0x5ca   : > { %30295 = vmatpush3.msra.mxu1 %v35578_v31  ;;  %30280 = vmatpush3.msra.mxu0 %v35604_v6  ;;  %v17851_v49 = vpop.f32.mrf.mxu1 }
 0x5cb   : > { %30296 = vmatprep.subr.mxu1 %v37336_v50  ;;  %30281 = vmatprep.subr.mxu0 %v37336_v50  ;;  %v17770_v33 = vpop.f32.mrf.mxu0 }
 0x5cc   : > { %30297 = vmatpush3.msra.mxu1 %v35592_v7  ;;  %30282 = vmatpush3.msra.mxu0 %v35619_v52  ;;  %v17771_v40 = vadd.f32 %v17770_v33, %v17670_v14  ;;  %v29880_v21 = vpop.f32.mrf.mxu1  ;;  %v25412_v14 = vld [vmem:[%s37609_s5 + $0x80] sm:$0xff]  ;;  %v35782_v33 = vsub.f32 %v25413_v29, %v35762_v60 }
 0x5cd   : > { %30298 = vmatprep.subr.mxu1 %v37336_v50  ;;  %30283 = vmatprep.subr.mxu0 %v37336_v50  ;;  %v29857_v0 = vpop.f32.mrf.mxu0  ;;  %v35772_v9 = vand.u32 4294901760, %v25412_v14  ;;  %v37636_v21 = vld [vmem:[#allocation55_spill] sm:$0xff] }
 0x5ce   : > { %30299 = vmatpush3.msra.mxu1 %v35606_v8  ;;  %30284 = vmatpush3.msra.mxu0 %v35632_v11  ;;  %v35753_v62 = vadd.f32 %v17851_v49, %v17771_v40  ;;  %v25410_v49 = vld [vmem:[%s37609_s5 + $0x70] sm:$0xff]  ;;  %v35784_v40 = vand.u32 4294901760, %v25411_v4  ;;  %v15589_v0 = vmul.f32 0.05, %v37636_v21  ;;  %vm15588_vm14 = vcmp.ge.f32.partialorder %v37636_v21, 0.0 }
 0x5cf   : > { %30300 = vmatprep.subr.mxu1 %v37336_v50  ;;  %30285 = vmatprep.subr.mxu0 %v37336_v50  ;;  %v35798_v29 = vand.u32 4294901760, %v25410_v49 }
 0x5d0   : > { %30301 = vmatpush3.msra.mxu1 %v35621_v53  ;;  %30286 = vmatpush3.msra.mxu0 %v35647_v17  ;;  %v35808_v17 = vand.u32 4294901760, %v35782_v33  ;;  %v15590_v11 = vsel %vm15588_vm14, %v37636_v21, %v15589_v0 }
 0x5d1   : > { %30302 = vmatprep.subr.mxu1 %v37336_v50  ;;  %30287 = vmatprep.subr.mxu0 %v37336_v50  ;;  %v35824_v52 = vsub.f32 %v25410_v49, %v35798_v29  ;;  %v20045_v21 = vsel %vm19014_vm13, %v15590_v11, 0 }
 0x5d2   : > { %30303 = vmatpush3.msra.mxu1 %v35634_v38  ;;  %30304 = vmatprep.mubr.msk.f32.mxu1 %vm31316_vm1, %v37336_v50  ;;  %v20152_v0 = vsub.f32 %v35782_v33, %v35808_v17  ;;  %v35853_v48 = vand.u32 4294901760, %v20045_v21 }
 0x5d3   : > { %30288 = vmatpush3.msra.mxu0 %v35659_v42  ;;  %30289 = vmatprep.mubr.msk.f32.mxu0 %vm31316_vm1, %v37336_v50  ;;  %v25409_v42 = vld [vmem:[%s37609_s5 + $0x68] sm:$0xff] }
 0x5d4   : > { %30305 = vmatmul.mubr.f32.vlgmr.msra.gmra.mxu1 %v19605_v10  ;;  %30322 = vmatprep.subr.mxu1 %v37336_v50  ;;  %v35796_v10 = vsub.f32 %v25412_v14, %v35772_v9  ;;  %v35811_v14 = vsub.f32 %v25411_v4, %v35784_v40 }
 0x5d5   : > { %30290 = vmatmul.mubr.f32.vlgmr.msra.gmra.mxu0 %v35689_v59  ;;  %30307 = vmatprep.subr.mxu0 %v37336_v50  ;;  %v25408_v59 = vld [vmem:[%s37609_s5 + $0x60] sm:$0xff]  ;;  %s37669_s5 = smov 96  }
 0x5d6   : > { %30323 = vmatpush3.msra.mxu1 %v35569_v32  ;;  %30308 = vmatpush3.msra.mxu0 %v35616_v1  ;;  %37637 = vst [vmem:[#allocation60_spill] sm:$0xff] %v35796_v10  ;;  %37638 = vst [vmem:[#allocation111_spill] sm:$0xff] %v35811_v14  ;;  %v35813_v1 = vand.u32 4294901760, %v25409_v42  ;;  %v35826_v4 = vand.u32 4294901760, %v25408_v59 }
 0x5d7   : > { %30324 = vmatprep.subr.mxu1 %v37336_v50  ;;  %30309 = vmatprep.subr.mxu0 %v37336_v50 }
 0x5d8   : > { %30325 = vmatpush3.msra.mxu1 %v35578_v31  ;;  %30310 = vmatpush3.msra.mxu0 %v35629_v15  ;;  %v35821_v15 = vand.u32 4294901760, %v35796_v10  ;;  %v35839_v49 = vsub.f32 %v25409_v42, %v35813_v1  ;;  %v35851_v6 = vsub.f32 %v25408_v59, %v35826_v4  ;;  %v35860_v42 = vand.u32 4294901760, %v20152_v0 }
 0x5d9   : > { %30326 = vmatprep.subr.mxu1 %v37336_v50  ;;  %30311 = vmatprep.subr.mxu0 %v37336_v50 }
 0x5da   : > { %30327 = vmatpush3.msra.mxu1 %v35592_v7  ;;  %30312 = vmatpush3.msra.mxu0 %v35644_v61  ;;  %v35836_v61 = vand.u32 4294901760, %v35811_v14  ;;  %v20159_v11 = vsub.f32 %v35796_v10, %v35821_v15  ;;  %v35865_v2 = vand.u32 4294901760, %v35839_v49  ;;  %v35877_v57 = vand.u32 4294901760, %v35851_v6 }
 0x5db   : > { %30328 = vmatprep.subr.mxu1 %v37336_v50  ;;  %30313 = vmatprep.subr.mxu0 %v37336_v50 }
 0x5dc   : > { %30329 = vmatpush3.msra.mxu1 %v35606_v8  ;;  %30314 = vmatpush3.msra.mxu0 %v35656_v30  ;;  %v35848_v30 = vand.u32 4294901760, %v35824_v52  ;;  %37639 = vst [vmem:[#allocation113_spill] sm:$0xff] %v35877_v57  ;;  %v20180_v25 = vsub.f32 %v35839_v49, %v35865_v2 }
 0x5dd   : > { %30330 = vmatprep.subr.mxu1 %v37336_v50  ;;  %30315 = vmatprep.subr.mxu0 %v37336_v50 }
 0x5de   : > { %30331 = vmatpush3.msra.mxu1 %v35621_v53  ;;  %30316 = vmatpush3.msra.mxu0 %v35672_v36  ;;  %v20166_v36 = vsub.f32 %v35811_v14, %v35836_v61  ;;  %v20173_v0 = vsub.f32 %v35824_v52, %v35848_v30 }
 0x5df   : > { %30332 = vmatprep.subr.mxu1 %v37336_v50  ;;  %30317 = vmatprep.subr.mxu0 %v37336_v50 }
 0x5e0   : > { %30333 = vmatpush3.msra.mxu1 %v35634_v38  ;;  %30334 = vmatprep.mubr.msk.f32.mxu1 %vm31316_vm1, %v37336_v50  ;;  %v18061_v59 = vpop.f32.mrf.mxu1  ;;  %v35872_v38 = vand.u32 4294901760, %v20159_v11  ;;  %v35886_v11 = vand.u32 4294901760, %v20166_v36  ;;  %v35905_v36 = vand.u32 4294901760, %v20180_v25 }
 0x5e1   : > { %30318 = vmatpush3.msra.mxu0 %v35686_v43  ;;  %30319 = vmatprep.mubr.msk.f32.mxu0 %vm31316_vm1, %v37336_v50  ;;  %v17940_v53 = vpop.f32.mrf.mxu0  ;;  %v35880_v43 = vsub.f32 %v20045_v21, %v35853_v48 }
 0x5e2   : > { %30335 = vmatmul.mubr.f32.vlgmr.msra.gmra.mxu1 %v35661_v51  ;;  %30352 = vmatprep.subr.mxu1 %v37336_v50  ;;  %v18062_v8 = vadd.f32 %v18061_v59, %v17940_v53  ;;  %v29926_v26 = vpop.f32.mrf.mxu1  ;;  %v35894_v53 = vand.u32 4294901760, %v20173_v0 }
 0x5e3   : > { %30320 = vmatmul.mubr.f32.vlgmr.msra.gmra.mxu0 %v35661_v51  ;;  %30337 = vmatprep.subr.mxu0 %v37336_v50  ;;  %v29903_v7 = vpop.f32.mrf.mxu0  ;;  %v35901_v51 = vand.u32 4294901760, %v35880_v43 }
 0x5e4   : > { %30353 = vmatpush3.msra.mxu1 %v35860_v42  ;;  %30338 = vmatpush3.msra.mxu0 %v35762_v60  ;;  %v20187_v7 = vsub.f32 %v35851_v6, %v35877_v57 }
 0x5e5   : > { %30354 = vmatprep.subr.mxu1 %v37336_v50  ;;  %30339 = vmatprep.subr.mxu0 %v37336_v50  ;;  %v20121_v21 = vsub.f32 %v35880_v43, %v35901_v51 }
 0x5e6   : > { %30355 = vmatpush3.msra.mxu1 %v35872_v38  ;;  %30340 = vmatpush3.msra.mxu0 %v35772_v9  ;;  %v35911_v26 = vand.u32 4294901760, %v20187_v7 }
 0x5e7   : > { %30356 = vmatprep.subr.mxu1 %v37336_v50  ;;  %30341 = vmatprep.subr.mxu0 %v37336_v50  ;;  %v35927_v25 = vand.u32 4294901760, %v20121_v21 }
 0x5e8   : > { %30357 = vmatpush3.msra.mxu1 %v35886_v11  ;;  %30342 = vmatpush3.msra.mxu0 %v35784_v40 }
 0x5e9   : > { %30358 = vmatprep.subr.mxu1 %v37336_v50  ;;  %30343 = vmatprep.subr.mxu0 %v37336_v50 }
 0x5ea   : > { %30359 = vmatpush3.msra.mxu1 %v35894_v53  ;;  %30344 = vmatpush3.msra.mxu0 %v35798_v29 }
 0x5eb   : > { %30360 = vmatprep.subr.mxu1 %v37336_v50  ;;  %30345 = vmatprep.subr.mxu0 %v37336_v50 }
 0x5ec   : > { %30361 = vmatpush3.msra.mxu1 %v35905_v36  ;;  %30346 = vmatpush3.msra.mxu0 %v35813_v1 }
 0x5ed   : > { %30362 = vmatprep.subr.mxu1 %v37336_v50  ;;  %30347 = vmatprep.subr.mxu0 %v37336_v50 }
 0x5ee   : > { %30363 = vmatpush3.msra.mxu1 %v35911_v26  ;;  %30364 = vmatprep.mubr.msk.f32.mxu1 %vm31316_vm1, %v37336_v50 }
 0x5ef   : > { %30348 = vmatpush3.msra.mxu0 %v35826_v4  ;;  %30349 = vmatprep.mubr.msk.f32.mxu0 %vm31316_vm1, %v37336_v50 }
 0x5f0   : > { %30365 = vmatmul.mubr.f32.vlgmr.msra.gmra.mxu1 %v35853_v48  ;;  %30382 = vmatprep.subr.mxu1 %v37336_v50 }
 0x5f1   : > { %30350 = vmatmul.mubr.f32.vlgmr.msra.gmra.mxu0 %v35927_v25  ;;  %30367 = vmatprep.subr.mxu0 %v37336_v50 }
 0x5f2   : > { %30383 = vmatpush3.msra.mxu1 %v35762_v60  ;;  %30368 = vmatpush3.msra.mxu0 %v35782_v33 }
 0x5f3   : > { %30384 = vmatprep.subr.mxu1 %v37336_v50  ;;  %30369 = vmatprep.subr.mxu0 %v37336_v50 }
 0x5f4   : > { %30385 = vmatpush3.msra.mxu1 %v35772_v9  ;;  %30370 = vmatpush3.msra.mxu0 %v35796_v10 }
 0x5f5   : > { %30386 = vmatprep.subr.mxu1 %v37336_v50  ;;  %30371 = vmatprep.subr.mxu0 %v37336_v50 }
 0x5f6   : > { %30387 = vmatpush3.msra.mxu1 %v35784_v40  ;;  %30372 = vmatpush3.msra.mxu0 %v35811_v14  ;;  %v18236_v59 = vpop.f32.mrf.mxu1 }
 0x5f7   : > { %30388 = vmatprep.subr.mxu1 %v37336_v50  ;;  %30373 = vmatprep.subr.mxu0 %v37336_v50  ;;  %v18153_v0 = vpop.f32.mrf.mxu0 }
 0x5f8   : > { %30389 = vmatpush3.msra.mxu1 %v35798_v29  ;;  %30374 = vmatpush3.msra.mxu0 %v35824_v52  ;;  %v18154_v7 = vadd.f32 %v18153_v0, %v18062_v8  ;;  %v29972_v21 = vpop.f32.mrf.mxu1 }
 0x5f9   : > { %30390 = vmatprep.subr.mxu1 %v37336_v50  ;;  %30375 = vmatprep.subr.mxu0 %v37336_v50  ;;  %v29949_v10 = vpop.f32.mrf.mxu0  ;;  %v31140_v21 = vld [vmem:[%s37452_s30] sm:$0x1] }
 0x5fa   : > { %30391 = vmatpush3.msra.mxu1 %v35813_v1  ;;  %30376 = vmatpush3.msra.mxu0 %v35839_v49  ;;  %v18237_v14 = vadd.f32 %v18236_v59, %v18154_v7 }
 0x5fb   : > { %30392 = vmatprep.subr.mxu1 %v37336_v50  ;;  %30377 = vmatprep.subr.mxu0 %v37336_v50 }
 0x5fc   : > { %30393 = vmatpush3.msra.mxu1 %v35826_v4  ;;  %30394 = vmatprep.mubr.msk.f32.mxu1 %vm31316_vm1, %v37336_v50 }
 0x5fd   : > { %30378 = vmatpush3.msra.mxu0 %v35851_v6  ;;  %30379 = vmatprep.mubr.msk.f32.mxu0 %vm31316_vm1, %v37336_v50 }
 0x5fe   : > { %30395 = vmatmul.mubr.f32.vlgmr.msra.gmra.mxu1 %v35901_v51  ;;  %30412 = vmatprep.subr.mxu1 %v37336_v50 }
 0x5ff   : > { %30380 = vmatmul.mubr.f32.vlgmr.msra.gmra.mxu0 %v35880_v43  ;;  %30397 = vmatprep.subr.mxu0 %v37336_v50 }
 0x600   : > { %30413 = vmatpush3.msra.mxu1 %v35762_v60  ;;  %30398 = vmatpush3.msra.mxu0 %v35808_v17 }
 0x601   : > { %30414 = vmatprep.subr.mxu1 %v37336_v50  ;;  %30399 = vmatprep.subr.mxu0 %v37336_v50 }
 0x602   : > { %30415 = vmatpush3.msra.mxu1 %v35772_v9  ;;  %30400 = vmatpush3.msra.mxu0 %v35821_v15 }
 0x603   : > { %30416 = vmatprep.subr.mxu1 %v37336_v50  ;;  %30401 = vmatprep.subr.mxu0 %v37336_v50 }
 0x604   : > { %30417 = vmatpush3.msra.mxu1 %v35784_v40  ;;  %30402 = vmatpush3.msra.mxu0 %v35836_v61 }
 0x605   : > { %30418 = vmatprep.subr.mxu1 %v37336_v50  ;;  %30403 = vmatprep.subr.mxu0 %v37336_v50 }
 0x606   : > { %30419 = vmatpush3.msra.mxu1 %v35798_v29  ;;  %30404 = vmatpush3.msra.mxu0 %v35848_v30 }
 0x607   : > { %30420 = vmatprep.subr.mxu1 %v37336_v50  ;;  %30405 = vmatprep.subr.mxu0 %v37336_v50 }
 0x608   : > { %30421 = vmatpush3.msra.mxu1 %v35813_v1  ;;  %30406 = vmatpush3.msra.mxu0 %v35865_v2 }
 0x609   : > { %30422 = vmatprep.subr.mxu1 %v37336_v50  ;;  %30407 = vmatprep.subr.mxu0 %v37336_v50 }
 0x60a   : > { %30423 = vmatpush3.msra.mxu1 %v35826_v4  ;;  %30424 = vmatprep.mubr.msk.f32.mxu1 %vm31316_vm1, %v37336_v50 }
 0x60b   : > { %30408 = vmatpush3.msra.mxu0 %v35877_v57  ;;  %30409 = vmatprep.mubr.msk.f32.mxu0 %vm31316_vm1, %v37336_v50  ;;  %v17855_v57 = vadd.f32 %v31140_v21, %v35753_v62  ;;  %v37651_v62 = vld [vmem:[#allocation100_spill] sm:$0xff] }
 0x60c   : > { %30425 = vmatmul.mubr.f32.vlgmr.msra.gmra.mxu1 %v35853_v48  ;;  %30442 = vmatprep.subr.mxu1 %v37336_v50  ;;  %v18418_v8 = vpop.f32.mrf.mxu1 }
 0x60d   : > { %30410 = vmatmul.mubr.f32.vlgmr.msra.gmra.mxu0 %v35853_v48  ;;  %30427 = vmatprep.subr.mxu0 %v37336_v50  ;;  %v18337_v10 = vpop.f32.mrf.mxu0 }
 0x60e   : > { %30443 = vmatpush3.msra.mxu1 %v35477_v56  ;;  %30428 = vmatpush3.msra.mxu0 %v35385_v23  ;;  %v18338_v59 = vadd.f32 %v18337_v10, %v18237_v14  ;;  %v30018_v0 = vpop.f32.mrf.mxu1 }
 0x60f   : > { %30444 = vmatprep.subr.mxu1 %v37336_v50  ;;  %30429 = vmatprep.subr.mxu0 %v37336_v50  ;;  %v29995_v7 = vpop.f32.mrf.mxu0 }
 0x610   : > { %30445 = vmatpush3.msra.mxu1 %v35489_v27  ;;  %30430 = vmatpush3.msra.mxu0 %v35394_v12  ;;  %v18419_v56 = vadd.f32 %v18418_v8, %v18338_v59  ;;  %v37653_v7 = vld [vmem:[#allocation96_spill] sm:$0xff] }
 0x611   : > { %30446 = vmatprep.subr.mxu1 %v37336_v50  ;;  %30431 = vmatprep.subr.mxu0 %v37336_v50 }
 0x612   : > { %30447 = vmatpush3.msra.mxu1 %v35503_v13  ;;  %30432 = vmatpush3.msra.mxu0 %v35406_v22  ;;  %v36007_v14 = vadd.f32 %v18419_v56, %v17855_v57  ;;  %v37645_v13 = vld [vmem:[#allocation89_spill] sm:$0xff] }
 0x613   : > { %30448 = vmatprep.subr.mxu1 %v37336_v50  ;;  %30433 = vmatprep.subr.mxu0 %v37336_v50 }
 0x614   : > { %30449 = vmatpush3.msra.mxu1 %v35511_v35  ;;  %30434 = vmatpush3.msra.mxu0 %v35418_v19  ;;  %v37646_v35 = vld [vmem:[#allocation73_spill] sm:$0xff] }
 0x615   : > { %30450 = vmatprep.subr.mxu1 %v37336_v50  ;;  %30435 = vmatprep.subr.mxu0 %v37336_v50 }
 0x616   : > { %30451 = vmatpush3.msra.mxu1 %v35519_v58  ;;  %30436 = vmatpush3.msra.mxu0 %v35433_v18  ;;  %v37647_v58 = vld [vmem:[#allocation102_spill] sm:$0xff] }
 0x617   : > { %30452 = vmatprep.subr.mxu1 %v37336_v50  ;;  %30437 = vmatprep.subr.mxu0 %v37336_v50 }
 0x618   : > { %30453 = vmatpush3.msra.mxu1 %v35525_v45  ;;  %30454 = vmatprep.mubr.msk.f32.mxu1 %vm31316_vm1, %v37336_v50 }
 0x619   : > { %30438 = vmatpush3.msra.mxu0 %v35445_v46  ;;  %30439 = vmatprep.mubr.msk.f32.mxu0 %vm31316_vm1, %v37336_v50 }
 0x61a   : > { %30455 = vmatmul.mubr.f32.vlgmr.msra.gmra.mxu1 %v35853_v48  ;;  %30472 = vmatprep.subr.mxu1 %v37336_v50 }
 0x61b   : > { %30440 = vmatmul.mubr.f32.vlgmr.msra.gmra.mxu0 %v35927_v25  ;;  %30457 = vmatprep.subr.mxu0 %v37336_v50 }
 0x61c   : > { %30473 = vmatpush3.msra.mxu1 %v35385_v23  ;;  %30458 = vmatpush3.msra.mxu0 %v35404_v16 }
 0x61d   : > { %30474 = vmatprep.subr.mxu1 %v37336_v50  ;;  %30459 = vmatprep.subr.mxu0 %v37336_v50 }
 0x61e   : > { %30475 = vmatpush3.msra.mxu1 %v35394_v12  ;;  %30460 = vmatpush3.msra.mxu0 %v35416_v54 }
 0x61f   : > { %30476 = vmatprep.subr.mxu1 %v37336_v50  ;;  %30461 = vmatprep.subr.mxu0 %v37336_v50 }
 0x620   : > { %30477 = vmatpush3.msra.mxu1 %v35406_v22  ;;  %30462 = vmatpush3.msra.mxu0 %v35431_v55 }
 0x621   : > { %30478 = vmatprep.subr.mxu1 %v37336_v50  ;;  %30463 = vmatprep.subr.mxu0 %v37336_v50 }
 0x622   : > { %30479 = vmatpush3.msra.mxu1 %v35418_v19  ;;  %30464 = vmatpush3.msra.mxu0 %v35443_v20  ;;  %v36043_v16 = vpop.f32.mrf.mxu1  ;;  %v17290_v20 = vmul.f32 0.05, %v35497_v47 }
 0x623   : > { %30480 = vmatprep.subr.mxu1 %v37336_v50  ;;  %30465 = vmatprep.subr.mxu0 %v37336_v50  ;;  %v36047_v54 = vpop.f32.mrf.mxu0 }
 0x624   : > { %30481 = vmatpush3.msra.mxu1 %v35433_v18  ;;  %30466 = vmatpush3.msra.mxu0 %v35457_v39  ;;  %v30064_v55 = vpop.f32.mrf.mxu1  ;;  %v17291_v39 = vsel %vm17289_vm15, %v35497_v47, %v17290_v20  ;;  %v37644_v47 = vld [vmem:[#allocation70_spill] sm:$0xff] }
 0x625   : > { %30482 = vmatprep.subr.mxu1 %v37336_v50  ;;  %30467 = vmatprep.subr.mxu0 %v37336_v50  ;;  %v30041_v27 = vpop.f32.mrf.mxu0  ;;  %v37655_v55 = vld [vmem:[#allocation91_spill] sm:$0xff] }
 0x626   : > { %30483 = vmatpush3.msra.mxu1 %v35445_v46  ;;  %30484 = vmatprep.mubr.msk.f32.mxu1 %vm31316_vm1, %v37336_v50 }
 0x627   : > { %30468 = vmatpush3.msra.mxu0 %v35469_v44  ;;  %30469 = vmatprep.mubr.msk.f32.mxu0 %vm31316_vm1, %v37336_v50  ;;  %v37642_v44 = vld [vmem:[#allocation67_spill] sm:$0xff] }
 0x628   : > { %30485 = vmatmul.mubr.f32.vlgmr.msra.gmra.mxu1 %v35901_v51  ;;  %30502 = vmatprep.subr.mxu1 %v37336_v50  ;;  %v37652_v51 = vld [vmem:[#allocation107_spill] sm:$0xff] }
 0x629   : > { %30470 = vmatmul.mubr.f32.vlgmr.msra.gmra.mxu0 %v35880_v43  ;;  %30487 = vmatprep.subr.mxu0 %v37336_v50  ;;  %v37650_v43 = vld [vmem:[#allocation17_spill] sm:$0xff] }
 0x62a   : > { %30503 = vmatpush3.msra.mxu1 %v35385_v23  ;;  %30488 = vmatpush3.msra.mxu0 %v35428_v3  ;;  %v21075_v23 = vsel %vm19014_vm13, %v17291_v39, 0  ;;  %v37658_v39 = vld [vmem:[#allocation23_spill] sm:$0xff] }
 0x62b   : > { %30504 = vmatprep.subr.mxu1 %v37336_v50  ;;  %30489 = vmatprep.subr.mxu0 %v37336_v50 }
 0x62c   : > { %30505 = vmatpush3.msra.mxu1 %v35394_v12  ;;  %30490 = vmatpush3.msra.mxu0 %v35440_v34  ;;  %v36085_v12 = vand.u32 4294901760, %v21075_v23 }
 0x62d   : > { %30506 = vmatprep.subr.mxu1 %v37336_v50  ;;  %30491 = vmatprep.subr.mxu0 %v37336_v50 }
 0x62e   : > { %30507 = vmatpush3.msra.mxu1 %v35406_v22  ;;  %30492 = vmatpush3.msra.mxu0 %v35454_v5  ;;  %v36098_v22 = vsub.f32 %v21075_v23, %v36085_v12  ;;  %v37640_v5 = vld [vmem:[#allocation18_spill] sm:$0xff] }
 0x62f   : > { %30508 = vmatprep.subr.mxu1 %v37336_v50  ;;  %30493 = vmatprep.subr.mxu0 %v37336_v50 }
 0x630   : > { %30509 = vmatpush3.msra.mxu1 %v35418_v19  ;;  %30494 = vmatpush3.msra.mxu0 %v35466_v37  ;;  %v21150_v34 = vand.u32 4294901760, %v36098_v22  ;;  %v37641_v37 = vld [vmem:[#allocation58_spill] sm:$0xff] }
 0x631   : > { %30510 = vmatprep.subr.mxu1 %v37336_v50  ;;  %30495 = vmatprep.subr.mxu0 %v37336_v50 }
 0x632   : > { %30511 = vmatpush3.msra.mxu1 %v35433_v18  ;;  %30496 = vmatpush3.msra.mxu0 %v35482_v24  ;;  %v37643_v24 = vld [vmem:[#allocation64_spill] sm:$0xff] }
 0x633   : > { %30512 = vmatprep.subr.mxu1 %v37336_v50  ;;  %30497 = vmatprep.subr.mxu0 %v37336_v50 }
 0x634   : > { %30513 = vmatpush3.msra.mxu1 %v35445_v46  ;;  %30514 = vmatprep.mubr.msk.f32.mxu1 %vm31316_vm1, %v37336_v50 }
 0x635   : > { %30498 = vmatpush3.msra.mxu0 %v35494_v63  ;;  %30499 = vmatprep.mubr.msk.f32.mxu0 %vm31316_vm1, %v37336_v50  ;;  %v21151_v63 = vsub.f32 %v36098_v22, %v21150_v34 }
 0x636   : > { %30515 = vmatmul.mubr.f32.vlgmr.msra.gmra.mxu1 %v35853_v48  ;;  %30532 = vmatprep.subr.mxu1 %v37336_v50 }
 0x637   : > { %30500 = vmatmul.mubr.f32.vlgmr.msra.gmra.mxu0 %v35853_v48  ;;  %30517 = vmatprep.subr.mxu0 %v37336_v50  ;;  %v21152_v45 = vand.u32 4294901760, %v21151_v63  ;;  %v37648_v48 = vld [vmem:[#allocation56_spill] sm:$0xff] }
 0x638   : > { %30533 = vmatpush3.msra.mxu1 %v35667_v28  ;;  %30518 = vmatpush3.msra.mxu0 %v35569_v32  ;;  %v18803_v19 = vpop.f32.mrf.mxu1  ;;  %v18629_v28 = vadd.f32 %v36043_v16, %v36047_v54  ;;  %v37654_v16 = vld [vmem:[#allocation81_spill] sm:$0xff]  ;;  %v37661_v63 = vld [vmem:[#allocation60_spill] sm:$0xff] }
 0x639   : > { %30534 = vmatprep.subr.mxu1 %v37336_v50  ;;  %30519 = vmatprep.subr.mxu0 %v37336_v50  ;;  %v18720_v3 = vpop.f32.mrf.mxu0 }
 0x63a   : > { %30535 = vmatpush3.msra.mxu1 %v35681_v41  ;;  %30520 = vmatpush3.msra.mxu0 %v35578_v31  ;;  %v30110_v18 = vpop.f32.mrf.mxu1  ;;  %v37649_v41 = vld [vmem:[#allocation61_spill] sm:$0xff]  ;;  %v18721_v57 = vadd.f32 %v18720_v3, %v18629_v28 }
 0x63b   : > { %30536 = vmatprep.subr.mxu1 %v37336_v50  ;;  %30521 = vmatprep.subr.mxu0 %v37336_v50  ;;  %v30087_v46 = vpop.f32.mrf.mxu0 }
 0x63c   : > { %30537 = vmatpush3.msra.mxu1 %v37640_v5  ;;  %30522 = vmatpush3.msra.mxu0 %v37641_v37  ;;  %v18804_v8 = vadd.f32 %v18803_v19, %v18721_v57 }
 0x63d   : > { %30538 = vmatprep.subr.mxu1 %v37336_v50  ;;  %30523 = vmatprep.subr.mxu0 %v37336_v50 }
 0x63e   : > { %30539 = vmatpush3.msra.mxu1 %v37642_v44  ;;  %30524 = vmatpush3.msra.mxu0 %v37643_v24 }
 0x63f   : > { %30540 = vmatprep.subr.mxu1 %v37336_v50  ;;  %30525 = vmatprep.subr.mxu0 %v37336_v50 }
 0x640   : > { %30541 = vmatpush3.msra.mxu1 %v37644_v47  ;;  %30526 = vmatpush3.msra.mxu0 %v37645_v13  ;;  %v22109_v47 = vld [vmem:[%s37660_s7 + $0x10] sm:$0xff] }
 0x641   : > { %30542 = vmatprep.subr.mxu1 %v37336_v50  ;;  %30527 = vmatprep.subr.mxu0 %v37336_v50 }
 0x642   : > { %30543 = vmatpush3.msra.mxu1 %v37646_v35  ;;  %30544 = vmatprep.mubr.msk.f32.mxu1 %vm31316_vm1, %v37336_v50  ;;  %v37662_v35 = vld [vmem:[#allocation111_spill] sm:$0xff] }
 0x643   : > { %30528 = vmatpush3.msra.mxu0 %v37647_v58  ;;  %30529 = vmatprep.mubr.msk.f32.mxu0 %vm31316_vm1, %v37336_v50 }
 0x644   : > { %30545 = vmatmul.mubr.f32.vlgmr.msra.gmra.mxu1 %v36085_v12  ;;  %30562 = vmatprep.subr.mxu1 %v37336_v50 }
 0x645   : > { %30530 = vmatmul.mubr.f32.vlgmr.msra.gmra.mxu0 %v21152_v45  ;;  %30547 = vmatprep.subr.mxu0 %v37336_v50 }
 0x646   : > { %30563 = vmatpush3.msra.mxu1 %v35569_v32  ;;  %30548 = vmatpush3.msra.mxu0 %v37648_v48  ;;  %v22107_v48 = vld [vmem:[%s37660_s7] sm:$0xff] }
 0x647   : > { %30564 = vmatprep.subr.mxu1 %v37336_v50  ;;  %30549 = vmatprep.subr.mxu0 %v37336_v50 }
 0x648   : > { %30565 = vmatpush3.msra.mxu1 %v35578_v31  ;;  %30550 = vmatpush3.msra.mxu0 %v37649_v41 }
 0x649   : > { %30566 = vmatprep.subr.mxu1 %v37336_v50  ;;  %30551 = vmatprep.subr.mxu0 %v37336_v50 }
 0x64a   : > { %30567 = vmatpush3.msra.mxu1 %v37641_v37  ;;  %30552 = vmatpush3.msra.mxu0 %v37650_v43 }
 0x64b   : > { %30568 = vmatprep.subr.mxu1 %v37336_v50  ;;  %30553 = vmatprep.subr.mxu0 %v37336_v50 }
 0x64c   : > { %30569 = vmatpush3.msra.mxu1 %v37643_v24  ;;  %30554 = vmatpush3.msra.mxu0 %v37651_v62 }
 0x64d   : > { %30570 = vmatprep.subr.mxu1 %v37336_v50  ;;  %30555 = vmatprep.subr.mxu0 %v37336_v50 }
 0x64e   : > { %30571 = vmatpush3.msra.mxu1 %v37645_v13  ;;  %30556 = vmatpush3.msra.mxu0 %v37652_v51  ;;  %v18985_v25 = vpop.f32.mrf.mxu1 }
 0x64f   : > { %30572 = vmatprep.subr.mxu1 %v37336_v50  ;;  %30557 = vmatprep.subr.mxu0 %v37336_v50  ;;  %v18904_v10 = vpop.f32.mrf.mxu0 }
 0x650   : > { %30573 = vmatpush3.msra.mxu1 %v37647_v58  ;;  %30574 = vmatprep.mubr.msk.f32.mxu1 %vm31316_vm1, %v37336_v50  ;;  %v18905_v59 = vadd.f32 %v18904_v10, %v18804_v8  ;;  %v30156_v0 = vpop.f32.mrf.mxu1  ;;  %v36282_v10 = vand.u32 4294901760, %v22107_v48 }
 0x651   : > { %30558 = vmatpush3.msra.mxu0 %v37653_v7  ;;  %30559 = vmatprep.mubr.msk.f32.mxu0 %vm31316_vm1, %v37336_v50  ;;  %v30133_v21 = vpop.f32.mrf.mxu0 }
 0x652   : > { %30575 = vmatmul.mubr.f32.vlgmr.msra.gmra.mxu1 %v21150_v34  ;;  %30592 = vmatprep.subr.mxu1 %v37336_v50  ;;  %v18986_v56 = vadd.f32 %v18985_v25, %v18905_v59  ;;  %v37659_v34 = vld [vmem:[#allocation26_spill] sm:$0xff] }
 0x653   : > { %30560 = vmatmul.mubr.f32.vlgmr.msra.gmra.mxu0 %v36098_v22  ;;  %30577 = vmatprep.subr.mxu0 %v37336_v50 }
 0x654   : > { %30593 = vmatpush3.msra.mxu1 %v35569_v32  ;;  %30578 = vmatpush3.msra.mxu0 %v37654_v16  ;;  %v18989_v54 = vadd.f32 %v18986_v56, %v36007_v14  ;;  %v37656_v32 = vld [vmem:[#allocation105_spill] sm:$0xff] }
 0x655   : > { %30594 = vmatprep.subr.mxu1 %v37336_v50  ;;  %30579 = vmatprep.subr.mxu0 %v37336_v50 }
 0x656   : > { %30595 = vmatpush3.msra.mxu1 %v35578_v31  ;;  %30580 = vmatpush3.msra.mxu0 %v37655_v55  ;;  %vm18990_vm0 = vcmp.ge.f32.partialorder %v18989_v54, 0.0  ;;  %v18991_v27 = vmul.f32 0.05, %v18989_v54  ;;  %v37657_v31 = vld [vmem:[#allocation109_spill] sm:$0xff] }
 0x657   : > { %30596 = vmatprep.subr.mxu1 %v37336_v50  ;;  %30581 = vmatprep.subr.mxu0 %v37336_v50 }
 0x658   : > { %30597 = vmatpush3.msra.mxu1 %v37641_v37  ;;  %30582 = vmatpush3.msra.mxu0 %v37656_v32  ;;  %v18992_v20 = vsel %vm18990_vm0, %v18989_v54, %v18991_v27 }
 0x659   : > { %30598 = vmatprep.subr.mxu1 %v37336_v50  ;;  %30583 = vmatprep.subr.mxu0 %v37336_v50  ;;  %v21590_v14 = vsel %vm19014_vm13, %v18992_v20, 0 }
 0x65a   : > { %30599 = vmatpush3.msra.mxu1 %v37643_v24  ;;  %30584 = vmatpush3.msra.mxu0 %v37657_v31  ;;  %v36186_v22 = vand.u32 4294901760, %v21590_v14 }
 0x65b   : > { %30600 = vmatprep.subr.mxu1 %v37336_v50  ;;  %30585 = vmatprep.subr.mxu0 %v37336_v50 }
 0x65c   : > { %30601 = vmatpush3.msra.mxu1 %v37645_v13  ;;  %30586 = vmatpush3.msra.mxu0 %v37658_v39  ;;  %v19094_v23 = vpop.f32.mrf.mxu0  ;;  %v36197_v5 = vsub.f32 %v21590_v14, %v36186_v22  ;;  %v22108_v13 = vld [vmem:[%s37660_s7 + $0x8] sm:$0xff] }
 0x65d   : > { %30602 = vmatprep.subr.mxu1 %v37336_v50  ;;  %30587 = vmatprep.subr.mxu0 %v37336_v50  ;;  %v19195_v19 = vpop.f32.mrf.mxu1  ;;  %v36271_v57 = vand.u32 4294901760, %v22108_v13 }
 0x65e   : > { %30603 = vmatpush3.msra.mxu1 %v37647_v58  ;;  %30604 = vmatprep.mubr.msk.f32.mxu1 %vm31316_vm1, %v37336_v50  ;;  %v19196_v3 = vadd.f32 %v19195_v19, %v19094_v23  ;;  %v30171_v18 = vpop.f32.mrf.mxu0  ;;  %v36260_v58 = vand.u32 4294901760, %v22109_v47 }
 0x65f   : > { %30588 = vmatpush3.msra.mxu0 %v37659_v34  ;;  %30589 = vmatprep.mubr.msk.f32.mxu0 %vm31316_vm1, %v37336_v50  ;;  %v30186_v46 = vpop.f32.mrf.mxu1 }
 0x660   : > { %30605 = vmatmul.mubr.f32.vlgmr.msra.gmra.mxu1 %v36085_v12  ;;  %30590 = vmatmul.mubr.f32.vlgmr.msra.gmra.mxu0 %v36085_v12  ;;  %v21665_v12 = vand.u32 4294901760, %v36197_v5  ;;  %v36280_v8 = vsub.f32 %v22109_v47, %v36260_v58 }
 0x661   : > { %30622 = vmatprep.subr.mxu1 %v37336_v50  ;;  %30607 = vmatprep.subr.mxu0 %v37336_v50 }
 0x662   : > { %30623 = vmatpush3.msra.mxu1 %v35860_v42  ;;  %30608 = vmatpush3.msra.mxu0 %v35762_v60 }
 0x663   : > { %30624 = vmatprep.subr.mxu1 %v37336_v50  ;;  %30609 = vmatprep.subr.mxu0 %v37336_v50 }
 0x664   : > { %30625 = vmatpush3.msra.mxu1 %v35872_v38  ;;  %30610 = vmatpush3.msra.mxu0 %v35772_v9  ;;  %v21666_v38 = vsub.f32 %v36197_v5, %v21665_v12 }
 0x665   : > { %30626 = vmatprep.subr.mxu1 %v37336_v50  ;;  %30611 = vmatprep.subr.mxu0 %v37336_v50 }
 0x666   : > { %30627 = vmatpush3.msra.mxu1 %v35886_v11  ;;  %30634 = vmatprep.mubr.msk.f32.mxu1 %vm31316_vm1, %v37336_v50  ;;  %v21667_v44 = vand.u32 4294901760, %v21666_v38 }
 0x667   : > { %30628 = vmatprep.subr.mxu1 %v37336_v50  ;;  %30612 = vmatpush3.msra.mxu0 %v35784_v40 }
 0x668   : > { %30629 = vmatpush3.msra.mxu1 %v35894_v53  ;;  %30613 = vmatprep.subr.mxu0 %v37336_v50 }
 0x669   : > { %30630 = vmatprep.subr.mxu1 %v37336_v50  ;;  %30614 = vmatpush3.msra.mxu0 %v35798_v29 }
 0x66a   : > { %30631 = vmatpush3.msra.mxu1 %v35905_v36  ;;  %30615 = vmatprep.subr.mxu0 %v37336_v50  ;;  %v19279_v42 = vpop.f32.mrf.mxu0 }
 0x66b   : > { %30632 = vmatprep.subr.mxu1 %v37336_v50  ;;  %30616 = vmatpush3.msra.mxu0 %v35813_v1  ;;  %v19280_v11 = vadd.f32 %v19279_v42, %v19196_v3  ;;  %v19358_v37 = vpop.f32.mrf.mxu1 }
 0x66c   : > { %30633 = vmatpush3.msra.mxu1 %v35911_v26  ;;  %30617 = vmatprep.subr.mxu0 %v37336_v50  ;;  %v30201_v53 = vpop.f32.mrf.mxu0  ;;  %v22110_v26 = vld [vmem:[%s37660_s7 + $0x18] sm:$0xff] }
 0x66d   : > { %30652 = vmatprep.subr.mxu1 %v37336_v50  ;;  %30635 = vmatmul.mubr.f32.vlgmr.msra.gmra.mxu1 %v36186_v22  ;;  %v19359_v36 = vadd.f32 %v19358_v37, %v19280_v11  ;;  %v30216_v24 = vpop.f32.mrf.mxu1  ;;  %v36376_v53 = vld [vmem:[%s37664_s6] sm:$0x1]  ;;  %s37255_s6 = scalar_lea.vmem [#allocation9], %s36807_s27 }
 0x66e   : > { %30653 = vmatpush3.msra.mxu1 %v35762_v60  ;;  %30618 = vmatpush3.msra.mxu0 %v35826_v4 }
 0x66f   : > { %30654 = vmatprep.subr.mxu1 %v37336_v50  ;;  %30619 = vmatprep.mubr.msk.f32.mxu0 %vm31316_vm1, %v37336_v50 }
 0x670   : > { %30655 = vmatpush3.msra.mxu1 %v35772_v9  ;;  %30637 = vmatprep.subr.mxu0 %v37336_v50 }
 0x671   : > { %30656 = vmatprep.subr.mxu1 %v37336_v50  ;;  %30620 = vmatmul.mubr.f32.vlgmr.msra.gmra.mxu0 %v21667_v44 }
 0x672   : > { %30657 = vmatpush3.msra.mxu1 %v35784_v40  ;;  %30638 = vmatpush3.msra.mxu0 %v35782_v33  ;;  %v36251_v33 = vand.u32 4294901760, %v22110_v26 }
 0x673   : > { %30658 = vmatprep.subr.mxu1 %v37336_v50  ;;  %30639 = vmatprep.subr.mxu0 %v37336_v50 }
 0x674   : > { %30659 = vmatpush3.msra.mxu1 %v35798_v29  ;;  %30640 = vmatpush3.msra.mxu0 %v37661_v63  ;;  %v36269_v43 = vsub.f32 %v22110_v26, %v36251_v33 }
 0x675   : > { %30660 = vmatprep.subr.mxu1 %v37336_v50  ;;  %30664 = vmatprep.mubr.msk.f32.mxu1 %vm31316_vm1, %v37336_v50 }
 0x676   : > { %30661 = vmatpush3.msra.mxu1 %v35813_v1  ;;  %30641 = vmatprep.subr.mxu0 %v37336_v50 }
 0x677   : > { %30662 = vmatprep.subr.mxu1 %v37336_v50  ;;  %30642 = vmatpush3.msra.mxu0 %v37662_v35 }
 0x678   : > { %30663 = vmatpush3.msra.mxu1 %v35826_v4  ;;  %30643 = vmatprep.subr.mxu0 %v37336_v50  ;;  %v19447_v45 = vpop.f32.mrf.mxu0 }
 0x679   : > { %30665 = vmatmul.mubr.f32.vlgmr.msra.gmra.mxu1 %v21665_v12  ;;  %30682 = vmatprep.subr.mxu1 %v37336_v50  ;;  %v19448_v28 = vadd.f32 %v19447_v45, %v19359_v36  ;;  %v19524_v41 = vpop.f32.mrf.mxu1 }
 0x67a   : > { %30683 = vmatpush3.msra.mxu1 %v35762_v60  ;;  %30644 = vmatpush3.msra.mxu0 %v35824_v52  ;;  %v30231_v62 = vpop.f32.mrf.mxu0  ;;  %v36289_v52 = vand.u32 4294901760, %v36269_v43  ;;  %v36292_v60 = vsub.f32 %v22108_v13, %v36271_v57 }
 0x67b   : > { %30684 = vmatprep.subr.mxu1 %v37336_v50  ;;  %30645 = vmatprep.subr.mxu0 %v37336_v50  ;;  %v36277_v51 = vadd.f32 %v19524_v41, %v19448_v28  ;;  %v30246_v25 = vpop.f32.mrf.mxu1 }
 0x67c   : > { %30685 = vmatpush3.msra.mxu1 %v35772_v9  ;;  %30646 = vmatpush3.msra.mxu0 %v35839_v49  ;;  %v36300_v9 = vand.u32 4294901760, %v36280_v8  ;;  %v36303_v49 = vsub.f32 %v22107_v48, %v36282_v10 }
 0x67d   : > { %30686 = vmatprep.subr.mxu1 %v37336_v50  ;;  %30647 = vmatprep.subr.mxu0 %v37336_v50  ;;  %v19528_v63 = vadd.f32 %v36277_v51, %v36376_v53 }
 0x67e   : > { %30687 = vmatpush3.msra.mxu1 %v35784_v40  ;;  %30648 = vmatpush3.msra.mxu0 %v35851_v6  ;;  %v22228_v6 = vsub.f32 %v36269_v43, %v36289_v52  ;;  %v36312_v40 = vand.u32 4294901760, %v36292_v60  ;;  %v36321_v59 = vand.u32 4294901760, %v36303_v49 }
 0x67f   : > { %30688 = vmatprep.subr.mxu1 %v37336_v50  ;;  %30649 = vmatprep.mubr.msk.f32.mxu0 %vm31316_vm1, %v37336_v50 }
 0x680   : > { %30689 = vmatpush3.msra.mxu1 %v35798_v29  ;;  %30650 = vmatmul.mubr.f32.vlgmr.msra.gmra.mxu0 %v36197_v5  ;;  %v22235_v29 = vsub.f32 %v36280_v8, %v36300_v9  ;;  %v22249_v7 = vsub.f32 %v36303_v49, %v36321_v59 }
 0x681   : > { %30667 = vmatprep.subr.mxu0 %v37336_v50  ;;  %30690 = vmatprep.subr.mxu1 %v37336_v50 }
 0x682   : > { %30668 = vmatpush3.msra.mxu0 %v35808_v17  ;;  %30691 = vmatpush3.msra.mxu1 %v35813_v1  ;;  %v36328_v1 = vand.u32 4294901760, %v22228_v6  ;;  %v22242_v17 = vsub.f32 %v36292_v60, %v36312_v40  ;;  %v36351_v16 = vand.u32 4294901760, %v22249_v7 }
 0x683   : > { %30669 = vmatprep.subr.mxu0 %v37336_v50  ;;  %30692 = vmatprep.subr.mxu1 %v37336_v50 }
 0x684   : > { %30670 = vmatpush3.msra.mxu0 %v35821_v15  ;;  %30693 = vmatpush3.msra.mxu1 %v35826_v4  ;;  %v36337_v4 = vand.u32 4294901760, %v22235_v29  ;;  %v36345_v56 = vand.u32 4294901760, %v22242_v17  ;;  %v22115_v29 = vld [vmem:[%s37665_s9 + $0x18] sm:$0xff] }
 0x685   : > { %30694 = vmatprep.mubr.msk.f32.mxu1 %vm31316_vm1, %v37336_v50  ;;  %30671 = vmatprep.subr.mxu0 %v37336_v50  ;;  %v36394_v7 = vand.u32 4294901760, %v22115_v29 }
 0x686   : > { %30695 = vmatmul.mubr.f32.vlgmr.msra.gmra.mxu1 %v36186_v22  ;;  %30672 = vmatpush3.msra.mxu0 %v35836_v61  ;;  %v19710_v0 = vpop.f32.mrf.mxu1 }
 0x687   : > { %30673 = vmatprep.subr.mxu0 %v37336_v50  ;;  %30679 = vmatprep.mubr.msk.f32.mxu0 %vm31316_vm1, %v37336_v50  ;;  %v19609_v15 = vpop.f32.mrf.mxu0 }
 0x688   : > { %30674 = vmatpush3.msra.mxu0 %v35848_v30  ;;  %v30276_v21 = vpop.f32.mrf.mxu1  ;;  %30708 = vmatprep.subr.mxu1 %v37336_v50  ;;  %v37663_v30 = vld [vmem:[#allocation113_spill] sm:$0xff]  ;;  %v19711_v34 = vadd.f32 %v19710_v0, %v19609_v15 }
 0x689   : > { %30675 = vmatprep.subr.mxu0 %v37336_v50  ;;  %v30261_v61 = vpop.f32.mrf.mxu0  ;;  %30709 = vmatpush3.msra.mxu1 %v36328_v1  ;;  %v22114_v0 = vld [vmem:[%s37665_s9 + $0x10] sm:$0xff] }
 0x68a   : > { %30676 = vmatpush3.msra.mxu0 %v35865_v2  ;;  %30710 = vmatprep.subr.mxu1 %v37336_v50 }
 0x68b   : > { %30677 = vmatprep.subr.mxu0 %v37336_v50  ;;  %30711 = vmatpush3.msra.mxu1 %v36337_v4 }
 0x68c   : > { %30678 = vmatpush3.msra.mxu0 %v37663_v30  ;;  %30712 = vmatprep.subr.mxu1 %v37336_v50 }
 0x68d   : > { %30680 = vmatmul.mubr.f32.vlgmr.msra.gmra.mxu0 %v36186_v22  ;;  %30713 = vmatpush3.msra.mxu1 %v36345_v56 }
 0x68e   : > { %30714 = vmatprep.subr.mxu1 %v37336_v50  ;;  %30697 = vmatprep.subr.mxu0 %v37336_v50 }
 0x68f   : > { %30715 = vmatpush3.msra.mxu1 %v36351_v16  ;;  %30716 = vmatprep.mubr.msk.f32.mxu1 %vm31316_vm1, %v37336_v50 }
 0x690   : > { %30730 = vmatprep.subr.mxu1 %v37336_v50  ;;  %30698 = vmatpush3.msra.mxu0 %v36251_v33 }
 0x691   : > { %30699 = vmatprep.subr.mxu0 %v37336_v50  ;;  %30705 = vmatprep.mubr.msk.f32.mxu0 %vm31316_vm1, %v37336_v50 }
 0x692   : > { %30700 = vmatpush3.msra.mxu0 %v36260_v58 }
 0x693   : > { %30701 = vmatprep.subr.mxu0 %v37336_v50 }
 0x694   : > { %v19873_v2 = vpop.f32.mrf.mxu1  ;;  %30702 = vmatpush3.msra.mxu0 %v36271_v57 }
 0x695   : > { %v19794_v54 = vpop.f32.mrf.mxu0  ;;  %30703 = vmatprep.subr.mxu0 %v37336_v50 }
 0x696   : > { %v30306_v55 = vpop.f32.mrf.mxu1  ;;  %30704 = vmatpush3.msra.mxu0 %v36282_v10  ;;  %v19795_v12 = vadd.f32 %v19794_v54, %v19711_v34 }
 0x697   : > { %v30291_v27 = vpop.f32.mrf.mxu0  ;;  %30719 = vmatprep.subr.mxu0 %v37336_v50  ;;  %v36401_v55 = vand.u32 4294901760, %v22114_v0 }
 0x698   : > { %v19874_v38 = vadd.f32 %v19873_v2, %v19795_v12  ;;  %v22113_v2 = vld [vmem:[%s37665_s9 + $0x8] sm:$0xff] }
 0x6a2   : > { %v20039_v32 = vpop.f32.mrf.mxu1 }
 0x6a3   : > { %v19962_v20 = vpop.f32.mrf.mxu0 }
 0x6a4   : > { %v30336_v31 = vpop.f32.mrf.mxu1  ;;  %v19963_v11 = vadd.f32 %v19962_v20, %v19874_v38  ;;  %v36408_v20 = vand.u32 4294901760, %v22113_v2 }
 0x6a5   : > { %v30321_v14 = vpop.f32.mrf.mxu0 }
 0x6a6   : > { %v20040_v44 = vadd.f32 %v20039_v32, %v19963_v11  ;;  %v36406_v32 = vsub.f32 %v22115_v29, %v36394_v7  ;;  %v22112_v14 = vld [vmem:[%s37665_s9] sm:$0xff] }
 0x6a8   : > { %v20043_v45 = vadd.f32 %v20040_v44, %v19528_v63 }
 0x6b0   : > { %v20225_v39 = vpop.f32.mrf.mxu1 }
 0x6b1   : > { %v20124_v23 = vpop.f32.mrf.mxu0 }
 0x6b2   : > { %v30366_v22 = vpop.f32.mrf.mxu1  ;;  %v20226_v42 = vadd.f32 %v20225_v39, %v20124_v23  ;;  %v36416_v39 = vsub.f32 %v22114_v0, %v36401_v55  ;;  %v36421_v23 = vand.u32 4294901760, %v36406_v32 }
 0x6b3   : > { %v30351_v19 = vpop.f32.mrf.mxu0  ;;  %v36424_v22 = vsub.f32 %v22113_v2, %v36408_v20 }
 0x6b4   : > { %v36426_v19 = vand.u32 4294901760, %v22112_v14 }
 0x6b5   : > { %v36442_v34 = vand.u32 4294901760, %v36424_v22 }
 0x6be   : > { %v20388_v3 = vpop.f32.mrf.mxu1 }
 0x6bf   : > { %v20309_v18 = vpop.f32.mrf.mxu0 }
 0x6c0   : > { %v30396_v46 = vpop.f32.mrf.mxu1  ;;  %v20310_v37 = vadd.f32 %v20309_v18, %v20226_v42  ;;  %v22715_v18 = vsub.f32 %v36406_v32, %v36421_v23 }
 0x6c1   : > { %v30381_v5 = vpop.f32.mrf.mxu0  ;;  %v36445_v46 = vsub.f32 %v22112_v14, %v36426_v19 }
 0x6c2   : > { %v20389_v24 = vadd.f32 %v20388_v3, %v20310_v37  ;;  %v36433_v3 = vand.u32 4294901760, %v36416_v39  ;;  %v36458_v44 = vand.u32 4294901760, %v22715_v18 }
 0x6c4   : > { %v22722_v38 = vsub.f32 %v36416_v39, %v36433_v3 }
 0x6c6   : > { %v36470_v63 = vand.u32 4294901760, %v22722_v38 }
 0x6cc   : > { %v20554_v36 = vpop.f32.mrf.mxu1 }
 0x6cd   : > { %v20477_v26 = vpop.f32.mrf.mxu0 }
 0x6ce   : > { %v20478_v47 = vadd.f32 %v20477_v26, %v20389_v24  ;;  %v30426_v13 = vpop.f32.mrf.mxu1  ;;  %v36463_v24 = vand.u32 4294901760, %v36445_v46 }
 0x6cf   : > { %v30411_v35 = vpop.f32.mrf.mxu0 }
 0x6d0   : > { %v20555_v48 = vadd.f32 %v20554_v36, %v20478_v47  ;;  %v22729_v36 = vsub.f32 %v36424_v22, %v36442_v34  ;;  %v22736_v13 = vsub.f32 %v36445_v46, %v36463_v24 }
 0x6d2   : > { %v20558_v28 = vadd.f32 %v20555_v48, %v20043_v45  ;;  %v36476_v47 = vand.u32 4294901760, %v22729_v36  ;;  %v36488_v35 = vand.u32 4294901760, %v22736_v13 }
 0x6d4   : > { %vm20559_vm2 = vcmp.ge.f32.partialorder %v20558_v28, 0.0  ;;  %v20560_v41 = vmul.f32 0.05, %v20558_v28 }
 0x6d6   : > { %v20561_v62 = vsel %vm20559_vm2, %v20558_v28, %v20560_v41 }
 0x6d7   : > { %v22119_v25 = vsel %vm22117_vm3, %v20561_v62, 0 }
 0x6d8   : > { %v36381_v6 = vand.u32 4294901760, %v22119_v25 }
 0x6da   : > { %v22191_v51 = vsub.f32 %v22119_v25, %v36381_v6  ;;  %v20740_v17 = vpop.f32.mrf.mxu1  ;;  %30717 = vmatmul.mubr.f32.vlgmr.msra.gmra.mxu1 %v36381_v6 }
 0x6db   : > { %v20639_v15 = vpop.f32.mrf.mxu0  ;;  %30731 = vmatpush3.msra.mxu1 %v36251_v33  ;;  %30738 = vmatprep.mubr.msk.f32.mxu1 %vm31316_vm1, %v37336_v50 }
 0x6dc   : > { %v20741_v21 = vadd.f32 %v20740_v17, %v20639_v15  ;;  %v30456_v61 = vpop.f32.mrf.mxu1  ;;  %30732 = vmatprep.subr.mxu1 %v37336_v50  ;;  %v22192_v30 = vand.u32 4294901760, %v22191_v51 }
 0x6dd   : > { %v30441_v54 = vpop.f32.mrf.mxu0  ;;  %30733 = vmatpush3.msra.mxu1 %v36260_v58 }
 0x6de   : > { %30734 = vmatprep.subr.mxu1 %v37336_v50  ;;  %v22193_v27 = vsub.f32 %v22191_v51, %v22192_v30 }
 0x6df   : > { %30735 = vmatpush3.msra.mxu1 %v36271_v57 }
 0x6e0   : > { %30736 = vmatprep.subr.mxu1 %v37336_v50  ;;  %v22194_v31 = vand.u32 4294901760, %v22193_v27 }
 0x6e1   : > { %30737 = vmatpush3.msra.mxu1 %v36282_v10 }
 0x6e2   : > { %30739 = vmatmul.mubr.f32.vlgmr.msra.gmra.mxu1 %v22192_v30  ;;  %30752 = vmatprep.subr.mxu1 %v37336_v50 }
 0x6e3   : > { %30706 = vmatmul.mubr.f32.vlgmr.msra.gmra.mxu0 %v22194_v31  ;;  %30753 = vmatpush3.msra.mxu1 %v36251_v33 }
 0x6e4   : > { %30720 = vmatpush3.msra.mxu0 %v36269_v43  ;;  %30754 = vmatprep.subr.mxu1 %v37336_v50 }
 0x6e5   : > { %30721 = vmatprep.subr.mxu0 %v37336_v50  ;;  %30755 = vmatpush3.msra.mxu1 %v36260_v58 }
 0x6e6   : > { %30722 = vmatpush3.msra.mxu0 %v36280_v8  ;;  %30756 = vmatprep.subr.mxu1 %v37336_v50 }
 0x6e7   : > { %30723 = vmatprep.subr.mxu0 %v37336_v50  ;;  %30757 = vmatpush3.msra.mxu1 %v36271_v57 }
 0x6e8   : > { %v20903_v5 = vpop.f32.mrf.mxu1  ;;  %30724 = vmatpush3.msra.mxu0 %v36292_v60  ;;  %30758 = vmatprep.subr.mxu1 %v37336_v50 }
 0x6e9   : > { %v20824_v12 = vpop.f32.mrf.mxu0  ;;  %30725 = vmatprep.subr.mxu0 %v37336_v50  ;;  %30727 = vmatprep.mubr.msk.f32.mxu0 %vm31316_vm1, %v37336_v50 }
 0x6ea   : > { %v20825_v42 = vadd.f32 %v20824_v12, %v20741_v21  ;;  %v30486_v11 = vpop.f32.mrf.mxu1  ;;  %30726 = vmatpush3.msra.mxu0 %v36303_v49  ;;  %30759 = vmatpush3.msra.mxu1 %v36282_v10 }
 0x6eb   : > { %v30471_v37 = vpop.f32.mrf.mxu0  ;;  %30760 = vmatprep.mubr.msk.f32.mxu1 %vm31316_vm1, %v37336_v50  ;;  %30728 = vmatmul.mubr.f32.vlgmr.msra.gmra.mxu0 %v22191_v51 }
 0x6ec   : > { %30741 = vmatprep.subr.mxu0 %v37336_v50  ;;  %30761 = vmatmul.mubr.f32.vlgmr.msra.gmra.mxu1 %v36381_v6  ;;  %v20904_v26 = vadd.f32 %v20903_v5, %v20825_v42 }
 0x6ed   : > { %30742 = vmatpush3.msra.mxu0 %v36289_v52  ;;  %30749 = vmatprep.mubr.msk.f32.mxu0 %vm31316_vm1, %v37336_v50 }
 0x6ee   : > { %30743 = vmatprep.subr.mxu0 %v37336_v50  ;;  %30774 = vmatprep.subr.mxu1 %v37336_v50 }
 0x6ef   : > { %30744 = vmatpush3.msra.mxu0 %v36300_v9  ;;  %30775 = vmatpush3.msra.mxu1 %v36458_v44 }
 0x6f0   : > { %30745 = vmatprep.subr.mxu0 %v37336_v50  ;;  %30776 = vmatprep.subr.mxu1 %v37336_v50 }
 0x6f1   : > { %30746 = vmatpush3.msra.mxu0 %v36312_v40  ;;  %30777 = vmatpush3.msra.mxu1 %v36470_v63 }
 0x6f2   : > { %30747 = vmatprep.subr.mxu0 %v37336_v50  ;;  %30778 = vmatprep.subr.mxu1 %v37336_v50 }
 0x6f3   : > { %30748 = vmatpush3.msra.mxu0 %v36321_v59  ;;  %30779 = vmatpush3.msra.mxu1 %v36476_v47 }
 0x6f4   : > { %30750 = vmatmul.mubr.f32.vlgmr.msra.gmra.mxu0 %v36381_v6  ;;  %30763 = vmatprep.subr.mxu0 %v37336_v50 }
 0x6f5   : > { %30764 = vmatpush3.msra.mxu0 %v36394_v7  ;;  %30780 = vmatprep.subr.mxu1 %v37336_v50 }
 0x6f6   : > { %v21069_v45 = vpop.f32.mrf.mxu1  ;;  %30765 = vmatprep.subr.mxu0 %v37336_v50  ;;  %30771 = vmatprep.mubr.msk.f32.mxu0 %vm31316_vm1, %v37336_v50 }
 0x6f7   : > { %v20992_v48 = vpop.f32.mrf.mxu0  ;;  %30766 = vmatpush3.msra.mxu0 %v36401_v55  ;;  %30781 = vmatpush3.msra.mxu1 %v36488_v35 }
 0x6f8   : > { %v20993_v28 = vadd.f32 %v20992_v48, %v20904_v26  ;;  %v30516_v41 = vpop.f32.mrf.mxu1  ;;  %30767 = vmatprep.subr.mxu0 %v37336_v50  ;;  %30782 = vmatprep.mubr.msk.f32.mxu1 %vm31316_vm1, %v37336_v50 }
 0x6f9   : > { %v30501_v62 = vpop.f32.mrf.mxu0  ;;  %30768 = vmatpush3.msra.mxu0 %v36408_v20  ;;  %30796 = vmatprep.subr.mxu1 %v37336_v50 }
 0x6fa   : > { %v36504_v25 = vadd.f32 %v21069_v45, %v20993_v28  ;;  %30769 = vmatprep.subr.mxu0 %v37336_v50  ;;  %30783 = vmatmul.mubr.f32.vlgmr.msra.gmra.mxu1 %v37336_v50 }
 0x6fb   : > { %30770 = vmatpush3.msra.mxu0 %v36426_v19  ;;  %30797 = vmatpush3.msra.mxu1 %v36394_v7 }
 0x6fc   : > { %30772 = vmatmul.mubr.f32.vlgmr.msra.gmra.mxu0 %v37336_v50  ;;  %30785 = vmatprep.subr.mxu0 %v37336_v50  ;;  %v21073_v31 = vadd.f32 %v36504_v25, %v36376_v53 }
 0x6fd   : > { %30786 = vmatpush3.msra.mxu0 %v36406_v32  ;;  %30798 = vmatprep.subr.mxu1 %v37336_v50 }
 0x6fe   : > { %30787 = vmatprep.subr.mxu0 %v37336_v50  ;;  %30799 = vmatpush3.msra.mxu1 %v36401_v55 }
 0x6ff   : > { %30788 = vmatpush3.msra.mxu0 %v36416_v39  ;;  %30800 = vmatprep.subr.mxu1 %v37336_v50 }
 0x700   : > { %30789 = vmatprep.subr.mxu0 %v37336_v50  ;;  %30801 = vmatpush3.msra.mxu1 %v36408_v20 }
 0x701   : > { %30790 = vmatpush3.msra.mxu0 %v36424_v22  ;;  %30802 = vmatprep.subr.mxu1 %v37336_v50 }
 0x702   : > { %30791 = vmatprep.subr.mxu0 %v37336_v50  ;;  %30793 = vmatprep.mubr.msk.f32.mxu0 %vm31316_vm1, %v37336_v50 }
 0x703   : > { %30792 = vmatpush3.msra.mxu0 %v36445_v46  ;;  %30803 = vmatpush3.msra.mxu1 %v36426_v19 }
 0x704   : > { %v21255_v6 = vpop.f32.mrf.mxu1  ;;  %30794 = vmatmul.mubr.f32.vlgmr.msra.gmra.mxu0 %v37336_v50  ;;  %30804 = vmatprep.mubr.msk.f32.mxu1 %vm31316_vm1, %v37336_v50 }
 0x705   : > { %v21154_v29 = vpop.f32.mrf.mxu0  ;;  %30807 = vmatprep.subr.mxu0 %v37336_v50  ;;  %30818 = vmatprep.subr.mxu1 %v37336_v50 }
 0x706   : > { %v21256_v51 = vadd.f32 %v21255_v6, %v21154_v29  ;;  %v30546_v17 = vpop.f32.mrf.mxu1  ;;  %30805 = vmatmul.mubr.f32.vlgmr.msra.gmra.mxu1 %v37336_v50  ;;  %30808 = vmatpush3.msra.mxu0 %v36421_v23 }
 0x707   : > { %v30531_v0 = vpop.f32.mrf.mxu0  ;;  %30819 = vmatpush3.msra.mxu1 %v36394_v7  ;;  %30809 = vmatprep.subr.mxu0 %v37336_v50 }
 0x708   : > { %30820 = vmatprep.subr.mxu1 %v37336_v50  ;;  %30810 = vmatpush3.msra.mxu0 %v36433_v3 }
 0x709   : > { %30821 = vmatpush3.msra.mxu1 %v36401_v55  ;;  %30811 = vmatprep.subr.mxu0 %v37336_v50 }
 0x70a   : > { %30822 = vmatprep.subr.mxu1 %v37336_v50  ;;  %30812 = vmatpush3.msra.mxu0 %v36442_v34 }
 0x70b   : > { %30823 = vmatpush3.msra.mxu1 %v36408_v20  ;;  %30813 = vmatprep.subr.mxu0 %v37336_v50 }
 0x70c   : > { %30824 = vmatprep.subr.mxu1 %v37336_v50  ;;  %30814 = vmatpush3.msra.mxu0 %v36463_v24 }
 0x70d   : > { %30815 = vmatprep.mubr.msk.f32.mxu0 %vm31316_vm1, %v37336_v50  ;;  %30825 = vmatpush3.msra.mxu1 %v36426_v19 }
 0x70e   : > { %30826 = vmatprep.mubr.msk.f32.mxu1 %vm31316_vm1, %v37336_v50  ;;  %30816 = vmatmul.mubr.f32.vlgmr.msra.gmra.mxu0 %v37336_v50 }
 0x70f   : > { %30827 = vmatmul.mubr.f32.vlgmr.msra.gmra.mxu1 %v37336_v50  ;;  %30840 = vmatprep.subr.mxu1 %v37336_v50 }
 0x710   : > { %30841 = vmatpush3.msra.mxu1 %v36328_v1  ;;  %30829 = vmatprep.subr.mxu0 %v37336_v50 }
 0x711   : > { %30842 = vmatprep.subr.mxu1 %v37336_v50  ;;  %30848 = vmatprep.mubr.msk.f32.mxu1 %vm31316_vm1, %v37336_v50 }
 0x712   : > { %v21418_v15 = vpop.f32.mrf.mxu1  ;;  %30843 = vmatpush3.msra.mxu1 %v36337_v4  ;;  %30830 = vmatpush3.msra.mxu0 %v36251_v33 }
 0x713   : > { %v21339_v21 = vpop.f32.mrf.mxu0  ;;  %30844 = vmatprep.subr.mxu1 %v37336_v50  ;;  %30831 = vmatprep.subr.mxu0 %v37336_v50 }
 0x714   : > { %v30576_v61 = vpop.f32.mrf.mxu1  ;;  %30845 = vmatpush3.msra.mxu1 %v36345_v56  ;;  %30832 = vmatpush3.msra.mxu0 %v36260_v58  ;;  %v21340_v4 = vadd.f32 %v21339_v21, %v21256_v51 }
 0x715   : > { %v30561_v1 = vpop.f32.mrf.mxu0  ;;  %30846 = vmatprep.subr.mxu1 %v37336_v50  ;;  %30833 = vmatprep.subr.mxu0 %v37336_v50 }
 0x716   : > { %30847 = vmatpush3.msra.mxu1 %v36351_v16  ;;  %30834 = vmatpush3.msra.mxu0 %v36271_v57  ;;  %v21419_v56 = vadd.f32 %v21418_v15, %v21340_v4 }
 0x717   : > { %30862 = vmatprep.subr.mxu1 %v37336_v50  ;;  %30835 = vmatprep.subr.mxu0 %v37336_v50 }
 0x718   : > { %30836 = vmatpush3.msra.mxu0 %v36282_v10  ;;  %30837 = vmatprep.mubr.msk.f32.mxu0 %vm31316_vm1, %v37336_v50 }
 0x719   : > { %30851 = vmatprep.subr.mxu0 %v37336_v50 }
 0x720   : > { %v21584_v30 = vpop.f32.mrf.mxu1  ;;  %v21507_v2 = vpop.f32.mrf.mxu0 }
 0x721   : > { %v21508_v54 = vadd.f32 %v21507_v2, %v21419_v56 }
 0x722   : > { %v30606_v27 = vpop.f32.mrf.mxu1  ;;  %v30591_v16 = vpop.f32.mrf.mxu0 }
 0x723   : > { %v21585_v14 = vadd.f32 %v21584_v30, %v21508_v54 }
 0x725   : > { %v21588_v18 = vadd.f32 %v21585_v14, %v21073_v31  ;;  %v36644_v14 = vld [vmem:[%s37667_s10] sm:$0x1] }
 0x72d   : > { %v21770_v5 = vpop.f32.mrf.mxu1 }
 0x72f   : > { %v30636_v12 = vpop.f32.mrf.mxu1 }
 0x731   : > { %v21669_v38 = vpop.f32.mrf.mxu0 }
 0x732   : > { %v21771_v13 = vadd.f32 %v21770_v5, %v21669_v38 }
 0x733   : > { %v30621_v42 = vpop.f32.mrf.mxu0 }
 0x739   : > { %v21933_v11 = vpop.f32.mrf.mxu1 }
 0x73b   : > { %v30666_v37 = vpop.f32.mrf.mxu1 }
 0x740   : > { %v21854_v36 = vpop.f32.mrf.mxu0 }
 0x741   : > { %v21855_v48 = vadd.f32 %v21854_v36, %v21771_v13 }
 0x742   : > { %v30651_v26 = vpop.f32.mrf.mxu0 }
 0x743   : > { %v21934_v41 = vadd.f32 %v21933_v11, %v21855_v48 }
 0x746   : > { %v22099_v45 = vpop.f32.mrf.mxu1 }
 0x748   : > { %v30696_v28 = vpop.f32.mrf.mxu1 }
 0x74d   : > { %v22022_v62 = vpop.f32.mrf.mxu0 }
 0x74e   : > { %v22023_v6 = vadd.f32 %v22022_v62, %v21934_v41 }
 0x74f   : > { %v30681_v29 = vpop.f32.mrf.mxu0 }
 0x750   : > { %v22100_v51 = vadd.f32 %v22099_v45, %v22023_v6 }
 0x752   : > { %v22103_v53 = vadd.f32 %v22100_v51, %v21588_v18 }
 0x754   : > { %vm22104_vm4 = vcmp.ge.f32.partialorder %v22103_v53, 0.0  ;;  %v22105_v25 = vmul.f32 0.05, %v22103_v53 }
 0x756   : > { %v22106_v17 = vsel %vm22104_vm4, %v22103_v53, %v22105_v25 }
 0x757   : > { %v23120_v0 = vsel %vm22117_vm3, %v22106_v17, 0 }
 0x758   : > { %v23191_v15 = vand.u32 4294901760, %v23120_v0 }
 0x75a   : > { %v23192_v21 = vsub.f32 %v23120_v0, %v23191_v15  ;;  %30849 = vmatmul.mubr.f32.vlgmr.msra.gmra.mxu1 %v23191_v15 }
 0x75b   : > { %30863 = vmatpush3.msra.mxu1 %v36251_v33  ;;  %30870 = vmatprep.mubr.msk.f32.mxu1 %vm31316_vm1, %v37336_v50 }
 0x75c   : > { %30864 = vmatprep.subr.mxu1 %v37336_v50  ;;  %v23193_v61 = vand.u32 4294901760, %v23192_v21 }
 0x75d   : > { %30865 = vmatpush3.msra.mxu1 %v36260_v58 }
 0x75e   : > { %30866 = vmatprep.subr.mxu1 %v37336_v50  ;;  %v23194_v1 = vsub.f32 %v23192_v21, %v23193_v61 }
 0x75f   : > { %30867 = vmatpush3.msra.mxu1 %v36271_v57 }
 0x760   : > { %30868 = vmatprep.subr.mxu1 %v37336_v50  ;;  %v23195_v4 = vand.u32 4294901760, %v23194_v1 }
 0x761   : > { %30869 = vmatpush3.msra.mxu1 %v36282_v10 }
 0x762   : > { %30871 = vmatmul.mubr.f32.vlgmr.msra.gmra.mxu1 %v23193_v61  ;;  %30884 = vmatprep.subr.mxu1 %v37336_v50 }
 0x763   : > { %30838 = vmatmul.mubr.f32.vlgmr.msra.gmra.mxu0 %v23195_v4  ;;  %30885 = vmatpush3.msra.mxu1 %v36251_v33 }
 0x764   : > { %30852 = vmatpush3.msra.mxu0 %v36269_v43  ;;  %30886 = vmatprep.subr.mxu1 %v37336_v50  ;;  %v22111_v43 = vld [vmem:[%s37666_s8] sm:$0x1] }
 0x765   : > { %30853 = vmatprep.subr.mxu0 %v37336_v50  ;;  %30887 = vmatpush3.msra.mxu1 %v36260_v58 }
 0x766   : > { %30854 = vmatpush3.msra.mxu0 %v36280_v8  ;;  %30888 = vmatprep.subr.mxu1 %v37336_v50 }
 0x767   : > { %30855 = vmatprep.subr.mxu0 %v37336_v50  ;;  %30889 = vmatpush3.msra.mxu1 %v36271_v57 }
 0x768   : > { %30856 = vmatpush3.msra.mxu0 %v36292_v60  ;;  %30890 = vmatprep.subr.mxu1 %v37336_v50 }
 0x769   : > { %30857 = vmatprep.subr.mxu0 %v37336_v50  ;;  %30859 = vmatprep.mubr.msk.f32.mxu0 %vm31316_vm1, %v37336_v50 }
 0x76a   : > { %30858 = vmatpush3.msra.mxu0 %v36303_v49  ;;  %30891 = vmatpush3.msra.mxu1 %v36282_v10 }
 0x76b   : > { %30892 = vmatprep.mubr.msk.f32.mxu1 %vm31316_vm1, %v37336_v50  ;;  %30860 = vmatmul.mubr.f32.vlgmr.msra.gmra.mxu0 %v23192_v21 }
 0x76c   : > { %30873 = vmatprep.subr.mxu0 %v37336_v50  ;;  %30893 = vmatmul.mubr.f32.vlgmr.msra.gmra.mxu1 %v23191_v15 }
 0x76d   : > { %30874 = vmatpush3.msra.mxu0 %v36289_v52  ;;  %30881 = vmatprep.mubr.msk.f32.mxu0 %vm31316_vm1, %v37336_v50 }
 0x76e   : > { %30875 = vmatprep.subr.mxu0 %v37336_v50  ;;  %30906 = vmatprep.subr.mxu1 %v37336_v50 }
 0x76f   : > { %30876 = vmatpush3.msra.mxu0 %v36300_v9  ;;  %30907 = vmatpush3.msra.mxu1 %v36458_v44 }
 0x770   : > { %30877 = vmatprep.subr.mxu0 %v37336_v50  ;;  %30908 = vmatprep.subr.mxu1 %v37336_v50 }
 0x771   : > { %30878 = vmatpush3.msra.mxu0 %v36312_v40  ;;  %30909 = vmatpush3.msra.mxu1 %v36470_v63 }
 0x772   : > { %30879 = vmatprep.subr.mxu0 %v37336_v50  ;;  %30910 = vmatprep.subr.mxu1 %v37336_v50 }
 0x773   : > { %30880 = vmatpush3.msra.mxu0 %v36321_v59  ;;  %30911 = vmatpush3.msra.mxu1 %v36476_v47 }
 0x774   : > { %30882 = vmatmul.mubr.f32.vlgmr.msra.gmra.mxu0 %v23191_v15  ;;  %30912 = vmatprep.subr.mxu1 %v37336_v50 }
 0x775   : > { %30913 = vmatpush3.msra.mxu1 %v36488_v35  ;;  %30895 = vmatprep.subr.mxu0 %v37336_v50 }
 0x776   : > { %30914 = vmatprep.mubr.msk.f32.mxu1 %vm31316_vm1, %v37336_v50  ;;  %30928 = vmatprep.subr.mxu1 %v37336_v50 }
 0x777   : > { %30896 = vmatpush3.msra.mxu0 %v36394_v7  ;;  %30903 = vmatprep.mubr.msk.f32.mxu0 %vm31316_vm1, %v37336_v50 }
 0x778   : > { %30897 = vmatprep.subr.mxu0 %v37336_v50 }
 0x779   : > { %30898 = vmatpush3.msra.mxu0 %v36401_v55 }
 0x77a   : > { %30899 = vmatprep.subr.mxu0 %v37336_v50 }
 0x77b   : > { %30900 = vmatpush3.msra.mxu0 %v36408_v20 }
 0x77c   : > { %30901 = vmatprep.subr.mxu0 %v37336_v50 }
 0x77d   : > { %30902 = vmatpush3.msra.mxu0 %v36426_v19 }
 0x77e   : > { %30917 = vmatprep.subr.mxu0 %v37336_v50 }
 0x79a   : > { %v22287_v33 = vpop.f32.mrf.mxu1 }
 0x79c   : > { %v30718_v58 = vpop.f32.mrf.mxu1 }
 0x7a2   : > { %v22444_v57 = vpop.f32.mrf.mxu1 }
 0x7a3   : > { %v22196_v8 = vpop.f32.mrf.mxu0 }
 0x7a4   : > { %v22197_v10 = vadd.f32 %v22196_v8, %v22111_v43  ;;  %v30740_v52 = vpop.f32.mrf.mxu1 }
 0x7a5   : > { %v30707_v60 = vpop.f32.mrf.mxu0 }
 0x7a6   : > { %v22288_v9 = vadd.f32 %v22287_v33, %v22197_v10 }
 0x7ab   : > { %v22367_v49 = vpop.f32.mrf.mxu0 }
 0x7ac   : > { %v22368_v40 = vadd.f32 %v22367_v49, %v22288_v9  ;;  %v22602_v59 = vpop.f32.mrf.mxu1 }
 0x7ad   : > { %v30729_v44 = vpop.f32.mrf.mxu0 }
 0x7ae   : > { %v30762_v63 = vpop.f32.mrf.mxu1  ;;  %v22445_v47 = vadd.f32 %v22444_v57, %v22368_v40 }
 0x7b4   : > { %v22527_v35 = vpop.f32.mrf.mxu0 }
 0x7b5   : > { %v22528_v56 = vadd.f32 %v22527_v35, %v22445_v47 }
 0x7b6   : > { %v30751_v30 = vpop.f32.mrf.mxu0 }
 0x7b7   : > { %v22603_v2 = vadd.f32 %v22602_v59, %v22528_v56 }
 0x7ba   : > { %v22774_v54 = vpop.f32.mrf.mxu1 }
 0x7bc   : > { %v22683_v27 = vpop.f32.mrf.mxu0  ;;  %v30784_v16 = vpop.f32.mrf.mxu1 }
 0x7bd   : > { %v22684_v18 = vadd.f32 %v22683_v27, %v36644_v14 }
 0x7be   : > { %v30773_v31 = vpop.f32.mrf.mxu0 }
 0x7bf   : > { %v22775_v42 = vadd.f32 %v22774_v54, %v22684_v18 }
 0x7c4   : > { %v22854_v5 = vpop.f32.mrf.mxu0 }
 0x7c5   : > { %v22855_v37 = vadd.f32 %v22854_v5, %v22775_v42 }
 0x7c6   : > { %v22931_v12 = vpop.f32.mrf.mxu1  ;;  %v30795_v38 = vpop.f32.mrf.mxu0 }
 0x7c7   : > { %v22932_v36 = vadd.f32 %v22931_v12, %v22855_v37 }
 0x7c8   : > { %v30806_v11 = vpop.f32.mrf.mxu1 }
 0x7ce   : > { %v23014_v26 = vpop.f32.mrf.mxu0 }
 0x7cf   : > { %v23015_v13 = vadd.f32 %v23014_v26, %v22932_v36  ;;  %v23089_v45 = vpop.f32.mrf.mxu1 }
 0x7d0   : > { %v30817_v48 = vpop.f32.mrf.mxu0 }
 0x7d1   : > { %v23090_v28 = vadd.f32 %v23089_v45, %v23015_v13  ;;  %v30828_v41 = vpop.f32.mrf.mxu1 }
 0x7d3   : > { %23101 = vrot.lane.b32.xlu0 %v23090_v28, %s31317_s23  ;;  %v23093_v6 = vadd.f32 %v23090_v28, %v22603_v2 }
 0x7d5   : > { %v25414_v51 = vmul.f32 -1.442695, %v23093_v6 }
 0x7d7   : > { %31123 = vpow2.f32 %v25414_v51 }
 0x7e4   : > { %v31124_v8 = vpop.eup %31123 }
 0x7e5   : > { %v23097_v10 = vadd.f32 1.0, %v31124_v8 }
 0x7e7   : > { %31125 = vrcp.f32 %v23097_v10 }
 0x7f4   : > { %v31126_v40 = vpop.eup %31125 }
 0x7f5   : > { %v23111_v35 = vsub.f32 1.0, %v31126_v40  ;;  %v23117_v30 = vmul.f32 0.0, %v31126_v40 }
 0x81a   : > { %v23288_v62 = vpop.f32.mrf.mxu1 }
 0x81c   : > { %v30850_v29 = vpop.f32.mrf.mxu1 }
 0x822   : > { %v23445_v53 = vpop.f32.mrf.mxu1 }
 0x823   : > { %v23197_v25 = vpop.f32.mrf.mxu0 }
 0x824   : > { %v23198_v17 = vadd.f32 %v23197_v25, %v22111_v43  ;;  %v30872_v0 = vpop.f32.mrf.mxu1  ;;  %v24125_v25 = vld [vmem:[%s37668_s11 + $0x10] sm:$0xff] }
 0x825   : > { %v30839_v15 = vpop.f32.mrf.mxu0 }
 0x826   : > { %v23289_v21 = vadd.f32 %v23288_v62, %v23198_v17  ;;  %v24124_v17 = vld [vmem:[%s37668_s11 + $0x8] sm:$0xff]  ;;  %v36717_v15 = vand.u32 4294901760, %v24125_v25 }
 0x82b   : > { %v23368_v61 = vpop.f32.mrf.mxu0 }
 0x82c   : > { %v23369_v1 = vadd.f32 %v23368_v61, %v23289_v21  ;;  %v23603_v4 = vpop.f32.mrf.mxu1  ;;  %v36719_v21 = vand.u32 4294901760, %v24124_v17 }
 0x82d   : > { %v30861_v33 = vpop.f32.mrf.mxu0 }
 0x82e   : > { %v30894_v58 = vpop.f32.mrf.mxu1  ;;  %v23446_v57 = vadd.f32 %v23445_v53, %v23369_v1  ;;  %v24126_v53 = vld [vmem:[%s37668_s11 + $0x18] sm:$0xff]  ;;  %v36725_v1 = vsub.f32 %v24125_v25, %v36717_v15 }
 0x82f   : > { %v36715_v0 = vand.u32 4294901760, %v24126_v53 }
 0x830   : > { %v24246_v58 = vand.u32 4294901760, %v36725_v1 }
 0x831   : > { %v36722_v61 = vsub.f32 %v24126_v53, %v36715_v0 }
 0x832   : > { %v24247_v10 = vsub.f32 %v36725_v1, %v24246_v58 }
 0x833   : > { %v24239_v33 = vand.u32 4294901760, %v36722_v61 }
 0x834   : > { %v23528_v52 = vpop.f32.mrf.mxu0 }
 0x835   : > { %v23529_v60 = vadd.f32 %v23528_v52, %v23446_v57  ;;  %v24240_v8 = vsub.f32 %v36722_v61, %v24239_v33 }
 0x836   : > { %v30883_v9 = vpop.f32.mrf.mxu0 }
 0x837   : > { %v36648_v49 = vadd.f32 %v23603_v4, %v23529_v60  ;;  %v36728_v4 = vsub.f32 %v24124_v17, %v36719_v21  ;;  %v24241_v9 = vand.u32 4294901760, %v24240_v8 }
 0x839   : > { %v24253_v57 = vand.u32 4294901760, %v36728_v4 }
 0x83b   : > { %v24254_v52 = vsub.f32 %v36728_v4, %v24253_v57 }
 0x845   : > { %v23102_v59 = vpop.permute.xlu0 %23101 }
 0x846   : > { %v23104_v43 = vmul.f32 %v31126_v40, %v23102_v59  ;;  %v24255_v40 = vand.u32 4294901760, %v24254_v52  ;;  %v24123_v59 = vld [vmem:[%s37668_s11] sm:$0xff] }
 0x848   : > { %23106 = vrot.lane.b32.xlu0 %v23104_v43, %s31317_s23  ;;  %v24167_v43 = vand.u32 4294901760, %v24123_v59 }
 0x8ba   : > { %v23107_v44 = vpop.permute.xlu0 %23106 }
 0x8bb   : > { %v23109_v63 = vadd.f32 %v23107_v44, %v22603_v2  ;;  %v24259_v44 = vsub.f32 %v24123_v59, %v24167_v43 }
 0x8bd   : > { %31127 = vtanh.f32 %v23109_v63  ;;  %v24260_v63 = vand.u32 4294901760, %v24259_v44 }
 0x8ca   : > { %v31128_v47 = vpop.eup %31127 }
 0x8cb   : > { %23113 = vrot.lane.b32.xlu1 %v31128_v47, %s37252_s28  ;;  %v24261_v47 = vsub.f32 %v24259_v44, %v24260_v63 }
 0x93d   : > { %v23114_v56 = vpop.permute.xlu1 %23113 }
 0x93e   : > { %v23116_v54 = vmul.f32 %v23114_v56, %v23111_v35  ;;  %v24262_v35 = vand.u32 4294901760, %v24261_v47 }
 0x940   : > { %v36652_v27 = vadd.f32 %v23117_v30, %v23116_v54 }
 0x942   : > { %23608 = vrot.lane.b32.xlu1 %v36652_v27, %s37252_s28  ;;  %s37257_s28 = scalar_lea.vmem [#allocation7], %s36807_s27 }
 0x9b4   : > { %v23609_v16 = vpop.permute.xlu1 %23608 }
 0x9b5   : > { %v23610_v31 = vsel %vm22117_vm3, %v23609_v16, 0 }
 0x9b6   : > { %v23681_v18 = vand.u32 4294901760, %v23610_v31 }
 0x9b8   : > { %v23682_v5 = vsub.f32 %v23610_v31, %v23681_v18  ;;  %30915 = vmatmul.mubr.f32.vlgmr.msra.gmra.mxu1 %v23681_v18 }
 0x9b9   : > { %30929 = vmatpush3.msra.mxu1 %v36394_v7  ;;  %30936 = vmatprep.mubr.msk.f32.mxu1 %vm31316_vm1, %v37336_v50 }
 0x9ba   : > { %v23683_v2 = vand.u32 4294901760, %v23682_v5  ;;  %30930 = vmatprep.subr.mxu1 %v37336_v50 }
 0x9bb   : > { %30931 = vmatpush3.msra.mxu1 %v36401_v55 }
 0x9bc   : > { %v23684_v12 = vsub.f32 %v23682_v5, %v23683_v2  ;;  %30932 = vmatprep.subr.mxu1 %v37336_v50 }
 0x9bd   : > { %30933 = vmatpush3.msra.mxu1 %v36408_v20 }
 0x9be   : > { %v23685_v38 = vand.u32 4294901760, %v23684_v12  ;;  %30934 = vmatprep.subr.mxu1 %v37336_v50 }
 0x9bf   : > { %30935 = vmatpush3.msra.mxu1 %v36426_v19 }
 0x9c0   : > { %30937 = vmatmul.mubr.f32.vlgmr.msra.gmra.mxu1 %v23683_v2  ;;  %30950 = vmatprep.subr.mxu1 %v37336_v50 }
 0x9c1   : > { %30904 = vmatmul.mubr.f32.vlgmr.msra.gmra.mxu0 %v23685_v38  ;;  %30951 = vmatpush3.msra.mxu1 %v36394_v7 }
 0x9c2   : > { %30918 = vmatpush3.msra.mxu0 %v36406_v32  ;;  %30952 = vmatprep.subr.mxu1 %v37336_v50 }
 0x9c3   : > { %30919 = vmatprep.subr.mxu0 %v37336_v50  ;;  %30953 = vmatpush3.msra.mxu1 %v36401_v55 }
 0x9c4   : > { %30920 = vmatpush3.msra.mxu0 %v36416_v39  ;;  %30954 = vmatprep.subr.mxu1 %v37336_v50 }
 0x9c5   : > { %30921 = vmatprep.subr.mxu0 %v37336_v50  ;;  %30955 = vmatpush3.msra.mxu1 %v36408_v20 }
 0x9c6   : > { %30922 = vmatpush3.msra.mxu0 %v36424_v22  ;;  %30956 = vmatprep.subr.mxu1 %v37336_v50 }
 0x9c7   : > { %30923 = vmatprep.subr.mxu0 %v37336_v50  ;;  %30925 = vmatprep.mubr.msk.f32.mxu0 %vm31316_vm1, %v37336_v50 }
 0x9c8   : > { %30924 = vmatpush3.msra.mxu0 %v36445_v46  ;;  %30957 = vmatpush3.msra.mxu1 %v36426_v19 }
 0x9c9   : > { %30958 = vmatprep.mubr.msk.f32.mxu1 %vm31316_vm1, %v37336_v50  ;;  %30926 = vmatmul.mubr.f32.vlgmr.msra.gmra.mxu0 %v23682_v5 }
 0x9ca   : > { %30939 = vmatprep.subr.mxu0 %v37336_v50  ;;  %30959 = vmatmul.mubr.f32.vlgmr.msra.gmra.mxu1 %v23681_v18 }
 0x9cb   : > { %30940 = vmatpush3.msra.mxu0 %v36421_v23  ;;  %30947 = vmatprep.mubr.msk.f32.mxu0 %vm31316_vm1, %v37336_v50 }
 0x9cc   : > { %30941 = vmatprep.subr.mxu0 %v37336_v50  ;;  %30972 = vmatprep.subr.mxu1 %v37336_v50 }
 0x9cd   : > { %30942 = vmatpush3.msra.mxu0 %v36433_v3  ;;  %30980 = vmatprep.mubr.msk.f32.mxu1 %vm31316_vm1, %v37336_v50 }
 0x9ce   : > { %30943 = vmatprep.subr.mxu0 %v37336_v50  ;;  %30973 = vmatpush3.msra.mxu1 %v24241_v9 }
 0x9cf   : > { %30944 = vmatpush3.msra.mxu0 %v36442_v34  ;;  %30974 = vmatprep.subr.mxu1 %v37336_v50 }
 0x9d0   : > { %30945 = vmatprep.subr.mxu0 %v37336_v50 }
 0x9d1   : > { %30946 = vmatpush3.msra.mxu0 %v36463_v24 }
 0x9d2   : > { %30948 = vmatmul.mubr.f32.vlgmr.msra.gmra.mxu0 %v23681_v18  ;;  %30961 = vmatprep.subr.mxu0 %v37336_v50 }
 0x9d3   : > { %30969 = vmatprep.mubr.msk.f32.mxu0 %vm31316_vm1, %v37336_v50  ;;  %30962 = vmatpush3.msra.mxu0 %v36715_v0 }
 0x9d4   : > { %30963 = vmatprep.subr.mxu0 %v37336_v50 }
 0x9d5   : > { %30964 = vmatpush3.msra.mxu0 %v36717_v15 }
 0x9d6   : > { %30965 = vmatprep.subr.mxu0 %v37336_v50 }
 0x9d7   : > { %30966 = vmatpush3.msra.mxu0 %v36719_v21 }
 0x9d8   : > { %30967 = vmatprep.subr.mxu0 %v37336_v50 }
 0x9d9   : > { %30968 = vmatpush3.msra.mxu0 %v24167_v43 }
 0x9da   : > { %30983 = vmatprep.subr.mxu0 %v37336_v50 }
 0xa78   : > { %v23778_v7 = vpop.f32.mrf.mxu1 }
 0xa7a   : > { %v30916_v55 = vpop.f32.mrf.mxu1 }
 0xa80   : > { %v23935_v32 = vpop.f32.mrf.mxu1 }
 0xa81   : > { %v23687_v20 = vpop.f32.mrf.mxu0 }
 0xa82   : > { %v30938_v39 = vpop.f32.mrf.mxu1  ;;  %v23688_v22 = vadd.f32 %v23687_v20, %v36644_v14 }
 0xa83   : > { %v30905_v23 = vpop.f32.mrf.mxu0 }
 0xa84   : > { %v23779_v34 = vadd.f32 %v23778_v7, %v23688_v22 }
 0xa89   : > { %v23858_v19 = vpop.f32.mrf.mxu0 }
 0xa8a   : > { %v24093_v3 = vpop.f32.mrf.mxu1  ;;  %v23859_v24 = vadd.f32 %v23858_v19, %v23779_v34  ;;  %v24127_v19 = vld [vmem:[%s37670_s12] sm:$0x1]  ;;  %s31321_s12 = smov [#allocation4]  }
 0xa8b   : > { %v30927_v46 = vpop.f32.mrf.mxu0 }
 0xa8c   : > { %v30960_v42 = vpop.f32.mrf.mxu1  ;;  %v23936_v11 = vadd.f32 %v23935_v32, %v23859_v24 }
 0xa92   : > { %v24018_v37 = vpop.f32.mrf.mxu0 }
 0xa93   : > { %v24019_v36 = vadd.f32 %v24018_v37, %v23936_v11 }
 0xa94   : > { %v30949_v26 = vpop.f32.mrf.mxu0 }
 0xa95   : > { %v24094_v13 = vadd.f32 %v24093_v3, %v24019_v36 }
 0xa97   : > { %24105 = vrot.lane.b32.xlu0 %v24094_v13, %s31317_s23  ;;  %v24097_v45 = vadd.f32 %v24094_v13, %v36648_v49 }
 0xa99   : > { %v25415_v48 = vmul.f32 -1.442695, %v24097_v45 }
 0xa9b   : > { %31129 = vpow2.f32 %v25415_v48 }
 0xaa8   : > { %v31130_v28 = vpop.eup %31129 }
 0xaa9   : > { %v24101_v41 = vadd.f32 1.0, %v31130_v28 }
 0xaab   : > { %31131 = vrcp.f32 %v24101_v41 }
 0xab8   : > { %v31132_v14 = vpop.eup %31131 }
 0xab9   : > { %v24115_v56 = vsub.f32 1.0, %v31132_v14  ;;  %v24121_v54 = vmul.f32 %v31132_v14, %v36652_v27 }
 0xb09   : > { %v24106_v62 = vpop.permute.xlu0 %24105 }
 0xb0a   : > { %v24108_v6 = vmul.f32 %v31132_v14, %v24106_v62  ;;  %v24642_v14 = vld [vmem:[%s37671_s13] sm:$0xff]  ;;  %v31320_v62 = vmov 1966171168  }
 0xb0c   : > { %24110 = vrot.lane.b32.xlu1 %v24108_v6, %s31317_s23  ;;  %v24624_v6 = vunpack.c.l.s4 %v31320_v62 }
 0xb0e   : > { %v24625_v25 = vunpack.c.0.s8 %v24624_v6 }
 0xb7e   : > { %v24111_v29 = vpop.permute.xlu1 %24110 }
 0xb7f   : > { %v24113_v51 = vadd.f32 %v24111_v29, %v36648_v49  ;;  %v24248_v49 = vand.u32 4294901760, %v24247_v10  ;;  %v24626_v29 = vlaneseq }
 0xb81   : > { %31133 = vtanh.f32 %v24113_v51  ;;  %30975 = vmatpush3.msra.mxu1 %v24248_v49  ;;  %v24679_v51 = vand.u32 4294901760, %v24642_v14  ;;  %v24627_v17 = vshrl.u32 %v24626_v29, 7 }
 0xb82   : > { %30976 = vmatprep.subr.mxu1 %v37336_v50 }
 0xb83   : > { %30977 = vmatpush3.msra.mxu1 %v24255_v40  ;;  %v24756_v53 = vsub.f32 %v24642_v14, %v24679_v51 }
 0xb84   : > { %30978 = vmatprep.subr.mxu1 %v37336_v50 }
 0xb85   : > { %30979 = vmatpush3.msra.mxu1 %v24262_v35 }
 0xb86   : > { %30994 = vmatprep.subr.mxu1 %v37336_v50 }
 0xb8e   : > { %v31134_v60 = vpop.eup %31133 }
 0xb8f   : > { %24117 = vrot.lane.b32.xlu0 %v31134_v60, %s37669_s5 }
 0xc01   : > { %v24118_v30 = vpop.permute.xlu0 %24117 }
 0xc02   : > { %v24120_v16 = vmul.f32 %v24118_v30, %v24115_v56 }
 0xc04   : > { %v24122_v31 = vadd.f32 %v24121_v54, %v24120_v16 }
 0xc06   : > { %24129 = vrot.lane.b32.xlu1 %v24122_v31, %s37669_s5  ;;  %s37256_s5 = scalar_lea.vmem [#allocation6], %s36807_s27 }
 0xc78   : > { %v24130_v18 = vpop.permute.xlu1 %24129 }
 0xc79   : > { %v24131_v5 = vsel %vm22117_vm3, %v24130_v18, 0 }
 0xc7a   : > { %v24202_v2 = vand.u32 4294901760, %v24131_v5 }
 0xc7c   : > { %v24203_v12 = vsub.f32 %v24131_v5, %v24202_v2  ;;  %30981 = vmatmul.mubr.f32.vlgmr.msra.gmra.mxu1 %v24202_v2 }
 0xc7d   : > { %30995 = vmatpush3.msra.mxu1 %v36715_v0  ;;  %31002 = vmatprep.mubr.msk.f32.mxu1 %vm31316_vm1, %v37336_v50 }
 0xc7e   : > { %v24204_v38 = vand.u32 4294901760, %v24203_v12  ;;  %30996 = vmatprep.subr.mxu1 %v37336_v50 }
 0xc7f   : > { %30997 = vmatpush3.msra.mxu1 %v36717_v15 }
 0xc80   : > { %v24205_v27 = vsub.f32 %v24203_v12, %v24204_v38  ;;  %30998 = vmatprep.subr.mxu1 %v37336_v50 }
 0xc81   : > { %30999 = vmatpush3.msra.mxu1 %v36719_v21 }
 0xc82   : > { %v24206_v7 = vand.u32 4294901760, %v24205_v27  ;;  %31000 = vmatprep.subr.mxu1 %v37336_v50 }
 0xc83   : > { %31001 = vmatpush3.msra.mxu1 %v24167_v43 }
 0xc84   : > { %31003 = vmatmul.mubr.f32.vlgmr.msra.gmra.mxu1 %v24204_v38  ;;  %31016 = vmatprep.subr.mxu1 %v37336_v50 }
 0xc85   : > { %30970 = vmatmul.mubr.f32.vlgmr.msra.gmra.mxu0 %v24206_v7  ;;  %31017 = vmatpush3.msra.mxu1 %v36715_v0  ;;  %v24757_v0 = vand.u32 4294901760, %v24756_v53 }
 0xc86   : > { %30984 = vmatpush3.msra.mxu0 %v36722_v61  ;;  %31018 = vmatprep.subr.mxu1 %v37336_v50 }
 0xc87   : > { %30985 = vmatprep.subr.mxu0 %v37336_v50  ;;  %31019 = vmatpush3.msra.mxu1 %v36717_v15  ;;  %v24758_v15 = vsub.f32 %v24756_v53, %v24757_v0 }
 0xc88   : > { %30986 = vmatpush3.msra.mxu0 %v36725_v1  ;;  %31020 = vmatprep.subr.mxu1 %v37336_v50 }
 0xc89   : > { %30987 = vmatprep.subr.mxu0 %v37336_v50  ;;  %31021 = vmatpush3.msra.mxu1 %v36719_v21  ;;  %v24628_v21 = vsub.s32 %v24625_v25, %v24627_v17  ;;  %v24759_v61 = vand.u32 4294901760, %v24758_v15 }
 0xc8a   : > { %30988 = vmatpush3.msra.mxu0 %v36728_v4  ;;  %31022 = vmatprep.subr.mxu1 %v37336_v50 }
 0xc8b   : > { %30989 = vmatprep.subr.mxu0 %v37336_v50  ;;  %30991 = vmatprep.mubr.msk.f32.mxu0 %vm31316_vm1, %v37336_v50 }
 0xc8c   : > { %30990 = vmatpush3.msra.mxu0 %v24259_v44  ;;  %31023 = vmatpush3.msra.mxu1 %v24167_v43 }
 0xc8d   : > { %31024 = vmatprep.mubr.msk.f32.mxu1 %vm31316_vm1, %v37336_v50  ;;  %30992 = vmatmul.mubr.f32.vlgmr.msra.gmra.mxu0 %v24203_v12 }
 0xc8e   : > { %31005 = vmatprep.subr.mxu0 %v37336_v50  ;;  %31025 = vmatmul.mubr.f32.vlgmr.msra.gmra.mxu1 %v24202_v2 }
 0xc8f   : > { %31006 = vmatpush3.msra.mxu0 %v24239_v33  ;;  %31013 = vmatprep.mubr.msk.f32.mxu0 %vm31316_vm1, %v37336_v50 }
 0xc90   : > { %31007 = vmatprep.subr.mxu0 %v37336_v50  ;;  %31032 = vmatprep.subr.mxu1 %v37336_v50 }
 0xc91   : > { %31008 = vmatpush3.msra.mxu0 %v24246_v58  ;;  %31034 = vmatprep.mubr.msk.f32.mxu1 %vm31316_vm1, %v37336_v50 }
 0xc92   : > { %31009 = vmatprep.subr.mxu0 %v37336_v50  ;;  %31033 = vmatpush3.msra.mxu1 %v24759_v61 }
 0xc93   : > { %31010 = vmatpush3.msra.mxu0 %v24253_v57  ;;  %31042 = vmatprep.subr.mxu1 %v37336_v50 }
 0xc94   : > { %31011 = vmatprep.subr.mxu0 %v37336_v50 }
 0xc95   : > { %31012 = vmatpush3.msra.mxu0 %v24260_v63 }
 0xc96   : > { %31014 = vmatmul.mubr.f32.vlgmr.msra.gmra.mxu0 %v24202_v2  ;;  %31027 = vmatprep.subr.mxu0 %v37336_v50 }
 0xc97   : > { %31029 = vmatprep.mubr.msk.f32.mxu0 %vm31316_vm1, %v37336_v50  ;;  %31028 = vmatpush3.msra.mxu0 %v24679_v51 }
 0xc98   : > { %31037 = vmatprep.subr.mxu0 %v37336_v50 }
 0xd3c   : > { %v24299_v55 = vpop.f32.mrf.mxu1 }
 0xd3e   : > { %v30982_v32 = vpop.f32.mrf.mxu1 }
 0xd44   : > { %v24456_v20 = vpop.f32.mrf.mxu1 }
 0xd45   : > { %v24208_v39 = vpop.f32.mrf.mxu0 }
 0xd46   : > { %v31004_v23 = vpop.f32.mrf.mxu1  ;;  %v24209_v3 = vadd.f32 %v24208_v39, %v24127_v19 }
 0xd47   : > { %v30971_v22 = vpop.f32.mrf.mxu0 }
 0xd48   : > { %v24300_v42 = vadd.f32 %v24299_v55, %v24209_v3 }
 0xd4d   : > { %v24379_v34 = vpop.f32.mrf.mxu0 }
 0xd4e   : > { %v24614_v46 = vpop.f32.mrf.mxu1  ;;  %v24380_v37 = vadd.f32 %v24379_v34, %v24300_v42 }
 0xd4f   : > { %v30993_v24 = vpop.f32.mrf.mxu0 }
 0xd50   : > { %v31026_v11 = vpop.f32.mrf.mxu1  ;;  %v24457_v36 = vadd.f32 %v24456_v20, %v24380_v37 }
 0xd56   : > { %v24539_v26 = vpop.f32.mrf.mxu0 }
 0xd57   : > { %v24540_v13 = vadd.f32 %v24539_v26, %v24457_v36 }
 0xd58   : > { %v31015_v45 = vpop.f32.mrf.mxu0 }
 0xd59   : > { %v24615_v48 = vadd.f32 %v24614_v46, %v24540_v13 }
 0xd5b   : > { %v24619_v28 = vmul.f32 0.5, %v24615_v48  ;;  %25099 = vrot.lane.b32.xlu1 %v24615_v48, %s31319_s0  ;;  %25097 = vst.msk [vmem:[%s37256_s5] sm:$0x1] %vm25096_vm5, %v24615_v48  ;;  %s643_s5 = scalar_lea.vmem [#allocation4], %s36807_s27 }
 0xd5c   : > { %25095 = vst.msk [vmem:[%s37255_s6] sm:$0x1] %vm25094_vm6, %v24615_v48  ;;  %s668_s6 = scalar_lea.vmem %s37672_s15, %s31511_s25  ;;  %s37258_s25 = sand.u32 1, %s31452_s2  }
 0xd5d   : > { %v24620_v41 = vmul.f32 1.442695, %v24619_v28  ;;  %v24618_v57 = vld [vmem:[%s668_s6] sm:$0x1]  ;;  %s36860_s10 = scalar_lea.sflag [#allocation5], %s37258_s25  ;;  %s31145_s6 = sshll.u32 %s31321_s12, 4  ;;  %s31146_s6 = int_to_ptr.vmem [resolvable:$false] %s31145_s6 }
 0xd5e   : > { %s31147_s3 = scalar_lea.vmem %s31146_s6, 32 }
 0xd5f   : > { %31135 = vpow2.f32 %v24620_v41 }
 0xd6c   : > { %v31136_v1 = vpop.eup %31135 }
 0xd6d   : > { %v24629_v4 = vrot.slane %v31136_v1, %v24628_v21 }
 0xd6f   : > { %v24636_v33 = vrot.slane %v24629_v4, %v24628_v21 }
 0xd71   : > { %24637 = vrot.lane.b32.xlu0 %v24636_v33, %s31319_s0  ;;  %s36844_s0 = sshll.u32 %s31452_s2, 4 }
 0xd72   : > { %s36850_s23 = scalar_lea.hbm %s37010_s17, %s36844_s0  ;;  %s36856_s9 = scalar_lea.hbm %s37012_s19, %s36844_s0 }
 0xdcd   : > { %v25100_v58 = vpop.permute.xlu1 %25099 }
 0xdce   : > { %25102 = vst.msk [vmem:[%s37257_s28] sm:$0x1] %vm25096_vm5, %v25100_v58  ;;  %s25147_s28 = sshll.u32 %s643_s5, 4  ;;  %s25148_s28 = int_to_ptr.vmem [resolvable:$true] %s25147_s28 }
 0xdcf   : > { %s31141_s11 = scalar_lea.vmem %s25148_s28, 16  ;;  %p31148_p0 = scmp.lt.s32.totalorder %s25148_s28, %s31146_s6 }
 0xdd0   : > { %p31142_p11 = scmp.ne.s32.totalorder %s25148_s28, %s31141_s11  ;;  %p31149_p1 = scmp.lt.s32.totalorder %s31147_s3, %s31141_s11 }
 0xdd2   : > { %p31143_p12 = pnand %p31142_p11, %p31471_p5  ;;  %p31150_p2 = por %p31149_p1, %p31148_p0 }
 0xdd4   : > { %p31144_p13 = pneg %p31143_p12 }
 0xdd6   : > { %p31151_p3 = pnand %p31150_p2, %p31144_p13 }
 0xde3   : > { %v24638_v8 = vpop.permute.xlu0 %24637 }
 0xde4   : > { %v24640_v10 = vmul.f32 %v24638_v8, %v24618_v57 }
 0xde6   : > { %v24641_v52 = vadd.f32 %v24640_v10, %v24615_v48 }
 0xde8   : > { %v24646_v60 = vsel %vm24644_vm7, %v24641_v52, 0  ;;  %25103 = vst.msk [vmem:[%s643_s5] sm:$0x1] %vm25096_vm5, %v24641_v52 }
 0xde9   : > { %v24714_v9 = vand.u32 4294901760, %v24646_v60 }
 0xdeb   : > { %v24715_v49 = vsub.f32 %v24646_v60, %v24714_v9  ;;  %31035 = vmatmul.mubr.f32.vlgmr.msra.gmra.mxu1 %v24714_v9 }
 0xdec   : > { %31043 = vmatpush3.msra.mxu1 %v24679_v51  ;;  %31044 = vmatprep.mubr.msk.f32.mxu1 %vm31316_vm1, %v37336_v50 }
 0xded   : > { %v24716_v40 = vand.u32 4294901760, %v24715_v49  ;;  %31052 = vmatprep.subr.mxu1 %v37336_v50 }
 0xdef   : > { %v24717_v59 = vsub.f32 %v24715_v49, %v24716_v40  ;;  %31045 = vmatmul.mubr.f32.vlgmr.msra.gmra.mxu1 %v24716_v40 }
 0xdf0   : > { %31053 = vmatpush3.msra.mxu1 %v24679_v51  ;;  %31054 = vmatprep.mubr.msk.f32.mxu1 %vm31316_vm1, %v37336_v50 }
 0xdf1   : > { %v24718_v43 = vand.u32 4294901760, %v24717_v59 }
 0xdf3   : > { %31030 = vmatmul.mubr.f32.vlgmr.msra.gmra.mxu0 %v24718_v43  ;;  %31055 = vmatmul.mubr.f32.vlgmr.msra.gmra.mxu1 %v24714_v9 }
 0xdf4   : > { %31038 = vmatpush3.msra.mxu0 %v24756_v53  ;;  %31039 = vmatprep.mubr.msk.f32.mxu0 %vm31316_vm1, %v37336_v50 }
 0xdf5   : > { %31047 = vmatprep.subr.mxu0 %v37336_v50 }
 0xdf7   : > { %31040 = vmatmul.mubr.f32.vlgmr.msra.gmra.mxu0 %v24715_v49 }
 0xdf8   : > { %31048 = vmatpush3.msra.mxu0 %v24757_v0  ;;  %31049 = vmatprep.mubr.msk.f32.mxu0 %vm31316_vm1, %v37336_v50 }
 0xdfb   : > { %31050 = vmatmul.mubr.f32.vlgmr.msra.gmra.mxu0 %v24714_v9 }
 0xdfc   : > { %31154 = shalt.err (!%p31151_p3)
}
 0xdfd   : > { %s31155_s7 = scalar_lea.hbm %s36850_s23, 16  ;;  %s31159_s12 = scalar_lea.hbm %s37010_s17, 32 }
 0xdfe   : > { %p31156_p4 = scmp.ne.s32.totalorder %s36850_s23, %s31155_s7  ;;  %p31160_p9 = scmp.lt.s32.totalorder %s36850_s23, %s37010_s17 }
 0xdff   : > { %p31161_p10 = scmp.lt.s32.totalorder %s31159_s12, %s31155_s7 }
 0xe00   : > { %p31157_p7 = pnand %p31156_p4, %p31471_p5 }
 0xe01   : > { %p31162_p11 = por %p31161_p10, %p31160_p9 }
 0xe02   : > { %p31158_p8 = pneg %p31157_p7 }
 0xe04   : > { %p31163_p12 = pnand %p31162_p11, %p31158_p8 }
 0xe06   : > { %31166 = shalt.err (!%p31163_p12)
}
 0xe07   : > { %31059 = dma.vmem_to_hbm [thread:$0]  (%p31471_p5), %s25148_s28, 16, %s36850_s23, %s36860_s10  }
 0xe08   : > { %s37673_s11 = scalar_lea.vmem [#allocation7], %s36807_s27  ;;  %s37674_s3 = sand.u32 1, %s31452_s2  }
 0xe09   : > { %s25173_s6 = sshll.u32 %s37673_s11, 4  ;;  %s36883_s8 = scalar_lea.sflag [#allocation8], %s37674_s3  ;;  %s25174_s6 = int_to_ptr.vmem [resolvable:$true] %s25173_s6 }
 0xe0a   : > { %s31167_s13 = scalar_lea.vmem %s25174_s6, 16  ;;  %s31322_s25 = smov [#allocation7]  }
 0xe0b   : > { %p31168_p13 = scmp.ne.s32.totalorder %s25174_s6, %s31167_s13  ;;  %s31171_s7 = sshll.u32 %s31322_s25, 4  ;;  %s31172_s7 = int_to_ptr.vmem [resolvable:$false] %s31171_s7 }
 0xe0c   : > { %s31173_s5 = scalar_lea.vmem %s31172_s7, 32  ;;  %p31174_p2 = scmp.lt.s32.totalorder %s25174_s6, %s31172_s7 }
 0xe0d   : > { %p31169_p0 = pnand %p31168_p13, %p31471_p5  ;;  %p31175_p3 = scmp.lt.s32.totalorder %s31173_s5, %s31167_s13 }
 0xe0f   : > { %p31170_p1 = pneg %p31169_p0  ;;  %p31176_p4 = por %p31175_p3, %p31174_p2 }
 0xe11   : > { %p31177_p7 = pnand %p31176_p4, %p31170_p1 }
 0xe13   : > { %31180 = shalt.err (!%p31177_p7)
}
 0xe14   : > { %s31181_s2 = scalar_lea.hbm %s36856_s9, 16  ;;  %s31185_s12 = scalar_lea.hbm %s37012_s19, 32 }
 0xe15   : > { %p31182_p8 = scmp.ne.s32.totalorder %s36856_s9, %s31181_s2  ;;  %p31186_p11 = scmp.lt.s32.totalorder %s36856_s9, %s37012_s19 }
 0xe16   : > { %p31187_p12 = scmp.lt.s32.totalorder %s31185_s12, %s31181_s2 }
 0xe17   : > { %p31183_p9 = pnand %p31182_p8, %p31471_p5 }
 0xe18   : > { %p31188_p13 = por %p31187_p12, %p31186_p11 }
 0xe19   : > { %p31184_p10 = pneg %p31183_p9 }
 0xe1b   : > { %p31189_p0 = pnand %p31188_p13, %p31184_p10 }
 0xe1d   : > { %31192 = shalt.err (!%p31189_p0)
}
 0xe1e   : > { %31061 = dma.vmem_to_hbm [thread:$0]  (%p31471_p5), %s25174_s6, 16, %s36856_s9, %s36883_s8  }
 0xe1f   : > { %s36906_s7 = scalar_lea.hbm %s37011_s18, %s36844_s0  ;;  %s37675_s5 = scalar_lea.vmem [#allocation6], %s36807_s27 }
 0xe20   : > { %s25160_s2 = sshll.u32 %s37675_s5, 4  ;;  %s36914_s12 = scalar_lea.hbm %s37013_s20, %s36844_s0  ;;  %s25161_s2 = int_to_ptr.vmem [resolvable:$true] %s25160_s2 }
 0xe21   : > { %s37676_s11 = scalar_lea.vmem [#allocation9], %s36807_s27  ;;  %s31193_s15 = scalar_lea.vmem %s25161_s2, 16 }
 0xe22   : > { %s25186_s3 = sshll.u32 %s37676_s11, 4  ;;  %p31194_p1 = scmp.ne.s32.totalorder %s25161_s2, %s31193_s15  ;;  %s25187_s3 = int_to_ptr.vmem [resolvable:$true] %s25186_s3 }
 0xe23   : > { %s31323_s9 = smov [#allocation6]  }
 0xe24   : > { %p31195_p2 = pnand %p31194_p1, %p31471_p5  ;;  %s31197_s6 = sshll.u32 %s31323_s9, 4  ;;  %s31198_s6 = int_to_ptr.vmem [resolvable:$false] %s31197_s6 }
 0xe25   : > { %s31199_s13 = scalar_lea.vmem %s31198_s6, 32  ;;  %p31200_p4 = scmp.lt.s32.totalorder %s25161_s2, %s31198_s6 }
 0xe26   : > { %p31196_p3 = pneg %p31195_p2  ;;  %p31201_p7 = scmp.lt.s32.totalorder %s31199_s13, %s31193_s15 }
 0xe28   : > { %p31202_p8 = por %p31201_p7, %p31200_p4 }
 0xe2a   : > { %p31203_p9 = pnand %p31202_p8, %p31196_p3 }
 0xe2c   : > { %31206 = shalt.err (!%p31203_p9)
}
 0xe2d   : > { %s31207_s25 = scalar_lea.hbm %s36906_s7, 16  ;;  %s31211_s23 = scalar_lea.hbm %s37011_s18, 32 }
 0xe2e   : > { %p31208_p10 = scmp.ne.s32.totalorder %s36906_s7, %s31207_s25  ;;  %p31212_p13 = scmp.lt.s32.totalorder %s36906_s7, %s37011_s18 }
 0xe2f   : > { %p31213_p0 = scmp.lt.s32.totalorder %s31211_s23, %s31207_s25 }
 0xe30   : > { %p31209_p11 = pnand %p31208_p10, %p31471_p5 }
 0xe31   : > { %p31214_p1 = por %p31213_p0, %p31212_p13 }
 0xe32   : > { %p31210_p12 = pneg %p31209_p11 }
 0xe34   : > { %p31215_p2 = pnand %p31214_p1, %p31210_p12 }
 0xe36   : > { %31218 = shalt.err (!%p31215_p2)
}
 0xe37   : > { %31060 = dma.vmem_to_hbm [thread:$0]  (%p31471_p5), %s25161_s2, 16, %s36906_s7, %s36860_s10  }
 0xe38   : > { %s31219_s15 = scalar_lea.vmem %s25187_s3, 16  ;;  %s31324_s6 = smov [#allocation9]  }
 0xe39   : > { %p31220_p3 = scmp.ne.s32.totalorder %s25187_s3, %s31219_s15  ;;  %s31223_s13 = sshll.u32 %s31324_s6, 4  ;;  %s31224_s13 = int_to_ptr.vmem [resolvable:$false] %s31223_s13 }
 0xe3a   : > { %s31225_s5 = scalar_lea.vmem %s31224_s13, 32  ;;  %p31226_p8 = scmp.lt.s32.totalorder %s25187_s3, %s31224_s13 }
 0xe3b   : > { %p31221_p4 = pnand %p31220_p3, %p31471_p5  ;;  %p31227_p9 = scmp.lt.s32.totalorder %s31225_s5, %s31219_s15 }
 0xe3d   : > { %p31222_p7 = pneg %p31221_p4  ;;  %p31228_p10 = por %p31227_p9, %p31226_p8 }
 0xe3f   : > { %p31229_p11 = pnand %p31228_p10, %p31222_p7 }
 0xe41   : > { %31232 = shalt.err (!%p31229_p11)
}
 0xe42   : > { %s31233_s10 = scalar_lea.hbm %s36914_s12, 16  ;;  %s31237_s25 = scalar_lea.hbm %s37013_s20, 32 }
 0xe43   : > { %p31234_p12 = scmp.ne.s32.totalorder %s36914_s12, %s31233_s10  ;;  %p31238_p1 = scmp.lt.s32.totalorder %s36914_s12, %s37013_s20 }
 0xe44   : > { %p31239_p2 = scmp.lt.s32.totalorder %s31237_s25, %s31233_s10 }
 0xe45   : > { %p31235_p13 = pnand %p31234_p12, %p31471_p5 }
 0xe46   : > { %p31240_p3 = por %p31239_p2, %p31238_p1 }
 0xe47   : > { %p31236_p0 = pneg %p31235_p13 }
 0xe49   : > { %p31241_p4 = pnand %p31240_p3, %p31236_p0 }
 0xe4b   : > { %31244 = shalt.err (!%p31241_p4)
}
 0xe4c   : > { %31062 = dma.vmem_to_hbm [thread:$0]  (%p31471_p5), %s25187_s3, 16, %s36914_s12, %s36883_s8   ;;  %v24643_v35 = vld [vmem:[%s37007_s14] sm:$0x1] }
 0xe4d   : > { %s637_s8 = scalar_lea.vmem [#allocation2], %s36807_s27  ;;  %s25132_s6 = scalar_lea.hbm %s37009_s16, %s36844_s0 }
 0xe4e   : > { %s25134_s12 = sshll.u32 %s637_s8, 4  ;;  %s25106_s13 = scalar_lea.sflag [#allocation3], %s36807_s27  ;;  %s25135_s12 = int_to_ptr.vmem [resolvable:$true] %s25134_s12 }
 0xe4f   : > { %s31245_s5 = scalar_lea.vmem %s25135_s12, 16  ;;  %s31325_s10 = smov [#allocation2]  }
 0xe50   : > { %p31246_p7 = scmp.ne.s32.totalorder %s25135_s12, %s31245_s5  ;;  %s31249_s7 = sshll.u32 %s31325_s10, 4  ;;  %s31250_s7 = int_to_ptr.vmem [resolvable:$false] %s31249_s7 }
 0xe51   : > { %s31251_s2 = scalar_lea.vmem %s31250_s7, 32  ;;  %p31252_p10 = scmp.lt.s32.totalorder %s25135_s12, %s31250_s7 }
 0xe52   : > { %p31247_p8 = pnand %p31246_p7, %p31471_p5  ;;  %p31253_p11 = scmp.lt.s32.totalorder %s31251_s2, %s31245_s5 }
 0xe54   : > { %p31248_p9 = pneg %p31247_p8  ;;  %p31254_p12 = por %p31253_p11, %p31252_p10 }
 0xe56   : > { %p31255_p13 = pnand %p31254_p12, %p31248_p9 }
 0xeab   : > { %v24796_v50 = vpop.f32.mrf.mxu1 }
 0xead   : > { %v31036_v44 = vpop.f32.mrf.mxu1 }
 0xeaf   : > { %v24944_v63 = vpop.f32.mrf.mxu1 }
 0xeb1   : > { %v31046_v47 = vpop.f32.mrf.mxu1 }
 0xeb3   : > { %v24720_v56 = vpop.f32.mrf.mxu0  ;;  %v25090_v30 = vpop.f32.mrf.mxu1 }
 0xeb4   : > { %v24721_v54 = vadd.f32 %v24720_v56, %v24643_v35 }
 0xeb5   : > { %v31031_v16 = vpop.f32.mrf.mxu0  ;;  %v31056_v31 = vpop.f32.mrf.mxu1 }
 0xeb6   : > { %v24797_v18 = vadd.f32 %v24796_v50, %v24721_v54 }
 0xeb7   : > { %v24870_v5 = vpop.f32.mrf.mxu0 }
 0xeb8   : > { %v24871_v2 = vadd.f32 %v24870_v5, %v24797_v18 }
 0xeb9   : > { %v31041_v12 = vpop.f32.mrf.mxu0 }
 0xeba   : > { %v24945_v38 = vadd.f32 %v24944_v63, %v24871_v2 }
 0xebb   : > { %v25018_v27 = vpop.f32.mrf.mxu0 }
 0xebc   : > { %v25019_v7 = vadd.f32 %v25018_v27, %v24945_v38 }
 0xebd   : > { %v31051_v55 = vpop.f32.mrf.mxu0 }
 0xebe   : > { %v25091_v32 = vadd.f32 %v25090_v30, %v25019_v7 }
 0xec0   : > { %25104 = vst.msk [vmem:[%s637_s8] sm:$0x1] %vm25094_vm6, %v25091_v32 }
 0xec1   : > { %31258 = shalt.err (!%p31255_p13)
}
 0xec2   : > { %s31259_s25 = scalar_lea.hbm %s25132_s6, 16  ;;  %s31263_s28 = scalar_lea.hbm %s37009_s16, 32 }
 0xec3   : > { %p31260_p0 = scmp.ne.s32.totalorder %s25132_s6, %s31259_s25  ;;  %p31264_p3 = scmp.lt.s32.totalorder %s25132_s6, %s37009_s16 }
 0xec4   : > { %p31265_p4 = scmp.lt.s32.totalorder %s31263_s28, %s31259_s25 }
 0xec5   : > { %p31261_p1 = pnand %p31260_p0, %p31471_p5 }
 0xec6   : > { %p31266_p7 = por %p31265_p4, %p31264_p3 }
 0xec7   : > { %p31262_p2 = pneg %p31261_p1 }
 0xec9   : > { %p31267_p8 = pnand %p31266_p7, %p31262_p2 }
 0xecb   : > { %31270 = shalt.err (!%p31267_p8)
}
 0xecc   : > { %31058 = dma.vmem_to_hbm [thread:$0]  (%p31471_p5), %s25135_s12, 16, %s25132_s6, %s25106_s13  }
 0xecd PF: > { %p31084_p9 = scmp.ge.s32.totalorder %s31313_s24, 2  ;;  %s25198_s9 = sand.u32 1, %s31301_s1  }
 0xece   : > { %s25199_s8 = scalar_lea.sflag [#allocation3], %s25198_s9 }
 0xecf   : > { %p31069_p10 = pnand %p31084_p9, %p31475_p6 }
 0xed1   : > { %p31070_p11 = pneg %p31069_p10 }
 0xed3   : > { %31288 = dma.done.wait (%p31070_p11), %s25199_s8, 16  }
 0xed4   : > { %31290 = vsyncadd (%p31070_p11), %s25199_s8, 4294967280  ;;  %s37677_s3 = sadd.s32 4294967294, %s31313_s24  }
 0xed5   : > { %s25206_s15 = sand.u32 1, %s37677_s3  }
 0xed6   : > { %s25207_s5 = scalar_lea.sflag [#allocation5], %s25206_s15 }
 0xed7   : > { %31292 = dma.done.wait (%p31070_p11), %s25207_s5, 32  }
 0xed8   : > { %31294 = vsyncadd (%p31070_p11), %s25207_s5, 4294967264  ;;  %s25223_s4 = scalar_lea.sflag [#allocation8], %s25206_s15 }
 0xed9   : > { %31296 = dma.done.wait (%p31070_p11), %s25223_s4, 32  }
 0xeda   : > { %31298 = vsyncadd (%p31070_p11), %s25223_s4, 4294967264  ;;  %s37678_s24 = sld [smem:[#allocation14_spill]]  ;;  %s37681_s1 = smov %s31305_s22 }
 0xedb   : > { %s37679_s12 = sld [smem:[#allocation13_spill]] }
 0xedc   : > { %s37680_s23 = sld [smem:[#allocation15_spill]] }
 0xee0   : > { %p37_p5 = scmp.ge.s32.totalorder %s37678_s24, 4  }
 0xee1   : > { %s37682_s22 = smov %s37679_s12 }
 0xee2   :  { %39 = sbr.rel (!%p37_p5) target bundleno = 23 (0x17), region = 208 }
 0xee7   :  { %25235 = vsyncpa [#allocation3], 1 }
 0xee8   :  { %25237 = vsyncpa [#allocation3 + $0x1], 1 }
 0xee9   :  { %25238 = vsyncpa [#allocation5], 1 }
 0xeea   :  { %25240 = vsyncpa [#allocation5 + $0x1], 1 }
 0xeeb   :  { %25241 = vsyncpa [#allocation8], 1 }
 0xeec   :  { %25243 = vsyncpa [#allocation8 + $0x1], 1 }

</bundles_post_ra>
